<compile_context>
chip_gen: v5e
topology: v5e:2x2
jax: 0.10.0
libtpu: 0.0.40
codegen_flags: <defaults>
</compile_context>

<pallas_src>
import functools

import jax
import jax.numpy as jnp
from jax.experimental import pallas as pl
from jax.experimental.pallas import tpu as pltpu


def _residual_block_kernel(x_ref, w1_ref, g1_ref, b1_ref,
                           w2_ref, g2_ref, b2_ref,
                           o_ref, xpad_ref, hpad_ref,
                           *, H, W, eps, compute_dtype):
    """One batch element per grid step.

    x_ref   : (1, H, W, Cin)           unpadded input block
    w1_ref  : (9*Cin, Cout)            conv1 weights (HWIO flattened, (dy, dx, ci) order)
    w2_ref  : (9*Cout, Cout)           conv2 weights
    g*/b*   : (1, Cout)                InstanceNorm affine params (f32)
    o_ref   : (1, H, W, Cout)
    xpad_ref: (H+2, W+2, Cin)  f32     padded-input VMEM scratch
    hpad_ref: (H+2, W+2, Cout) f32     padded-hidden VMEM scratch
    """
    Cin = x_ref.shape[-1]
    Cout = o_ref.shape[-1]
    inv_hw = 1.0 / float(H * W)

    def zero_border(ref, C):
        # Zero only the 1-pixel border; the interior is fully overwritten below.
        ref[0:1, :, :] = jnp.zeros((1, W + 2, C), jnp.float32)
        ref[H + 1:H + 2, :, :] = jnp.zeros((1, W + 2, C), jnp.float32)
        ref[1:H + 1, 0:1, :] = jnp.zeros((H, 1, C), jnp.float32)
        ref[1:H + 1, W + 1:W + 2, :] = jnp.zeros((H, 1, C), jnp.float32)

    zero_border(xpad_ref, Cin)
    zero_border(hpad_ref, Cout)

    x = x_ref[0]                                          # (H, W, Cin), aligned read
    xpad_ref[1:H + 1, 1:W + 1, :] = x.astype(jnp.float32)

    def im2col(ap, C):
        # (H+2, W+2, C) -> (H*W, 9*C); column order (dy, dx, ci) matches the
        # HWIO weight reshape done in the wrapper.
        cols = []
        for dy in range(3):
            for dx in range(3):
                cols.append(ap[dy:dy + H, dx:dx + W, :].reshape(H * W, C))
        return jnp.concatenate(cols, axis=-1)

    def instance_norm(acc, g_ref, b_ref):
        # One-pass biased statistics (matches nn.InstanceNorm2d), affine applied after.
        mean = jnp.sum(acc, axis=0, keepdims=True) * inv_hw
        mean_sq = jnp.sum(acc * acc, axis=0, keepdims=True) * inv_hw
        var = jnp.maximum(mean_sq - mean * mean, 0.0)
        return (acc - mean) * jax.lax.rsqrt(var + eps) * g_ref[...] + b_ref[...]

    # ---- conv1: single MXU matmul, K = 9*Cin, bf16 operands / f32 accumulation ----
    patches1 = im2col(xpad_ref[...], Cin).astype(compute_dtype)
    acc1 = jnp.dot(patches1, w1_ref[...], preferred_element_type=jnp.float32)

    # ---- InstanceNorm #1 + affine + ReLU (f32) ----
    h = jnp.maximum(instance_norm(acc1, g1_ref, b1_ref), 0.0)

    hpad_ref[1:H + 1, 1:W + 1, :] = h.reshape(H, W, Cout)

    # ---- conv2: single MXU matmul, K = 9*Cout ----
    patches2 = im2col(hpad_ref[...], Cout).astype(compute_dtype)
    acc2 = jnp.dot(patches2, w2_ref[...], preferred_element_type=jnp.float32)

    # ---- InstanceNorm #2 + affine ----
    h2 = instance_norm(acc2, g2_ref, b2_ref)

    # ---- residual add with the unmodified input block ----
    out = x.reshape(H * W, Cin).astype(jnp.float32) + h2
    o_ref[0] = out.reshape(H, W, Cout).astype(o_ref.dtype)


def residual_block_nhwc(x_nhwc, w1, g1, b1, w2, g2, b2, eps=1e-5,
                        compute_dtype=jnp.bfloat16):
    N, H, W, Cin = x_nhwc.shape
    Cout = w1.shape[-1]
    assert Cin == Cout, "residual add requires dim_in == dim_out"

    # Flatten HWIO weights to (9*C, Cout) in (dy, dx, ci) order and cast for the MXU.
    w1_rs = w1.reshape(9 * Cin, Cout).astype(compute_dtype)
    w2_rs = w2.reshape(9 * Cout, Cout).astype(compute_dtype)
    g1_ = g1.reshape(1, Cout).astype(jnp.float32)
    b1_ = b1.reshape(1, Cout).astype(jnp.float32)
    g2_ = g2.reshape(1, Cout).astype(jnp.float32)
    b2_ = b2.reshape(1, Cout).astype(jnp.float32)

    kern = functools.partial(_residual_block_kernel, H=H, W=W, eps=eps,
                             compute_dtype=compute_dtype)

    return pl.pallas_call(
        kern,
        out_shape=jax.ShapeDtypeStruct((N, H, W, Cout), x_nhwc.dtype),
        grid_spec=pltpu.PrefetchScalarGridSpec(
            num_scalar_prefetch=0,
            grid=(N,),
            in_specs=[
                pl.BlockSpec((1, H, W, Cin), lambda n: (n, 0, 0, 0)),
                pl.BlockSpec((9 * Cin, Cout), lambda n: (0, 0)),
                pl.BlockSpec((1, Cout), lambda n: (0, 0)),
                pl.BlockSpec((1, Cout), lambda n: (0, 0)),
                pl.BlockSpec((9 * Cout, Cout), lambda n: (0, 0)),
                pl.BlockSpec((1, Cout), lambda n: (0, 0)),
                pl.BlockSpec((1, Cout), lambda n: (0, 0)),
            ],
            out_specs=pl.BlockSpec((1, H, W, Cout), lambda n: (n, 0, 0, 0)),
            scratch_shapes=[
                pltpu.VMEM((H + 2, W + 2, Cin), jnp.float32),
                pltpu.VMEM((H + 2, W + 2, Cout), jnp.float32),
            ],
        ),
        compiler_params=pltpu.CompilerParams(
            dimension_semantics=("parallel",)),
    )(x_nhwc, w1_rs, g1_, b1_, w2_rs, g2_, b2_)


def residual_block_nchw(x_nchw, params, eps=1e-5, compute_dtype=jnp.bfloat16):
    """Matches ResidualBlock.forward: x + main(x), x in NCHW (PyTorch convention)."""
    w1, g1, b1, w2, g2, b2 = params
    x_nhwc = jnp.transpose(x_nchw, (0, 2, 3, 1))
    y_nhwc = residual_block_nhwc(x_nhwc, w1, g1, b1, w2, g2, b2, eps=eps,
                                 compute_dtype=compute_dtype)
    return jnp.transpose(y_nhwc, (0, 3, 1, 2))


def _reference_nchw(x_nchw, params, eps=1e-5):
    """Pure-JAX f32 reference of the PyTorch forward (for verification)."""
    w1, g1, b1, w2, g2, b2 = params
    x = jnp.transpose(x_nchw, (0, 2, 3, 1))

    def conv(h, w):
        return jax.lax.conv_general_dilated(
            h, w, window_strides=(1, 1), padding="SAME",
            dimension_numbers=("NHWC", "HWIO", "NHWC"))

    def inorm(h, g, b):
        m = jnp.mean(h, axis=(1, 2), keepdims=True)
        v = jnp.mean((h - m) ** 2, axis=(1, 2), keepdims=True)
        return (h - m) * jax.lax.rsqrt(v + eps) * g + b

    h = jnp.maximum(inorm(conv(x, w1), g1, b1), 0.0)
    h = inorm(conv(h, w2), g2, b2)
    return jnp.transpose(x + h, (0, 3, 1, 2))


def init_params(key, dim_in, dim_out):
    k1, k2, k3, k4, k5, k6 = jax.random.split(key, 6)
    w1 = 0.1 * jax.random.normal(k1, (3, 3, dim_in, dim_out), jnp.float32)   # HWIO
    w2 = 0.1 * jax.random.normal(k2, (3, 3, dim_out, dim_out), jnp.float32)  # HWIO
    g1 = 1.0 + 0.1 * jax.random.normal(k3, (dim_out,), jnp.float32)
    b1 = 0.1 * jax.random.normal(k4, (dim_out,), jnp.float32)
    g2 = 1.0 + 0.1 * jax.random.normal(k5, (dim_out,), jnp.float32)
    b2 = 0.1 * jax.random.normal(k6, (dim_out,), jnp.float32)
    return (w1, g1, b1, w2, g2, b2)


if __name__ == "__main__":
    key = jax.random.PRNGKey(0)
    kx, kp = jax.random.split(key)

    N, C, H, W = 2, 4, 16, 16  # dim_in == dim_out == 4 (required by the residual add)
    x = jax.random.normal(kx, (N, C, H, W), jnp.float32)  # NCHW, like PyTorch
    params = init_params(kp, C, C)

    y_ref = jax.block_until_ready(_reference_nchw(x, params))

    # Exact-semantics path (f32 matmul operands): tight check against the f32 reference.
    y_f32 = jax.block_until_ready(
        residual_block_nchw(x, params, compute_dtype=jnp.float32))
    assert y_f32.shape == (N, C, H, W)
    assert jnp.allclose(y_f32, y_ref, rtol=1e-3, atol=1e-3), (
        f"f32 path: max abs diff {jnp.max(jnp.abs(y_f32 - y_ref))}")

    # Fast path (bf16 MXU operands, f32 accumulation and norm math): loose check.
    y_bf16 = jax.block_until_ready(residual_block_nchw(x, params))
    assert y_bf16.shape == (N, C, H, W)
    assert jnp.allclose(y_bf16, y_ref, rtol=5e-2, atol=1e-1), (
        f"bf16 path: max abs diff {jnp.max(jnp.abs(y_bf16 - y_ref))}")

    print("KERNEL_OK")
</pallas_src>

<mosaic_0001>
module attributes {stable_mosaic.version = 11 : i64} {
  func.func @_residual_block_kernel(%arg0: i32, %arg1: memref<1x16x16x4xf32, #tpu.memory_space<vmem>>, %arg2: memref<36x4xf32, #tpu.memory_space<vmem>>, %arg3: memref<1x4xf32, #tpu.memory_space<vmem>>, %arg4: memref<1x4xf32, #tpu.memory_space<vmem>>, %arg5: memref<36x4xf32, #tpu.memory_space<vmem>>, %arg6: memref<1x4xf32, #tpu.memory_space<vmem>>, %arg7: memref<1x4xf32, #tpu.memory_space<vmem>>, %arg8: memref<1x16x16x4xf32, #tpu.memory_space<vmem>>, %arg9: memref<18x18x4xf32, #tpu.memory_space<vmem>>, %arg10: memref<18x18x4xf32, #tpu.memory_space<vmem>>) attributes {dimension_semantics = [#tpu.dimension_semantics<parallel>], iteration_bounds = array<i64: 2>, scalar_prefetch = 0 : i64, scratch_operands = 2 : i64, tpu.core_type = #tpu.core_type<tc>, window_params = [{transform_indices = @transform_0, window_bounds = array<i64: 1, 16, 16, 4>}, {pipeline_mode = #tpu.pipeline_mode<synchronous>, transform_indices = @transform_1, window_bounds = array<i64: 36, 4>}, {pipeline_mode = #tpu.pipeline_mode<synchronous>, transform_indices = @transform_2, window_bounds = array<i64: 1, 4>}, {pipeline_mode = #tpu.pipeline_mode<synchronous>, transform_indices = @transform_3, window_bounds = array<i64: 1, 4>}, {pipeline_mode = #tpu.pipeline_mode<synchronous>, transform_indices = @transform_4, window_bounds = array<i64: 36, 4>}, {pipeline_mode = #tpu.pipeline_mode<synchronous>, transform_indices = @transform_5, window_bounds = array<i64: 1, 4>}, {pipeline_mode = #tpu.pipeline_mode<synchronous>, transform_indices = @transform_6, window_bounds = array<i64: 1, 4>}, {transform_indices = @transform_7, window_bounds = array<i64: 1, 16, 16, 4>}]} {
    %cst = arith.constant 0.000000e+00 : f32
    %0 = vector.broadcast %cst : f32 to vector<1x18x4xf32>
    %c0 = arith.constant 0 : index
    %c0_0 = arith.constant 0 : index
    %c0_1 = arith.constant 0 : index
    %1 = vector.load %arg9[%c0, %c0_0, %c0_1] : memref<18x18x4xf32, #tpu.memory_space<vmem>>, vector<1x18x4xf32>
    tpu.vector_store %arg9[%c0, %c0_0, %c0_1], %0 {strides = array<i32>} : memref<18x18x4xf32, #tpu.memory_space<vmem>>, vector<1x18x4xf32>,
    %cst_2 = arith.constant 0.000000e+00 : f32
    %2 = vector.broadcast %cst_2 : f32 to vector<1x18x4xf32>
    %c17 = arith.constant 17 : index
    %c0_3 = arith.constant 0 : index
    %c0_4 = arith.constant 0 : index
    %3 = vector.load %arg9[%c17, %c0_3, %c0_4] : memref<18x18x4xf32, #tpu.memory_space<vmem>>, vector<1x18x4xf32>
    tpu.vector_store %arg9[%c17, %c0_3, %c0_4], %2 {strides = array<i32>} : memref<18x18x4xf32, #tpu.memory_space<vmem>>, vector<1x18x4xf32>,
    %cst_5 = arith.constant 0.000000e+00 : f32
    %4 = vector.broadcast %cst_5 : f32 to vector<16x1x4xf32>
    %c1 = arith.constant 1 : index
    %c0_6 = arith.constant 0 : index
    %c0_7 = arith.constant 0 : index
    %5 = vector.load %arg9[%c1, %c0_6, %c0_7] : memref<18x18x4xf32, #tpu.memory_space<vmem>>, vector<16x1x4xf32>
    tpu.vector_store %arg9[%c1, %c0_6, %c0_7], %4 {strides = array<i32>} : memref<18x18x4xf32, #tpu.memory_space<vmem>>, vector<16x1x4xf32>,
    %cst_8 = arith.constant 0.000000e+00 : f32
    %6 = vector.broadcast %cst_8 : f32 to vector<16x1x4xf32>
    %c1_9 = arith.constant 1 : index
    %c17_10 = arith.constant 17 : index
    %c0_11 = arith.constant 0 : index
    %7 = vector.load %arg9[%c1_9, %c17_10, %c0_11] : memref<18x18x4xf32, #tpu.memory_space<vmem>>, vector<16x1x4xf32>
    tpu.vector_store %arg9[%c1_9, %c17_10, %c0_11], %6 {strides = array<i32>} : memref<18x18x4xf32, #tpu.memory_space<vmem>>, vector<16x1x4xf32>,
    %cst_12 = arith.constant 0.000000e+00 : f32
    %8 = vector.broadcast %cst_12 : f32 to vector<1x18x4xf32>
    %c0_13 = arith.constant 0 : index
    %c0_14 = arith.constant 0 : index
    %c0_15 = arith.constant 0 : index
    %9 = vector.load %arg10[%c0_13, %c0_14, %c0_15] : memref<18x18x4xf32, #tpu.memory_space<vmem>>, vector<1x18x4xf32>
    tpu.vector_store %arg10[%c0_13, %c0_14, %c0_15], %8 {strides = array<i32>} : memref<18x18x4xf32, #tpu.memory_space<vmem>>, vector<1x18x4xf32>,
    %cst_16 = arith.constant 0.000000e+00 : f32
    %10 = vector.broadcast %cst_16 : f32 to vector<1x18x4xf32>
    %c17_17 = arith.constant 17 : index
    %c0_18 = arith.constant 0 : index
    %c0_19 = arith.constant 0 : index
    %11 = vector.load %arg10[%c17_17, %c0_18, %c0_19] : memref<18x18x4xf32, #tpu.memory_space<vmem>>, vector<1x18x4xf32>
    tpu.vector_store %arg10[%c17_17, %c0_18, %c0_19], %10 {strides = array<i32>} : memref<18x18x4xf32, #tpu.memory_space<vmem>>, vector<1x18x4xf32>,
    %cst_20 = arith.constant 0.000000e+00 : f32
    %12 = vector.broadcast %cst_20 : f32 to vector<16x1x4xf32>
    %c1_21 = arith.constant 1 : index
    %c0_22 = arith.constant 0 : index
    %c0_23 = arith.constant 0 : index
    %13 = vector.load %arg10[%c1_21, %c0_22, %c0_23] : memref<18x18x4xf32, #tpu.memory_space<vmem>>, vector<16x1x4xf32>
    tpu.vector_store %arg10[%c1_21, %c0_22, %c0_23], %12 {strides = array<i32>} : memref<18x18x4xf32, #tpu.memory_space<vmem>>, vector<16x1x4xf32>,
    %cst_24 = arith.constant 0.000000e+00 : f32
    %14 = vector.broadcast %cst_24 : f32 to vector<16x1x4xf32>
    %c1_25 = arith.constant 1 : index
    %c17_26 = arith.constant 17 : index
    %c0_27 = arith.constant 0 : index
    %15 = vector.load %arg10[%c1_25, %c17_26, %c0_27] : memref<18x18x4xf32, #tpu.memory_space<vmem>>, vector<16x1x4xf32>
    tpu.vector_store %arg10[%c1_25, %c17_26, %c0_27], %14 {strides = array<i32>} : memref<18x18x4xf32, #tpu.memory_space<vmem>>, vector<16x1x4xf32>,
    %c0_28 = arith.constant 0 : index
    %c0_29 = arith.constant 0 : index
    %c0_30 = arith.constant 0 : index
    %c0_31 = arith.constant 0 : index
    %16 = vector.load %arg1[%c0_28, %c0_29, %c0_30, %c0_31] : memref<1x16x16x4xf32, #tpu.memory_space<vmem>>, vector<1x16x16x4xf32>
    %17 = vector.shape_cast %16 : vector<1x16x16x4xf32> to vector<16x16x4xf32>
    %c1_32 = arith.constant 1 : index
    %c1_33 = arith.constant 1 : index
    %c0_34 = arith.constant 0 : index
    %18 = vector.load %arg9[%c1_32, %c1_33, %c0_34] : memref<18x18x4xf32, #tpu.memory_space<vmem>>, vector<16x16x4xf32>
    tpu.vector_store %arg9[%c1_32, %c1_33, %c0_34], %17 {strides = array<i32>} : memref<18x18x4xf32, #tpu.memory_space<vmem>>, vector<16x16x4xf32>,
    %c0_35 = arith.constant 0 : index
    %c0_36 = arith.constant 0 : index
    %c0_37 = arith.constant 0 : index
    %19 = vector.load %arg9[%c0_35, %c0_36, %c0_37] : memref<18x18x4xf32, #tpu.memory_space<vmem>>, vector<18x18x4xf32>
    %20 = vector.extract_strided_slice %19 {offsets = [0, 0, 0], sizes = [16, 16, 4], strides = [1, 1, 1]} : vector<18x18x4xf32> to vector<16x16x4xf32>
    %21 = vector.shape_cast %20 : vector<16x16x4xf32> to vector<256x4xf32>
    %22 = vector.extract_strided_slice %19 {offsets = [0, 1, 0], sizes = [16, 16, 4], strides = [1, 1, 1]} : vector<18x18x4xf32> to vector<16x16x4xf32>
    %23 = vector.shape_cast %22 : vector<16x16x4xf32> to vector<256x4xf32>
    %24 = vector.extract_strided_slice %19 {offsets = [0, 2, 0], sizes = [16, 16, 4], strides = [1, 1, 1]} : vector<18x18x4xf32> to vector<16x16x4xf32>
    %25 = vector.shape_cast %24 : vector<16x16x4xf32> to vector<256x4xf32>
    %26 = vector.extract_strided_slice %19 {offsets = [1, 0, 0], sizes = [16, 16, 4], strides = [1, 1, 1]} : vector<18x18x4xf32> to vector<16x16x4xf32>
    %27 = vector.shape_cast %26 : vector<16x16x4xf32> to vector<256x4xf32>
    %28 = vector.extract_strided_slice %19 {offsets = [1, 1, 0], sizes = [16, 16, 4], strides = [1, 1, 1]} : vector<18x18x4xf32> to vector<16x16x4xf32>
    %29 = vector.shape_cast %28 : vector<16x16x4xf32> to vector<256x4xf32>
    %30 = vector.extract_strided_slice %19 {offsets = [1, 2, 0], sizes = [16, 16, 4], strides = [1, 1, 1]} : vector<18x18x4xf32> to vector<16x16x4xf32>
    %31 = vector.shape_cast %30 : vector<16x16x4xf32> to vector<256x4xf32>
    %32 = vector.extract_strided_slice %19 {offsets = [2, 0, 0], sizes = [16, 16, 4], strides = [1, 1, 1]} : vector<18x18x4xf32> to vector<16x16x4xf32>
    %33 = vector.shape_cast %32 : vector<16x16x4xf32> to vector<256x4xf32>
    %34 = vector.extract_strided_slice %19 {offsets = [2, 1, 0], sizes = [16, 16, 4], strides = [1, 1, 1]} : vector<18x18x4xf32> to vector<16x16x4xf32>
    %35 = vector.shape_cast %34 : vector<16x16x4xf32> to vector<256x4xf32>
    %36 = vector.extract_strided_slice %19 {offsets = [2, 2, 0], sizes = [16, 16, 4], strides = [1, 1, 1]} : vector<18x18x4xf32> to vector<16x16x4xf32>
    %37 = vector.shape_cast %36 : vector<16x16x4xf32> to vector<256x4xf32>
    %38 = tpu.concatenate %21, %23, %25, %27, %29, %31, %33, %35, %37 in 1 : vector<256x4xf32>, vector<256x4xf32>, vector<256x4xf32>, vector<256x4xf32>, vector<256x4xf32>, vector<256x4xf32>, vector<256x4xf32>, vector<256x4xf32>, vector<256x4xf32> -> vector<256x36xf32>
    %c0_38 = arith.constant 0 : index
    %c0_39 = arith.constant 0 : index
    %39 = vector.load %arg2[%c0_38, %c0_39] : memref<36x4xf32, #tpu.memory_space<vmem>>, vector<36x4xf32>
    %cst_40 = arith.constant dense<0.000000e+00> : vector<256x4xf32>
    %40 = tpu.matmul %38, %39, %cst_40 {dimension_numbers = #tpu.dot_dimension_numbers<[1], [0], [0], [1], [0, 0, 1, 1], [], []>} : vector<256x36xf32>, vector<36x4xf32>, vector<256x4xf32> -> vector<256x4xf32>
    %cst_41 = arith.constant dense<0.000000e+00> : vector<4xf32>
    %41 = vector.multi_reduction <add>, %40, %cst_41 [0] : vector<256x4xf32> to vector<4xf32>
    %42 = vector.shape_cast %41 : vector<4xf32> to vector<1x4xf32>
    %cst_42 = arith.constant 3.906250e-03 : f32
    %43 = vector.broadcast %cst_42 : f32 to vector<1x4xf32>
    %44 = arith.mulf %42, %43 : vector<1x4xf32>
    %45 = arith.mulf %40, %40 : vector<256x4xf32>
    %cst_43 = arith.constant dense<0.000000e+00> : vector<4xf32>
    %46 = vector.multi_reduction <add>, %45, %cst_43 [0] : vector<256x4xf32> to vector<4xf32>
    %47 = vector.shape_cast %46 : vector<4xf32> to vector<1x4xf32>
    %cst_44 = arith.constant 3.906250e-03 : f32
    %48 = vector.broadcast %cst_44 : f32 to vector<1x4xf32>
    %49 = arith.mulf %47, %48 : vector<1x4xf32>
    %50 = arith.mulf %44, %44 : vector<1x4xf32>
    %51 = arith.subf %49, %50 : vector<1x4xf32>
    %cst_45 = arith.constant 0.000000e+00 : f32
    %52 = vector.broadcast %cst_45 : f32 to vector<1x4xf32>
    %53 = arith.maximumf %51, %52 : vector<1x4xf32>
    %54 = vector.broadcast %44 : vector<1x4xf32> to vector<256x4xf32>
    %55 = arith.subf %40, %54 : vector<256x4xf32>
    %cst_46 = arith.constant 9.99999974E-6 : f32
    %56 = vector.broadcast %cst_46 : f32 to vector<1x4xf32>
    %57 = arith.addf %53, %56 : vector<1x4xf32>
    %58 = math.rsqrt %57 : vector<1x4xf32>
    %59 = vector.broadcast %58 : vector<1x4xf32> to vector<256x4xf32>
    %60 = arith.mulf %55, %59 : vector<256x4xf32>
    %c0_47 = arith.constant 0 : index
    %c0_48 = arith.constant 0 : index
    %61 = vector.load %arg3[%c0_47, %c0_48] : memref<1x4xf32, #tpu.memory_space<vmem>>, vector<1x4xf32>
    %62 = vector.broadcast %61 : vector<1x4xf32> to vector<256x4xf32>
    %63 = arith.mulf %60, %62 : vector<256x4xf32>
    %c0_49 = arith.constant 0 : index
    %c0_50 = arith.constant 0 : index
    %64 = vector.load %arg4[%c0_49, %c0_50] : memref<1x4xf32, #tpu.memory_space<vmem>>, vector<1x4xf32>
    %65 = vector.broadcast %64 : vector<1x4xf32> to vector<256x4xf32>
    %66 = arith.addf %63, %65 : vector<256x4xf32>
    %cst_51 = arith.constant 0.000000e+00 : f32
    %67 = vector.broadcast %cst_51 : f32 to vector<256x4xf32>
    %68 = arith.maximumf %66, %67 : vector<256x4xf32>
    %69 = vector.shape_cast %68 : vector<256x4xf32> to vector<16x16x4xf32>
    %c1_52 = arith.constant 1 : index
    %c1_53 = arith.constant 1 : index
    %c0_54 = arith.constant 0 : index
    %70 = vector.load %arg10[%c1_52, %c1_53, %c0_54] : memref<18x18x4xf32, #tpu.memory_space<vmem>>, vector<16x16x4xf32>
    tpu.vector_store %arg10[%c1_52, %c1_53, %c0_54], %69 {strides = array<i32>} : memref<18x18x4xf32, #tpu.memory_space<vmem>>, vector<16x16x4xf32>,
    %c0_55 = arith.constant 0 : index
    %c0_56 = arith.constant 0 : index
    %c0_57 = arith.constant 0 : index
    %71 = vector.load %arg10[%c0_55, %c0_56, %c0_57] : memref<18x18x4xf32, #tpu.memory_space<vmem>>, vector<18x18x4xf32>
    %72 = vector.extract_strided_slice %71 {offsets = [0, 0, 0], sizes = [16, 16, 4], strides = [1, 1, 1]} : vector<18x18x4xf32> to vector<16x16x4xf32>
    %73 = vector.shape_cast %72 : vector<16x16x4xf32> to vector<256x4xf32>
    %74 = vector.extract_strided_slice %71 {offsets = [0, 1, 0], sizes = [16, 16, 4], strides = [1, 1, 1]} : vector<18x18x4xf32> to vector<16x16x4xf32>
    %75 = vector.shape_cast %74 : vector<16x16x4xf32> to vector<256x4xf32>
    %76 = vector.extract_strided_slice %71 {offsets = [0, 2, 0], sizes = [16, 16, 4], strides = [1, 1, 1]} : vector<18x18x4xf32> to vector<16x16x4xf32>
    %77 = vector.shape_cast %76 : vector<16x16x4xf32> to vector<256x4xf32>
    %78 = vector.extract_strided_slice %71 {offsets = [1, 0, 0], sizes = [16, 16, 4], strides = [1, 1, 1]} : vector<18x18x4xf32> to vector<16x16x4xf32>
    %79 = vector.shape_cast %78 : vector<16x16x4xf32> to vector<256x4xf32>
    %80 = vector.extract_strided_slice %71 {offsets = [1, 1, 0], sizes = [16, 16, 4], strides = [1, 1, 1]} : vector<18x18x4xf32> to vector<16x16x4xf32>
    %81 = vector.shape_cast %80 : vector<16x16x4xf32> to vector<256x4xf32>
    %82 = vector.extract_strided_slice %71 {offsets = [1, 2, 0], sizes = [16, 16, 4], strides = [1, 1, 1]} : vector<18x18x4xf32> to vector<16x16x4xf32>
    %83 = vector.shape_cast %82 : vector<16x16x4xf32> to vector<256x4xf32>
    %84 = vector.extract_strided_slice %71 {offsets = [2, 0, 0], sizes = [16, 16, 4], strides = [1, 1, 1]} : vector<18x18x4xf32> to vector<16x16x4xf32>
    %85 = vector.shape_cast %84 : vector<16x16x4xf32> to vector<256x4xf32>
    %86 = vector.extract_strided_slice %71 {offsets = [2, 1, 0], sizes = [16, 16, 4], strides = [1, 1, 1]} : vector<18x18x4xf32> to vector<16x16x4xf32>
    %87 = vector.shape_cast %86 : vector<16x16x4xf32> to vector<256x4xf32>
    %88 = vector.extract_strided_slice %71 {offsets = [2, 2, 0], sizes = [16, 16, 4], strides = [1, 1, 1]} : vector<18x18x4xf32> to vector<16x16x4xf32>
    %89 = vector.shape_cast %88 : vector<16x16x4xf32> to vector<256x4xf32>
    %90 = tpu.concatenate %73, %75, %77, %79, %81, %83, %85, %87, %89 in 1 : vector<256x4xf32>, vector<256x4xf32>, vector<256x4xf32>, vector<256x4xf32>, vector<256x4xf32>, vector<256x4xf32>, vector<256x4xf32>, vector<256x4xf32>, vector<256x4xf32> -> vector<256x36xf32>
    %c0_58 = arith.constant 0 : index
    %c0_59 = arith.constant 0 : index
    %91 = vector.load %arg5[%c0_58, %c0_59] : memref<36x4xf32, #tpu.memory_space<vmem>>, vector<36x4xf32>
    %cst_60 = arith.constant dense<0.000000e+00> : vector<256x4xf32>
    %92 = tpu.matmul %90, %91, %cst_60 {dimension_numbers = #tpu.dot_dimension_numbers<[1], [0], [0], [1], [0, 0, 1, 1], [], []>} : vector<256x36xf32>, vector<36x4xf32>, vector<256x4xf32> -> vector<256x4xf32>
    %cst_61 = arith.constant dense<0.000000e+00> : vector<4xf32>
    %93 = vector.multi_reduction <add>, %92, %cst_61 [0] : vector<256x4xf32> to vector<4xf32>
    %94 = vector.shape_cast %93 : vector<4xf32> to vector<1x4xf32>
    %cst_62 = arith.constant 3.906250e-03 : f32
    %95 = vector.broadcast %cst_62 : f32 to vector<1x4xf32>
    %96 = arith.mulf %94, %95 : vector<1x4xf32>
    %97 = arith.mulf %92, %92 : vector<256x4xf32>
    %cst_63 = arith.constant dense<0.000000e+00> : vector<4xf32>
    %98 = vector.multi_reduction <add>, %97, %cst_63 [0] : vector<256x4xf32> to vector<4xf32>
    %99 = vector.shape_cast %98 : vector<4xf32> to vector<1x4xf32>
    %cst_64 = arith.constant 3.906250e-03 : f32
    %100 = vector.broadcast %cst_64 : f32 to vector<1x4xf32>
    %101 = arith.mulf %99, %100 : vector<1x4xf32>
    %102 = arith.mulf %96, %96 : vector<1x4xf32>
    %103 = arith.subf %101, %102 : vector<1x4xf32>
    %cst_65 = arith.constant 0.000000e+00 : f32
    %104 = vector.broadcast %cst_65 : f32 to vector<1x4xf32>
    %105 = arith.maximumf %103, %104 : vector<1x4xf32>
    %106 = vector.broadcast %96 : vector<1x4xf32> to vector<256x4xf32>
    %107 = arith.subf %92, %106 : vector<256x4xf32>
    %cst_66 = arith.constant 9.99999974E-6 : f32
    %108 = vector.broadcast %cst_66 : f32 to vector<1x4xf32>
    %109 = arith.addf %105, %108 : vector<1x4xf32>
    %110 = math.rsqrt %109 : vector<1x4xf32>
    %111 = vector.broadcast %110 : vector<1x4xf32> to vector<256x4xf32>
    %112 = arith.mulf %107, %111 : vector<256x4xf32>
    %c0_67 = arith.constant 0 : index
    %c0_68 = arith.constant 0 : index
    %113 = vector.load %arg6[%c0_67, %c0_68] : memref<1x4xf32, #tpu.memory_space<vmem>>, vector<1x4xf32>
    %114 = vector.broadcast %113 : vector<1x4xf32> to vector<256x4xf32>
    %115 = arith.mulf %112, %114 : vector<256x4xf32>
    %c0_69 = arith.constant 0 : index
    %c0_70 = arith.constant 0 : index
    %116 = vector.load %arg7[%c0_69, %c0_70] : memref<1x4xf32, #tpu.memory_space<vmem>>, vector<1x4xf32>
    %117 = vector.broadcast %116 : vector<1x4xf32> to vector<256x4xf32>
    %118 = arith.addf %115, %117 : vector<256x4xf32>
    %119 = vector.shape_cast %17 : vector<16x16x4xf32> to vector<256x4xf32>
    %120 = arith.addf %119, %118 : vector<256x4xf32>
    %121 = vector.shape_cast %120 : vector<256x4xf32> to vector<16x16x4xf32>
    %c0_71 = arith.constant 0 : index
    %c0_72 = arith.constant 0 : index
    %c0_73 = arith.constant 0 : index
    %c0_74 = arith.constant 0 : index
    %122 = vector.load %arg8[%c0_71, %c0_72, %c0_73, %c0_74] : memref<1x16x16x4xf32, #tpu.memory_space<vmem>>, vector<1x16x16x4xf32>
    %123 = vector.shape_cast %122 : vector<1x16x16x4xf32> to vector<16x16x4xf32>
    %124 = vector.shape_cast %121 : vector<16x16x4xf32> to vector<1x16x16x4xf32>
    tpu.vector_store %arg8[%c0_71, %c0_72, %c0_73, %c0_74], %124 {strides = array<i32>} : memref<1x16x16x4xf32, #tpu.memory_space<vmem>>, vector<1x16x16x4xf32>,
    return
  }
  func.func @transform_0(%arg0: i32) -> (i32, i32, i32, i32) {
    %c0_i32 = arith.constant 0 : i32
    %c0_i32_0 = arith.constant 0 : i32
    %c0_i32_1 = arith.constant 0 : i32
    %c0_i32_2 = arith.constant 0 : i32
    return %arg0, %c0_i32, %c0_i32_0, %c0_i32_1 : i32, i32, i32, i32
  }
  func.func @transform_1(%arg0: i32) -> (i32, i32) {
    %c0_i32 = arith.constant 0 : i32
    %c0_i32_0 = arith.constant 0 : i32
    %c0_i32_1 = arith.constant 0 : i32
    return %c0_i32, %c0_i32_0 : i32, i32
  }
  func.func @transform_2(%arg0: i32) -> (i32, i32) {
    %c0_i32 = arith.constant 0 : i32
    %c0_i32_0 = arith.constant 0 : i32
    %c0_i32_1 = arith.constant 0 : i32
    return %c0_i32, %c0_i32_0 : i32, i32
  }
  func.func @transform_3(%arg0: i32) -> (i32, i32) {
    %c0_i32 = arith.constant 0 : i32
    %c0_i32_0 = arith.constant 0 : i32
    %c0_i32_1 = arith.constant 0 : i32
    return %c0_i32, %c0_i32_0 : i32, i32
  }
  func.func @transform_4(%arg0: i32) -> (i32, i32) {
    %c0_i32 = arith.constant 0 : i32
    %c0_i32_0 = arith.constant 0 : i32
    %c0_i32_1 = arith.constant 0 : i32
    return %c0_i32, %c0_i32_0 : i32, i32
  }
  func.func @transform_5(%arg0: i32) -> (i32, i32) {
    %c0_i32 = arith.constant 0 : i32
    %c0_i32_0 = arith.constant 0 : i32
    %c0_i32_1 = arith.constant 0 : i32
    return %c0_i32, %c0_i32_0 : i32, i32
  }
  func.func @transform_6(%arg0: i32) -> (i32, i32) {
    %c0_i32 = arith.constant 0 : i32
    %c0_i32_0 = arith.constant 0 : i32
    %c0_i32_1 = arith.constant 0 : i32
    return %c0_i32, %c0_i32_0 : i32, i32
  }
  func.func @transform_7(%arg0: i32) -> (i32, i32, i32, i32) {
    %c0_i32 = arith.constant 0 : i32
    %c0_i32_0 = arith.constant 0 : i32
    %c0_i32_1 = arith.constant 0 : i32
    %c0_i32_2 = arith.constant 0 : i32
    return %arg0, %c0_i32, %c0_i32_0, %c0_i32_1 : i32, i32, i32, i32
  }
}

</mosaic_0001>

<bundles_post_ra>
// kernel: tpu_custom_call.1
= control target key start
LH: loop header
LB: loop body
LE: loop exit
PB: predicated region body
PF: predicated region fallthrough
CT: control target
= control target key end

     0   :  { %s4557_s24 = smov 0   ;;  %s9538_s0 = inlined_call_operand.vmem [shape: f32[2,16,16,4], index: 0, kind: input, shape index: {}]   ;;  %s9539_s1 = inlined_call_operand.vmem [shape: f32[36,4], index: 1, kind: input, shape index: {}]   ;;  %s9540_s2 = inlined_call_operand.vmem [shape: f32[1,4], index: 2, kind: input, shape index: {}]   ;;  %s9541_s3 = inlined_call_operand.vmem [shape: f32[1,4], index: 3, kind: input, shape index: {}]   ;;  %s9542_s4 = inlined_call_operand.vmem [shape: f32[36,4], index: 4, kind: input, shape index: {}]   ;;  %s9543_s5 = inlined_call_operand.vmem [shape: f32[1,4], index: 5, kind: input, shape index: {}]   ;;  %s9544_s6 = inlined_call_operand.vmem [shape: f32[1,4], index: 6, kind: input, shape index: {}]   ;;  %s9545_s7 = inlined_call_operand.vmem [shape: f32[2,16,16,4], index: 7, kind: output, shape index: {}]  }
   0x1 LB: > { %s4322_s25 = sadd.s32 4294967295, %s4506_s24   ;;  %p4326_p0 = scmp.ge.s32.totalorder %s4506_s24, 1  ;;  %s4506_s24 = sphi %s4557_s24, %s17_s24  }
   0x2   : > { %p237_p1 = scmp.lt.s32.totalorder %s4506_s24, 3 }
   0x4   : > { %p238_p2 = pnand %p4326_p0, %p237_p1 }
   0x6   : > { %241 = sbr.rel (%p238_p2) target bundleno = 2194 (0x892), region = 48 }
   0xb   : > { %vm279_vm0 = vcmask 31744   ;;  %p269_p3 = scmp.lt.s32.totalorder %s4322_s25, 1  ;;  %v4508_v0 = vmov 0.0   ;;  %vm289_vm1 = vcmask 24576   ;;  %vm528_vm2 = vcmask 1046528   ;;  %s4509_s30 = smov 4  }
   0xc   : > { %280 = vst.msk [vmem:[#allocation2] sm:$0xff] %vm279_vm0, %v4508_v0  ;;  %vm282_vm3 = vcmask 25600   ;;  %vm609_vm4 = vcmask 1045504   ;;  %s4510_s8 = smov 8   ;;  %s4511_s9 = smov 12   ;;  %vm1849_vm5 = vcmask 1043456  }
   0xd   : > { %281 = vst.msk [vmem:[#allocation2 + $0x8] sm:$0xff] %vm279_vm0, %v4508_v0  ;;  %s10577_s25 = smov (!%p269_p3, %s4322_s25), 1  ;;  %s4512_s10 = smov 16   ;;  %vm1516_vm6 = vcmask 64512   ;;  %vm1549_vm7 = vcmask 97280   ;;  %vm1615_vm8 = vcmask 162816  }
   0xe   : > { %285 = vst.msk [vmem:[#allocation2 + $0x198] sm:$0xff] %vm279_vm0, %v4508_v0  ;;  %s4399_s26 = sshll.u32 %s10577_s25, 8  ;;  %s4513_s11 = smov 20   ;;  %vm1582_vm9 = vcmask 130048   ;;  %vm1648_vm10 = vcmask 195584   ;;  %vm1714_vm11 = vcmask 261120  }
   0xf   : > { %286 = vst.msk [vmem:[#allocation2 + $0x1a0] sm:$0xff] %vm279_vm0, %v4508_v0  ;;  %s4583_s29 = scalar_lea.vmem %s9538_s0, %s4399_s26  ;;  %s4514_s12 = smov 24   ;;  %vm1681_vm12 = vcmask 228352   ;;  %vm1752_vm13 = vcmask 293888  }
  0x10   : > { %322 = vst.msk [vmem:[#allocation3] sm:$0xff] %vm279_vm0, %v4508_v0  ;;  %v4590_v1 = vld [vmem:[%s4583_s29 + $0x10] sm:$0xff]  ;;  %v4597_v3 = vld [vmem:[%s4583_s29 + $0x18] sm:$0xff]  ;;  %v4755_v16 = vld [vmem:[%s4583_s29] sm:$0xff]  ;;  %s4515_s13 = smov 28   ;;  %s4516_s14 = smov 32  }
  0x11   : > { %323 = vst.msk [vmem:[#allocation3 + $0x8] sm:$0xff] %vm279_vm0, %v4508_v0  ;;  %v4760_v17 = vld [vmem:[%s4583_s29 + $0x8] sm:$0xff]  ;;  %v4771_v18 = vld [vmem:[%s4583_s29 + $0x20] sm:$0xff]  ;;  %v4779_v20 = vld [vmem:[%s4583_s29 + $0x30] sm:$0xff]  ;;  %s9327_s28 = scalar_lea.vmem %s9545_s7, %s4399_s26 }
  0x12   : > { %326 = vst.msk [vmem:[#allocation3 + $0x198] sm:$0xff] %vm279_vm0, %v4508_v0  ;;  %v4775_v19 = vld [vmem:[%s4583_s29 + $0x28] sm:$0xff]  ;;  %v4784_v21 = vld [vmem:[%s4583_s29 + $0x38] sm:$0xff]  ;;  %v4791_v23 = vld [vmem:[%s4583_s29 + $0x40] sm:$0xff] }
  0x13   : > { %9752 = vst [vmem:[#allocation4_spill] sm:$0xff] %v4590_v1  ;;  %v4592_v2 = vld [vmem:[#allocation2] sm:$0xff]  ;;  %v4799_v26 = vld [vmem:[%s4583_s29 + $0x48] sm:$0xff]  ;;  %v4807_v29 = vld [vmem:[%s4583_s29 + $0x50] sm:$0xff] }
  0x14   : > { %327 = vst.msk [vmem:[#allocation3 + $0x1a0] sm:$0xff] %vm279_vm0, %v4508_v0  ;;  %v4599_v4 = vld [vmem:[#allocation2 + $0x8] sm:$0xff]  ;;  %v529_v5 = vrot.slane %v4592_v2, 1  ;;  %v4815_v32 = vld [vmem:[%s4583_s29 + $0x58] sm:$0xff]  ;;  %v4823_v34 = vld [vmem:[%s4583_s29 + $0x60] sm:$0xff] }
  0x15   : > { %9753 = vst [vmem:[#allocation5_spill] sm:$0xff] %v4597_v3  ;;  %v530_v6 = vrot.slane %v4599_v4, 1  ;;  %v4833_v36 = vld [vmem:[%s4583_s29 + $0x68] sm:$0xff]  ;;  %v4842_v39 = vld [vmem:[%s4583_s29 + $0x70] sm:$0xff]  ;;  %v4850_v42 = vld [vmem:[%s4583_s29 + $0x78] sm:$0xff] }
  0x16   : > { %291 = vst.msk [vmem:[#allocation2 + $0x30] sm:$0x1] %vm289_vm1, %v4508_v0  ;;  %v4858_v45 = vld [vmem:[%s4583_s29 + $0x80] sm:$0xff]  ;;  %v4866_v48 = vld [vmem:[%s4583_s29 + $0x88] sm:$0xff]  ;;  %v4877_v52 = vld [vmem:[%s4583_s29 + $0x90] sm:$0xff] }
  0x17   : > { %396 = vst.msk [vmem:[#allocation2 + $0x31] sm:$0xff] %vm279_vm0, %v4590_v1  ;;  %v531_v7 = vsel %vm528_vm2, %v529_v5, %v530_v6  ;;  %v4889_v56 = vld [vmem:[%s4583_s29 + $0x98] sm:$0xff]  ;;  %v4913_v63 = vld [vmem:[%s4583_s29 + $0xa0] sm:$0xff] }
  0x18   : > { %397 = vst.msk [vmem:[#allocation2 + $0x39] sm:$0xff] %vm279_vm0, %v4597_v3  ;;  %716 = vrot.lane.b32.xlu0 %v531_v7, %s4509_s30  ;;  %v4924_v7 = vld [vmem:[%s4583_s29 + $0xa8] sm:$0xff] }
  0x19   : > { %290 = vst.msk [vmem:[#allocation2 + $0x18] sm:$0x1] %vm289_vm1, %v4508_v0 }
  0x1a   : > { %292 = vst.msk [vmem:[#allocation2 + $0x48] sm:$0x1] %vm289_vm1, %v4508_v0 }
  0x1b   : > { %293 = vst.msk [vmem:[#allocation2 + $0x60] sm:$0x1] %vm289_vm1, %v4508_v0 }
  0x1c   : > { %294 = vst.msk [vmem:[#allocation2 + $0x78] sm:$0x1] %vm289_vm1, %v4508_v0 }
  0x1d   : > { %295 = vst.msk [vmem:[#allocation2 + $0x90] sm:$0x1] %vm289_vm1, %v4508_v0 }
  0x1e   : > { %v4623_v8 = vld [vmem:[#allocation2 + $0x30] sm:$0xff]  ;;  %296 = vst.msk [vmem:[#allocation2 + $0xa8] sm:$0x1] %vm289_vm1, %v4508_v0 }
  0x1f   : > { %v4627_v9 = vld [vmem:[#allocation2 + $0x38] sm:$0xff]  ;;  %v539_v10 = vrot.slane %v4623_v8, 1  ;;  %297 = vst.msk [vmem:[#allocation2 + $0xc0] sm:$0x1] %vm289_vm1, %v4508_v0 }
  0x20   : > { %v540_v11 = vrot.slane %v4627_v9, 1  ;;  %298 = vst.msk [vmem:[#allocation2 + $0xd8] sm:$0x1] %vm289_vm1, %v4508_v0 }
  0x21   : > { %299 = vst.msk [vmem:[#allocation2 + $0xf0] sm:$0x1] %vm289_vm1, %v4508_v0 }
  0x22   : > { %v4638_v12 = vsel %vm528_vm2, %v539_v10, %v540_v11  ;;  %300 = vst.msk [vmem:[#allocation2 + $0x108] sm:$0x1] %vm289_vm1, %v4508_v0 }
  0x23   : > { %724 = vrot.lane.b32.xlu2 %v4638_v12, %s4509_s30  ;;  %301 = vst.msk [vmem:[#allocation2 + $0x120] sm:$0x1] %vm289_vm1, %v4508_v0 }
  0x24   : > { %302 = vst.msk [vmem:[#allocation2 + $0x138] sm:$0x1] %vm289_vm1, %v4508_v0 }
  0x25   : > { %303 = vst.msk [vmem:[#allocation2 + $0x150] sm:$0x1] %vm289_vm1, %v4508_v0 }
  0x26   : > { %304 = vst.msk [vmem:[#allocation2 + $0x168] sm:$0x1] %vm289_vm1, %v4508_v0 }
  0x27   : > { %305 = vst.msk [vmem:[#allocation2 + $0x180] sm:$0x1] %vm289_vm1, %v4508_v0 }
  0x28   : > { %306 = vst.msk [vmem:[#allocation2 + $0x29] sm:$0x1] %vm289_vm1, %v4508_v0 }
  0x29   : > { %307 = vst.msk [vmem:[#allocation2 + $0x41] sm:$0x1] %vm289_vm1, %v4508_v0 }
  0x2a   : > { %308 = vst.msk [vmem:[#allocation2 + $0x59] sm:$0x1] %vm289_vm1, %v4508_v0 }
  0x2b   : > { %309 = vst.msk [vmem:[#allocation2 + $0x71] sm:$0x1] %vm289_vm1, %v4508_v0 }
  0x2c   : > { %310 = vst.msk [vmem:[#allocation2 + $0x89] sm:$0x1] %vm289_vm1, %v4508_v0 }
  0x2d   : > { %311 = vst.msk [vmem:[#allocation2 + $0xa1] sm:$0x1] %vm289_vm1, %v4508_v0 }
  0x2e   : > { %312 = vst.msk [vmem:[#allocation2 + $0xb9] sm:$0x1] %vm289_vm1, %v4508_v0 }
  0x2f   : > { %313 = vst.msk [vmem:[#allocation2 + $0xd1] sm:$0x1] %vm289_vm1, %v4508_v0 }
  0x30   : > { %314 = vst.msk [vmem:[#allocation2 + $0xe9] sm:$0x1] %vm289_vm1, %v4508_v0  ;;  %v4714_v13 = vld [vmem:[#allocation2 + $0x40] sm:$0x3] }
  0x31   : > { %315 = vst.msk [vmem:[#allocation2 + $0x101] sm:$0x1] %vm289_vm1, %v4508_v0  ;;  %v542_v14 = vrot.slane %v4714_v13, 1 }
  0x32   : > { %316 = vst.msk [vmem:[#allocation2 + $0x119] sm:$0x1] %vm289_vm1, %v4508_v0 }
  0x33   : > { %317 = vst.msk [vmem:[#allocation2 + $0x131] sm:$0x1] %vm289_vm1, %v4508_v0  ;;  %v4724_v15 = vsel %vm528_vm2, %v540_v11, %v542_v14 }
  0x34   : > { %318 = vst.msk [vmem:[#allocation2 + $0x149] sm:$0x1] %vm289_vm1, %v4508_v0  ;;  %726 = vrot.lane.b32.xlu2 %v4724_v15, %s4509_s30 }
  0x35   : > { %319 = vst.msk [vmem:[#allocation2 + $0x161] sm:$0x1] %vm289_vm1, %v4508_v0 }
  0x36   : > { %320 = vst.msk [vmem:[#allocation2 + $0x179] sm:$0x1] %vm289_vm1, %v4508_v0 }
  0x37   : > { %321 = vst.msk [vmem:[#allocation2 + $0x191] sm:$0x1] %vm289_vm1, %v4508_v0 }
  0x38   : > { %330 = vst.msk [vmem:[#allocation3 + $0x18] sm:$0x1] %vm289_vm1, %v4508_v0 }
  0x39   : > { %331 = vst.msk [vmem:[#allocation3 + $0x30] sm:$0x1] %vm289_vm1, %v4508_v0 }
  0x3a   : > { %332 = vst.msk [vmem:[#allocation3 + $0x48] sm:$0x1] %vm289_vm1, %v4508_v0 }
  0x3b   : > { %333 = vst.msk [vmem:[#allocation3 + $0x60] sm:$0x1] %vm289_vm1, %v4508_v0 }
  0x3c   : > { %334 = vst.msk [vmem:[#allocation3 + $0x78] sm:$0x1] %vm289_vm1, %v4508_v0 }
  0x3d   : > { %335 = vst.msk [vmem:[#allocation3 + $0x90] sm:$0x1] %vm289_vm1, %v4508_v0 }
  0x3e   : > { %336 = vst.msk [vmem:[#allocation3 + $0xa8] sm:$0x1] %vm289_vm1, %v4508_v0 }
  0x3f   : > { %337 = vst.msk [vmem:[#allocation3 + $0xc0] sm:$0x1] %vm289_vm1, %v4508_v0 }
  0x40   : > { %338 = vst.msk [vmem:[#allocation3 + $0xd8] sm:$0x1] %vm289_vm1, %v4508_v0 }
  0x41   : > { %339 = vst.msk [vmem:[#allocation3 + $0xf0] sm:$0x1] %vm289_vm1, %v4508_v0 }
  0x42   : > { %340 = vst.msk [vmem:[#allocation3 + $0x108] sm:$0x1] %vm289_vm1, %v4508_v0 }
  0x43   : > { %341 = vst.msk [vmem:[#allocation3 + $0x120] sm:$0x1] %vm289_vm1, %v4508_v0 }
  0x44   : > { %342 = vst.msk [vmem:[#allocation3 + $0x138] sm:$0x1] %vm289_vm1, %v4508_v0 }
  0x45   : > { %343 = vst.msk [vmem:[#allocation3 + $0x150] sm:$0x1] %vm289_vm1, %v4508_v0 }
  0x46   : > { %344 = vst.msk [vmem:[#allocation3 + $0x168] sm:$0x1] %vm289_vm1, %v4508_v0 }
  0x47   : > { %345 = vst.msk [vmem:[#allocation3 + $0x180] sm:$0x1] %vm289_vm1, %v4508_v0 }
  0x48   : > { %346 = vst.msk [vmem:[#allocation3 + $0x29] sm:$0x1] %vm289_vm1, %v4508_v0 }
  0x49   : > { %347 = vst.msk [vmem:[#allocation3 + $0x41] sm:$0x1] %vm289_vm1, %v4508_v0 }
  0x4a   : > { %348 = vst.msk [vmem:[#allocation3 + $0x59] sm:$0x1] %vm289_vm1, %v4508_v0 }
  0x4b   : > { %349 = vst.msk [vmem:[#allocation3 + $0x71] sm:$0x1] %vm289_vm1, %v4508_v0 }
  0x4c   : > { %350 = vst.msk [vmem:[#allocation3 + $0x89] sm:$0x1] %vm289_vm1, %v4508_v0 }
  0x4d   : > { %351 = vst.msk [vmem:[#allocation3 + $0xa1] sm:$0x1] %vm289_vm1, %v4508_v0 }
  0x4e   : > { %352 = vst.msk [vmem:[#allocation3 + $0xb9] sm:$0x1] %vm289_vm1, %v4508_v0 }
  0x4f   : > { %353 = vst.msk [vmem:[#allocation3 + $0xd1] sm:$0x1] %vm289_vm1, %v4508_v0 }
  0x50   : > { %354 = vst.msk [vmem:[#allocation3 + $0xe9] sm:$0x1] %vm289_vm1, %v4508_v0 }
  0x51   : > { %355 = vst.msk [vmem:[#allocation3 + $0x101] sm:$0x1] %vm289_vm1, %v4508_v0 }
  0x52   : > { %356 = vst.msk [vmem:[#allocation3 + $0x119] sm:$0x1] %vm289_vm1, %v4508_v0 }
  0x53   : > { %357 = vst.msk [vmem:[#allocation3 + $0x131] sm:$0x1] %vm289_vm1, %v4508_v0 }
  0x54   : > { %358 = vst.msk [vmem:[#allocation3 + $0x149] sm:$0x1] %vm289_vm1, %v4508_v0 }
  0x55   : > { %359 = vst.msk [vmem:[#allocation3 + $0x161] sm:$0x1] %vm289_vm1, %v4508_v0 }
  0x56   : > { %9754 = vst [vmem:[#allocation6_spill] sm:$0xff] %v4755_v16 }
  0x57   : > { %360 = vst.msk [vmem:[#allocation3 + $0x179] sm:$0x1] %vm289_vm1, %v4508_v0 }
  0x58   : > { %9755 = vst [vmem:[#allocation7_spill] sm:$0xff] %v4760_v17 }
  0x59   : > { %361 = vst.msk [vmem:[#allocation3 + $0x191] sm:$0x1] %vm289_vm1, %v4508_v0 }
  0x5a   : > { %394 = vst.msk [vmem:[#allocation2 + $0x19] sm:$0xff] %vm279_vm0, %v4755_v16 }
  0x5b   : > { %395 = vst.msk [vmem:[#allocation2 + $0x21] sm:$0xff] %vm279_vm0, %v4760_v17 }
  0x5c   : > { %283 = vst.msk [vmem:[#allocation2 + $0x10] sm:$0x3] %vm282_vm3, %v4508_v0 }
  0x5d   : > { %287 = vst.msk [vmem:[#allocation2 + $0x1a8] sm:$0x3] %vm282_vm3, %v4508_v0 }
  0x5e   : > { %9756 = vst [vmem:[#allocation8_spill] sm:$0xff] %v4771_v18 }
  0x5f   : > { %324 = vst.msk [vmem:[#allocation3 + $0x10] sm:$0x3] %vm282_vm3, %v4508_v0 }
  0x60   : > { %9757 = vst [vmem:[#allocation9_spill] sm:$0xff] %v4775_v19 }
  0x61   : > { %328 = vst.msk [vmem:[#allocation3 + $0x1a8] sm:$0x3] %vm282_vm3, %v4508_v0  ;;  %v4786_v22 = vld [vmem:[#allocation2 + $0x18] sm:$0xff] }
  0x62   : > { %9758 = vst [vmem:[#allocation10_spill] sm:$0xff] %v4779_v20  ;;  %v4793_v24 = vld [vmem:[#allocation2 + $0x20] sm:$0xff]  ;;  %v534_v25 = vrot.slane %v4786_v22, 1  ;;  %v4810_v31 = vld [vmem:[#allocation2 + $0x28] sm:$0x3] }
  0x63   : > { %398 = vst.msk [vmem:[#allocation2 + $0x49] sm:$0xff] %vm279_vm0, %v4771_v18  ;;  %v535_v27 = vrot.slane %v4793_v24, 1  ;;  %v4802_v28 = vld [vmem:[#allocation2 + $0x10] sm:$0x3]  ;;  %v537_v37 = vrot.slane %v4810_v31, 1 }
  0x64   : > { %9759 = vst [vmem:[#allocation11_spill] sm:$0xff] %v4784_v21  ;;  %v532_v30 = vrot.slane %v4802_v28, 1 }
  0x65   : > { %399 = vst.msk [vmem:[#allocation2 + $0x51] sm:$0xff] %vm279_vm0, %v4775_v19  ;;  %v4818_v33 = vsel %vm528_vm2, %v534_v25, %v535_v27  ;;  %v4869_v49 = vsel %vm528_vm2, %v535_v27, %v537_v37  ;;  %v4938_v25 = vld [vmem:[%s4583_s29 + $0xb0] sm:$0xff] }
  0x66   : > { %9760 = vst [vmem:[#allocation12_spill] sm:$0xff] %v4791_v23  ;;  %720 = vrot.lane.b32.xlu1 %v4818_v33, %s4509_s30  ;;  %v533_v35 = vsel %vm528_vm2, %v530_v6, %v532_v30 }
  0x67   : > { %400 = vst.msk [vmem:[#allocation2 + $0x61] sm:$0xff] %vm279_vm0, %v4779_v20  ;;  %718 = vrot.lane.b32.xlu0 %v533_v35, %s4509_s30  ;;  %v4945_v35 = vld [vmem:[%s4583_s29 + $0xb8] sm:$0xff] }
  0x68   : > { %9761 = vst [vmem:[#allocation13_spill] sm:$0xff] %v4799_v26 }
  0x69   : > { %401 = vst.msk [vmem:[#allocation2 + $0x69] sm:$0xff] %vm279_vm0, %v4784_v21 }
  0x6a   : > { %9762 = vst [vmem:[#allocation14_spill] sm:$0xff] %v4807_v29  ;;  %v4837_v38 = vld [vmem:[#allocation2 + $0x48] sm:$0xff] }
  0x6b   : > { %402 = vst.msk [vmem:[#allocation2 + $0x79] sm:$0xff] %vm279_vm0, %v4791_v23  ;;  %v544_v41 = vrot.slane %v4837_v38, 1 }
  0x6c   : > { %9763 = vst [vmem:[#allocation15_spill] sm:$0xff] %v4815_v32  ;;  %v4844_v40 = vld [vmem:[#allocation2 + $0x50] sm:$0xff]  ;;  %v4872_v51 = vld [vmem:[#allocation2 + $0x58] sm:$0x3] }
  0x6d   : > { %403 = vst.msk [vmem:[#allocation2 + $0x81] sm:$0xff] %vm279_vm0, %v4799_v26  ;;  %v545_v43 = vrot.slane %v4844_v40, 1  ;;  %v547_v59 = vrot.slane %v4872_v51, 1 }
  0x6e   : > { %9764 = vst [vmem:[#allocation16_spill] sm:$0xff] %v4823_v34  ;;  %v4853_v44 = vld [vmem:[#allocation2 + $0x60] sm:$0xff]  ;;  %722 = vrot.lane.b32.xlu1 %v4869_v49, %s4509_s30 }
  0x6f   : > { %404 = vst.msk [vmem:[#allocation2 + $0x91] sm:$0xff] %vm279_vm0, %v4807_v29  ;;  %v549_v47 = vrot.slane %v4853_v44, 1  ;;  %v4880_v53 = vsel %vm528_vm2, %v544_v41, %v545_v43  ;;  %v4916_v0 = vsel %vm528_vm2, %v545_v43, %v547_v59  ;;  %v4963_v59 = vld [vmem:[%s4583_s29 + $0xc0] sm:$0xff] }
  0x70   : > { %9765 = vst [vmem:[#allocation17_spill] sm:$0xff] %v4833_v36  ;;  %v4860_v46 = vld [vmem:[#allocation2 + $0x68] sm:$0xff]  ;;  %v4894_v58 = vld [vmem:[#allocation2 + $0x70] sm:$0x3]  ;;  %728 = vrot.lane.b32.xlu0 %v4880_v53, %s4509_s30 }
  0x71   : > { %405 = vst.msk [vmem:[#allocation2 + $0x99] sm:$0xff] %vm279_vm0, %v4815_v32  ;;  %v550_v50 = vrot.slane %v4860_v46, 1  ;;  %v552_v62 = vrot.slane %v4894_v58, 1 }
  0x72   : > { %9766 = vst [vmem:[#allocation18_spill] sm:$0xff] %v4842_v39  ;;  %v4921_v6 = vld [vmem:[#allocation2 + $0x78] sm:$0xff] }
  0x73   : > { %406 = vst.msk [vmem:[#allocation2 + $0xa9] sm:$0xff] %vm279_vm0, %v4823_v34  ;;  %v4892_v57 = vsel %vm528_vm2, %v549_v47, %v550_v50  ;;  %v4929_v10 = vsel %vm528_vm2, %v550_v50, %v552_v62  ;;  %v554_v37 = vrot.slane %v4921_v6, 1 }
  0x74   : > { %9767 = vst [vmem:[#allocation19_spill] sm:$0xff] %v4850_v42  ;;  %v4882_v54 = vld [vmem:[#allocation2 + $0x80] sm:$0xff]  ;;  %v4884_v55 = vld [vmem:[#allocation2 + $0x88] sm:$0x3]  ;;  %732 = vrot.lane.b32.xlu2 %v4892_v57, %s4509_s30 }
  0x75   : > { %407 = vst.msk [vmem:[#allocation2 + $0xb1] sm:$0xff] %vm279_vm0, %v4833_v36  ;;  %v555_v60 = vrot.slane %v4882_v54, 1  ;;  %v557_v61 = vrot.slane %v4884_v55, 1 }
  0x76   : > { %9768 = vst [vmem:[#allocation20_spill] sm:$0xff] %v4858_v45  ;;  %v4940_v27 = vld [vmem:[#allocation2 + $0x90] sm:$0xff]  ;;  %730 = vrot.lane.b32.xlu1 %v4916_v0, %s4509_s30 }
  0x77   : > { %408 = vst.msk [vmem:[#allocation2 + $0xc1] sm:$0xff] %vm279_vm0, %v4842_v39  ;;  %v4919_v5 = vsel %vm528_vm2, %v555_v60, %v557_v61  ;;  %v559_v47 = vrot.slane %v4940_v27, 1  ;;  %v4966_v61 = vld [vmem:[%s4583_s29 + $0xc8] sm:$0xff]  ;;  %v4969_v62 = vsel %vm528_vm2, %v554_v37, %v555_v60 }
  0x78   : > { %9769 = vst [vmem:[#allocation21_spill] sm:$0xff] %v4866_v48  ;;  %v4942_v30 = vld [vmem:[#allocation2 + $0x98] sm:$0xff]  ;;  %734 = vrot.lane.b32.xlu0 %v4929_v10, %s4509_s30 }
  0x79   : > { %409 = vst.msk [vmem:[#allocation2 + $0xc9] sm:$0xff] %vm279_vm0, %v4850_v42  ;;  %v560_v50 = vrot.slane %v4942_v30, 1 }
  0x7a   : > { %9770 = vst [vmem:[#allocation22_spill] sm:$0xff] %v4877_v52  ;;  %v4931_v11 = vld [vmem:[#allocation2 + $0xa8] sm:$0xff] }
  0x7b   : > { %410 = vst.msk [vmem:[#allocation2 + $0xd9] sm:$0xff] %vm279_vm0, %v4858_v45  ;;  %v564_v41 = vrot.slane %v4931_v11, 1 }
  0x7c   : > { %9771 = vst [vmem:[#allocation23_spill] sm:$0xff] %v4889_v56  ;;  %v4933_v14 = vld [vmem:[#allocation2 + $0xb0] sm:$0xff]  ;;  %738 = vrot.lane.b32.xlu2 %v4919_v5, %s4509_s30  ;;  %v4987_v60 = vld [vmem:[#allocation2 + $0xb8] sm:$0x3] }
  0x7d   : > { %9772 = vst [vmem:[#allocation24_spill] sm:$0xff] %v4892_v57  ;;  %v565_v43 = vrot.slane %v4933_v14, 1 }
  0x7e   : > { %411 = vst.msk [vmem:[#allocation2 + $0xe1] sm:$0xff] %vm279_vm0, %v4866_v48  ;;  %736 = vrot.lane.b32.xlu1 %v4969_v62, %s4509_s30  ;;  %v5011_v42 = vld [vmem:[#allocation2 + $0xc0] sm:$0xff] }
  0x7f   : > { %412 = vst.msk [vmem:[#allocation2 + $0xf1] sm:$0xff] %vm279_vm0, %v4877_v52  ;;  %v5003_v52 = vld [vmem:[%s4583_s29 + $0xd8] sm:$0xff] }
  0x80   : > { %413 = vst.msk [vmem:[#allocation2 + $0xf9] sm:$0xff] %vm279_vm0, %v4889_v56  ;;  %v4983_v56 = vld [vmem:[#allocation2 + $0xd0] sm:$0x3] }
  0x81   : > { %9773 = vst [vmem:[#allocation25_spill] sm:$0xff] %v4913_v63 }
  0x82   : > { %9774 = vst [vmem:[#allocation26_spill] sm:$0xff] %v4919_v5 }
  0x83   : > { %9775 = vst [vmem:[#allocation27_spill] sm:$0xff] %v4924_v7 }
  0x84   : > { %414 = vst.msk [vmem:[#allocation2 + $0x109] sm:$0xff] %vm279_vm0, %v4913_v63  ;;  %v4981_v63 = vld [vmem:[#allocation2 + $0xc8] sm:$0xff] }
  0x85   : > { %9776 = vst [vmem:[#allocation28_spill] sm:$0xff] %v4929_v10  ;;  %v5032_v32 = vld [vmem:[#allocation2 + $0xe0] sm:$0xff]  ;;  %v5058_v23 = vld [vmem:[#allocation2 + $0xe8] sm:$0x3] }
  0x86   : > { %415 = vst.msk [vmem:[#allocation2 + $0x111] sm:$0xff] %vm279_vm0, %v4924_v7  ;;  %v4979_v7 = vld [vmem:[#allocation2 + $0xa0] sm:$0x3]  ;;  %v5013_v39 = vld [vmem:[#allocation2 + $0xf0] sm:$0xff] }
  0x87   : > { %9777 = vst [vmem:[#allocation29_spill] sm:$0xff] %v4938_v25  ;;  %v562_v37 = vrot.slane %v4979_v7, 1  ;;  %v5020_v34 = vld [vmem:[#allocation2 + $0xf8] sm:$0xff]  ;;  %v5064_v19 = vld [vmem:[#allocation2 + $0x100] sm:$0x3] }
  0x88   : > { %9778 = vst [vmem:[#allocation30_spill] sm:$0xff] %v4945_v35 }
  0x89   : > { %416 = vst.msk [vmem:[#allocation2 + $0x121] sm:$0xff] %vm279_vm0, %v4938_v25  ;;  %v4977_v25 = vsel %vm528_vm2, %v559_v47, %v560_v50  ;;  %v572_v47 = vrot.slane %v4983_v56, 1  ;;  %v5006_v48 = vsel %vm528_vm2, %v560_v50, %v562_v37  ;;  %v5025_v50 = vld [vmem:[%s4583_s29 + $0xe0] sm:$0xff]  ;;  %v5028_v37 = vld [vmem:[%s4583_s29 + $0xe8] sm:$0xff] }
  0x8a   : > { %417 = vst.msk [vmem:[#allocation2 + $0x129] sm:$0xff] %vm279_vm0, %v4945_v35  ;;  %v4972_v35 = vsel %vm528_vm2, %v564_v41, %v565_v43  ;;  %740 = vrot.lane.b32.xlu0 %v4977_v25, %s4509_s30  ;;  %v570_v41 = vrot.slane %v4981_v63, 1  ;;  %742 = vrot.lane.b32.xlu1 %v5006_v48, %s4509_s30 }
  0x8b   : > { %9779 = vst [vmem:[#allocation31_spill] sm:$0xff] %v4963_v59  ;;  %744 = vrot.lane.b32.xlu2 %v4972_v35, %s4509_s30  ;;  %v5085_v17 = vld [vmem:[#allocation2 + $0x108] sm:$0xff] }
  0x8c   : > { %9780 = vst [vmem:[#allocation32_spill] sm:$0xff] %v4966_v61  ;;  %v5009_v45 = vsel %vm528_vm2, %v570_v41, %v572_v47  ;;  %v5030_v47 = vld [vmem:[#allocation2 + $0xd8] sm:$0xff] }
  0x8d   : > { %9781 = vst [vmem:[#allocation33_spill] sm:$0xff] %v4972_v35  ;;  %v5060_v21 = vld [vmem:[#allocation2 + $0x110] sm:$0xff]  ;;  %v5062_v20 = vld [vmem:[#allocation2 + $0x118] sm:$0x3] }
  0x8e   : > { %418 = vst.msk [vmem:[#allocation2 + $0x139] sm:$0xff] %vm279_vm0, %v4963_v59  ;;  %v5000_v59 = vld [vmem:[%s4583_s29 + $0xd0] sm:$0xff] }
  0x8f   : > { %9782 = vst [vmem:[#allocation34_spill] sm:$0xff] %v4977_v25 }
  0x90   : > { %419 = vst.msk [vmem:[#allocation2 + $0x141] sm:$0xff] %vm279_vm0, %v4966_v61  ;;  %v567_v61 = vrot.slane %v4987_v60, 1 }
  0x91   : > { %9783 = vst [vmem:[#allocation35_spill] sm:$0xff] %v5000_v59 }
  0x92   : > { %9784 = vst [vmem:[#allocation36_spill] sm:$0xff] %v5003_v52  ;;  %v5018_v36 = vsel %vm528_vm2, %v565_v43, %v567_v61  ;;  %v569_v43 = vrot.slane %v5011_v42, 1  ;;  %v579_v61 = vrot.slane %v5013_v39, 1 }
  0x93   : > { %9785 = vst [vmem:[#allocation37_spill] sm:$0xff] %v5006_v48  ;;  %750 = vrot.lane.b32.xlu2 %v5009_v45, %s4509_s30  ;;  %746 = vrot.lane.b32.xlu0 %v5018_v36, %s4509_s30 }
  0x94   : > { %9786 = vst [vmem:[#allocation38_spill] sm:$0xff] %v5009_v45  ;;  %v5050_v29 = vsel %vm528_vm2, %v569_v43, %v570_v41  ;;  %v577_v41 = vrot.slane %v5058_v23, 1  ;;  %v587_v43 = vrot.slane %v5062_v20, 1  ;;  %v5093_v45 = vld [vmem:[#allocation2 + $0x128] sm:$0xff] }
  0x95   : > { %420 = vst.msk [vmem:[#allocation2 + $0x151] sm:$0xff] %vm279_vm0, %v5000_v59  ;;  %v575_v59 = vrot.slane %v5032_v32, 1  ;;  %748 = vrot.lane.b32.xlu1 %v5050_v29, %s4509_s30  ;;  %v5087_v16 = vld [vmem:[#allocation2 + $0x138] sm:$0xff] }
  0x96   : > { %9787 = vst [vmem:[#allocation39_spill] sm:$0xff] %v5018_v36 }
  0x97   : > { %421 = vst.msk [vmem:[#allocation2 + $0x159] sm:$0xff] %vm279_vm0, %v5003_v52  ;;  %v580_v52 = vrot.slane %v5020_v34, 1  ;;  %v5077_v18 = vsel %vm528_vm2, %v575_v59, %v577_v41  ;;  %v5121_v25 = vld [vmem:[#allocation2 + $0x148] sm:$0x3] }
  0x98   : > { %9788 = vst [vmem:[#allocation40_spill] sm:$0xff] %v5025_v50 }
  0x99   : > { %9789 = vst [vmem:[#allocation41_spill] sm:$0xff] %v5028_v37  ;;  %v5053_v26 = vsel %vm528_vm2, %v579_v61, %v580_v52  ;;  %v582_v61 = vrot.slane %v5064_v19, 1 }
  0x9a   : > { %422 = vst.msk [vmem:[#allocation2 + $0x169] sm:$0xff] %vm279_vm0, %v5025_v50  ;;  %v574_v50 = vrot.slane %v5030_v47, 1 }
  0x9b   : > { %423 = vst.msk [vmem:[#allocation2 + $0x171] sm:$0xff] %vm279_vm0, %v5028_v37  ;;  %756 = vrot.lane.b32.xlu2 %v5053_v26, %s4509_s30  ;;  %v5083_v1 = vsel %vm528_vm2, %v580_v52, %v582_v61  ;;  %v584_v52 = vrot.slane %v5085_v17, 1  ;;  %v590_v61 = vrot.slane %v5093_v45, 1 }
  0x9c   : > { %9790 = vst [vmem:[#allocation42_spill] sm:$0xff] %v5050_v29  ;;  %v5056_v37 = vsel %vm528_vm2, %v574_v50, %v575_v59  ;;  %v585_v50 = vrot.slane %v5060_v21, 1  ;;  %v594_v59 = vrot.slane %v5087_v16, 1 }
  0x9d   : > { %9791 = vst [vmem:[#allocation43_spill] sm:$0xff] %v5053_v26  ;;  %752 = vrot.lane.b32.xlu0 %v5056_v37, %s4509_s30  ;;  %v5089_v26 = vld [vmem:[#allocation2 + $0x140] sm:$0xff]  ;;  %754 = vrot.lane.b32.xlu1 %v5077_v18, %s4509_s30 }
  0x9e   : > { %9792 = vst [vmem:[#allocation44_spill] sm:$0xff] %v5056_v37  ;;  %v5080_v3 = vsel %vm528_vm2, %v585_v50, %v587_v43  ;;  %v5091_v37 = vld [vmem:[#allocation2 + $0x120] sm:$0xff]  ;;  %v595_v41 = vrot.slane %v5089_v26, 1  ;;  %v5107_v36 = vsel %vm528_vm2, %v584_v52, %v585_v50  ;;  %v5117_v35 = vld [vmem:[#allocation2 + $0x158] sm:$0xff] }
  0x9f   : > { %9793 = vst [vmem:[#allocation45_spill] sm:$0xff] %v5077_v18  ;;  %v589_v43 = vrot.slane %v5091_v37, 1  ;;  %v5119_v29 = vld [vmem:[#allocation2 + $0x160] sm:$0x3]  ;;  %v600_v52 = vrot.slane %v5117_v35, 1 }
  0xa0   : > { %9794 = vst [vmem:[#allocation46_spill] sm:$0xff] %v5080_v3  ;;  %v5110_v18 = vsel %vm528_vm2, %v594_v59, %v595_v41  ;;  %v602_v59 = vrot.slane %v5119_v29, 1 }
  0xa1   : > { %9795 = vst [vmem:[#allocation47_spill] sm:$0xff] %v5083_v1 }
  0xa2   : > { %9796 = vst [vmem:[#allocation48_spill] sm:$0xff] %v5107_v36  ;;  %v5137_v48 = vsel %vm528_vm2, %v600_v52, %v602_v59  ;;  %v5146_v10 = vld [vmem:[#allocation2 + $0x170] sm:$0xff] }
  0xa3   : > { %762 = vrot.lane.b32.xlu2 %v5080_v3, %s4509_s30  ;;  %9797 = vst [vmem:[#allocation49_spill] sm:$0xff] %v5110_v18  ;;  %v5113_v3 = vsel %vm528_vm2, %v589_v43, %v590_v61  ;;  %v597_v43 = vrot.slane %v5121_v25, 1 }
  0xa4   : > { %9798 = vst [vmem:[#allocation50_spill] sm:$0xff] %v5113_v3 }
  0xa5   : > { %758 = vrot.lane.b32.xlu0 %v5083_v1, %s4509_s30  ;;  %v5115_v1 = vld [vmem:[#allocation2 + $0x130] sm:$0x3]  ;;  %760 = vrot.lane.b32.xlu1 %v5107_v36, %s4509_s30  ;;  %9800 = vst [vmem:[#allocation52_spill] sm:$0xff] %v5137_v48  ;;  %v5140_v36 = vsel %vm528_vm2, %v595_v41, %v597_v43  ;;  %v610_v41 = vrot.slane %v4592_v2, 2  ;;  %v605_v43 = vrot.slane %v5146_v10, 1 }
  0xa6   : > { %v592_v50 = vrot.slane %v5115_v1, 1  ;;  %9801 = vst [vmem:[#allocation53_spill] sm:$0xff] %v5140_v36 }
  0xa8   : > { %v5134_v5 = vsel %vm528_vm2, %v590_v61, %v592_v50  ;;  %v611_v50 = vrot.slane %v4599_v4, 2  ;;  %v616_v4 = vrot.slane %v4793_v24, 2 }
  0xa9   : > { %9799 = vst [vmem:[#allocation51_spill] sm:$0xff] %v5134_v5 }
  0xab   : > { %768 = vrot.lane.b32.xlu2 %v5110_v18, %s4509_s30  ;;  %v5142_v18 = vld [vmem:[#allocation2 + $0x150] sm:$0xff] }
  0xac   : > { %v599_v61 = vrot.slane %v5142_v18, 1 }
  0xad   : > { %764 = vrot.lane.b32.xlu0 %v5113_v3, %s4509_s30  ;;  %v5144_v3 = vld [vmem:[#allocation2 + $0x168] sm:$0xff]  ;;  %766 = vrot.lane.b32.xlu1 %v5134_v5, %s4509_s30  ;;  %v612_v5 = vsel %vm609_vm4, %v610_v41, %v611_v50 }
  0xae   : > { %v604_v59 = vrot.slane %v5144_v3, 1  ;;  %v5160_v57 = vsel %vm528_vm2, %v599_v61, %v600_v52  ;;  %v618_v52 = vrot.slane %v4810_v31, 2  ;;  %v613_v61 = vrot.slane %v4802_v28, 2 }
  0xaf   : > { %9802 = vst [vmem:[#allocation54_spill] sm:$0xff] %v5160_v57  ;;  %v615_v28 = vrot.slane %v4786_v22, 2  ;;  %v625_v31 = vrot.slane %v4837_v38, 2 }
  0xb3   : > { %774 = vrot.lane.b32.xlu2 %v5137_v48, %s4509_s30  ;;  %v5164_v48 = vsel %vm528_vm2, %v604_v59, %v605_v43  ;;  %v5181_v59 = vsel %vm609_vm4, %v616_v4, %v618_v52  ;;  %v5197_v52 = vsel %vm609_vm4, %v615_v28, %v616_v4  ;;  %v623_v4 = vrot.slane %v4714_v13, 2 }
  0xb4   : > { %9803 = vst [vmem:[#allocation55_spill] sm:$0xff] %v5164_v48  ;;  %v631_v28 = vrot.slane %v4860_v46, 2  ;;  %v630_v13 = vrot.slane %v4853_v44, 2 }
  0xb5   : > { %770 = vrot.lane.b32.xlu0 %v5140_v36, %s4509_s30  ;;  %v5166_v36 = vld [vmem:[#allocation2 + $0x178] sm:$0x3]  ;;  %772 = vrot.lane.b32.xlu1 %v5160_v57, %s4509_s30  ;;  %9805 = vst [vmem:[#allocation57_spill] sm:$0xff] %v5181_v59  ;;  %v614_v57 = vsel %vm609_vm4, %v611_v50, %v613_v61  ;;  %v621_v50 = vrot.slane %v4627_v9, 2 }
  0xb6   : > { %v607_v2 = vrot.slane %v5166_v36, 1  ;;  %9807 = vst [vmem:[#allocation59_spill] sm:$0xff] %v5197_v52 }
  0xb8   : > { %v5178_v41 = vsel %vm528_vm2, %v605_v43, %v607_v2  ;;  %v626_v43 = vrot.slane %v4844_v40, 2  ;;  %v620_v2 = vrot.slane %v4623_v8, 2 }
  0xb9   : > { %9804 = vst [vmem:[#allocation56_spill] sm:$0xff] %v5178_v41 }
  0xba   : > { %v5200_v61 = vsel %vm609_vm4, %v625_v31, %v626_v43  ;;  %v633_v31 = vrot.slane %v4894_v58, 2  ;;  %v641_v58 = vrot.slane %v4942_v30, 2 }
  0xbb   : > { %812 = vrot.lane.b32.xlu2 %v612_v5, %s4510_s8  ;;  %v5184_v5 = vpop.permute.xlu2 %724  ;;  %9808 = vst [vmem:[#allocation60_spill] sm:$0xff] %v5200_v61 }
  0xbc   : > { %9806 = vst [vmem:[#allocation58_spill] sm:$0xff] %v5184_v5  ;;  %v5203_v5 = vsel %vm609_vm4, %v620_v2, %v621_v50  ;;  %v628_v2 = vrot.slane %v4872_v51, 2  ;;  %v640_v51 = vrot.slane %v4940_v27, 2 }
  0xbd   : > { %776 = vrot.lane.b32.xlu0 %v5164_v48, %s4509_s30  ;;  %778 = vrot.lane.b32.xlu1 %v5178_v41, %s4509_s30 }
  0xc3   : > { %818 = vrot.lane.b32.xlu2 %v5181_v59, %s4510_s8  ;;  %v5218_v59 = vsel %vm609_vm4, %v621_v50, %v623_v4  ;;  %v635_v50 = vrot.slane %v4921_v6, 2 }
  0xc5   : > { %814 = vrot.lane.b32.xlu0 %v614_v57, %s4510_s8  ;;  %816 = vrot.lane.b32.xlu1 %v5197_v52, %s4510_s8  ;;  %v5209_v57 = vpop.permute.xlu2 %726  ;;  %v5221_v52 = vsel %vm609_vm4, %v631_v28, %v633_v31  ;;  %v5240_v31 = vsel %vm609_vm4, %v630_v13, %v631_v28  ;;  %v638_v28 = vrot.slane %v4884_v55, 2  ;;  %v646_v13 = vrot.slane %v4933_v14, 2 }
  0xc6   : > { %9809 = vst [vmem:[#allocation61_spill] sm:$0xff] %v5209_v57  ;;  %v645_v55 = vrot.slane %v4931_v11, 2 }
  0xc7   : > { %9810 = vst [vmem:[#allocation62_spill] sm:$0xff] %v5221_v52 }
  0xc8   : > { %9813 = vst [vmem:[#allocation65_spill] sm:$0xff] %v5240_v31 }
  0xcb   : > { %824 = vrot.lane.b32.xlu2 %v5200_v61, %s4510_s8  ;;  %v5224_v61 = vsel %vm609_vm4, %v626_v43, %v628_v2  ;;  %v636_v43 = vrot.slane %v4882_v54, 2  ;;  %v5243_v2 = vsel %vm609_vm4, %v640_v51, %v641_v58  ;;  %v648_v51 = vrot.slane %v4987_v60, 2 }
  0xcc   : > { %9811 = vst [vmem:[#allocation63_spill] sm:$0xff] %v5224_v61  ;;  %v656_v60 = vrot.slane %v5032_v32, 2 }
  0xcd   : > { %820 = vrot.lane.b32.xlu0 %v5203_v5, %s4510_s8  ;;  %822 = vrot.lane.b32.xlu1 %v5218_v59, %s4510_s8  ;;  %9814 = vst [vmem:[#allocation66_spill] sm:$0xff] %v5243_v2  ;;  %v5246_v57 = vsel %vm609_vm4, %v635_v50, %v636_v43  ;;  %v643_v50 = vrot.slane %v4979_v7, 2  ;;  %v655_v7 = vrot.slane %v5030_v47, 2 }
  0xce   : > { %v5237_v4 = vpop.permute.xlu2 %732  ;;  %9815 = vst [vmem:[#allocation67_spill] sm:$0xff] %v5246_v57 }
  0xcf   : > { %9812 = vst [vmem:[#allocation64_spill] sm:$0xff] %v5237_v4 }
  0xd3   : > { %830 = vrot.lane.b32.xlu2 %v5221_v52, %s4510_s8  ;;  %v5254_v52 = vpop.permute.xlu0 %716 }
  0xd4   : > { %9816 = vst [vmem:[#allocation68_spill] sm:$0xff] %v5254_v52  ;;  %v5292_v52 = vsel %vm609_vm4, %v655_v7, %v656_v60 }
  0xd5   : > { %826 = vrot.lane.b32.xlu0 %v5224_v61, %s4510_s8  ;;  %828 = vrot.lane.b32.xlu1 %v5240_v31, %s4510_s8  ;;  %v5263_v61 = vsel %vm609_vm4, %v636_v43, %v638_v28  ;;  %v651_v28 = vrot.slane %v4981_v63, 2  ;;  %9825 = vst [vmem:[#allocation77_spill] sm:$0xff] %v5292_v52 }
  0xd6   : > { %v5260_v4 = vpop.permute.xlu2 %738  ;;  %9818 = vst [vmem:[#allocation70_spill] sm:$0xff] %v5263_v61 }
  0xd7   : > { %9817 = vst [vmem:[#allocation69_spill] sm:$0xff] %v5260_v4  ;;  %v5289_v4 = vsel %vm609_vm4, %v645_v55, %v646_v13  ;;  %v663_v55 = vrot.slane %v5064_v19, 2  ;;  %v660_v19 = vrot.slane %v5013_v39, 2 }
  0xd8   : > { %v5280_v43 = vpop.permute.xlu1 %720  ;;  %9824 = vst [vmem:[#allocation76_spill] sm:$0xff] %v5289_v4 }
  0xd9   : > { %9821 = vst [vmem:[#allocation73_spill] sm:$0xff] %v5280_v43 }
  0xdb   : > { %836 = vrot.lane.b32.xlu2 %v5243_v2, %s4510_s8  ;;  %v5266_v2 = vsel %vm609_vm4, %v646_v13, %v648_v51  ;;  %v661_v13 = vrot.slane %v5020_v34, 2 }
  0xdc   : > { %9819 = vst [vmem:[#allocation71_spill] sm:$0xff] %v5266_v2 }
  0xdd   : > { %832 = vrot.lane.b32.xlu0 %v5246_v57, %s4510_s8  ;;  %v5269_v57 = vsel %vm609_vm4, %v641_v58, %v643_v50  ;;  %834 = vrot.lane.b32.xlu1 %v5263_v61, %s4510_s8  ;;  %v650_v58 = vrot.slane %v5011_v42, 2  ;;  %v5286_v50 = vpop.permute.xlu0 %718 }
  0xde   : > { %9820 = vst [vmem:[#allocation72_spill] sm:$0xff] %v5269_v57 }
  0xdf   : > { %9823 = vst [vmem:[#allocation75_spill] sm:$0xff] %v5286_v50 }
  0xe0   : > { %v5306_v7 = vpop.permute.xlu1 %722 }
  0xe1   : > { %9826 = vst [vmem:[#allocation78_spill] sm:$0xff] %v5306_v7 }
  0xe3   : > { %842 = vrot.lane.b32.xlu2 %v5266_v2, %s4510_s8  ;;  %v5295_v2 = vsel %vm609_vm4, %v650_v58, %v651_v28  ;;  %v658_v58 = vrot.slane %v5058_v23, 2  ;;  %v670_v23 = vrot.slane %v5091_v37, 2 }
  0xe5   : > { %838 = vrot.lane.b32.xlu0 %v5269_v57, %s4510_s8  ;;  %v5284_v51 = vpop.permute.xlu2 %744  ;;  %840 = vrot.lane.b32.xlu1 %v5289_v4, %s4510_s8  ;;  %v5311_v50 = vpop.permute.xlu0 %728 }
  0xe6   : > { %9822 = vst [vmem:[#allocation74_spill] sm:$0xff] %v5284_v51  ;;  %v653_v51 = vrot.slane %v4983_v56, 2  ;;  %v5320_v56 = vsel %vm609_vm4, %v656_v60, %v658_v58  ;;  %v665_v60 = vrot.slane %v5085_v17, 2 }
  0xe7   : > { %9828 = vst [vmem:[#allocation80_spill] sm:$0xff] %v5311_v50  ;;  %v5340_v50 = vsel %vm609_vm4, %v660_v19, %v661_v13  ;;  %v678_v19 = vrot.slane %v5121_v25, 2  ;;  %v685_v25 = vrot.slane %v5144_v3, 2 }
  0xe8   : > { %v5314_v57 = vsel %vm609_vm4, %v651_v28, %v653_v51  ;;  %9831 = vst [vmem:[#allocation83_spill] sm:$0xff] %v5320_v56  ;;  %v671_v28 = vrot.slane %v5093_v45, 2  ;;  %v5331_v51 = vpop.permute.xlu1 %730 }
  0xe9   : > { %9829 = vst [vmem:[#allocation81_spill] sm:$0xff] %v5314_v57 }
  0xea   : > { %9832 = vst [vmem:[#allocation84_spill] sm:$0xff] %v5331_v51  ;;  %v5343_v7 = vsel %vm609_vm4, %v670_v23, %v671_v28 }
  0xeb   : > { %848 = vrot.lane.b32.xlu2 %v5292_v52, %s4510_s8  ;;  %v5317_v52 = vsel %vm609_vm4, %v661_v13, %v663_v55  ;;  %v666_v55 = vrot.slane %v5060_v21, 2  ;;  %9835 = vst [vmem:[#allocation87_spill] sm:$0xff] %v5340_v50  ;;  %v676_v13 = vrot.slane %v5089_v26, 2 }
  0xec   : > { %9830 = vst [vmem:[#allocation82_spill] sm:$0xff] %v5317_v52 }
  0xed   : > { %844 = vrot.lane.b32.xlu0 %v5295_v2, %s4510_s8  ;;  %v5309_v43 = vpop.permute.xlu2 %750  ;;  %846 = vrot.lane.b32.xlu1 %v5314_v57, %s4510_s8  ;;  %9836 = vst [vmem:[#allocation88_spill] sm:$0xff] %v5343_v7 }
  0xee   : > { %9827 = vst [vmem:[#allocation79_spill] sm:$0xff] %v5309_v43  ;;  %v5337_v43 = vpop.permute.xlu0 %734 }
  0xef   : > { %9834 = vst [vmem:[#allocation86_spill] sm:$0xff] %v5337_v43 }
  0xf0   : > { %v5357_v23 = vpop.permute.xlu1 %736 }
  0xf1   : > { %9837 = vst [vmem:[#allocation89_spill] sm:$0xff] %v5357_v23 }
  0xf3   : > { %854 = vrot.lane.b32.xlu2 %v5317_v52, %s4510_s8  ;;  %v5346_v52 = vsel %vm609_vm4, %v665_v60, %v666_v55  ;;  %v673_v60 = vrot.slane %v5115_v1, 2  ;;  %v675_v1 = vrot.slane %v5087_v16, 2 }
  0xf5   : > { %850 = vrot.lane.b32.xlu0 %v5320_v56, %s4510_s8  ;;  %v5335_v58 = vpop.permute.xlu2 %756  ;;  %852 = vrot.lane.b32.xlu1 %v5340_v50, %s4510_s8 }
  0xf6   : > { %9833 = vst [vmem:[#allocation85_spill] sm:$0xff] %v5335_v58  ;;  %v668_v58 = vrot.slane %v5062_v20, 2  ;;  %v5371_v20 = vsel %vm609_vm4, %v671_v28, %v673_v60  ;;  %v680_v28 = vrot.slane %v5142_v18, 2 }
  0xf8   : > { %v5365_v56 = vsel %vm609_vm4, %v666_v55, %v668_v58  ;;  %v686_v55 = vrot.slane %v5146_v10, 2 }
  0xf9   : > { %9840 = vst [vmem:[#allocation92_spill] sm:$0xff] %v5365_v56 }
  0xfa   : > { %v5394_v23 = vsel %vm609_vm4, %v685_v25, %v686_v55 }
  0xfb   : > { %860 = vrot.lane.b32.xlu2 %v5343_v7, %s4510_s8  ;;  %v5368_v7 = vsel %vm609_vm4, %v676_v13, %v678_v19  ;;  %v681_v19 = vrot.slane %v5117_v35, 2 }
  0xfc   : > { %v5362_v51 = vpop.permute.xlu0 %740  ;;  %9841 = vst [vmem:[#allocation93_spill] sm:$0xff] %v5368_v7  ;;  %v5382_v58 = vpop.permute.xlu1 %742 }
  0xfd   : > { %856 = vrot.lane.b32.xlu0 %v5346_v52, %s4510_s8  ;;  %v5360_v43 = vpop.permute.xlu2 %762  ;;  %9839 = vst [vmem:[#allocation91_spill] sm:$0xff] %v5362_v51  ;;  %858 = vrot.lane.b32.xlu1 %v5365_v56, %s4510_s8  ;;  %v5391_v51 = vsel %vm609_vm4, %v675_v1, %v676_v13  ;;  %v688_v13 = vrot.slane %v5166_v36, 2 }
  0xfe   : > { %9838 = vst [vmem:[#allocation90_spill] sm:$0xff] %v5360_v43 }
  0xff   : > { %9842 = vst [vmem:[#allocation94_spill] sm:$0xff] %v5382_v58  ;;  %v5417_v58 = vsel %vm609_vm4, %v686_v55, %v688_v13 }
 0x100   : > { %9845 = vst [vmem:[#allocation97_spill] sm:$0xff] %v5391_v51 }
 0x103   : > { %866 = vrot.lane.b32.xlu2 %v5368_v7, %s4510_s8  ;;  %v5397_v7 = vsel %vm609_vm4, %v680_v28, %v681_v19 }
 0x105   : > { %862 = vrot.lane.b32.xlu0 %v5371_v20, %s4510_s8  ;;  %v5386_v60 = vpop.permute.xlu2 %768  ;;  %v5388_v43 = vpop.permute.xlu0 %746  ;;  %864 = vrot.lane.b32.xlu1 %v5391_v51, %s4510_s8 }
 0x106   : > { %9843 = vst [vmem:[#allocation95_spill] sm:$0xff] %v5386_v60  ;;  %v683_v60 = vrot.slane %v5119_v29, 2 }
 0x107   : > { %9844 = vst [vmem:[#allocation96_spill] sm:$0xff] %v5388_v43  ;;  %v5406_v43 = vpop.permute.xlu1 %748 }
 0x108   : > { %9846 = vst [vmem:[#allocation98_spill] sm:$0xff] %v5406_v43  ;;  %v5414_v28 = vsel %vm609_vm4, %v681_v19, %v683_v60 }
 0x109   : > { %9849 = vst [vmem:[#allocation101_spill] sm:$0xff] %v5414_v28 }
 0x10b   : > { %872 = vrot.lane.b32.xlu2 %v5394_v23, %s4510_s8 }
 0x10d   : > { %868 = vrot.lane.b32.xlu0 %v5397_v7, %s4510_s8  ;;  %v5409_v1 = vpop.permute.xlu2 %774  ;;  %870 = vrot.lane.b32.xlu1 %v5414_v28, %s4510_s8 }
 0x10e   : > { %9847 = vst [vmem:[#allocation99_spill] sm:$0xff] %v5409_v1 }
 0x10f   : > { %v5411_v25 = vpop.permute.xlu0 %752  ;;  %v5425_v29 = vpop.permute.xlu1 %754 }
 0x110   : > { %9848 = vst [vmem:[#allocation100_spill] sm:$0xff] %v5411_v25 }
 0x111   : > { %9850 = vst [vmem:[#allocation102_spill] sm:$0xff] %v5425_v29 }
 0x113   : > { %910 = vrot.lane.b32.xlu2 %v4793_v24, %s4511_s9 }
 0x115   : > { %874 = vrot.lane.b32.xlu0 %v5417_v58, %s4510_s8  ;;  %v5427_v36 = vpop.permute.xlu2 %812  ;;  %908 = vrot.lane.b32.xlu1 %v4786_v22, %s4511_s9 }
 0x116   : > { %9851 = vst [vmem:[#allocation103_spill] sm:$0xff] %v5427_v36 }
 0x117   : > { %v5429_v1 = vpop.permute.xlu0 %758  ;;  %v5437_v55 = vpop.permute.xlu1 %760 }
 0x118   : > { %9852 = vst [vmem:[#allocation104_spill] sm:$0xff] %v5429_v1 }
 0x119   : > { %9853 = vst [vmem:[#allocation105_spill] sm:$0xff] %v5437_v55 }
 0x11b   : > { %916 = vrot.lane.b32.xlu2 %v4837_v38, %s4511_s9 }
 0x11d   : > { %912 = vrot.lane.b32.xlu0 %v4623_v8, %s4511_s9  ;;  %v5439_v24 = vpop.permute.xlu2 %818  ;;  %914 = vrot.lane.b32.xlu1 %v4627_v9, %s4511_s9 }
 0x11e   : > { %9854 = vst [vmem:[#allocation106_spill] sm:$0xff] %v5439_v24 }
 0x11f   : > { %v5441_v19 = vpop.permute.xlu0 %764  ;;  %v5449_v22 = vpop.permute.xlu1 %766 }
 0x120   : > { %9855 = vst [vmem:[#allocation107_spill] sm:$0xff] %v5441_v19 }
 0x121   : > { %9856 = vst [vmem:[#allocation108_spill] sm:$0xff] %v5449_v22  ;;  %v5495_v22 = vld [vmem:[%s4583_s29 + $0xf8] sm:$0xff] }
 0x122   : > { %9869 = vst [vmem:[#allocation121_spill] sm:$0xff] %v5495_v22 }
 0x123   : > { %922 = vrot.lane.b32.xlu2 %v4860_v46, %s4511_s9  ;;  %425 = vst.msk [vmem:[#allocation2 + $0x189] sm:$0xff] %vm279_vm0, %v5495_v22 }
 0x125   : > { %918 = vrot.lane.b32.xlu0 %v4844_v40, %s4511_s9  ;;  %v5451_v38 = vpop.permute.xlu2 %824  ;;  %920 = vrot.lane.b32.xlu1 %v4853_v44, %s4511_s9 }
 0x126   : > { %9857 = vst [vmem:[#allocation109_spill] sm:$0xff] %v5451_v38 }
 0x127   : > { %v5453_v8 = vpop.permute.xlu0 %770  ;;  %v5461_v9 = vpop.permute.xlu1 %772 }
 0x128   : > { %9858 = vst [vmem:[#allocation110_spill] sm:$0xff] %v5453_v8 }
 0x129   : > { %9859 = vst [vmem:[#allocation111_spill] sm:$0xff] %v5461_v9 }
 0x12b   : > { %928 = vrot.lane.b32.xlu2 %v4940_v27, %s4511_s9 }
 0x12d   : > { %924 = vrot.lane.b32.xlu0 %v4921_v6, %s4511_s9  ;;  %v5463_v40 = vpop.permute.xlu2 %830  ;;  %926 = vrot.lane.b32.xlu1 %v4882_v54, %s4511_s9 }
 0x12e   : > { %9860 = vst [vmem:[#allocation112_spill] sm:$0xff] %v5463_v40 }
 0x12f   : > { %v5465_v46 = vpop.permute.xlu0 %776  ;;  %v5473_v44 = vpop.permute.xlu1 %778 }
 0x130   : > { %9861 = vst [vmem:[#allocation113_spill] sm:$0xff] %v5465_v46 }
 0x131   : > { %9862 = vst [vmem:[#allocation114_spill] sm:$0xff] %v5473_v44  ;;  %v5492_v44 = vld [vmem:[%s4583_s29 + $0xf0] sm:$0xff] }
 0x132   : > { %9868 = vst [vmem:[#allocation120_spill] sm:$0xff] %v5492_v44 }
 0x133   : > { %934 = vrot.lane.b32.xlu2 %v4933_v14, %s4511_s9  ;;  %424 = vst.msk [vmem:[#allocation2 + $0x181] sm:$0xff] %vm279_vm0, %v5492_v44 }
 0x135   : > { %930 = vrot.lane.b32.xlu0 %v4942_v30, %s4511_s9  ;;  %v5475_v60 = vpop.permute.xlu2 %836  ;;  %932 = vrot.lane.b32.xlu1 %v4931_v11, %s4511_s9 }
 0x136   : > { %9863 = vst [vmem:[#allocation115_spill] sm:$0xff] %v5475_v60 }
 0x137   : > { %v5477_v13 = vpop.permute.xlu0 %814  ;;  %v5485_v46 = vpop.permute.xlu1 %816 }
 0x138   : > { %9864 = vst [vmem:[#allocation116_spill] sm:$0xff] %v5477_v13 }
 0x139   : > { %9865 = vst [vmem:[#allocation117_spill] sm:$0xff] %v5485_v46 }
 0x13b   : > { %940 = vrot.lane.b32.xlu2 %v5030_v47, %s4511_s9 }
 0x13d   : > { %936 = vrot.lane.b32.xlu0 %v5011_v42, %s4511_s9  ;;  %v5487_v9 = vpop.permute.xlu2 %842  ;;  %938 = vrot.lane.b32.xlu1 %v4981_v63, %s4511_s9 }
 0x13e   : > { %9866 = vst [vmem:[#allocation118_spill] sm:$0xff] %v5487_v9 }
 0x13f   : > { %v5489_v8 = vpop.permute.xlu0 %820  ;;  %v5507_v9 = vpop.permute.xlu1 %822 }
 0x140   : > { %9867 = vst [vmem:[#allocation119_spill] sm:$0xff] %v5489_v8 }
 0x141   : > { %9870 = vst [vmem:[#allocation122_spill] sm:$0xff] %v5507_v9 }
 0x143   : > { %946 = vrot.lane.b32.xlu2 %v5020_v34, %s4511_s9 }
 0x145   : > { %942 = vrot.lane.b32.xlu0 %v5032_v32, %s4511_s9  ;;  %v5509_v19 = vpop.permute.xlu2 %848  ;;  %944 = vrot.lane.b32.xlu1 %v5013_v39, %s4511_s9 }
 0x146   : > { %9871 = vst [vmem:[#allocation123_spill] sm:$0xff] %v5509_v19 }
 0x147   : > { %v5511_v60 = vpop.permute.xlu0 %826  ;;  %v5519_v44 = vpop.permute.xlu1 %828 }
 0x148   : > { %9872 = vst [vmem:[#allocation124_spill] sm:$0xff] %v5511_v60 }
 0x149   : > { %9873 = vst [vmem:[#allocation125_spill] sm:$0xff] %v5519_v44 }
 0x14b   : > { %952 = vrot.lane.b32.xlu2 %v5091_v37, %s4511_s9 }
 0x14d   : > { %948 = vrot.lane.b32.xlu0 %v5085_v17, %s4511_s9  ;;  %v5521_v55 = vpop.permute.xlu2 %854  ;;  %950 = vrot.lane.b32.xlu1 %v5060_v21, %s4511_s9 }
 0x14e   : > { %9874 = vst [vmem:[#allocation126_spill] sm:$0xff] %v5521_v55 }
 0x14f   : > { %v5523_v22 = vpop.permute.xlu0 %832  ;;  %v5531_v1 = vpop.permute.xlu1 %834 }
 0x150   : > { %9875 = vst [vmem:[#allocation127_spill] sm:$0xff] %v5523_v22 }
 0x151   : > { %9876 = vst [vmem:[#allocation128_spill] sm:$0xff] %v5531_v1  ;;  %v5549_v1 = vld [vmem:[#allocation2 + $0x188] sm:$0xff] }
 0x153   : > { %958 = vrot.lane.b32.xlu2 %v5089_v26, %s4511_s9 }
 0x155   : > { %954 = vrot.lane.b32.xlu0 %v5093_v45, %s4511_s9  ;;  %v5533_v40 = vpop.permute.xlu2 %860  ;;  %956 = vrot.lane.b32.xlu1 %v5087_v16, %s4511_s9 }
 0x156   : > { %9877 = vst [vmem:[#allocation129_spill] sm:$0xff] %v5533_v40 }
 0x157   : > { %v5535_v29 = vpop.permute.xlu0 %838  ;;  %v5543_v55 = vpop.permute.xlu1 %840 }
 0x158   : > { %9878 = vst [vmem:[#allocation130_spill] sm:$0xff] %v5535_v29 }
 0x159   : > { %9879 = vst [vmem:[#allocation131_spill] sm:$0xff] %v5543_v55 }
 0x15b   : > { %964 = vrot.lane.b32.xlu2 %v5144_v3, %s4511_s9 }
 0x15d   : > { %960 = vrot.lane.b32.xlu0 %v5142_v18, %s4511_s9  ;;  %v5545_v22 = vpop.permute.xlu2 %866  ;;  %962 = vrot.lane.b32.xlu1 %v5117_v35, %s4511_s9 }
 0x15e   : > { %9880 = vst [vmem:[#allocation132_spill] sm:$0xff] %v5545_v22  ;;  %v5563_v22 = vld [vmem:[#allocation2 + $0x180] sm:$0xff] }
 0x15f   : > { %v5547_v44 = vpop.permute.xlu0 %844  ;;  %v5557_v40 = vpop.permute.xlu1 %846 }
 0x160   : > { %9881 = vst [vmem:[#allocation133_spill] sm:$0xff] %v5547_v44  ;;  %v9897_v44 = vld [vmem:[#allocation26_spill] sm:$0xff] }
 0x161   : > { %9882 = vst [vmem:[#allocation134_spill] sm:$0xff] %v5557_v40 }
 0x163   : > { %970 = vrot.lane.b32.xlu2 %v5549_v1, %s4511_s9 }
 0x165   : > { %966 = vrot.lane.b32.xlu0 %v5146_v10, %s4511_s9  ;;  %v5559_v29 = vpop.permute.xlu2 %872  ;;  %968 = vrot.lane.b32.xlu1 %v5563_v22, %s4511_s9 }
 0x166   : > { %9883 = vst [vmem:[#allocation135_spill] sm:$0xff] %v5559_v29 }
 0x167   : > { %v5561_v55 = vpop.permute.xlu0 %850  ;;  %v5571_v19 = vpop.permute.xlu1 %852 }
 0x168   : > { %9884 = vst [vmem:[#allocation136_spill] sm:$0xff] %v5561_v55 }
 0x169   : > { %9885 = vst [vmem:[#allocation137_spill] sm:$0xff] %v5571_v19 }
 0x16b   : > { %1008 = vrot.lane.b32.xlu2 %v4638_v12, %s4512_s10 }
 0x16d   : > { %1004 = vrot.lane.b32.xlu0 %v4818_v33, %s4512_s10  ;;  %v5573_v25 = vpop.permute.xlu2 %910  ;;  %1006 = vrot.lane.b32.xlu1 %v4869_v49, %s4512_s10  ;;  %v9891_v49 = vld [vmem:[#allocation24_spill] sm:$0xff] }
 0x16e   : > { %9886 = vst [vmem:[#allocation138_spill] sm:$0xff] %v5573_v25 }
 0x16f   : > { %v5575_v40 = vpop.permute.xlu0 %856  ;;  %v5583_v29 = vpop.permute.xlu1 %858 }
 0x170   : > { %9887 = vst [vmem:[#allocation139_spill] sm:$0xff] %v5575_v40 }
 0x171   : > { %9888 = vst [vmem:[#allocation140_spill] sm:$0xff] %v5583_v29  ;;  %v9895_v29 = vld [vmem:[#allocation28_spill] sm:$0xff] }
 0x173   : > { %1014 = vrot.lane.b32.xlu2 %v4916_v0, %s4512_s10 }
 0x175   : > { %1010 = vrot.lane.b32.xlu0 %v4724_v15, %s4512_s10  ;;  %v5585_v55 = vpop.permute.xlu2 %916  ;;  %1012 = vrot.lane.b32.xlu1 %v4880_v53, %s4512_s10 }
 0x176   : > { %9889 = vst [vmem:[#allocation141_spill] sm:$0xff] %v5585_v55 }
 0x177   : > { %v5587_v33 = vpop.permute.xlu0 %862  ;;  %v5595_v40 = vpop.permute.xlu1 %864 }
 0x178   : > { %9890 = vst [vmem:[#allocation142_spill] sm:$0xff] %v5587_v33  ;;  %v9896_v33 = vld [vmem:[#allocation37_spill] sm:$0xff] }
 0x179   : > { %9892 = vst [vmem:[#allocation24_spill] sm:$0xff] %v5595_v40  ;;  %v9901_v40 = vld [vmem:[#allocation34_spill] sm:$0xff] }
 0x17b   : > { %1020 = vrot.lane.b32.xlu2 %v4969_v62, %s4512_s10 }
 0x17d   : > { %1016 = vrot.lane.b32.xlu0 %v9891_v49, %s4512_s10  ;;  %v5597_v19 = vpop.permute.xlu2 %922  ;;  %1018 = vrot.lane.b32.xlu1 %v9895_v29, %s4512_s10 }
 0x17e   : > { %9893 = vst [vmem:[#allocation143_spill] sm:$0xff] %v5597_v19  ;;  %v9903_v19 = vld [vmem:[#allocation33_spill] sm:$0xff] }
 0x17f   : > { %v5599_v60 = vpop.permute.xlu0 %868  ;;  %v5607_v38 = vpop.permute.xlu1 %870 }
 0x180   : > { %9894 = vst [vmem:[#allocation144_spill] sm:$0xff] %v5599_v60  ;;  %v9902_v60 = vld [vmem:[#allocation42_spill] sm:$0xff] }
 0x181   : > { %9898 = vst [vmem:[#allocation28_spill] sm:$0xff] %v5607_v38  ;;  %v9907_v38 = vld [vmem:[#allocation39_spill] sm:$0xff] }
 0x183   : > { %1026 = vrot.lane.b32.xlu2 %v9896_v33, %s4512_s10 }
 0x185   : > { %1022 = vrot.lane.b32.xlu0 %v9897_v44, %s4512_s10  ;;  %v5609_v43 = vpop.permute.xlu2 %928  ;;  %1024 = vrot.lane.b32.xlu1 %v9901_v40, %s4512_s10 }
 0x186   : > { %9899 = vst [vmem:[#allocation37_spill] sm:$0xff] %v5609_v43  ;;  %v9909_v43 = vld [vmem:[#allocation38_spill] sm:$0xff] }
 0x187   : > { %v5611_v9 = vpop.permute.xlu0 %874  ;;  %v5619_v55 = vpop.permute.xlu1 %908 }
 0x188   : > { %9900 = vst [vmem:[#allocation26_spill] sm:$0xff] %v5611_v9  ;;  %v9908_v9 = vld [vmem:[#allocation45_spill] sm:$0xff] }
 0x189   : > { %9904 = vst [vmem:[#allocation34_spill] sm:$0xff] %v5619_v55  ;;  %v9913_v55 = vld [vmem:[#allocation44_spill] sm:$0xff] }
 0x18b   : > { %1032 = vrot.lane.b32.xlu2 %v9902_v60, %s4512_s10 }
 0x18d   : > { %1028 = vrot.lane.b32.xlu0 %v9903_v19, %s4512_s10  ;;  %v5621_v8 = vpop.permute.xlu2 %934  ;;  %1030 = vrot.lane.b32.xlu1 %v9907_v38, %s4512_s10 }
 0x18e   : > { %9905 = vst [vmem:[#allocation33_spill] sm:$0xff] %v5621_v8  ;;  %v9914_v8 = vld [vmem:[#allocation48_spill] sm:$0xff] }
 0x18f   : > { %v5623_v24 = vpop.permute.xlu0 %912  ;;  %v5631_v46 = vpop.permute.xlu1 %914 }
 0x190   : > { %9906 = vst [vmem:[#allocation145_spill] sm:$0xff] %v5623_v24  ;;  %v9915_v24 = vld [vmem:[#allocation43_spill] sm:$0xff] }
 0x191   : > { %9910 = vst [vmem:[#allocation39_spill] sm:$0xff] %v5631_v46  ;;  %v9919_v46 = vld [vmem:[#allocation47_spill] sm:$0xff] }
 0x193   : > { %1038 = vrot.lane.b32.xlu2 %v9908_v9, %s4512_s10 }
 0x195   : > { %1034 = vrot.lane.b32.xlu0 %v9909_v43, %s4512_s10  ;;  %v5633_v25 = vpop.permute.xlu2 %940  ;;  %1036 = vrot.lane.b32.xlu1 %v9913_v55, %s4512_s10 }
 0x196   : > { %9911 = vst [vmem:[#allocation146_spill] sm:$0xff] %v5633_v25  ;;  %v9920_v25 = vld [vmem:[#allocation51_spill] sm:$0xff] }
 0x197   : > { %v5635_v13 = vpop.permute.xlu0 %918  ;;  %v5643_v36 = vpop.permute.xlu1 %920 }
 0x198   : > { %9912 = vst [vmem:[#allocation147_spill] sm:$0xff] %v5635_v13  ;;  %v9921_v13 = vld [vmem:[#allocation46_spill] sm:$0xff] }
 0x199   : > { %9916 = vst [vmem:[#allocation44_spill] sm:$0xff] %v5643_v36  ;;  %v9925_v36 = vld [vmem:[#allocation50_spill] sm:$0xff] }
 0x19b   : > { %1044 = vrot.lane.b32.xlu2 %v9914_v8, %s4512_s10 }
 0x19d   : > { %1040 = vrot.lane.b32.xlu0 %v9915_v24, %s4512_s10  ;;  %v5645_v9 = vpop.permute.xlu2 %946  ;;  %1042 = vrot.lane.b32.xlu1 %v9919_v46, %s4512_s10 }
 0x19e   : > { %9917 = vst [vmem:[#allocation148_spill] sm:$0xff] %v5645_v9  ;;  %v9926_v9 = vld [vmem:[#allocation54_spill] sm:$0xff] }
 0x19f   : > { %v5647_v43 = vpop.permute.xlu0 %924  ;;  %v5655_v60 = vpop.permute.xlu1 %926 }
 0x1a0   : > { %9918 = vst [vmem:[#allocation149_spill] sm:$0xff] %v5647_v43  ;;  %v9927_v43 = vld [vmem:[#allocation49_spill] sm:$0xff] }
 0x1a1   : > { %9922 = vst [vmem:[#allocation150_spill] sm:$0xff] %v5655_v60  ;;  %v9931_v60 = vld [vmem:[#allocation53_spill] sm:$0xff] }
 0x1a3   : > { %1050 = vrot.lane.b32.xlu2 %v9920_v25, %s4512_s10 }
 0x1a5   : > { %1046 = vrot.lane.b32.xlu0 %v9921_v13, %s4512_s10  ;;  %v5657_v8 = vpop.permute.xlu2 %952  ;;  %1048 = vrot.lane.b32.xlu1 %v9925_v36, %s4512_s10 }
 0x1a6   : > { %9923 = vst [vmem:[#allocation151_spill] sm:$0xff] %v5657_v8  ;;  %v9932_v8 = vld [vmem:[#allocation52_spill] sm:$0xff] }
 0x1a7   : > { %v5659_v24 = vpop.permute.xlu0 %930  ;;  %v5667_v46 = vpop.permute.xlu1 %932 }
 0x1a8   : > { %9924 = vst [vmem:[#allocation152_spill] sm:$0xff] %v5659_v24 }
 0x1a9   : > { %9928 = vst [vmem:[#allocation50_spill] sm:$0xff] %v5667_v46  ;;  %v694_v46 = vrot.slane %v5549_v1, 1 }
 0x1ab   : > { %1056 = vrot.lane.b32.xlu2 %v9926_v9, %s4512_s10 }
 0x1ad   : > { %1052 = vrot.lane.b32.xlu0 %v9927_v43, %s4512_s10  ;;  %v5669_v25 = vpop.permute.xlu2 %958  ;;  %1054 = vrot.lane.b32.xlu1 %v9931_v60, %s4512_s10  ;;  %v693_v43 = vrot.slane %v5563_v22, 1  ;;  %v5690_v60 = vld [vmem:[#allocation2 + $0x190] sm:$0x3] }
 0x1ae   : > { %9929 = vst [vmem:[#allocation153_spill] sm:$0xff] %v5669_v25 }
 0x1af   : > { %v5671_v13 = vpop.permute.xlu0 %936  ;;  %v5679_v24 = vpop.permute.xlu1 %938 }
 0x1b0   : > { %9930 = vst [vmem:[#allocation154_spill] sm:$0xff] %v5671_v13  ;;  %v5688_v13 = vsel %vm528_vm2, %v693_v43, %v694_v46 }
 0x1b1   : > { %9933 = vst [vmem:[#allocation155_spill] sm:$0xff] %v5679_v24 }
 0x1b2   : > { %9936 = vst [vmem:[#allocation158_spill] sm:$0xff] %v5688_v13 }
 0x1b3   : > { %1062 = vrot.lane.b32.xlu2 %v5178_v41, %s4512_s10  ;;  %v9937_v41 = vld [vmem:[#allocation59_spill] sm:$0xff] }
 0x1b5   : > { %1058 = vrot.lane.b32.xlu0 %v9932_v8, %s4512_s10  ;;  %v5681_v9 = vpop.permute.xlu2 %964  ;;  %1060 = vrot.lane.b32.xlu1 %v5164_v48, %s4512_s10 }
 0x1b6   : > { %9934 = vst [vmem:[#allocation156_spill] sm:$0xff] %v5681_v9  ;;  %v696_v9 = vrot.slane %v5690_v60, 1 }
 0x1b7   : > { %v5685_v25 = vpop.permute.xlu0 %942  ;;  %v5699_v24 = vpop.permute.xlu1 %944 }
 0x1b8   : > { %9935 = vst [vmem:[#allocation157_spill] sm:$0xff] %v5685_v25  ;;  %v5706_v8 = vsel %vm528_vm2, %v694_v46, %v696_v9  ;;  %v9945_v9 = vld [vmem:[#allocation60_spill] sm:$0xff] }
 0x1b9   : > { %9938 = vst [vmem:[#allocation59_spill] sm:$0xff] %v5699_v24 }
 0x1bb   : > { %1100 = vrot.lane.b32.xlu2 %v9937_v41, %s4513_s11  ;;  %v9941_v41 = vld [vmem:[#allocation57_spill] sm:$0xff] }
 0x1bd   : > { %1064 = vrot.lane.b32.xlu0 %v5688_v13, %s4512_s10  ;;  %v5701_v25 = vpop.permute.xlu2 %970  ;;  %1066 = vrot.lane.b32.xlu1 %v5706_v8, %s4512_s10 }
 0x1be   : > { %9939 = vst [vmem:[#allocation159_spill] sm:$0xff] %v5701_v25 }
 0x1bf   : > { %v5703_v43 = vpop.permute.xlu0 %948  ;;  %v5714_v13 = vpop.permute.xlu1 %950 }
 0x1c0   : > { %9940 = vst [vmem:[#allocation160_spill] sm:$0xff] %v5703_v43 }
 0x1c1   : > { %9942 = vst [vmem:[#allocation57_spill] sm:$0xff] %v5714_v13  ;;  %v9949_v13 = vld [vmem:[#allocation63_spill] sm:$0xff] }
 0x1c3   : > { %1106 = vrot.lane.b32.xlu2 %v5218_v59, %s4513_s11 }
 0x1c5   : > { %1102 = vrot.lane.b32.xlu0 %v9941_v41, %s4513_s11  ;;  %v5716_v48 = vpop.permute.xlu2 %1008  ;;  %1104 = vrot.lane.b32.xlu1 %v5203_v5, %s4513_s11 }
 0x1c6   : > { %9943 = vst [vmem:[#allocation161_spill] sm:$0xff] %v5716_v48 }
 0x1c7   : > { %v5718_v24 = vpop.permute.xlu0 %954  ;;  %v5726_v46 = vpop.permute.xlu1 %956 }
 0x1c8   : > { %9944 = vst [vmem:[#allocation162_spill] sm:$0xff] %v5718_v24  ;;  %v9950_v24 = vld [vmem:[#allocation62_spill] sm:$0xff] }
 0x1c9   : > { %9946 = vst [vmem:[#allocation60_spill] sm:$0xff] %v5726_v46  ;;  %v9954_v46 = vld [vmem:[#allocation67_spill] sm:$0xff] }
 0x1cb   : > { %1112 = vrot.lane.b32.xlu2 %v5240_v31, %s4513_s11 }
 0x1cd   : > { %1108 = vrot.lane.b32.xlu0 %v9945_v9, %s4513_s11  ;;  %v5728_v25 = vpop.permute.xlu2 %1014  ;;  %1110 = vrot.lane.b32.xlu1 %v9949_v13, %s4513_s11 }
 0x1ce   : > { %9947 = vst [vmem:[#allocation163_spill] sm:$0xff] %v5728_v25 }
 0x1cf   : > { %v5730_v41 = vpop.permute.xlu0 %960  ;;  %v5738_v43 = vpop.permute.xlu1 %962 }
 0x1d0   : > { %9948 = vst [vmem:[#allocation164_spill] sm:$0xff] %v5730_v41  ;;  %v9955_v41 = vld [vmem:[#allocation66_spill] sm:$0xff] }
 0x1d1   : > { %9951 = vst [vmem:[#allocation63_spill] sm:$0xff] %v5738_v43  ;;  %v9959_v43 = vld [vmem:[#allocation72_spill] sm:$0xff] }
 0x1d3   : > { %1118 = vrot.lane.b32.xlu2 %v5263_v61, %s4513_s11 }
 0x1d5   : > { %1114 = vrot.lane.b32.xlu0 %v9950_v24, %s4513_s11  ;;  %v5740_v48 = vpop.permute.xlu2 %1020  ;;  %1116 = vrot.lane.b32.xlu1 %v9954_v46, %s4513_s11 }
 0x1d6   : > { %9952 = vst [vmem:[#allocation165_spill] sm:$0xff] %v5740_v48 }
 0x1d7   : > { %v5742_v31 = vpop.permute.xlu0 %966  ;;  %v5750_v25 = vpop.permute.xlu1 %968 }
 0x1d8   : > { %9953 = vst [vmem:[#allocation166_spill] sm:$0xff] %v5742_v31  ;;  %v9960_v31 = vld [vmem:[#allocation71_spill] sm:$0xff] }
 0x1d9   : > { %9956 = vst [vmem:[#allocation67_spill] sm:$0xff] %v5750_v25  ;;  %v9964_v25 = vld [vmem:[#allocation77_spill] sm:$0xff] }
 0x1db   : > { %1124 = vrot.lane.b32.xlu2 %v5289_v4, %s4513_s11 }
 0x1dd   : > { %1120 = vrot.lane.b32.xlu0 %v9955_v41, %s4513_s11  ;;  %v5752_v61 = vpop.permute.xlu2 %1026  ;;  %1122 = vrot.lane.b32.xlu1 %v9959_v43, %s4513_s11 }
 0x1de   : > { %9957 = vst [vmem:[#allocation167_spill] sm:$0xff] %v5752_v61 }
 0x1df   : > { %v5754_v24 = vpop.permute.xlu0 %1004  ;;  %v5762_v48 = vpop.permute.xlu1 %1006 }
 0x1e0   : > { %9958 = vst [vmem:[#allocation168_spill] sm:$0xff] %v5754_v24 }
 0x1e1   : > { %9961 = vst [vmem:[#allocation72_spill] sm:$0xff] %v5762_v48  ;;  %v9968_v48 = vld [vmem:[#allocation83_spill] sm:$0xff] }
 0x1e3   : > { %1130 = vrot.lane.b32.xlu2 %v5314_v57, %s4513_s11 }
 0x1e5   : > { %1126 = vrot.lane.b32.xlu0 %v9960_v31, %s4513_s11  ;;  %v5764_v4 = vpop.permute.xlu2 %1032  ;;  %1128 = vrot.lane.b32.xlu1 %v5295_v2, %s4513_s11 }
 0x1e6   : > { %9962 = vst [vmem:[#allocation71_spill] sm:$0xff] %v5764_v4  ;;  %v9969_v4 = vld [vmem:[#allocation82_spill] sm:$0xff] }
 0x1e7   : > { %v5766_v41 = vpop.permute.xlu0 %1010  ;;  %v5774_v61 = vpop.permute.xlu1 %1012 }
 0x1e8   : > { %9963 = vst [vmem:[#allocation169_spill] sm:$0xff] %v5766_v41 }
 0x1e9   : > { %9965 = vst [vmem:[#allocation170_spill] sm:$0xff] %v5774_v61 }
 0x1eb   : > { %1136 = vrot.lane.b32.xlu2 %v5340_v50, %s4513_s11 }
 0x1ed   : > { %1132 = vrot.lane.b32.xlu0 %v9964_v25, %s4513_s11  ;;  %v5776_v24 = vpop.permute.xlu2 %1038  ;;  %1134 = vrot.lane.b32.xlu1 %v9968_v48, %s4513_s11 }
 0x1ee   : > { %9966 = vst [vmem:[#allocation171_spill] sm:$0xff] %v5776_v24  ;;  %v9973_v24 = vld [vmem:[#allocation88_spill] sm:$0xff] }
 0x1ef   : > { %v5778_v57 = vpop.permute.xlu0 %1016  ;;  %v5786_v41 = vpop.permute.xlu1 %1018 }
 0x1f0   : > { %9967 = vst [vmem:[#allocation172_spill] sm:$0xff] %v5778_v57 }
 0x1f1   : > { %9970 = vst [vmem:[#allocation83_spill] sm:$0xff] %v5786_v41  ;;  %v9977_v41 = vld [vmem:[#allocation93_spill] sm:$0xff] }
 0x1f3   : > { %1142 = vrot.lane.b32.xlu2 %v5365_v56, %s4513_s11 }
 0x1f5   : > { %1138 = vrot.lane.b32.xlu0 %v9969_v4, %s4513_s11  ;;  %v5788_v50 = vpop.permute.xlu2 %1044  ;;  %1140 = vrot.lane.b32.xlu1 %v5346_v52, %s4513_s11 }
 0x1f6   : > { %9971 = vst [vmem:[#allocation82_spill] sm:$0xff] %v5788_v50  ;;  %v699_v50 = vrot.slane %v5549_v1, 2 }
 0x1f7   : > { %v5790_v25 = vpop.permute.xlu0 %1022  ;;  %v5798_v57 = vpop.permute.xlu1 %1024 }
 0x1f8   : > { %9972 = vst [vmem:[#allocation173_spill] sm:$0xff] %v5790_v25  ;;  %v698_v25 = vrot.slane %v5563_v22, 2 }
 0x1f9   : > { %9974 = vst [vmem:[#allocation88_spill] sm:$0xff] %v5798_v57 }
 0x1fb   : > { %1148 = vrot.lane.b32.xlu2 %v5391_v51, %s4513_s11 }
 0x1fd   : > { %1144 = vrot.lane.b32.xlu0 %v9973_v24, %s4513_s11  ;;  %v5800_v61 = vpop.permute.xlu2 %1050  ;;  %1146 = vrot.lane.b32.xlu1 %v5371_v20, %s4513_s11 }
 0x1fe   : > { %9975 = vst [vmem:[#allocation174_spill] sm:$0xff] %v5800_v61 }
 0x1ff   : > { %v5802_v56 = vpop.permute.xlu0 %1028  ;;  %v5812_v51 = vpop.permute.xlu1 %1030 }
 0x200   : > { %9976 = vst [vmem:[#allocation175_spill] sm:$0xff] %v5802_v56  ;;  %v5819_v56 = vsel %vm609_vm4, %v698_v25, %v699_v50 }
 0x201   : > { %9978 = vst [vmem:[#allocation176_spill] sm:$0xff] %v5812_v51 }
 0x203   : > { %1154 = vrot.lane.b32.xlu2 %v5414_v28, %s4513_s11 }
 0x205   : > { %1150 = vrot.lane.b32.xlu0 %v9977_v41, %s4513_s11  ;;  %v5814_v57 = vpop.permute.xlu2 %1056  ;;  %1152 = vrot.lane.b32.xlu1 %v5397_v7, %s4513_s11 }
 0x206   : > { %9979 = vst [vmem:[#allocation177_spill] sm:$0xff] %v5814_v57  ;;  %v701_v57 = vrot.slane %v5690_v60, 2 }
 0x207   : > { %v5816_v61 = vpop.permute.xlu0 %1034  ;;  %v5827_v28 = vpop.permute.xlu1 %1036 }
 0x208   : > { %9980 = vst [vmem:[#allocation178_spill] sm:$0xff] %v5816_v61  ;;  %v5835_v25 = vsel %vm609_vm4, %v699_v50, %v701_v57  ;;  %v5839_v61 = vld [vmem:[#allocation2 + $0x38] sm:$0xff]  ;;  %v5851_v57 = vld [vmem:[#allocation2 + $0x30] sm:$0xff]  ;;  %v5855_v50 = vld [vmem:[#allocation2 + $0x60] sm:$0xff] }
 0x209   : > { %9981 = vst [vmem:[#allocation179_spill] sm:$0xff] %v5827_v28  ;;  %v5859_v28 = vld [vmem:[#allocation2 + $0x48] sm:$0xff] }
 0x20a   : > { %9984 = vst [vmem:[#allocation182_spill] sm:$0xff] %v5835_v25 }
 0x20b   : > { %1160 = vrot.lane.b32.xlu2 %v5819_v56, %s4513_s11  ;;  %9985 = vst [vmem:[#allocation183_spill] sm:$0xff] %v5839_v61 }
 0x20c   : > { %9988 = vst [vmem:[#allocation186_spill] sm:$0xff] %v5851_v57 }
 0x20d   : > { %1156 = vrot.lane.b32.xlu0 %v5394_v23, %s4513_s11  ;;  %v5829_v41 = vpop.permute.xlu2 %1062  ;;  %1158 = vrot.lane.b32.xlu1 %v5417_v58, %s4513_s11  ;;  %9989 = vst [vmem:[#allocation187_spill] sm:$0xff] %v5855_v50 }
 0x20e   : > { %9982 = vst [vmem:[#allocation180_spill] sm:$0xff] %v5829_v41 }
 0x20f   : > { %v5832_v51 = vpop.permute.xlu0 %1040  ;;  %v5845_v41 = vpop.permute.xlu1 %1042  ;;  %9990 = vst [vmem:[#allocation188_spill] sm:$0xff] %v5859_v28 }
 0x210   : > { %9983 = vst [vmem:[#allocation181_spill] sm:$0xff] %v5832_v51 }
 0x211   : > { %9986 = vst [vmem:[#allocation184_spill] sm:$0xff] %v5845_v41 }
 0x213   : > { %1198 = vrot.lane.b32.xlu2 %v5839_v61, %s4514_s12 }
 0x215   : > { %1162 = vrot.lane.b32.xlu0 %v5835_v25, %s4513_s11  ;;  %v5847_v60 = vpop.permute.xlu2 %1100  ;;  %1196 = vrot.lane.b32.xlu1 %v5851_v57, %s4514_s12  ;;  %v5869_v25 = vld [vmem:[#allocation2 + $0x50] sm:$0xff] }
 0x217   : > { %v5849_v51 = vpop.permute.xlu0 %1046  ;;  %v5863_v41 = vpop.permute.xlu1 %1048 }
 0x218   : > { %9987 = vst [vmem:[#allocation185_spill] sm:$0xff] %v5849_v51 }
 0x219   : > { %9991 = vst [vmem:[#allocation189_spill] sm:$0xff] %v5863_v41 }
 0x21b   : > { %1204 = vrot.lane.b32.xlu2 %v5855_v50, %s4514_s12  ;;  %v5875_v50 = vld [vmem:[#allocation2 + $0x68] sm:$0xff] }
 0x21c   : > { %9993 = vst [vmem:[#allocation191_spill] sm:$0xff] %v5875_v50 }
 0x21d   : > { %1200 = vrot.lane.b32.xlu0 %v5859_v28, %s4514_s12  ;;  %v5865_v61 = vpop.permute.xlu2 %1106  ;;  %1202 = vrot.lane.b32.xlu1 %v5869_v25, %s4514_s12 }
 0x21f   : > { %v5867_v51 = vpop.permute.xlu0 %1052  ;;  %v5879_v28 = vpop.permute.xlu1 %1054 }
 0x220   : > { %9992 = vst [vmem:[#allocation190_spill] sm:$0xff] %v5867_v51 }
 0x221   : > { %9994 = vst [vmem:[#allocation192_spill] sm:$0xff] %v5879_v28 }
 0x223   : > { %1210 = vrot.lane.b32.xlu2 %v4882_v54, %s4514_s12 }
 0x225   : > { %1206 = vrot.lane.b32.xlu0 %v5875_v50, %s4514_s12  ;;  %v5881_v41 = vpop.permute.xlu2 %1112  ;;  %1208 = vrot.lane.b32.xlu1 %v4921_v6, %s4514_s12 }
 0x227   : > { %v5883_v57 = vpop.permute.xlu0 %1058  ;;  %v5891_v54 = vpop.permute.xlu1 %1060 }
 0x228   : > { %9995 = vst [vmem:[#allocation193_spill] sm:$0xff] %v5883_v57 }
 0x229   : > { %9996 = vst [vmem:[#allocation194_spill] sm:$0xff] %v5891_v54 }
 0x22b   : > { %1216 = vrot.lane.b32.xlu2 %v4931_v11, %s4514_s12 }
 0x22d   : > { %1212 = vrot.lane.b32.xlu0 %v4940_v27, %s4514_s12  ;;  %v5893_v51 = vpop.permute.xlu2 %1118  ;;  %1214 = vrot.lane.b32.xlu1 %v4942_v30, %s4514_s12 }
 0x22f   : > { %v5895_v50 = vpop.permute.xlu0 %1064  ;;  %v5903_v6 = vpop.permute.xlu1 %1066 }
 0x230   : > { %9997 = vst [vmem:[#allocation195_spill] sm:$0xff] %v5895_v50  ;;  %v5983_v50 = vld [vmem:[#allocation2 + $0x198] sm:$0xff] }
 0x231   : > { %9998 = vst [vmem:[#allocation196_spill] sm:$0xff] %v5903_v6  ;;  %v5969_v6 = vld [vmem:[#allocation2 + $0x1a0] sm:$0xff] }
 0x232   : > { %v707_v57 = vrot.slane %v5969_v6, 1 }
 0x233   : > { %1222 = vrot.lane.b32.xlu2 %v4981_v63, %s4514_s12 }
 0x235   : > { %1218 = vrot.lane.b32.xlu0 %v4933_v14, %s4514_s12  ;;  %v5905_v11 = vpop.permute.xlu2 %1124  ;;  %1220 = vrot.lane.b32.xlu1 %v5011_v42, %s4514_s12 }
 0x236   : > { %9999 = vst [vmem:[#allocation197_spill] sm:$0xff] %v5905_v11 }
 0x237   : > { %v5907_v27 = vpop.permute.xlu0 %1102  ;;  %v5915_v30 = vpop.permute.xlu1 %1104 }
 0x23b   : > { %1228 = vrot.lane.b32.xlu2 %v5013_v39, %s4514_s12 }
 0x23d   : > { %1224 = vrot.lane.b32.xlu0 %v5030_v47, %s4514_s12  ;;  %v5917_v63 = vpop.permute.xlu2 %1130  ;;  %1226 = vrot.lane.b32.xlu1 %v5032_v32, %s4514_s12 }
 0x23e   : > { %10000 = vst [vmem:[#allocation198_spill] sm:$0xff] %v5917_v63 }
 0x23f   : > { %v5919_v14 = vpop.permute.xlu0 %1108  ;;  %v5927_v42 = vpop.permute.xlu1 %1110 }
 0x243   : > { %1234 = vrot.lane.b32.xlu2 %v5060_v21, %s4514_s12 }
 0x245   : > { %1230 = vrot.lane.b32.xlu0 %v5020_v34, %s4514_s12  ;;  %v5929_v39 = vpop.permute.xlu2 %1136  ;;  %1232 = vrot.lane.b32.xlu1 %v5085_v17, %s4514_s12 }
 0x247   : > { %v5931_v47 = vpop.permute.xlu0 %1114  ;;  %v5939_v32 = vpop.permute.xlu1 %1116 }
 0x24b   : > { %1240 = vrot.lane.b32.xlu2 %v5087_v16, %s4514_s12 }
 0x24d   : > { %1236 = vrot.lane.b32.xlu0 %v5091_v37, %s4514_s12  ;;  %v5941_v21 = vpop.permute.xlu2 %1142  ;;  %1238 = vrot.lane.b32.xlu1 %v5093_v45, %s4514_s12 }
 0x24f   : > { %v5943_v34 = vpop.permute.xlu0 %1120  ;;  %v5951_v17 = vpop.permute.xlu1 %1122 }
 0x253   : > { %1246 = vrot.lane.b32.xlu2 %v5117_v35, %s4514_s12 }
 0x255   : > { %1242 = vrot.lane.b32.xlu0 %v5089_v26, %s4514_s12  ;;  %v5953_v16 = vpop.permute.xlu2 %1148  ;;  %1244 = vrot.lane.b32.xlu1 %v5142_v18, %s4514_s12 }
 0x256   : > { %10001 = vst [vmem:[#allocation199_spill] sm:$0xff] %v5953_v16  ;;  %v10021_v16 = vld [vmem:[#allocation53_spill] sm:$0xff] }
 0x257   : > { %v5955_v37 = vpop.permute.xlu0 %1126  ;;  %v5963_v45 = vpop.permute.xlu1 %1128 }
 0x258   : > { %10002 = vst [vmem:[#allocation200_spill] sm:$0xff] %v5955_v37 }
 0x259   : > { %10003 = vst [vmem:[#allocation201_spill] sm:$0xff] %v5963_v45  ;;  %v10020_v45 = vld [vmem:[#allocation46_spill] sm:$0xff] }
 0x25b   : > { %1252 = vrot.lane.b32.xlu2 %v5563_v22, %s4514_s12 }
 0x25d   : > { %1248 = vrot.lane.b32.xlu0 %v5144_v3, %s4514_s12  ;;  %v5965_v35 = vpop.permute.xlu2 %1154  ;;  %1250 = vrot.lane.b32.xlu1 %v5146_v10, %s4514_s12 }
 0x25e   : > { %10004 = vst [vmem:[#allocation202_spill] sm:$0xff] %v5965_v35 }
 0x25f   : > { %v5967_v26 = vpop.permute.xlu0 %1132  ;;  %v5977_v18 = vpop.permute.xlu1 %1134 }
 0x263   : > { %1258 = vrot.lane.b32.xlu2 %v5969_v6, %s4514_s12 }
 0x265   : > { %1254 = vrot.lane.b32.xlu0 %v5549_v1, %s4514_s12  ;;  %v5979_v3 = vpop.permute.xlu2 %1160  ;;  %1256 = vrot.lane.b32.xlu1 %v5983_v50, %s4514_s12 }
 0x266   : > { %10005 = vst [vmem:[#allocation203_spill] sm:$0xff] %v5979_v3 }
 0x267   : > { %v5981_v22 = vpop.permute.xlu0 %1138  ;;  %v5991_v10 = vpop.permute.xlu1 %1140 }
 0x26b   : > { %1296 = vrot.lane.b32.xlu2 %v4880_v53, %s4515_s13 }
 0x26d   : > { %1292 = vrot.lane.b32.xlu0 %v4638_v12, %s4515_s13  ;;  %v5993_v1 = vpop.permute.xlu2 %1198  ;;  %1294 = vrot.lane.b32.xlu1 %v4724_v15, %s4515_s13 }
 0x26f   : > { %v5995_v54 = vpop.permute.xlu0 %1144  ;;  %v6003_v3 = vpop.permute.xlu1 %1146 }
 0x270   : > { %10006 = vst [vmem:[#allocation204_spill] sm:$0xff] %v5995_v54  ;;  %v10030_v54 = vld [vmem:[#allocation52_spill] sm:$0xff] }
 0x271   : > { %10007 = vst [vmem:[#allocation205_spill] sm:$0xff] %v6003_v3  ;;  %v10025_v3 = vld [vmem:[#allocation55_spill] sm:$0xff] }
 0x273   : > { %1302 = vrot.lane.b32.xlu2 %v9895_v29, %s4515_s13 }
 0x275   : > { %1298 = vrot.lane.b32.xlu0 %v4916_v0, %s4515_s13  ;;  %v6005_v53 = vpop.permute.xlu2 %1204  ;;  %1300 = vrot.lane.b32.xlu1 %v9891_v49, %s4515_s13 }
 0x277   : > { %v6007_v12 = vpop.permute.xlu0 %1150  ;;  %v6015_v15 = vpop.permute.xlu1 %1152 }
 0x278   : > { %10008 = vst [vmem:[#allocation206_spill] sm:$0xff] %v6007_v12  ;;  %v10018_v12 = vld [vmem:[#allocation43_spill] sm:$0xff] }
 0x279   : > { %10009 = vst [vmem:[#allocation207_spill] sm:$0xff] %v6015_v15  ;;  %v706_v15 = vrot.slane %v5983_v50, 1 }
 0x27b   : > { %1308 = vrot.lane.b32.xlu2 %v9901_v40, %s4515_s13 }
 0x27d   : > { %1304 = vrot.lane.b32.xlu0 %v4969_v62, %s4515_s13  ;;  %v6017_v29 = vpop.permute.xlu2 %1210  ;;  %1306 = vrot.lane.b32.xlu1 %v9897_v44, %s4515_s13  ;;  %v10013_v44 = vld [vmem:[#allocation42_spill] sm:$0xff] }
 0x27f   : > { %v6019_v0 = vpop.permute.xlu0 %1156  ;;  %v6027_v49 = vpop.permute.xlu1 %1158 }
 0x280   : > { %10010 = vst [vmem:[#allocation208_spill] sm:$0xff] %v6019_v0 }
 0x281   : > { %10011 = vst [vmem:[#allocation209_spill] sm:$0xff] %v6027_v49  ;;  %v10015_v49 = vld [vmem:[#allocation38_spill] sm:$0xff] }
 0x283   : > { %1314 = vrot.lane.b32.xlu2 %v9907_v38, %s4515_s13 }
 0x285   : > { %1310 = vrot.lane.b32.xlu0 %v9896_v33, %s4515_s13  ;;  %v6029_v40 = vpop.permute.xlu2 %1216  ;;  %1312 = vrot.lane.b32.xlu1 %v9903_v19, %s4515_s13  ;;  %v10017_v19 = vld [vmem:[#allocation45_spill] sm:$0xff] }
 0x287   : > { %v6031_v62 = vpop.permute.xlu0 %1162  ;;  %v6039_v0 = vpop.permute.xlu1 %1196 }
 0x288   : > { %10012 = vst [vmem:[#allocation210_spill] sm:$0xff] %v6031_v62  ;;  %v10016_v62 = vld [vmem:[#allocation47_spill] sm:$0xff] }
 0x28b   : > { %1320 = vrot.lane.b32.xlu2 %v9913_v55, %s4515_s13 }
 0x28d   : > { %1316 = vrot.lane.b32.xlu0 %v10013_v44, %s4515_s13  ;;  %v6041_v38 = vpop.permute.xlu2 %1222  ;;  %1318 = vrot.lane.b32.xlu1 %v10015_v49, %s4515_s13  ;;  %v708_v49 = vsel %vm528_vm2, %v706_v15, %v707_v57 }
 0x28e   : > { %10014 = vst [vmem:[#allocation42_spill] sm:$0xff] %v6041_v38  ;;  %v10024_v38 = vld [vmem:[#allocation49_spill] sm:$0xff] }
 0x28f   : > { %v6043_v33 = vpop.permute.xlu0 %1200  ;;  %v6051_v35 = vpop.permute.xlu1 %1202 }
 0x293   : > { %1326 = vrot.lane.b32.xlu2 %v10016_v62, %s4515_s13  ;;  %v10019_v62 = vld [vmem:[#allocation48_spill] sm:$0xff] }
 0x295   : > { %1322 = vrot.lane.b32.xlu0 %v10017_v19, %s4515_s13  ;;  %v6053_v55 = vpop.permute.xlu2 %1228  ;;  %1324 = vrot.lane.b32.xlu1 %v10018_v12, %s4515_s13  ;;  %v10022_v12 = vld [vmem:[#allocation51_spill] sm:$0xff] }
 0x297   : > { %v6055_v44 = vpop.permute.xlu0 %1206  ;;  %v6066_v19 = vpop.permute.xlu1 %1208 }
 0x29b   : > { %1332 = vrot.lane.b32.xlu2 %v9925_v36, %s4515_s13 }
 0x29d   : > { %1328 = vrot.lane.b32.xlu0 %v10019_v62, %s4515_s13  ;;  %v6068_v63 = vpop.permute.xlu2 %1234  ;;  %1330 = vrot.lane.b32.xlu1 %v10020_v45, %s4515_s13  ;;  %v10026_v45 = vld [vmem:[#allocation54_spill] sm:$0xff] }
 0x29f   : > { %v6070_v28 = vpop.permute.xlu0 %1212  ;;  %v6078_v36 = vpop.permute.xlu1 %1214 }
 0x2a3   : > { %1338 = vrot.lane.b32.xlu2 %v10021_v16, %s4515_s13 }
 0x2a5   : > { %1334 = vrot.lane.b32.xlu0 %v10022_v12, %s4515_s13  ;;  %v6080_v15 = vpop.permute.xlu2 %1240  ;;  %1336 = vrot.lane.b32.xlu1 %v10024_v38, %s4515_s13  ;;  %v10031_v38 = vld [vmem:[#allocation56_spill] sm:$0xff] }
 0x2a6   : > { %10023 = vst [vmem:[#allocation38_spill] sm:$0xff] %v6080_v15 }
 0x2a7   : > { %v6082_v62 = vpop.permute.xlu0 %1218  ;;  %v6090_v37 = vpop.permute.xlu1 %1220 }
 0x2a8   : > { %10027 = vst [vmem:[#allocation47_spill] sm:$0xff] %v6090_v37  ;;  %v6108_v37 = vld [vmem:[#allocation2 + $0x1a8] sm:$0x3] }
 0x2ab   : > { %1344 = vrot.lane.b32.xlu2 %v10025_v3, %s4515_s13 }
 0x2ad   : > { %1340 = vrot.lane.b32.xlu0 %v10026_v45, %s4515_s13  ;;  %v6092_v16 = vpop.permute.xlu2 %1246  ;;  %1342 = vrot.lane.b32.xlu1 %v10030_v54, %s4515_s13 }
 0x2ae   : > { %10028 = vst [vmem:[#allocation45_spill] sm:$0xff] %v6092_v16  ;;  %v10034_v16 = vld [vmem:[#allocation158_spill] sm:$0xff] }
 0x2af   : > { %v6094_v12 = vpop.permute.xlu0 %1224  ;;  %v6102_v15 = vpop.permute.xlu1 %1226 }
 0x2b0   : > { %10029 = vst [vmem:[#allocation43_spill] sm:$0xff] %v6094_v12  ;;  %v10051_v12 = vld [vmem:[#allocation77_spill] sm:$0xff] }
 0x2b1   : > { %10032 = vst [vmem:[#allocation48_spill] sm:$0xff] %v6102_v15 }
 0x2b3   : > { %1350 = vrot.lane.b32.xlu2 %v5706_v8, %s4515_s13  ;;  %v709_v8 = vrot.slane %v6108_v37, 1 }
 0x2b5   : > { %1346 = vrot.lane.b32.xlu0 %v10031_v38, %s4515_s13  ;;  %v6104_v3 = vpop.permute.xlu2 %1252  ;;  %1348 = vrot.lane.b32.xlu1 %v10034_v16, %s4515_s13  ;;  %v710_v15 = vsel %vm528_vm2, %v707_v57, %v709_v8  ;;  %v10038_v57 = vld [vmem:[#allocation65_spill] sm:$0xff]  ;;  %v10041_v8 = vld [vmem:[#allocation62_spill] sm:$0xff] }
 0x2b6   : > { %10033 = vst [vmem:[#allocation46_spill] sm:$0xff] %v6104_v3 }
 0x2b7   : > { %v6106_v45 = vpop.permute.xlu0 %1230  ;;  %v6116_v54 = vpop.permute.xlu1 %1232 }
 0x2bb   : > { %1388 = vrot.lane.b32.xlu2 %v5203_v5, %s4516_s14 }
 0x2bd   : > { %1352 = vrot.lane.b32.xlu0 %v708_v49, %s4515_s13  ;;  %v6118_v38 = vpop.permute.xlu2 %1258  ;;  %1354 = vrot.lane.b32.xlu1 %v710_v15, %s4515_s13 }
 0x2be   : > { %10035 = vst [vmem:[#allocation53_spill] sm:$0xff] %v6118_v38 }
 0x2bf   : > { %v6120_v3 = vpop.permute.xlu0 %1236  ;;  %v6128_v5 = vpop.permute.xlu1 %1238 }
 0x2c0   : > { %10036 = vst [vmem:[#allocation51_spill] sm:$0xff] %v6128_v5 }
 0x2c3   : > { %1394 = vrot.lane.b32.xlu2 %v9949_v13, %s4516_s14 }
 0x2c5   : > { %1390 = vrot.lane.b32.xlu0 %v5218_v59, %s4516_s14  ;;  %v6130_v49 = vpop.permute.xlu2 %1296  ;;  %1392 = vrot.lane.b32.xlu1 %v9945_v9, %s4516_s14  ;;  %v10042_v9 = vld [vmem:[#allocation70_spill] sm:$0xff] }
 0x2c7   : > { %v6132_v16 = vpop.permute.xlu0 %1242  ;;  %v6140_v15 = vpop.permute.xlu1 %1244 }
 0x2c8   : > { %10037 = vst [vmem:[#allocation49_spill] sm:$0xff] %v6132_v16 }
 0x2c9   : > { %10039 = vst [vmem:[#allocation55_spill] sm:$0xff] %v6140_v15  ;;  %v10045_v15 = vld [vmem:[#allocation66_spill] sm:$0xff] }
 0x2cb   : > { %1400 = vrot.lane.b32.xlu2 %v9954_v46, %s4516_s14 }
 0x2cd   : > { %1396 = vrot.lane.b32.xlu0 %v10038_v57, %s4516_s14  ;;  %v6142_v13 = vpop.permute.xlu2 %1302  ;;  %1398 = vrot.lane.b32.xlu1 %v10041_v8, %s4516_s14  ;;  %v10046_v8 = vld [vmem:[#allocation76_spill] sm:$0xff] }
 0x2cf   : > { %v6144_v59 = vpop.permute.xlu0 %1248  ;;  %v6152_v38 = vpop.permute.xlu1 %1250 }
 0x2d0   : > { %10040 = vst [vmem:[#allocation54_spill] sm:$0xff] %v6144_v59 }
 0x2d1   : > { %10043 = vst [vmem:[#allocation52_spill] sm:$0xff] %v6152_v38  ;;  %v711_v38 = vrot.slane %v5983_v50, 2  ;;  %v10053_v50 = vld [vmem:[#allocation92_spill] sm:$0xff] }
 0x2d3   : > { %1406 = vrot.lane.b32.xlu2 %v9959_v43, %s4516_s14 }
 0x2d5   : > { %1402 = vrot.lane.b32.xlu0 %v10042_v9, %s4516_s14  ;;  %v6154_v46 = vpop.permute.xlu2 %1308  ;;  %1404 = vrot.lane.b32.xlu1 %v10045_v15, %s4516_s14  ;;  %v10049_v15 = vld [vmem:[#allocation81_spill] sm:$0xff] }
 0x2d7   : > { %v6156_v57 = vpop.permute.xlu0 %1254  ;;  %v6164_v59 = vpop.permute.xlu1 %1256 }
 0x2d8   : > { %10044 = vst [vmem:[#allocation56_spill] sm:$0xff] %v6156_v57 }
 0x2d9   : > { %10047 = vst [vmem:[#allocation158_spill] sm:$0xff] %v6164_v59  ;;  %v712_v59 = vrot.slane %v5969_v6, 2 }
 0x2db   : > { %1412 = vrot.lane.b32.xlu2 %v5295_v2, %s4516_s14  ;;  %v713_v16 = vsel %vm609_vm4, %v711_v38, %v712_v59  ;;  %v1748_v38 = vld [vmem:[%s9539_s1 + $0x8] sm:$0xff] }
 0x2dd   : > { %1408 = vrot.lane.b32.xlu0 %v10046_v8, %s4516_s14  ;;  %v6166_v43 = vpop.permute.xlu2 %1314  ;;  %1410 = vrot.lane.b32.xlu1 %v9960_v31, %s4516_s14 }
 0x2de   : > { %10048 = vst [vmem:[#allocation65_spill] sm:$0xff] %v6166_v43 }
 0x2df   : > { %v6168_v9 = vpop.permute.xlu0 %1292  ;;  %v6176_v57 = vpop.permute.xlu1 %1294 }
 0x2e3   : > { %1418 = vrot.lane.b32.xlu2 %v9968_v48, %s4516_s14  ;;  %v10052_v48 = vld [vmem:[#allocation87_spill] sm:$0xff] }
 0x2e5   : > { %1414 = vrot.lane.b32.xlu0 %v10049_v15, %s4516_s14  ;;  %v6178_v2 = vpop.permute.xlu2 %1320  ;;  %1416 = vrot.lane.b32.xlu1 %v10051_v12, %s4516_s14  ;;  %v1751_v12 = vld [vmem:[%s9539_s1 + $0x20] sm:$0xf] }
 0x2e6   : > { %10050 = vst [vmem:[#allocation62_spill] sm:$0xff] %v6178_v2  ;;  %4331 = vmatpush.msk.msra.mxu0 %vm1849_vm5, %v1751_v12  ;;  %4401 = vmatpush.msk.msra.mxu2 %vm1849_vm5, %v1751_v12 }
 0x2e7   : > { %v6180_v8 = vpop.permute.xlu0 %1298  ;;  %v6190_v31 = vpop.permute.xlu1 %1300 }
 0x2eb   : > { %1424 = vrot.lane.b32.xlu2 %v5346_v52, %s4516_s14 }
 0x2ed   : > { %1420 = vrot.lane.b32.xlu0 %v10052_v48, %s4516_s14  ;;  %v6192_v15 = vpop.permute.xlu2 %1326  ;;  %1422 = vrot.lane.b32.xlu1 %v9969_v4, %s4516_s14  ;;  %v1750_v4 = vld [vmem:[%s9539_s1 + $0x18] sm:$0xff] }
 0x2ee   : > { %1865 = vmatpush.msra.mxu0 %v1750_v4  ;;  %4402 = vmatpush.msra.mxu2 %v1750_v4  ;;  %v1747_v4 = vld [vmem:[%s9539_s1] sm:$0xff] }
 0x2ef   : > { %v6194_v2 = vpop.permute.xlu0 %1304  ;;  %v6203_v52 = vpop.permute.xlu1 %1306 }
 0x2f3   : > { %1430 = vrot.lane.b32.xlu2 %v5371_v20, %s4516_s14  ;;  %v1749_v20 = vld [vmem:[%s9539_s1 + $0x10] sm:$0xff] }
 0x2f4   : > { %1866 = vmatpush.msra.mxu0 %v1749_v20  ;;  %4403 = vmatpush.msra.mxu2 %v1749_v20 }
 0x2f5   : > { %1426 = vrot.lane.b32.xlu0 %v10053_v50, %s4516_s14  ;;  %v6205_v6 = vpop.permute.xlu2 %1332  ;;  %1428 = vrot.lane.b32.xlu1 %v9973_v24, %s4516_s14  ;;  %v10054_v50 = vld [vmem:[#allocation97_spill] sm:$0xff] }
 0x2f6   : > { %1867 = vmatpush.msra.mxu0 %v1748_v38  ;;  %4404 = vmatpush.msra.mxu2 %v1748_v38  ;;  %v10057_v24 = vld [vmem:[#allocation93_spill] sm:$0xff] }
 0x2f7   : > { %v6210_v48 = vpop.permute.xlu0 %1310  ;;  %v6229_v12 = vpop.permute.xlu1 %1312 }
 0x2f8   : > { %1868 = vmatpush.msra.mxu0 %v1747_v4  ;;  %4405 = vmatpush.msra.mxu2 %v1747_v4  ;;  %v714_v4 = vrot.slane %v6108_v37, 2 }
 0x2fb   : > { %1436 = vrot.lane.b32.xlu2 %v5397_v7, %s4516_s14  ;;  %v10058_v7 = vld [vmem:[#allocation101_spill] sm:$0xff] }
 0x2fd   : > { %1432 = vrot.lane.b32.xlu0 %v10054_v50, %s4516_s14  ;;  %v6231_v11 = vpop.permute.xlu2 %1338  ;;  %1434 = vrot.lane.b32.xlu1 %v10057_v24, %s4516_s14 }
 0x2fe   : > { %10055 = vst [vmem:[#allocation70_spill] sm:$0xff] %v6231_v11 }
 0x2ff   : > { %v6236_v20 = vpop.permute.xlu0 %1316  ;;  %v6244_v50 = vpop.permute.xlu1 %1318 }
 0x300   : > { %10056 = vst [vmem:[#allocation66_spill] sm:$0xff] %v6236_v20  ;;  %v715_v20 = vsel %vm609_vm4, %v712_v59, %v714_v4 }
 0x301   : > { %10059 = vst [vmem:[#allocation76_spill] sm:$0xff] %v6244_v50  ;;  %v10064_v50 = vld [vmem:[#allocation103_spill] sm:$0xff] }
 0x303   : > { %1442 = vrot.lane.b32.xlu2 %v5417_v58, %s4516_s14 }
 0x305   : > { %1438 = vrot.lane.b32.xlu0 %v10058_v7, %s4516_s14  ;;  %v6246_v11 = vpop.permute.xlu2 %1344  ;;  %1440 = vrot.lane.b32.xlu1 %v5394_v23, %s4516_s14  ;;  %v4442_v7 = vld [vmem:[#allocation2] sm:$0xff] }
 0x306   : > { %10060 = vst [vmem:[#allocation81_spill] sm:$0xff] %v6246_v11  ;;  %v10063_v11 = vld [vmem:[#allocation68_spill] sm:$0xff] }
 0x307   : > { %v6248_v43 = vpop.permute.xlu0 %1322  ;;  %v6255_v38 = vpop.permute.xlu1 %1324 }
 0x308   : > { %10061 = vst [vmem:[#allocation77_spill] sm:$0xff] %v6248_v43  ;;  %v1484_v43 = vsel %vm279_vm0, %v4442_v7, %v10063_v11  ;;  %v10067_v11 = vld [vmem:[#allocation182_spill] sm:$0xff] }
 0x309   : > { %v1517_v23 = vsel %vm1516_vm6, %v1484_v43, %v10064_v50 }
 0x30b   : > { %1448 = vrot.lane.b32.xlu2 %v713_v16, %s4516_s14  ;;  %v10065_v16 = vld [vmem:[#allocation34_spill] sm:$0xff] }
 0x30d   : > { %1444 = vrot.lane.b32.xlu0 %v5819_v56, %s4516_s14  ;;  %v6257_v58 = vpop.permute.xlu2 %1350  ;;  %v1550_v56 = vsel %vm1549_vm7, %v1517_v23, %v10065_v16  ;;  %1446 = vrot.lane.b32.xlu1 %v10067_v11, %s4516_s14  ;;  %v4443_v16 = vld [vmem:[#allocation2 + $0x8] sm:$0xff]  ;;  %v10074_v11 = vld [vmem:[#allocation116_spill] sm:$0xff] }
 0x30e   : > { %10062 = vst [vmem:[#allocation87_spill] sm:$0xff] %v6257_v58  ;;  %v10066_v58 = vld [vmem:[#allocation168_spill] sm:$0xff] }
 0x30f   : > { %v6260_v24 = vpop.permute.xlu0 %1328  ;;  %v1583_v37 = vsel %vm1582_vm9, %v1550_v56, %v10066_v58  ;;  %v6280_v50 = vpop.permute.xlu1 %1330  ;;  %v10073_v56 = vld [vmem:[#allocation75_spill] sm:$0xff] }
 0x310   : > { %v1616_v5 = vsel %vm1615_vm8, %v1583_v37, %v5847_v60  ;;  %v1485_v37 = vsel %vm279_vm0, %v4443_v16, %v10073_v56 }
 0x311   : > { %v1649_v43 = vsel %vm1648_vm10, %v1616_v5, %v6039_v0 }
 0x312   : > { %v1682_v59 = vsel %vm1681_vm12, %v1649_v43, %v6168_v9  ;;  %v1518_v43 = vsel %vm1516_vm6, %v1485_v37, %v10074_v11  ;;  %v4444_v11 = vld [vmem:[#allocation2 + $0x18] sm:$0xff] }
 0x315   : > { %1450 = vrot.lane.b32.xlu0 %v715_v20, %s4516_s14  ;;  %v1389_v58 = vpop.permute.xlu2 %1388 }
 0x316   : > { %v1715_v60 = vsel %vm1714_vm11, %v1682_v59, %v1389_v58  ;;  %v10075_v59 = vld [vmem:[#allocation138_spill] sm:$0xff] }
 0x317   : > { %v6282_v4 = vpop.permute.xlu0 %1334  ;;  %4332 = vmatmul.msk.f32.vlgmr.msra.gmra.mxu0 %vm1752_vm13, %v1715_v60  ;;  %v6286_v7 = vpop.permute.xlu1 %1336  ;;  %v1551_v58 = vsel %vm1549_vm7, %v1518_v43, %v10075_v59  ;;  %v10076_v60 = vld [vmem:[#allocation72_spill] sm:$0xff]  ;;  %v10078_v59 = vld [vmem:[#allocation117_spill] sm:$0xff] }
 0x31f   : > { %v6288_v23 = vpop.permute.xlu0 %1340  ;;  %v6290_v0 = vpop.permute.xlu1 %1342 }
 0x320   : > { %10068 = vst [vmem:[#allocation92_spill] sm:$0xff] %v6288_v23  ;;  %v1584_v23 = vsel %vm1582_vm9, %v1551_v58, %v10076_v60  ;;  %v10080_v58 = vld [vmem:[#allocation161_spill] sm:$0xff] }
 0x321   : > { %10069 = vst [vmem:[#allocation97_spill] sm:$0xff] %v6290_v0  ;;  %v10077_v0 = vld [vmem:[#allocation73_spill] sm:$0xff] }
 0x322   : > { %v1486_v43 = vsel %vm279_vm0, %v4444_v11, %v10077_v0  ;;  %v4445_v11 = vld [vmem:[#allocation2 + $0x20] sm:$0xff] }
 0x327   : > { %v6292_v5 = vpop.permute.xlu0 %1346  ;;  %v6294_v20 = vpop.permute.xlu1 %1348 }
 0x328   : > { %10070 = vst [vmem:[#allocation93_spill] sm:$0xff] %v6292_v5  ;;  %v1617_v5 = vsel %vm1615_vm8, %v1584_v23, %v5907_v27  ;;  %v1519_v27 = vsel %vm1516_vm6, %v1486_v43, %v10078_v59  ;;  %v10079_v23 = vld [vmem:[#allocation145_spill] sm:$0xff]  ;;  %v10081_v43 = vld [vmem:[#allocation78_spill] sm:$0xff] }
 0x329   : > { %10071 = vst [vmem:[#allocation101_spill] sm:$0xff] %v6294_v20  ;;  %v1650_v20 = vsel %vm1648_vm10, %v1617_v5, %v5993_v1  ;;  %v1552_v1 = vsel %vm1549_vm7, %v1519_v27, %v10079_v23  ;;  %v1395_v5 = vpop.permute.xlu2 %1394  ;;  %v1487_v59 = vsel %vm279_vm0, %v4445_v11, %v10081_v43  ;;  %v10082_v27 = vld [vmem:[#allocation106_spill] sm:$0xff] }
 0x32a   : > { %v1683_v16 = vsel %vm1681_vm12, %v1650_v20, %v6176_v57  ;;  %v1585_v60 = vsel %vm1582_vm9, %v1552_v1, %v10080_v58  ;;  %v1520_v23 = vsel %vm1516_vm6, %v1487_v59, %v10082_v27  ;;  %v10085_v11 = vld [vmem:[#allocation58_spill] sm:$0xff]  ;;  %v10087_v27 = vld [vmem:[#allocation119_spill] sm:$0xff] }
 0x32b   : > { %v1618_v57 = vsel %vm1615_vm8, %v1585_v60, %v5915_v30  ;;  %v10083_v30 = vld [vmem:[#allocation39_spill] sm:$0xff]  ;;  %v10086_v43 = vld [vmem:[#allocation186_spill] sm:$0xff] }
 0x32c   : > { %v1651_v20 = vsel %vm1648_vm10, %v1618_v57, %v6043_v33  ;;  %v1553_v1 = vsel %vm1549_vm7, %v1520_v23, %v10083_v30  ;;  %v10084_v33 = vld [vmem:[#allocation169_spill] sm:$0xff]  ;;  %v1488_v59 = vsel %vm279_vm0, %v10086_v43, %v10085_v11  ;;  %v10089_v30 = vld [vmem:[#allocation170_spill] sm:$0xff]  ;;  %v10091_v11 = vld [vmem:[#allocation183_spill] sm:$0xff] }
 0x32d   : > { %v1684_v0 = vsel %vm1681_vm12, %v1651_v20, %v6130_v49  ;;  %v1586_v58 = vsel %vm1582_vm9, %v1553_v1, %v10084_v33  ;;  %v10088_v23 = vld [vmem:[#allocation141_spill] sm:$0xff] }
 0x32e   : > { %v1619_v49 = vsel %vm1615_vm8, %v1586_v58, %v5865_v61  ;;  %v1521_v61 = vsel %vm1516_vm6, %v1488_v59, %v10087_v27  ;;  %v10093_v59 = vld [vmem:[#allocation147_spill] sm:$0xff] }
 0x32f   : > { %v6296_v9 = vpop.permute.xlu0 %1352  ;;  %v1652_v57 = vsel %vm1648_vm10, %v1619_v49, %v6051_v35  ;;  %v1554_v35 = vsel %vm1549_vm7, %v1521_v61, %v10088_v23  ;;  %v10094_v61 = vld [vmem:[#allocation163_spill] sm:$0xff] }
 0x330   : > { %10072 = vst [vmem:[#allocation68_spill] sm:$0xff] %v6296_v9  ;;  %v6310_v9 = vpop.permute.xlu1 %1354  ;;  %v1587_v1 = vsel %vm1582_vm9, %v1554_v35, %v10089_v30 }
 0x331   : > { %v1401_v60 = vpop.permute.xlu2 %1400 }
 0x337   : > { %v1391_v56 = vpop.permute.xlu0 %1390 }
 0x338   : > { %v1716_v37 = vsel %vm1714_vm11, %v1683_v16, %v1391_v56  ;;  %v1393_v16 = vpop.permute.xlu1 %1392 }
 0x339   : > { %4333 = vmatmul.msk.f32.gmra.mxu0 %vm1752_vm13, %v1716_v37  ;;  %v1717_v37 = vsel %vm1714_vm11, %v1684_v0, %v1393_v16  ;;  %v1685_v16 = vsel %vm1681_vm12, %v1652_v57, %v6180_v8  ;;  %v1620_v8 = vsel %vm1615_vm8, %v1587_v1, %v5919_v14  ;;  %v6367_v49 = vpop.permute.xlu2 %1406  ;;  %v10092_v14 = vld [vmem:[#allocation122_spill] sm:$0xff] }
 0x33f   : > { %v1397_v56 = vpop.permute.xlu0 %1396 }
 0x340   : > { %v1399_v20 = vpop.permute.xlu1 %1398 }
 0x341   : > { %4334 = vmatmul.msk.f32.gmra.mxu0 %vm1752_vm13, %v1717_v37  ;;  %v1718_v37 = vsel %vm1714_vm11, %v1685_v16, %v1395_v5  ;;  %v1653_v5 = vsel %vm1648_vm10, %v1620_v8, %v6005_v53 }
 0x342   : > { %v1686_v58 = vsel %vm1681_vm12, %v1653_v5, %v6190_v31  ;;  %v10095_v5 = vld [vmem:[#allocation80_spill] sm:$0xff] }
 0x343   : > { %v1719_v16 = vsel %vm1714_vm11, %v1686_v58, %v1397_v56  ;;  %v10096_v58 = vld [vmem:[#allocation188_spill] sm:$0xff] }
 0x347   : > { %v6346_v0 = vpop.permute.xlu0 %1402 }
 0x348   : > { %v6363_v33 = vpop.permute.xlu1 %1404 }
 0x349   : > { %4335 = vmatmul.msk.f32.gmra.mxu0 %vm1752_vm13, %v1718_v37  ;;  %v10090_v37 = vld [vmem:[#allocation61_spill] sm:$0xff] }
 0x34a   : > { %v1489_v43 = vsel %vm279_vm0, %v10091_v11, %v10090_v37  ;;  %v4446_v37 = vld [vmem:[#allocation2 + $0xc0] sm:$0xff]  ;;  %v10097_v11 = vld [vmem:[#allocation98_spill] sm:$0xff] }
 0x34b   : > { %v1522_v53 = vsel %vm1516_vm6, %v1489_v43, %v10092_v14  ;;  %v6398_v43 = vpop.permute.xlu2 %1412 }
 0x34c   : > { %v1555_v27 = vsel %vm1549_vm7, %v1522_v53, %v10093_v59  ;;  %v10100_v59 = vld [vmem:[#allocation146_spill] sm:$0xff] }
 0x34d   : > { %v1588_v31 = vsel %vm1582_vm9, %v1555_v27, %v10094_v61  ;;  %v10101_v27 = vld [vmem:[#allocation44_spill] sm:$0xff] }
 0x34e   : > { %v1621_v23 = vsel %vm1615_vm8, %v1588_v31, %v5927_v42  ;;  %v1500_v42 = vsel %vm279_vm0, %v4446_v37, %v10097_v11  ;;  %v10102_v31 = vld [vmem:[#allocation172_spill] sm:$0xff] }
 0x34f   : > { %v6369_v57 = vpop.permute.xlu0 %1408  ;;  %v1654_v56 = vsel %vm1648_vm10, %v1621_v23, %v6055_v44  ;;  %v10098_v44 = vld [vmem:[#allocation109_spill] sm:$0xff] }
 0x350   : > { %v6386_v35 = vpop.permute.xlu1 %1410  ;;  %v1687_v30 = vsel %vm1681_vm12, %v1654_v56, %v6142_v13  ;;  %v10099_v13 = vld [vmem:[#allocation133_spill] sm:$0xff]  ;;  %v10103_v56 = vld [vmem:[#allocation179_spill] sm:$0xff] }
 0x351   : > { %4336 = vmatmul.msk.f32.gmra.mxu0 %vm1752_vm13, %v1719_v16  ;;  %v1720_v8 = vsel %vm1714_vm11, %v1687_v30, %v1399_v20  ;;  %v1490_v16 = vsel %vm279_vm0, %v10096_v58, %v10095_v5  ;;  %v1533_v53 = vsel %vm1516_vm6, %v1500_v42, %v10099_v13  ;;  %v10104_v13 = vld [vmem:[#allocation79_spill] sm:$0xff] }
 0x352   : > { %v1523_v14 = vsel %vm1516_vm6, %v1490_v16, %v10098_v44  ;;  %v1566_v20 = vsel %vm1549_vm7, %v1533_v53, %v10100_v59  ;;  %v10105_v53 = vld [vmem:[#allocation84_spill] sm:$0xff]  ;;  %v10107_v59 = vld [vmem:[#allocation134_spill] sm:$0xff] }
 0x353   : > { %v1556_v61 = vsel %vm1549_vm7, %v1523_v14, %v10101_v27  ;;  %v1599_v30 = vsel %vm1582_vm9, %v1566_v20, %v10103_v56  ;;  %v10108_v20 = vld [vmem:[#allocation143_spill] sm:$0xff] }
 0x354   : > { %v1589_v23 = vsel %vm1582_vm9, %v1556_v61, %v10102_v31  ;;  %v1632_v5 = vsel %vm1615_vm8, %v1599_v30, %v5967_v26  ;;  %v4447_v26 = vld [vmem:[#allocation2 + $0xc8] sm:$0xff]  ;;  %v10110_v56 = vld [vmem:[#allocation171_spill] sm:$0xff] }
 0x355   : > { %v1665_v58 = vsel %vm1648_vm10, %v1632_v5, %v6053_v55  ;;  %v1501_v55 = vsel %vm279_vm0, %v4447_v26, %v10104_v13  ;;  %v10109_v61 = vld [vmem:[#allocation157_spill] sm:$0xff]  ;;  %v10111_v30 = vld [vmem:[#allocation83_spill] sm:$0xff]  ;;  %v10112_v26 = vld [vmem:[#allocation64_spill] sm:$0xff] }
 0x356   : > { %v1698_v42 = vsel %vm1681_vm12, %v1665_v58, %v6255_v38 }
 0x357   : > { %v6390_v1 = vpop.permute.xlu0 %1414 }
 0x358   : > { %v6421_v37 = vpop.permute.xlu1 %1416 }
 0x359   : > { %4337 = vmatmul.msk.f32.gmra.mxu0 %vm1752_vm13, %v1720_v8  ;;  %v1622_v8 = vsel %vm1615_vm8, %v1589_v23, %v5881_v41  ;;  %v6444_v23 = vpop.permute.xlu2 %1418 }
 0x35a   : > { %v1655_v16 = vsel %vm1648_vm10, %v1622_v8, %v6066_v19  ;;  %v1491_v19 = vsel %vm279_vm0, %v5869_v25, %v10105_v53  ;;  %v10116_v53 = vld [vmem:[#allocation125_spill] sm:$0xff] }
 0x35b   : > { %v1688_v11 = vsel %vm1681_vm12, %v1655_v16, %v6194_v2  ;;  %v10106_v2 = vld [vmem:[#allocation124_spill] sm:$0xff] }
 0x35c   : > { %v1721_v41 = vsel %vm1714_vm11, %v1688_v11, %v1401_v60  ;;  %v1524_v38 = vsel %vm1516_vm6, %v1491_v19, %v10106_v2  ;;  %v1534_v60 = vsel %vm1516_vm6, %v1501_v55, %v10107_v59  ;;  %v10114_v55 = vld [vmem:[#allocation100_spill] sm:$0xff]  ;;  %v10117_v19 = vld [vmem:[#allocation149_spill] sm:$0xff] }
 0x35d   : > { %v1557_v27 = vsel %vm1549_vm7, %v1524_v38, %v10108_v20  ;;  %v1567_v31 = vsel %vm1549_vm7, %v1534_v60, %v10109_v61  ;;  %v10118_v38 = vld [vmem:[#allocation59_spill] sm:$0xff]  ;;  %v10119_v60 = vld [vmem:[#allocation165_spill] sm:$0xff] }
 0x35e   : > { %v1600_v25 = vsel %vm1582_vm9, %v1567_v31, %v10110_v56  ;;  %v1590_v8 = vsel %vm1582_vm9, %v1557_v27, %v10111_v30  ;;  %v10120_v27 = vld [vmem:[#allocation181_spill] sm:$0xff] }
 0x35f   : > { %v1421_v44 = vpop.permute.xlu0 %1420  ;;  %v1623_v5 = vsel %vm1615_vm8, %v1590_v8, %v5931_v47  ;;  %v1633_v58 = vsel %vm1615_vm8, %v1600_v25, %v5977_v18  ;;  %v10113_v18 = vld [vmem:[#allocation187_spill] sm:$0xff] }
 0x360   : > { %v1731_v14 = vsel %vm1714_vm11, %v1698_v42, %v1421_v44  ;;  %v1656_v16 = vsel %vm1648_vm10, %v1623_v5, %v6017_v29  ;;  %v1666_v11 = vsel %vm1648_vm10, %v1633_v58, %v6106_v45  ;;  %v1423_v42 = vpop.permute.xlu1 %1422  ;;  %v1492_v13 = vsel %vm279_vm0, %v10113_v18, %v10112_v26  ;;  %v4448_v29 = vld [vmem:[#allocation2 + $0xd8] sm:$0xff]  ;;  %v10127_v26 = vld [vmem:[#allocation150_spill] sm:$0xff] }
 0x361   : > { %4338 = vmatmul.msk.f32.gmra.mxu0 %vm1752_vm13, %v1721_v41  ;;  %4348 = vmatmul.msk.f32.vlgmr.msra.gmra.mxu2 %vm1752_vm13, %v1731_v14  ;;  %v1699_v44 = vsel %vm1681_vm12, %v1666_v11, %v6192_v15  ;;  %v1689_v41 = vsel %vm1681_vm12, %v1656_v16, %v6203_v52  ;;  %v1502_v45 = vsel %vm279_vm0, %v4448_v29, %v10114_v55  ;;  %v10115_v15 = vld [vmem:[#allocation123_spill] sm:$0xff]  ;;  %v1425_v25 = vpop.permute.xlu2 %1424  ;;  %v10121_v11 = vld [vmem:[#allocation86_spill] sm:$0xff]  ;;  %v10129_v55 = vld [vmem:[#allocation184_spill] sm:$0xff] }
 0x362   : > { %v1722_v14 = vsel %vm1714_vm11, %v1689_v41, %v6346_v0  ;;  %v1732_v47 = vsel %vm1714_vm11, %v1699_v44, %v1423_v42  ;;  %v1535_v52 = vsel %vm1516_vm6, %v1502_v45, %v10115_v15  ;;  %v1525_v0 = vsel %vm1516_vm6, %v1492_v13, %v10116_v53  ;;  %v4449_v44 = vld [vmem:[#allocation2 + $0xe0] sm:$0xff]  ;;  %v10128_v13 = vld [vmem:[#allocation173_spill] sm:$0xff] }
 0x363   : > { %v1558_v2 = vsel %vm1549_vm7, %v1525_v0, %v10117_v19  ;;  %v1568_v59 = vsel %vm1549_vm7, %v1535_v52, %v10118_v38 }
 0x364   : > { %v1591_v20 = vsel %vm1582_vm9, %v1558_v2, %v10119_v60  ;;  %v1601_v61 = vsel %vm1582_vm9, %v1568_v59, %v10120_v27  ;;  %v4450_v60 = vld [vmem:[#allocation2 + $0xf0] sm:$0xff]  ;;  %v4451_v27 = vld [vmem:[#allocation2 + $0x78] sm:$0xff] }
 0x365   : > { %v1634_v31 = vsel %vm1615_vm8, %v1601_v61, %v5929_v39  ;;  %v1624_v56 = vsel %vm1615_vm8, %v1591_v20, %v5939_v32  ;;  %v10122_v32 = vld [vmem:[#allocation191_spill] sm:$0xff] }
 0x366   : > { %v1657_v30 = vsel %vm1648_vm10, %v1624_v56, %v6070_v28  ;;  %v1667_v8 = vsel %vm1648_vm10, %v1634_v31, %v6116_v54  ;;  %v1493_v42 = vsel %vm279_vm0, %v10122_v32, %v10121_v11  ;;  %v10123_v28 = vld [vmem:[#allocation102_spill] sm:$0xff]  ;;  %v10124_v54 = vld [vmem:[#allocation112_spill] sm:$0xff]  ;;  %v10134_v31 = vld [vmem:[#allocation37_spill] sm:$0xff] }
 0x367   : > { %v1690_v5 = vsel %vm1681_vm12, %v1657_v30, %v6154_v46  ;;  %v1700_v58 = vsel %vm1681_vm12, %v1667_v8, %v6260_v24  ;;  %v1503_v41 = vsel %vm279_vm0, %v4449_v44, %v10123_v28  ;;  %v1526_v46 = vsel %vm1516_vm6, %v1493_v42, %v10124_v54  ;;  %v10125_v24 = vld [vmem:[#allocation136_spill] sm:$0xff]  ;;  %v1427_v53 = vpop.permute.xlu0 %1426  ;;  %v10136_v8 = vld [vmem:[#allocation82_spill] sm:$0xff] }
 0x368   : > { %v1723_v16 = vsel %vm1714_vm11, %v1690_v5, %v6363_v33  ;;  %v1733_v39 = vsel %vm1714_vm11, %v1700_v58, %v1425_v25  ;;  %v1536_v33 = vsel %vm1516_vm6, %v1503_v41, %v10125_v24  ;;  %v1559_v18 = vsel %vm1549_vm7, %v1526_v46, %v10127_v26  ;;  %v10135_v25 = vld [vmem:[#allocation160_spill] sm:$0xff]  ;;  %v1429_v32 = vpop.permute.xlu1 %1428 }
 0x369   : > { %4339 = vmatmul.msk.f32.gmra.mxu0 %vm1752_vm13, %v1722_v14  ;;  %4349 = vmatmul.msk.f32.gmra.mxu2 %vm1752_vm13, %v1732_v47  ;;  %v10126_v14 = vld [vmem:[#allocation148_spill] sm:$0xff]  ;;  %v1592_v29 = vsel %vm1582_vm9, %v1559_v18, %v10128_v13  ;;  %v10143_v18 = vld [vmem:[#allocation57_spill] sm:$0xff] }
 0x36a   : > { %v1569_v47 = vsel %vm1549_vm7, %v1536_v33, %v10126_v14  ;;  %v1625_v15 = vsel %vm1615_vm8, %v1592_v29, %v5893_v51  ;;  %v10137_v58 = vld [vmem:[#allocation88_spill] sm:$0xff]  ;;  %v4453_v33 = vld [vmem:[#allocation2 + $0xf8] sm:$0xff] }
 0x36b   : > { %v1602_v45 = vsel %vm1582_vm9, %v1569_v47, %v10129_v55  ;;  %v1658_v19 = vsel %vm1648_vm10, %v1625_v15, %v6078_v36  ;;  %v10132_v36 = vld [vmem:[#allocation127_spill] sm:$0xff]  ;;  %v4452_v46 = vld [vmem:[#allocation2 + $0x80] sm:$0xff] }
 0x36c   : > { %v1635_v52 = vsel %vm1615_vm8, %v1602_v45, %v5981_v22  ;;  %v1691_v2 = vsel %vm1681_vm12, %v1658_v19, %v6210_v48  ;;  %v10130_v22 = vld [vmem:[#allocation85_spill] sm:$0xff]  ;;  %v10142_v47 = vld [vmem:[#allocation152_spill] sm:$0xff]  ;;  %v10144_v29 = vld [vmem:[#allocation167_spill] sm:$0xff] }
 0x36d   : > { %v1668_v0 = vsel %vm1648_vm10, %v1635_v52, %v6068_v63  ;;  %v1724_v59 = vsel %vm1714_vm11, %v1691_v2, %v6367_v49  ;;  %v1504_v20 = vsel %vm279_vm0, %v4450_v60, %v10130_v22  ;;  %v10131_v63 = vld [vmem:[#allocation89_spill] sm:$0xff]  ;;  %v10146_v2 = vld [vmem:[#allocation51_spill] sm:$0xff] }
 0x36e   : > { %v1701_v38 = vsel %vm1681_vm12, %v1668_v0, %v6280_v50  ;;  %v1494_v61 = vsel %vm279_vm0, %v4451_v27, %v10131_v63  ;;  %v10133_v50 = vld [vmem:[#allocation137_spill] sm:$0xff]  ;;  %v1431_v0 = vpop.permute.xlu2 %1430 }
 0x36f   : > { %v1734_v51 = vsel %vm1714_vm11, %v1701_v38, %v1427_v53  ;;  %v1527_v48 = vsel %vm1516_vm6, %v1494_v61, %v10132_v36  ;;  %v1537_v49 = vsel %vm1516_vm6, %v1504_v20, %v10133_v50  ;;  %v10145_v45 = vld [vmem:[#allocation185_spill] sm:$0xff]  ;;  %v4454_v20 = vld [vmem:[#allocation2 + $0x90] sm:$0xff]  ;;  %v10150_v36 = vld [vmem:[#allocation115_spill] sm:$0xff] }
 0x370   : > { %v1560_v56 = vsel %vm1549_vm7, %v1527_v48, %v10134_v31  ;;  %v1570_v30 = vsel %vm1549_vm7, %v1537_v49, %v10135_v25  ;;  %v4455_v63 = vld [vmem:[#allocation2 + $0x108] sm:$0xff]  ;;  %v10151_v48 = vld [vmem:[#allocation139_spill] sm:$0xff]  ;;  %v10153_v31 = vld [vmem:[#allocation50_spill] sm:$0xff] }
 0x371   : > { %4340 = vmatmul.msk.f32.gmra.mxu0 %vm1752_vm13, %v1723_v16  ;;  %4350 = vmatmul.msk.f32.gmra.mxu2 %vm1752_vm13, %v1733_v39  ;;  %v1603_v5 = vsel %vm1582_vm9, %v1570_v30, %v10136_v8  ;;  %v1593_v16 = vsel %vm1582_vm9, %v1560_v56, %v10137_v58  ;;  %v10152_v50 = vld [vmem:[#allocation151_spill] sm:$0xff]  ;;  %v10155_v8 = vld [vmem:[#allocation189_spill] sm:$0xff] }
 0x372   : > { %v1626_v39 = vsel %vm1615_vm8, %v1593_v16, %v5943_v34  ;;  %v1636_v11 = vsel %vm1615_vm8, %v1603_v5, %v5991_v10  ;;  %v10138_v10 = vld [vmem:[#allocation69_spill] sm:$0xff]  ;;  %v10154_v25 = vld [vmem:[#allocation175_spill] sm:$0xff] }
 0x373   : > { %v1659_v42 = vsel %vm1648_vm10, %v1626_v39, %v6029_v40  ;;  %v1669_v44 = vsel %vm1648_vm10, %v1636_v11, %v6120_v3  ;;  %v1495_v24 = vsel %vm279_vm0, %v4452_v46, %v10138_v10  ;;  %v10139_v40 = vld [vmem:[#allocation104_spill] sm:$0xff]  ;;  %v10140_v3 = vld [vmem:[#allocation126_spill] sm:$0xff]  ;;  %v10156_v58 = vld [vmem:[#allocation197_spill] sm:$0xff] }
 0x374   : > { %v1702_v28 = vsel %vm1681_vm12, %v1669_v44, %v6205_v6  ;;  %v1692_v41 = vsel %vm1681_vm12, %v1659_v42, %v6229_v12  ;;  %v1505_v14 = vsel %vm279_vm0, %v4453_v33, %v10139_v40  ;;  %v10141_v12 = vld [vmem:[#allocation128_spill] sm:$0xff]  ;;  %v10158_v42 = vld [vmem:[#allocation38_spill] sm:$0xff] }
 0x375   : > { %v1725_v54 = vsel %vm1714_vm11, %v1692_v41, %v6369_v57  ;;  %v1735_v34 = vsel %vm1714_vm11, %v1702_v28, %v1429_v32  ;;  %v1538_v6 = vsel %vm1516_vm6, %v1505_v14, %v10140_v3  ;;  %v1528_v57 = vsel %vm1516_vm6, %v1495_v24, %v10141_v12  ;;  %v10157_v39 = vld [vmem:[#allocation204_spill] sm:$0xff]  ;;  %v1433_v32 = vpop.permute.xlu0 %1432  ;;  %v10159_v28 = vld [vmem:[#allocation47_spill] sm:$0xff]  ;;  %v4456_v33 = vld [vmem:[#allocation2 + $0x110] sm:$0xff] }
 0x376   : > { %v1561_v26 = vsel %vm1549_vm7, %v1528_v57, %v10142_v47  ;;  %v1571_v13 = vsel %vm1549_vm7, %v1538_v6, %v10143_v18  ;;  %v10161_v40 = vld [vmem:[#allocation90_spill] sm:$0xff]  ;;  %v4457_v3 = vld [vmem:[#allocation2 + $0x98] sm:$0xff]  ;;  %v10164_v47 = vld [vmem:[#allocation140_spill] sm:$0xff] }
 0x377   : > { %v1594_v55 = vsel %vm1582_vm9, %v1561_v26, %v10144_v29  ;;  %v1604_v15 = vsel %vm1582_vm9, %v1571_v13, %v10145_v45  ;;  %v1507_v14 = vsel %vm279_vm0, %v4456_v33, %v10161_v40  ;;  %v10162_v6 = vld [vmem:[#allocation94_spill] sm:$0xff]  ;;  %v10165_v26 = vld [vmem:[#allocation33_spill] sm:$0xff]  ;;  %v10188_v40 = vld [vmem:[#allocation92_spill] sm:$0xff] }
 0x378   : > { %v1637_v52 = vsel %vm1615_vm8, %v1604_v15, %v5941_v21  ;;  %v1627_v53 = vsel %vm1615_vm8, %v1594_v55, %v5951_v17  ;;  %v10148_v17 = vld [vmem:[#allocation91_spill] sm:$0xff]  ;;  %v1497_v12 = vsel %vm279_vm0, %v4457_v3, %v10162_v6  ;;  %v10163_v57 = vld [vmem:[#allocation130_spill] sm:$0xff]  ;;  %v10168_v15 = vld [vmem:[#allocation176_spill] sm:$0xff] }
 0x379   : > { %4341 = vmatmul.msk.f32.gmra.mxu0 %vm1752_vm13, %v1724_v59  ;;  %4351 = vmatmul.msk.f32.gmra.mxu2 %vm1752_vm13, %v1734_v51  ;;  %v1660_v19 = vsel %vm1648_vm10, %v1627_v53, %v6082_v62  ;;  %v1670_v38 = vsel %vm1648_vm10, %v1637_v52, %v10146_v2  ;;  %v10147_v59 = vld [vmem:[#allocation65_spill] sm:$0xff]  ;;  %v1496_v27 = vsel %vm279_vm0, %v4454_v20, %v10148_v17  ;;  %v10166_v13 = vld [vmem:[#allocation162_spill] sm:$0xff]  ;;  %v10169_v53 = vld [vmem:[#allocation200_spill] sm:$0xff] }
 0x37a   : > { %v1693_v51 = vsel %vm1681_vm12, %v1660_v19, %v10147_v59  ;;  %v1703_v60 = vsel %vm1681_vm12, %v1670_v38, %v6282_v4  ;;  %v10149_v62 = vld [vmem:[#allocation105_spill] sm:$0xff]  ;;  %v1529_v4 = vsel %vm1516_vm6, %v1496_v27, %v10150_v36  ;;  %v10167_v55 = vld [vmem:[#allocation174_spill] sm:$0xff]  ;;  %v1435_v38 = vpop.permute.xlu1 %1434  ;;  %v10174_v17 = vld [vmem:[#allocation76_spill] sm:$0xff] }
 0x37b   : > { %v1726_v22 = vsel %vm1714_vm11, %v1693_v51, %v6386_v35  ;;  %v1736_v21 = vsel %vm1714_vm11, %v1703_v60, %v1431_v0  ;;  %v1506_v61 = vsel %vm279_vm0, %v4455_v63, %v10149_v62  ;;  %v1562_v56 = vsel %vm1549_vm7, %v1529_v4, %v10153_v31  ;;  %v10170_v19 = vld [vmem:[#allocation205_spill] sm:$0xff]  ;;  %v10171_v59 = vld [vmem:[#allocation42_spill] sm:$0xff] }
 0x37c   : > { %v1539_v35 = vsel %vm1516_vm6, %v1506_v61, %v10151_v48  ;;  %v1595_v30 = vsel %vm1582_vm9, %v1562_v56, %v10154_v25  ;;  %v10172_v60 = vld [vmem:[#allocation49_spill] sm:$0xff]  ;;  %v10175_v36 = vld [vmem:[#allocation74_spill] sm:$0xff]  ;;  %v4459_v48 = vld [vmem:[#allocation2 + $0x120] sm:$0xff] }
 0x37d   : > { %v1572_v49 = vsel %vm1549_vm7, %v1539_v35, %v10152_v50  ;;  %v1628_v16 = vsel %vm1615_vm8, %v1595_v30, %v10156_v58  ;;  %v4458_v61 = vld [vmem:[#allocation2 + $0xa8] sm:$0xff]  ;;  %v10176_v35 = vld [vmem:[#allocation107_spill] sm:$0xff]  ;;  %v10179_v25 = vld [vmem:[#allocation154_spill] sm:$0xff] }
 0x37e   : > { %v1605_v5 = vsel %vm1582_vm9, %v1572_v49, %v10155_v8  ;;  %v1661_v41 = vsel %vm1648_vm10, %v1628_v16, %v10159_v28  ;;  %v1498_v4 = vsel %vm279_vm0, %v4458_v61, %v10175_v36  ;;  %v1508_v50 = vsel %vm279_vm0, %v4459_v48, %v10176_v35  ;;  %v10177_v49 = vld [vmem:[#allocation129_spill] sm:$0xff]  ;;  %v10178_v56 = vld [vmem:[#allocation131_spill] sm:$0xff]  ;;  %v10180_v8 = vld [vmem:[#allocation60_spill] sm:$0xff] }
 0x37f   : > { %v1638_v11 = vsel %vm1615_vm8, %v1605_v5, %v10157_v39  ;;  %v1541_v31 = vsel %vm1516_vm6, %v1508_v50, %v10177_v49  ;;  %v10181_v58 = vld [vmem:[#allocation71_spill] sm:$0xff]  ;;  %v10182_v39 = vld [vmem:[#allocation190_spill] sm:$0xff]  ;;  %v10202_v61 = vld [vmem:[#allocation97_spill] sm:$0xff] }
 0x380   : > { %v1671_v44 = vsel %vm1648_vm10, %v1638_v11, %v10158_v42  ;;  %v1574_v5 = vsel %vm1549_vm7, %v1541_v31, %v10180_v8  ;;  %v4462_v35 = vld [vmem:[#allocation2 + $0x138] sm:$0xff]  ;;  %v10204_v31 = vld [vmem:[#allocation24_spill] sm:$0xff] }
 0x381   : > { %4342 = vmatmul.msk.f32.gmra.mxu0 %vm1752_vm13, %v1725_v54  ;;  %4352 = vmatmul.msk.f32.gmra.mxu2 %vm1752_vm13, %v1735_v34  ;;  %v10160_v54 = vld [vmem:[#allocation66_spill] sm:$0xff]  ;;  %v1704_v46 = vsel %vm1681_vm12, %v1671_v44, %v6286_v7  ;;  %v1530_v7 = vsel %vm1516_vm6, %v1497_v12, %v10163_v57  ;;  %v1607_v11 = vsel %vm1582_vm9, %v1574_v5, %v10182_v39  ;;  %v10184_v44 = vld [vmem:[#allocation201_spill] sm:$0xff]  ;;  %v10189_v57 = vld [vmem:[#allocation96_spill] sm:$0xff] }
 0x382   : > { %v1694_v34 = vsel %vm1681_vm12, %v1661_v41, %v10160_v54  ;;  %v1737_v24 = vsel %vm1714_vm11, %v1704_v46, %v1433_v32  ;;  %v1563_v18 = vsel %vm1549_vm7, %v1530_v7, %v10165_v26  ;;  %v10183_v32 = vld [vmem:[#allocation199_spill] sm:$0xff]  ;;  %v1437_v41 = vpop.permute.xlu2 %1436  ;;  %v4460_v12 = vld [vmem:[#allocation2 + $0xb0] sm:$0xff] }
 0x383   : > { %v1727_v10 = vsel %vm1714_vm11, %v1694_v34, %v6398_v43  ;;  %v1540_v43 = vsel %vm1516_vm6, %v1507_v14, %v10164_v47  ;;  %v1596_v52 = vsel %vm1582_vm9, %v1563_v18, %v10168_v15  ;;  %v1640_v42 = vsel %vm1615_vm8, %v1607_v11, %v10183_v32  ;;  %v10185_v54 = vld [vmem:[#allocation43_spill] sm:$0xff]  ;;  %v4461_v47 = vld [vmem:[#allocation2 + $0x128] sm:$0xff]  ;;  %v10191_v18 = vld [vmem:[#allocation118_spill] sm:$0xff] }
 0x384   : > { %v1573_v29 = vsel %vm1549_vm7, %v1540_v43, %v10166_v13  ;;  %v1629_v0 = vsel %vm1615_vm8, %v1596_v52, %v10169_v53  ;;  %v10186_v46 = vld [vmem:[#allocation55_spill] sm:$0xff]  ;;  %v1499_v7 = vsel %vm279_vm0, %v4460_v12, %v10189_v57  ;;  %v10190_v43 = vld [vmem:[#allocation108_spill] sm:$0xff]  ;;  %v10195_v53 = vld [vmem:[#allocation178_spill] sm:$0xff] }
 0x385   : > { %v1606_v45 = vsel %vm1582_vm9, %v1573_v29, %v10167_v55  ;;  %v1662_v51 = vsel %vm1648_vm10, %v1629_v0, %v10171_v59  ;;  %v1509_v26 = vsel %vm279_vm0, %v4461_v47, %v10190_v43  ;;  %v1532_v13 = vsel %vm1516_vm6, %v1499_v7, %v10191_v18  ;;  %v10192_v29 = vld [vmem:[#allocation142_spill] sm:$0xff]  ;;  %v10193_v55 = vld [vmem:[#allocation153_spill] sm:$0xff]  ;;  %v10194_v15 = vld [vmem:[#allocation155_spill] sm:$0xff] }
 0x386   : > { %v1639_v2 = vsel %vm1615_vm8, %v1606_v45, %v10170_v19  ;;  %v1695_v27 = vsel %vm1681_vm12, %v1662_v51, %v10174_v17  ;;  %v1565_v52 = vsel %vm1549_vm7, %v1532_v13, %v10194_v15  ;;  %v10196_v19 = vld [vmem:[#allocation192_spill] sm:$0xff]  ;;  %v10198_v51 = vld [vmem:[#allocation206_spill] sm:$0xff]  ;;  %v10203_v50 = vld [vmem:[#allocation95_spill] sm:$0xff] }
 0x387   : > { %v1728_v63 = vsel %vm1714_vm11, %v1695_v27, %v6390_v1  ;;  %v1531_v1 = vsel %vm1516_vm6, %v1498_v4, %v10178_v56  ;;  %v1598_v0 = vsel %vm1582_vm9, %v1565_v52, %v10195_v53  ;;  %v10200_v17 = vld [vmem:[#allocation48_spill] sm:$0xff]  ;;  %v1510_v49 = vsel %vm279_vm0, %v4462_v35, %v10203_v50  ;;  %v10209_v32 = vld [vmem:[#allocation81_spill] sm:$0xff]  ;;  %v4464_v18 = vld [vmem:[#allocation2 + $0x150] sm:$0xff] }
 0x388   : > { %v1564_v30 = vsel %vm1549_vm7, %v1531_v1, %v10179_v25  ;;  %v1543_v56 = vsel %vm1516_vm6, %v1510_v49, %v10204_v31  ;;  %v10205_v1 = vld [vmem:[#allocation164_spill] sm:$0xff]  ;;  %v10216_v47 = vld [vmem:[#allocation93_spill] sm:$0xff]  ;;  %v10217_v13 = vld [vmem:[#allocation111_spill] sm:$0xff] }
 0x389   : > { %4343 = vmatmul.msk.f32.gmra.mxu0 %vm1752_vm13, %v1726_v22  ;;  %4353 = vmatmul.msk.f32.gmra.mxu2 %vm1752_vm13, %v1736_v21  ;;  %v1672_v22 = vsel %vm1648_vm10, %v1639_v2, %v10172_v60  ;;  %v10173_v21 = vld [vmem:[#allocation70_spill] sm:$0xff]  ;;  %v1597_v16 = vsel %vm1582_vm9, %v1564_v30, %v10181_v58  ;;  %v1576_v25 = vsel %vm1549_vm7, %v1543_v56, %v10205_v1  ;;  %v10206_v30 = vld [vmem:[#allocation177_spill] sm:$0xff]  ;;  %v1441_v58 = vpop.permute.xlu1 %1440  ;;  %v10215_v12 = vld [vmem:[#allocation52_spill] sm:$0xff] }
 0x38a   : > { %v1705_v20 = vsel %vm1681_vm12, %v1672_v22, %v10173_v21  ;;  %v1630_v28 = vsel %vm1615_vm8, %v1597_v16, %v10184_v44  ;;  %v1439_v22 = vpop.permute.xlu0 %1438  ;;  %v10199_v21 = vld [vmem:[#allocation45_spill] sm:$0xff]  ;;  %v1609_v8 = vsel %vm1582_vm9, %v1576_v25, %v10206_v30  ;;  %v10208_v16 = vld [vmem:[#allocation54_spill] sm:$0xff]  ;;  %v10229_v31 = vld [vmem:[#allocation56_spill] sm:$0xff] }
 0x38b   : > { %v1738_v62 = vsel %vm1714_vm11, %v1705_v20, %v1435_v38  ;;  %v1663_v34 = vsel %vm1648_vm10, %v1630_v28, %v10185_v54  ;;  %v10197_v38 = vld [vmem:[#allocation198_spill] sm:$0xff]  ;;  %v4463_v28 = vld [vmem:[#allocation2 + $0x140] sm:$0xff]  ;;  %v10228_v35 = vld [vmem:[#allocation209_spill] sm:$0xff] }
 0x38c   : > { %v1631_v59 = vsel %vm1615_vm8, %v1598_v0, %v10197_v38  ;;  %v10220_v52 = vld [vmem:[#allocation194_spill] sm:$0xff]  ;;  %v10221_v0 = vld [vmem:[#allocation208_spill] sm:$0xff]  ;;  %v10230_v25 = vld [vmem:[#allocation87_spill] sm:$0xff] }
 0x38d   : > { %v1664_v27 = vsel %vm1648_vm10, %v1631_v59, %v10200_v17  ;;  %v10222_v38 = vld [vmem:[#allocation46_spill] sm:$0xff]  ;;  %v10224_v17 = vld [vmem:[#allocation99_spill] sm:$0xff] }
 0x391   : > { %4344 = vmatmul.msk.f32.gmra.mxu0 %vm1752_vm13, %v1727_v10  ;;  %4354 = vmatmul.msk.f32.gmra.mxu2 %vm1752_vm13, %v1737_v24  ;;  %v1673_v10 = vsel %vm1648_vm10, %v1640_v42, %v10186_v46  ;;  %v10187_v24 = vld [vmem:[#allocation62_spill] sm:$0xff]  ;;  %v1447_v49 = vpop.permute.xlu1 %1446 }
 0x392   : > { %v1696_v33 = vsel %vm1681_vm12, %v1663_v34, %v10187_v24  ;;  %v1706_v14 = vsel %vm1681_vm12, %v1673_v10, %v10188_v40  ;;  %v10211_v34 = vld [vmem:[#allocation132_spill] sm:$0xff]  ;;  %v10212_v10 = vld [vmem:[#allocation63_spill] sm:$0xff] }
 0x393   : > { %v1729_v3 = vsel %vm1714_vm11, %v1696_v33, %v6421_v37  ;;  %v1739_v6 = vsel %vm1714_vm11, %v1706_v14, %v1437_v41  ;;  %v1542_v37 = vsel %vm1516_vm6, %v1509_v26, %v10192_v29  ;;  %v10210_v41 = vld [vmem:[#allocation110_spill] sm:$0xff]  ;;  %v10213_v33 = vld [vmem:[#allocation193_spill] sm:$0xff]  ;;  %v1512_v29 = vsel %vm279_vm0, %v4464_v18, %v10217_v13  ;;  %v10241_v18 = vld [vmem:[#allocation196_spill] sm:$0xff] }
 0x394   : > { %v1575_v45 = vsel %vm1549_vm7, %v1542_v37, %v10193_v55  ;;  %v6745_v11 = vpop.f32.mrf.mxu0  ;;  %v1511_v54 = vsel %vm279_vm0, %v4463_v28, %v10210_v41  ;;  %v10214_v14 = vld [vmem:[#allocation202_spill] sm:$0xff]  ;;  %v10218_v37 = vld [vmem:[#allocation144_spill] sm:$0xff]  ;;  %v10235_v41 = vld [vmem:[#allocation203_spill] sm:$0xff] }
 0x395   : > { %v1608_v2 = vsel %vm1582_vm9, %v1575_v45, %v10196_v19  ;;  %v1544_v46 = vsel %vm1516_vm6, %v1511_v54, %v10211_v34  ;;  %v1545_v55 = vsel %vm1516_vm6, %v1512_v29, %v10218_v37  ;;  %v10219_v45 = vld [vmem:[#allocation156_spill] sm:$0xff]  ;;  %v10242_v29 = vld [vmem:[#allocation210_spill] sm:$0xff] }
 0x396   : > { %v1641_v60 = vsel %vm1615_vm8, %v1608_v2, %v10198_v51  ;;  %v1577_v24 = vsel %vm1549_vm7, %v1544_v46, %v10212_v10  ;;  %v1578_v15 = vsel %vm1549_vm7, %v1545_v55, %v10219_v45  ;;  %v1445_v2 = vpop.permute.xlu0 %1444  ;;  %v10236_v46 = vld [vmem:[#allocation158_spill] sm:$0xff]  ;;  %v10243_v45 = vld [vmem:[#allocation53_spill] sm:$0xff] }
 0x397   : > { %v1674_v20 = vsel %vm1648_vm10, %v1641_v60, %v10199_v21  ;;  %v1610_v40 = vsel %vm1582_vm9, %v1577_v24, %v10213_v33  ;;  %v1611_v53 = vsel %vm1582_vm9, %v1578_v15, %v10220_v52  ;;  %v10223_v60 = vld [vmem:[#allocation101_spill] sm:$0xff]  ;;  %v10237_v33 = vld [vmem:[#allocation68_spill] sm:$0xff] }
 0x398   : > { %v1707_v36 = vsel %vm1681_vm12, %v1674_v20, %v10202_v61  ;;  %v1644_v19 = vsel %vm1615_vm8, %v1611_v53, %v10221_v0  ;;  %v4465_v20 = vld [vmem:[#allocation2 + $0x158] sm:$0xff]  ;;  %v10226_v61 = vld [vmem:[#allocation166_spill] sm:$0xff] }
 0x399   : > { %4345 = vmatmul.msk.f32.gmra.mxu0 %vm1752_vm13, %v1728_v63  ;;  %4355 = vmatmul.msk.f32.gmra.mxu2 %vm1752_vm13, %v1738_v62  ;;  %v10201_v63 = vld [vmem:[#allocation77_spill] sm:$0xff]  ;;  %v1740_v48 = vsel %vm1714_vm11, %v1707_v36, %v1439_v22  ;;  %v1677_v59 = vsel %vm1648_vm10, %v1644_v19, %v10222_v38 }
 0x39a   : > { %v1697_v62 = vsel %vm1681_vm12, %v1664_v27, %v10201_v63  ;;  %v1710_v22 = vsel %vm1681_vm12, %v1677_v59, %v10223_v60  ;;  %v1513_v27 = vsel %vm279_vm0, %v4465_v20, %v10224_v17  ;;  %v10225_v63 = vld [vmem:[#allocation28_spill] sm:$0xff] }
 0x39b   : > { %v1730_v4 = vsel %vm1714_vm11, %v1697_v62, %v6444_v23  ;;  %v10207_v23 = vld [vmem:[#allocation207_spill] sm:$0xff]  ;;  %v1743_v21 = vsel %vm1714_vm11, %v1710_v22, %v1445_v2  ;;  %v1546_v62 = vsel %vm1516_vm6, %v1513_v27, %v10225_v63 }
 0x39c   : > { %v1642_v5 = vsel %vm1615_vm8, %v1609_v8, %v10207_v23  ;;  %v1579_v36 = vsel %vm1549_vm7, %v1546_v62, %v10226_v61  ;;  %v4466_v23 = vld [vmem:[#allocation2 + $0x168] sm:$0xff]  ;;  %v2036_v62 = vmul.f32 %v6745_v11, %v6745_v11 }
 0x39d   : > { %v1675_v39 = vsel %vm1648_vm10, %v1642_v5, %v10208_v16  ;;  %v10231_v5 = vld [vmem:[#allocation113_spill] sm:$0xff]  ;;  %v10232_v16 = vld [vmem:[#allocation135_spill] sm:$0xff] }
 0x39e   : > { %v1708_v42 = vsel %vm1681_vm12, %v1675_v39, %v10209_v32  ;;  %v10233_v32 = vld [vmem:[#allocation67_spill] sm:$0xff]  ;;  %v1451_v55 = vpop.permute.xlu0 %1450 }
 0x39f   : > { %v1741_v44 = vsel %vm1714_vm11, %v1708_v42, %v1441_v58  ;;  %v1514_v58 = vsel %vm279_vm0, %v4466_v23, %v10231_v5 }
 0x3a0   : > { %v1547_v39 = vsel %vm1516_vm6, %v1514_v58, %v10232_v16 }
 0x3a1   : > { %4346 = vmatmul.msk.f32.gmra.mxu0 %vm1752_vm13, %v1729_v3  ;;  %4356 = vmatmul.msk.f32.gmra.mxu2 %vm1752_vm13, %v1739_v6  ;;  %v1643_v3 = vsel %vm1615_vm8, %v1610_v40, %v10214_v14  ;;  %v1443_v6 = vpop.permute.xlu2 %1442  ;;  %v1580_v42 = vsel %vm1549_vm7, %v1547_v39, %v10233_v32 }
 0x3a2   : > { %v1676_v57 = vsel %vm1648_vm10, %v1643_v3, %v10215_v12  ;;  %v4467_v3 = vld [vmem:[#allocation2 + $0x170] sm:$0xff] }
 0x3a3   : > { %v1709_v43 = vsel %vm1681_vm12, %v1676_v57, %v10216_v47  ;;  %v10239_v57 = vld [vmem:[#allocation26_spill] sm:$0xff] }
 0x3a4   : > { %v1742_v26 = vsel %vm1714_vm11, %v1709_v43, %v1443_v6  ;;  %v10238_v6 = vld [vmem:[#allocation114_spill] sm:$0xff]  ;;  %v10240_v43 = vld [vmem:[#allocation159_spill] sm:$0xff] }
 0x3a5   : > { %v1515_v12 = vsel %vm279_vm0, %v4467_v3, %v10238_v6 }
 0x3a6   : > { %v1548_v47 = vsel %vm1516_vm6, %v1515_v12, %v10239_v57 }
 0x3a9   : > { %4347 = vmatmul.msk.f32.gmra.mxu0 %vm1752_vm13, %v1730_v4  ;;  %4357 = vmatmul.msk.f32.gmra.mxu2 %vm1752_vm13, %v1740_v48  ;;  %v10227_v4 = vld [vmem:[#allocation180_spill] sm:$0xff]  ;;  %v1449_v34 = vpop.permute.xlu2 %1448 }
 0x3aa   : > { %v1612_v48 = vsel %vm1582_vm9, %v1579_v36, %v10227_v4  ;;  %v1966_v4 = vsel %vm279_vm0, %v6745_v11, 0.0 }
 0x3ab   : > { %v1645_v50 = vsel %vm1615_vm8, %v1612_v48, %v10228_v35 }
 0x3ac   : > { %v1678_v56 = vsel %vm1648_vm10, %v1645_v50, %v10229_v31 }
 0x3ad   : > { %v1711_v30 = vsel %vm1681_vm12, %v1678_v56, %v10230_v25  ;;  %v2068_v56 = vsel %vm279_vm0, %v2036_v62, 0.0 }
 0x3ae   : > { %v1744_v8 = vsel %vm1714_vm11, %v1711_v30, %v1447_v49 }
 0x3b1   : > { %4358 = vmatmul.msk.f32.gmra.mxu2 %vm1752_vm13, %v1741_v44  ;;  %v10234_v44 = vld [vmem:[#allocation195_spill] sm:$0xff] }
 0x3b2   : > { %v1613_v28 = vsel %vm1582_vm9, %v1580_v42, %v10234_v44 }
 0x3b3   : > { %v1646_v54 = vsel %vm1615_vm8, %v1613_v28, %v10235_v41 }
 0x3b4   : > { %v1679_v10 = vsel %vm1648_vm10, %v1646_v54, %v10236_v46 }
 0x3b5   : > { %v1712_v40 = vsel %vm1681_vm12, %v1679_v10, %v10237_v33 }
 0x3b6   : > { %v6763_v7 = vpop.f32.mrf.mxu0  ;;  %v1745_v14 = vsel %vm1714_vm11, %v1712_v40, %v1449_v34 }
 0x3b7   : > { %v2037_v63 = vmul.f32 %v6763_v7, %v6763_v7  ;;  %v1967_v61 = vsel %vm279_vm0, %v6763_v7, 0.0 }
 0x3b8   : > { %v1968_v49 = vadd.f32 %v1967_v61, %v1966_v4 }
 0x3b9   : > { %4359 = vmatmul.msk.f32.gmra.mxu2 %vm1752_vm13, %v1742_v26  ;;  %v1581_v26 = vsel %vm1549_vm7, %v1548_v47, %v10240_v43  ;;  %v2069_v48 = vsel %vm279_vm0, %v2037_v63, 0.0 }
 0x3ba   : > { %v1614_v13 = vsel %vm1582_vm9, %v1581_v26, %v10241_v18  ;;  %v2070_v23 = vadd.f32 %v2069_v48, %v2068_v56 }
 0x3bb   : > { %v1647_v37 = vsel %vm1615_vm8, %v1614_v13, %v10242_v29 }
 0x3bc   : > { %v1680_v15 = vsel %vm1648_vm10, %v1647_v37, %v10243_v45 }
 0x3bd   : > { %v1713_v53 = vsel %vm1681_vm12, %v1680_v15, %v6310_v9 }
 0x3be   : > { %v6781_v51 = vpop.f32.mrf.mxu0  ;;  %v1746_v0 = vsel %vm1714_vm11, %v1713_v53, %v1451_v55 }
 0x3bf   : > { %v2038_v36 = vmul.f32 %v6781_v51, %v6781_v51  ;;  %v1969_v35 = vsel %vm279_vm0, %v6781_v51, 0.0 }
 0x3c0   : > { %v1970_v5 = vadd.f32 %v1969_v35, %v1968_v49 }
 0x3c1   : > { %4360 = vmatmul.msk.f32.gmra.mxu2 %vm1752_vm13, %v1743_v21  ;;  %v2071_v25 = vsel %vm279_vm0, %v2038_v36, 0.0 }
 0x3c2   : > { %v2072_v42 = vadd.f32 %v2071_v25, %v2070_v23 }
 0x3c6   : > { %v6799_v1 = vpop.f32.mrf.mxu0 }
 0x3c7   : > { %v2039_v50 = vmul.f32 %v6799_v1, %v6799_v1  ;;  %v1971_v30 = vsel %vm279_vm0, %v6799_v1, 0.0 }
 0x3c8   : > { %v1972_v44 = vadd.f32 %v1971_v30, %v1970_v5 }
 0x3c9   : > { %4361 = vmatmul.msk.f32.gmra.mxu2 %vm1752_vm13, %v1744_v8  ;;  %v2073_v16 = vsel %vm279_vm0, %v2039_v50, 0.0 }
 0x3ca   : > { %v2074_v34 = vadd.f32 %v2073_v16, %v2072_v42 }
 0x3ce   : > { %v6817_v24 = vpop.f32.mrf.mxu0 }
 0x3cf   : > { %v2040_v8 = vmul.f32 %v6817_v24, %v6817_v24  ;;  %v1973_v39 = vsel %vm279_vm0, %v6817_v24, 0.0 }
 0x3d0   : > { %v1974_v46 = vadd.f32 %v1973_v39, %v1972_v44 }
 0x3d1   : > { %4362 = vmatmul.msk.f32.gmra.mxu2 %vm1752_vm13, %v1745_v14  ;;  %v2075_v28 = vsel %vm279_vm0, %v2040_v8, 0.0 }
 0x3d2   : > { %v2076_v14 = vadd.f32 %v2075_v28, %v2074_v34 }
 0x3d6   : > { %v6835_v52 = vpop.f32.mrf.mxu0 }
 0x3d7   : > { %v2041_v32 = vmul.f32 %v6835_v52, %v6835_v52  ;;  %v1975_v41 = vsel %vm279_vm0, %v6835_v52, 0.0 }
 0x3d8   : > { %v1976_v3 = vadd.f32 %v1975_v41, %v1974_v46 }
 0x3d9   : > { %4363 = vmatmul.msk.f32.gmra.mxu2 %vm1752_vm13, %v1746_v0  ;;  %v2077_v10 = vsel %vm279_vm0, %v2041_v32, 0.0 }
 0x3da   : > { %v2078_v43 = vadd.f32 %v2077_v10, %v2076_v14 }
 0x3de   : > { %v6841_v19 = vpop.f32.mrf.mxu0 }
 0x3df   : > { %v2042_v54 = vmul.f32 %v6841_v19, %v6841_v19  ;;  %v1977_v33 = vsel %vm279_vm0, %v6841_v19, 0.0 }
 0x3e0   : > { %v1978_v26 = vadd.f32 %v1977_v33, %v1976_v3 }
 0x3e1   : > { %v2079_v12 = vsel %vm279_vm0, %v2042_v54, 0.0 }
 0x3e2   : > { %v2080_v55 = vadd.f32 %v2079_v12, %v2078_v43 }
 0x3e4   : > { %v6843_v2 = vpop.f32.mrf.mxu2 }
 0x3e5   : > { %v2052_v43 = vmul.f32 %v6843_v2, %v6843_v2 }
 0x3e6   : > { %v6845_v38 = vpop.f32.mrf.mxu0 }
 0x3e7   : > { %v2043_v40 = vmul.f32 %v6845_v38, %v6845_v38  ;;  %v1979_v57 = vsel %vm279_vm0, %v6845_v38, 0.0 }
 0x3e8   : > { %v1980_v45 = vadd.f32 %v1979_v57, %v1978_v26 }
 0x3e9   : > { %v2081_v13 = vsel %vm279_vm0, %v2043_v40, 0.0 }
 0x3ea   : > { %v2082_v63 = vadd.f32 %v2081_v13, %v2080_v55  ;;  %v1997_v55 = vsel %vm279_vm0, %v6843_v2, 0.0 }
 0x3ec   : > { %v6847_v59 = vpop.f32.mrf.mxu2 }
 0x3ee   : > { %v6849_v60 = vpop.f32.mrf.mxu0 }
 0x3ef   : > { %v2044_v47 = vmul.f32 %v6849_v60, %v6849_v60  ;;  %v1981_v29 = vsel %vm279_vm0, %v6849_v60, 0.0 }
 0x3f0   : > { %v1982_v62 = vadd.f32 %v1981_v29, %v1980_v45 }
 0x3f1   : > { %v2083_v15 = vsel %vm279_vm0, %v2044_v47, 0.0 }
 0x3f2   : > { %v2084_v48 = vadd.f32 %v2083_v15, %v2082_v63  ;;  %v2053_v63 = vmul.f32 %v6847_v59, %v6847_v59 }
 0x3f4   : > { %v6851_v22 = vpop.f32.mrf.mxu2 }
 0x3f6   : > { %v6853_v21 = vpop.f32.mrf.mxu0 }
 0x3f7   : > { %v2045_v37 = vmul.f32 %v6853_v21, %v6853_v21  ;;  %v1983_v53 = vsel %vm279_vm0, %v6853_v21, 0.0 }
 0x3f8   : > { %v1984_v35 = vadd.f32 %v1983_v53, %v1982_v62 }
 0x3f9   : > { %v2085_v61 = vsel %vm279_vm0, %v2045_v37, 0.0 }
 0x3fa   : > { %v2086_v30 = vadd.f32 %v2085_v61, %v2084_v48  ;;  %v2101_v48 = vsel %vm279_vm0, %v2053_v63, 0.0 }
 0x3fc   : > { %v6855_v20 = vpop.f32.mrf.mxu2 }
 0x3fe   : > { %v6857_v9 = vpop.f32.mrf.mxu0 }
 0x3ff   : > { %v2046_v0 = vmul.f32 %v6857_v9, %v6857_v9  ;;  %v1985_v36 = vsel %vm279_vm0, %v6857_v9, 0.0 }
 0x400   : > { %v1986_v8 = vadd.f32 %v1985_v36, %v1984_v35  ;;  %v1999_v36 = vsel %vm279_vm0, %v6847_v59, 0.0  ;;  %v2054_v35 = vmul.f32 %v6851_v22, %v6851_v22 }
 0x401   : > { %v2087_v49 = vsel %vm279_vm0, %v2046_v0, 0.0  ;;  %v2099_v0 = vsel %vm279_vm0, %v2052_v43, 0.0 }
 0x402   : > { %v2088_v32 = vadd.f32 %v2087_v49, %v2086_v30  ;;  %v2103_v30 = vsel %vm279_vm0, %v2054_v35, 0.0 }
 0x404   : > { %v6859_v17 = vpop.f32.mrf.mxu2 }
 0x406   : > { %v6861_v27 = vpop.f32.mrf.mxu0 }
 0x407   : > { %v2047_v4 = vmul.f32 %v6861_v27, %v6861_v27  ;;  %v1987_v56 = vsel %vm279_vm0, %v6861_v27, 0.0 }
 0x408   : > { %v1988_v42 = vadd.f32 %v1987_v56, %v1986_v8  ;;  %v2001_v56 = vsel %vm279_vm0, %v6851_v22, 0.0  ;;  %v2055_v8 = vmul.f32 %v6855_v20, %v6855_v20 }
 0x409   : > { %v2089_v5 = vsel %vm279_vm0, %v2047_v4, 0.0 }
 0x40a   : > { %v2090_v54 = vadd.f32 %v2089_v5, %v2088_v32 }
 0x40c   : > { %v6878_v31 = vpop.f32.mrf.mxu2 }
 0x40e   : > { %v6886_v58 = vpop.f32.mrf.mxu0 }
 0x40f   : > { %v2048_v25 = vmul.f32 %v6886_v58, %v6886_v58  ;;  %v1989_v16 = vsel %vm279_vm0, %v6886_v58, 0.0 }
 0x410   : > { %v1990_v34 = vadd.f32 %v1989_v16, %v1988_v42  ;;  %v2105_v42 = vsel %vm279_vm0, %v2055_v8, 0.0 }
 0x411   : > { %v2091_v44 = vsel %vm279_vm0, %v2048_v25, 0.0 }
 0x412   : > { %v2092_v33 = vadd.f32 %v2091_v44, %v2090_v54  ;;  %v2056_v44 = vmul.f32 %v6859_v17, %v6859_v17 }
 0x414   : > { %v6903_v6 = vpop.f32.mrf.mxu2 }
 0x416   : > { %v6910_v18 = vpop.f32.mrf.mxu0 }
 0x417   : > { %v2049_v39 = vmul.f32 %v6910_v18, %v6910_v18  ;;  %v1991_v28 = vsel %vm279_vm0, %v6910_v18, 0.0 }
 0x418   : > { %v1992_v40 = vadd.f32 %v1991_v28, %v1990_v34  ;;  %v2107_v34 = vsel %vm279_vm0, %v2056_v44, 0.0 }
 0x419   : > { %v2093_v46 = vsel %vm279_vm0, %v2049_v39, 0.0  ;;  %v2003_v39 = vsel %vm279_vm0, %v6855_v20, 0.0 }
 0x41a   : > { %v2094_v12 = vadd.f32 %v2093_v46, %v2092_v33  ;;  %v2057_v46 = vmul.f32 %v6878_v31, %v6878_v31 }
 0x41c   : > { %v6927_v50 = vpop.f32.mrf.mxu2 }
 0x41e   : > { %v6934_v23 = vpop.f32.mrf.mxu0 }
 0x41f   : > { %v2050_v41 = vmul.f32 %v6934_v23, %v6934_v23  ;;  %v1993_v10 = vsel %vm279_vm0, %v6934_v23, 0.0 }
 0x420   : > { %v1994_v57 = vadd.f32 %v1993_v10, %v1992_v40  ;;  %v2007_v40 = vsel %vm279_vm0, %v6878_v31, 0.0 }
 0x421   : > { %v2095_v3 = vsel %vm279_vm0, %v2050_v41, 0.0  ;;  %v2005_v41 = vsel %vm279_vm0, %v6859_v17, 0.0 }
 0x422   : > { %v2096_v29 = vadd.f32 %v2095_v3, %v2094_v12  ;;  %v2109_v12 = vsel %vm279_vm0, %v2057_v46, 0.0 }
 0x424   : > { %v6949_v14 = vpop.f32.mrf.mxu2 }
 0x425   : > { %v2060_v63 = vmul.f32 %v6949_v14, %v6949_v14 }
 0x426   : > { %v6952_v47 = vpop.f32.mrf.mxu0 }
 0x427   : > { %v1995_v26 = vsel %vm279_vm0, %v6952_v47, 0.0  ;;  %v2051_v13 = vmul.f32 %v6952_v47, %v6952_v47 }
 0x428   : > { %v1996_v37 = vadd.f32 %v1995_v26, %v1994_v57  ;;  %v2058_v57 = vmul.f32 %v6903_v6, %v6903_v6  ;;  %v2009_v26 = vsel %vm279_vm0, %v6903_v6, 0.0 }
 0x429   : > { %v2097_v45 = vsel %vm279_vm0, %v2051_v13, 0.0 }
 0x42a   : > { %v1998_v15 = vadd.f32 %v1997_v55, %v1996_v37  ;;  %v2098_v53 = vadd.f32 %v2097_v45, %v2096_v29  ;;  %v2111_v29 = vsel %vm279_vm0, %v2058_v57, 0.0  ;;  %v2059_v37 = vmul.f32 %v6927_v50, %v6927_v50 }
 0x42c   : > { %v2100_v62 = vadd.f32 %v2099_v0, %v2098_v53  ;;  %v6966_v61 = vpop.f32.mrf.mxu2  ;;  %v2000_v4 = vadd.f32 %v1999_v36, %v1998_v15  ;;  %v2011_v15 = vsel %vm279_vm0, %v6927_v50, 0.0  ;;  %v2113_v0 = vsel %vm279_vm0, %v2059_v37, 0.0 }
 0x42d   : > { %v2013_v36 = vsel %vm279_vm0, %v6949_v14, 0.0  ;;  %v2061_v35 = vmul.f32 %v6966_v61, %v6966_v61 }
 0x42e   : > { %v2102_v49 = vadd.f32 %v2101_v48, %v2100_v62  ;;  %v2002_v25 = vadd.f32 %v2001_v56, %v2000_v4  ;;  %v2115_v48 = vsel %vm279_vm0, %v2060_v63, 0.0 }
 0x42f   : > { %v2117_v8 = vsel %vm279_vm0, %v2061_v35, 0.0 }
 0x430   : > { %v2104_v5 = vadd.f32 %v2103_v30, %v2102_v49  ;;  %v2004_v32 = vadd.f32 %v2003_v39, %v2002_v25  ;;  %v2015_v25 = vsel %vm279_vm0, %v6966_v61, 0.0 }
 0x432   : > { %v2106_v28 = vadd.f32 %v2105_v42, %v2104_v5  ;;  %v2006_v54 = vadd.f32 %v2005_v41, %v2004_v32 }
 0x434   : > { %v6978_v16 = vpop.f32.mrf.mxu2  ;;  %v2108_v10 = vadd.f32 %v2107_v34, %v2106_v28  ;;  %v2008_v3 = vadd.f32 %v2007_v40, %v2006_v54 }
 0x435   : > { %v2062_v5 = vmul.f32 %v6978_v16, %v6978_v16  ;;  %v2017_v32 = vsel %vm279_vm0, %v6978_v16, 0.0 }
 0x436   : > { %v2110_v43 = vadd.f32 %v2109_v12, %v2108_v10  ;;  %v2010_v13 = vadd.f32 %v2009_v26, %v2008_v3 }
 0x437   : > { %v2119_v44 = vsel %vm279_vm0, %v2062_v5, 0.0 }
 0x438   : > { %v2112_v55 = vadd.f32 %v2111_v29, %v2110_v43  ;;  %v2012_v53 = vadd.f32 %v2011_v15, %v2010_v13 }
 0x43a   : > { %v2114_v62 = vadd.f32 %v2113_v0, %v2112_v55  ;;  %v2014_v4 = vadd.f32 %v2013_v36, %v2012_v53 }
 0x43c   : > { %v6990_v33 = vpop.f32.mrf.mxu2  ;;  %v2116_v49 = vadd.f32 %v2115_v48, %v2114_v62  ;;  %v2016_v30 = vadd.f32 %v2015_v25, %v2014_v4 }
 0x43d   : > { %v2063_v28 = vmul.f32 %v6990_v33, %v6990_v33  ;;  %v2019_v46 = vsel %vm279_vm0, %v6990_v33, 0.0 }
 0x43e   : > { %v2118_v39 = vadd.f32 %v2117_v8, %v2116_v49  ;;  %v2018_v42 = vadd.f32 %v2017_v32, %v2016_v30 }
 0x43f   : > { %v2121_v12 = vsel %vm279_vm0, %v2063_v28, 0.0 }
 0x440   : > { %v2120_v54 = vadd.f32 %v2119_v44, %v2118_v39  ;;  %v2020_v3 = vadd.f32 %v2019_v46, %v2018_v42 }
 0x442   : > { %v2122_v13 = vadd.f32 %v2121_v12, %v2120_v54 }
 0x444   : > { %v7002_v45 = vpop.f32.mrf.mxu2 }
 0x445   : > { %v2064_v41 = vmul.f32 %v7002_v45, %v7002_v45  ;;  %v2021_v10 = vsel %vm279_vm0, %v7002_v45, 0.0 }
 0x446   : > { %v2022_v29 = vadd.f32 %v2021_v10, %v2020_v3 }
 0x447   : > { %v2123_v57 = vsel %vm279_vm0, %v2064_v41, 0.0 }
 0x448   : > { %v2124_v15 = vadd.f32 %v2123_v57, %v2122_v13 }
 0x44c   : > { %v7014_v56 = vpop.f32.mrf.mxu2 }
 0x44d   : > { %v2065_v40 = vmul.f32 %v7014_v56, %v7014_v56  ;;  %v2023_v43 = vsel %vm279_vm0, %v7014_v56, 0.0 }
 0x44e   : > { %v2024_v53 = vadd.f32 %v2023_v43, %v2022_v29  ;;  %v7052_v29 = vld [vmem:[#allocation3 + $0x8] sm:$0xff] }
 0x44f   : > { %v2125_v37 = vsel %vm279_vm0, %v2065_v40, 0.0 }
 0x450   : > { %v2126_v63 = vadd.f32 %v2125_v37, %v2124_v15  ;;  %v7054_v37 = vld [vmem:[#allocation3 + $0x10] sm:$0x3] }
 0x454   : > { %v7028_v34 = vpop.f32.mrf.mxu2 }
 0x455   : > { %v2066_v26 = vmul.f32 %v7028_v34, %v7028_v34  ;;  %v2025_v55 = vsel %vm279_vm0, %v7028_v34, 0.0 }
 0x456   : > { %v2026_v62 = vadd.f32 %v2025_v55, %v2024_v53  ;;  %v7056_v55 = vld [vmem:[#allocation3] sm:$0xff] }
 0x457   : > { %v2127_v0 = vsel %vm279_vm0, %v2066_v26, 0.0 }
 0x458   : > { %v2128_v35 = vadd.f32 %v2127_v0, %v2126_v63 }
 0x45c   : > { %v1963_v36 = vpop.f32.mrf.mxu2 }
 0x45d   : > { %v2027_v4 = vsel %vm279_vm0, %v1963_v36, 0.0  ;;  %v2067_v48 = vmul.f32 %v1963_v36, %v1963_v36 }
 0x45e   : > { %v2028_v49 = vadd.f32 %v2027_v4, %v2026_v62  ;;  %v2455_v62 = vrot.slane %v7052_v29, 1  ;;  %v2457_v4 = vrot.slane %v7054_v37, 1 }
 0x45f   : > { %v2129_v25 = vsel %vm279_vm0, %v2067_v48, 0.0  ;;  %v2454_v48 = vrot.slane %v7056_v55, 1 }
 0x460   : > { %v2029_v30 = vrot.slane %v2028_v49, 4  ;;  %v2130_v8 = vadd.f32 %v2129_v25, %v2128_v35  ;;  %v2458_v35 = vsel %vm528_vm2, %v2455_v62, %v2457_v4 }
 0x461   : > { %2642 = vrot.lane.b32.xlu2 %v2458_v35, %s4509_s30 }
 0x462   : > { %v2030_v5 = vadd.f32 %v2029_v30, %v2028_v49  ;;  %v2131_v39 = vrot.slane %v2130_v8, 4  ;;  %v2456_v49 = vsel %vm528_vm2, %v2454_v48, %v2455_v62 }
 0x463   : > { %2640 = vrot.lane.b32.xlu1 %v2456_v49, %s4509_s30 }
 0x464   : > { %v2031_v32 = vrot.slane %v2030_v5, 2  ;;  %v2132_v42 = vadd.f32 %v2131_v39, %v2130_v8 }
 0x466   : > { %v2032_v44 = vadd.f32 %v2031_v32, %v2030_v5  ;;  %v2133_v28 = vrot.slane %v2132_v42, 2 }
 0x468   : > { %v2033_v41 = vrot.slane %v2032_v44, 1  ;;  %v2134_v54 = vadd.f32 %v2133_v28, %v2132_v42  ;;  %v7076_v42 = vld [vmem:[%s9540_s2] ss:$0 sm:$0xff] }
 0x46a   : > { %v2034_v46 = vadd.f32 %v2033_v41, %v2032_v44  ;;  %v2135_v10 = vrot.slane %v2134_v54, 1  ;;  %v7084_v41 = vld [vmem:[%s9541_s3] ss:$0 sm:$0xff] }
 0x46c   : > { %v7048_v40 = vmul.f32 0.00390625, %v2034_v46  ;;  %v2136_v3 = vadd.f32 %v2135_v10, %v2134_v54 }
 0x46e   : > { %v2137_v12 = vmul.f32 0.00390625, %v2136_v3  ;;  %v2138_v57 = vmul.f32 %v7048_v40, %v7048_v40  ;;  %v2168_v15 = vsub.f32 %v6990_v33, %v7048_v40  ;;  %v2169_v53 = vsub.f32 %v7002_v45, %v7048_v40 }
 0x46f   : > { %v2170_v0 = vsub.f32 %v7014_v56, %v7048_v40  ;;  %v2171_v63 = vsub.f32 %v7028_v34, %v7048_v40  ;;  %v2172_v44 = vsub.f32 %v1963_v36, %v7048_v40  ;;  %v2141_v3 = vsub.f32 %v6745_v11, %v7048_v40 }
 0x470   : > { %v2139_v43 = vsub.f32 %v2137_v12, %v2138_v57  ;;  %v2142_v36 = vsub.f32 %v6763_v7, %v7048_v40  ;;  %v2143_v12 = vsub.f32 %v6781_v51, %v7048_v40  ;;  %v2144_v57 = vsub.f32 %v6799_v1, %v7048_v40 }
 0x471   : > { %v2148_v11 = vsub.f32 %v6845_v38, %v7048_v40  ;;  %v2149_v7 = vsub.f32 %v6849_v60, %v7048_v40  ;;  %v2150_v51 = vsub.f32 %v6853_v21, %v7048_v40  ;;  %v2151_v1 = vsub.f32 %v6857_v9, %v7048_v40 }
 0x472   : > { %v2140_v26 = vmax.f32 %v2139_v43, 0.0  ;;  %v2145_v43 = vsub.f32 %v6817_v24, %v7048_v40  ;;  %v2152_v24 = vsub.f32 %v6861_v27, %v7048_v40  ;;  %v2155_v38 = vsub.f32 %v6934_v23, %v7048_v40 }
 0x473   : > { %v2156_v60 = vsub.f32 %v6952_v47, %v7048_v40  ;;  %v2157_v27 = vsub.f32 %v6843_v2, %v7048_v40  ;;  %v2160_v4 = vsub.f32 %v6855_v20, %v7048_v40  ;;  %v2161_v23 = vsub.f32 %v6859_v17, %v7048_v40 }
 0x474   : > { %v2173_v13 = vadd.f32 1e-05, %v2140_v26  ;;  %v2146_v26 = vsub.f32 %v6835_v52, %v7048_v40  ;;  %v2153_v52 = vsub.f32 %v6886_v58, %v7048_v40  ;;  %v2158_v58 = vsub.f32 %v6847_v59, %v7048_v40 }
 0x475   : > { %v2162_v47 = vsub.f32 %v6878_v31, %v7048_v40  ;;  %v2163_v48 = vsub.f32 %v6903_v6, %v7048_v40  ;;  %v2164_v2 = vsub.f32 %v6927_v50, %v7048_v40  ;;  %v2165_v59 = vsub.f32 %v6949_v14, %v7048_v40 }
 0x476   : > { %4432 = vrsqrt.f32 %v2173_v13  ;;  %vm2180_vm15 = vweird.f32 %v2173_v13  ;;  %v2167_v20 = vsub.f32 %v6978_v16, %v7048_v40 }
 0x47c   : > { %v4433_v25 = vpop.eup %4432 }
 0x47d   : > { %v2175_v30 = vmul.f32 %v4433_v25, %v2173_v13  ;;  %vm2181_vm14 = vweird.f32 %v4433_v25  ;;  %v2147_v13 = vsub.f32 %v6841_v19, %v7048_v40  ;;  %v2154_v19 = vsub.f32 %v6910_v18, %v7048_v40 }
 0x47e   : > { %vm2182_vm1 = vmor %vm2180_vm15, %vm2181_vm14  ;;  %v2159_v18 = vsub.f32 %v6851_v22, %v7048_v40  ;;  %v2166_v22 = vsub.f32 %v6966_v61, %v7048_v40 }
 0x47f   : > { %v2176_v8 = vmul.f32 %v4433_v25, %v2175_v30 }
 0x481   : > { %v2177_v5 = vmul.f32 0.5, %v2176_v8 }
 0x483   : > { %v2178_v39 = vsub.f32 1.5, %v2177_v5 }
 0x485   : > { %v2179_v32 = vmul.f32 %v4433_v25, %v2178_v39 }
 0x487   : > { %v7079_v28 = vsel %vm2182_vm1, %v4433_v25, %v2179_v32 }
 0x488   : > { %v2215_v54 = vmul.f32 %v7079_v28, %v2172_v44  ;;  %v2186_v21 = vmul.f32 %v7079_v28, %v2143_v12  ;;  %v2187_v9 = vmul.f32 %v7079_v28, %v2144_v57  ;;  %v2184_v17 = vmul.f32 %v7079_v28, %v2141_v3 }
 0x489   : > { %v2185_v35 = vmul.f32 %v7079_v28, %v2142_v36  ;;  %v2188_v31 = vmul.f32 %v7079_v28, %v2145_v43  ;;  %v2189_v50 = vmul.f32 %v7079_v28, %v2146_v26  ;;  %v2190_v14 = vmul.f32 %v7079_v28, %v2147_v13 }
 0x48a   : > { %v2251_v46 = vmul.f32 %v7076_v42, %v2215_v54  ;;  %v2222_v6 = vmul.f32 %v7076_v42, %v2186_v21  ;;  %v2223_v49 = vmul.f32 %v7076_v42, %v2187_v9  ;;  %v2191_v25 = vmul.f32 %v7079_v28, %v2148_v11 }
 0x48b   : > { %v2192_v61 = vmul.f32 %v7079_v28, %v2149_v7  ;;  %v2193_v16 = vmul.f32 %v7079_v28, %v2150_v51  ;;  %v2194_v30 = vmul.f32 %v7079_v28, %v2151_v1  ;;  %v2195_v8 = vmul.f32 %v7079_v28, %v2152_v24 }
 0x48c   : > { %v2287_v10 = vadd.f32 %v7084_v41, %v2251_v46  ;;  %v2196_v5 = vmul.f32 %v7079_v28, %v2153_v52  ;;  %v2197_v39 = vmul.f32 %v7079_v28, %v2154_v19  ;;  %v2198_v32 = vmul.f32 %v7079_v28, %v2155_v38 }
 0x48d   : > { %v2199_v44 = vmul.f32 %v7079_v28, %v2156_v60  ;;  %v2200_v54 = vmul.f32 %v7079_v28, %v2157_v27  ;;  %v2201_v46 = vmul.f32 %v7079_v28, %v2158_v58  ;;  %v2258_v3 = vadd.f32 %v7084_v41, %v2222_v6 }
 0x48e   : > { %v2319_v62 = vmax.f32 %v2287_v10, 0.0  ;;  %v2220_v10 = vmul.f32 %v7076_v42, %v2184_v17  ;;  %v2259_v36 = vadd.f32 %v7084_v41, %v2223_v49  ;;  %v2202_v12 = vmul.f32 %v7079_v28, %v2159_v18 }
 0x48f   : > { %v2221_v57 = vmul.f32 %v7076_v42, %v2185_v35  ;;  %v2224_v43 = vmul.f32 %v7076_v42, %v2188_v31  ;;  %v2225_v26 = vmul.f32 %v7076_v42, %v2189_v50  ;;  %v2203_v13 = vmul.f32 %v7079_v28, %v2160_v4 }
 0x490   : > { %2351 = vst.msk [vmem:[#allocation3 + $0x189] sm:$0xff] %vm279_vm0, %v2319_v62  ;;  %v2226_v62 = vmul.f32 %v7076_v42, %v2190_v14  ;;  %v2290_v11 = vmax.f32 %v2258_v3, 0.0  ;;  %v2291_v7 = vmax.f32 %v2259_v36, 0.0  ;;  %v2204_v51 = vmul.f32 %v7079_v28, %v2161_v23 }
 0x491   : > { %v2205_v1 = vmul.f32 %v7079_v28, %v2162_v47  ;;  %v7176_v24 = vmul.f32 %v7079_v28, %v2163_v48  ;;  %v2227_v52 = vmul.f32 %v7076_v42, %v2191_v25  ;;  %v7180_v19 = vmul.f32 %v7079_v28, %v2164_v2 }
 0x492   : > { %v7183_v38 = vmul.f32 %v7079_v28, %v2165_v59  ;;  %v2228_v60 = vmul.f32 %v7076_v42, %v2192_v61  ;;  %2322 = vst.msk [vmem:[#allocation3 + $0x31] sm:$0xff] %vm279_vm0, %v2290_v11  ;;  %v2256_v21 = vadd.f32 %v7084_v41, %v2220_v10  ;;  %v2229_v9 = vmul.f32 %v7076_v42, %v2193_v16 }
 0x493   : > { %2323 = vst.msk [vmem:[#allocation3 + $0x39] sm:$0xff] %vm279_vm0, %v2291_v7  ;;  %v2257_v27 = vadd.f32 %v7084_v41, %v2221_v57  ;;  %v2260_v58 = vadd.f32 %v7084_v41, %v2224_v43  ;;  %v2261_v18 = vadd.f32 %v7084_v41, %v2225_v26  ;;  %v2209_v4 = vmul.f32 %v7079_v28, %v2166_v22 }
 0x494   : > { %v7195_v23 = vmul.f32 %v7079_v28, %v2167_v20  ;;  %v2230_v47 = vmul.f32 %v7076_v42, %v2194_v30  ;;  %v2262_v48 = vadd.f32 %v7084_v41, %v2226_v62  ;;  %v7203_v2 = vmul.f32 %v7079_v28, %v2168_v15 }
 0x495   : > { %v7209_v59 = vmul.f32 %v7079_v28, %v2169_v53  ;;  %v2231_v22 = vmul.f32 %v7076_v42, %v2195_v8  ;;  %v2263_v20 = vadd.f32 %v7084_v41, %v2227_v52  ;;  %v2232_v17 = vmul.f32 %v7076_v42, %v2196_v5 }
 0x496   : > { %v2233_v35 = vmul.f32 %v7076_v42, %v2197_v39  ;;  %v2264_v31 = vadd.f32 %v7084_v41, %v2228_v60  ;;  %v2288_v33 = vmax.f32 %v2256_v21, 0.0  ;;  %v2265_v15 = vadd.f32 %v7084_v41, %v2229_v9 }
 0x497   : > { %v2289_v6 = vmax.f32 %v2257_v27, 0.0  ;;  %v2292_v49 = vmax.f32 %v2260_v58, 0.0  ;;  %v2293_v50 = vmax.f32 %v2261_v18, 0.0  ;;  %v7221_v45 = vmul.f32 %v7079_v28, %v2170_v0 }
 0x498   : > { %v2234_v53 = vmul.f32 %v7076_v42, %v2198_v32  ;;  %v2266_v14 = vadd.f32 %v7084_v41, %v2230_v47  ;;  %2320 = vst.msk [vmem:[#allocation3 + $0x19] sm:$0xff] %vm279_vm0, %v2288_v33  ;;  %v2294_v25 = vmax.f32 %v2262_v48, 0.0  ;;  %v2235_v61 = vmul.f32 %v7076_v42, %v2199_v44 }
 0x499   : > { %v2236_v16 = vmul.f32 %v7076_v42, %v2200_v54  ;;  %v7228_v30 = vld [vmem:[#allocation3 + $0x30] sm:$0xff]  ;;  %v2267_v8 = vadd.f32 %v7084_v41, %v2231_v22  ;;  %2321 = vst.msk [vmem:[#allocation3 + $0x21] sm:$0xff] %vm279_vm0, %v2289_v6  ;;  %v2295_v56 = vmax.f32 %v2263_v20, 0.0  ;;  %v2237_v0 = vmul.f32 %v7076_v42, %v2201_v46 }
 0x49a   : > { %v7233_v5 = vld [vmem:[#allocation3 + $0x38] sm:$0xff]  ;;  %v2464_v39 = vrot.slane %v7228_v30, 1  ;;  %v2268_v32 = vadd.f32 %v7084_v41, %v2232_v17  ;;  %v2296_v10 = vmax.f32 %v2264_v31, 0.0  ;;  %2324 = vst.msk [vmem:[#allocation3 + $0x49] sm:$0xff] %vm279_vm0, %v2292_v49  ;;  %v7242_v44 = vmul.f32 %v7079_v28, %v2171_v63 }
 0x49b   : > { %v2465_v54 = vrot.slane %v7233_v5, 1  ;;  %v2269_v3 = vadd.f32 %v7084_v41, %v2233_v35  ;;  %v2297_v46 = vmax.f32 %v2265_v15, 0.0  ;;  %2325 = vst.msk [vmem:[#allocation3 + $0x51] sm:$0xff] %vm279_vm0, %v2293_v50  ;;  %v2238_v36 = vmul.f32 %v7076_v42, %v2202_v12 }
 0x49c   : > { %v2239_v57 = vmul.f32 %v7076_v42, %v2203_v13  ;;  %v2270_v43 = vadd.f32 %v7084_v41, %v2234_v53  ;;  %v2298_v26 = vmax.f32 %v2266_v14, 0.0  ;;  %2326 = vst.msk [vmem:[#allocation3 + $0x61] sm:$0xff] %vm279_vm0, %v2294_v25  ;;  %v2240_v34 = vmul.f32 %v7076_v42, %v2204_v51 }
 0x49d   : > { %v7255_v40 = vsel %vm528_vm2, %v2464_v39, %v2465_v54  ;;  %v2271_v63 = vadd.f32 %v7084_v41, %v2235_v61  ;;  %v2299_v28 = vmax.f32 %v2267_v8, 0.0  ;;  %2327 = vst.msk [vmem:[#allocation3 + $0x69] sm:$0xff] %vm279_vm0, %v2295_v56  ;;  %v2241_v12 = vmul.f32 %v7076_v42, %v2205_v1  ;;  %v7312_v61 = vld [vmem:[#allocation3 + $0x40] sm:$0x3] }
 0x49e   : > { %10244 = vst [vmem:[#allocation103_spill] sm:$0xff] %v7255_v40  ;;  %2648 = vrot.lane.b32.xlu2 %v7255_v40, %s4509_s30  ;;  %v2272_v13 = vadd.f32 %v7084_v41, %v2236_v16  ;;  %v2273_v62 = vadd.f32 %v7084_v41, %v2237_v0  ;;  %v2300_v11 = vmax.f32 %v2268_v32, 0.0  ;;  %v2242_v7 = vmul.f32 %v7076_v42, %v7176_v24 }
 0x49f   : > { %2328 = vst.msk [vmem:[#allocation3 + $0x79] sm:$0xff] %vm279_vm0, %v2296_v10  ;;  %v2243_v51 = vmul.f32 %v7076_v42, %v7180_v19  ;;  %v2244_v52 = vmul.f32 %v7076_v42, %v7183_v38  ;;  %v2301_v1 = vmax.f32 %v2269_v3, 0.0  ;;  %v7271_v60 = vld [vmem:[#allocation3 + $0x18] sm:$0xff]  ;;  %v2245_v21 = vmul.f32 %v7076_v42, %v2209_v4 }
 0x4a0   : > { %2329 = vst.msk [vmem:[#allocation3 + $0x81] sm:$0xff] %vm279_vm0, %v2297_v46  ;;  %v2274_v9 = vadd.f32 %v7084_v41, %v2238_v36  ;;  %v7276_v27 = vld [vmem:[#allocation3 + $0x20] sm:$0xff]  ;;  %v7278_v58 = vld [vmem:[#allocation3 + $0x28] sm:$0x3]  ;;  %v2302_v24 = vmax.f32 %v2270_v43, 0.0  ;;  %v2459_v18 = vrot.slane %v7271_v60, 1  ;;  %v2275_v19 = vadd.f32 %v7084_v41, %v2239_v57 }
 0x4a1   : > { %2330 = vst.msk [vmem:[#allocation3 + $0x91] sm:$0xff] %vm279_vm0, %v2298_v26  ;;  %v2460_v38 = vrot.slane %v7276_v27, 1  ;;  %v2462_v47 = vrot.slane %v7278_v58, 1  ;;  %v2303_v48 = vmax.f32 %v2271_v63, 0.0  ;;  %v2276_v4 = vadd.f32 %v7084_v41, %v2240_v34  ;;  %v7310_v25 = vld [vmem:[#allocation3 + $0x48] sm:$0xff] }
 0x4a2   : > { %2331 = vst.msk [vmem:[#allocation3 + $0x99] sm:$0xff] %vm279_vm0, %v2299_v28  ;;  %v2277_v22 = vadd.f32 %v7084_v41, %v2241_v12  ;;  %v2304_v20 = vmax.f32 %v2272_v13, 0.0  ;;  %v2305_v17 = vmax.f32 %v2273_v62, 0.0  ;;  %v7289_v35 = vld [vmem:[#allocation3 + $0x50] sm:$0xff]  ;;  %v7291_v31 = vld [vmem:[#allocation3 + $0x58] sm:$0x3]  ;;  %v2246_v50 = vmul.f32 %v7076_v42, %v7195_v23 }
 0x4a3   : > { %2332 = vst.msk [vmem:[#allocation3 + $0xa9] sm:$0xff] %vm279_vm0, %v2300_v11  ;;  %v7294_v33 = vsel %vm528_vm2, %v2460_v38, %v2462_v47  ;;  %v7297_v15 = vsel %vm528_vm2, %v2459_v18, %v2460_v38  ;;  %v2470_v6 = vrot.slane %v7289_v35, 1  ;;  %v2472_v49 = vrot.slane %v7291_v31, 1 }
 0x4a4   : > { %2333 = vst.msk [vmem:[#allocation3 + $0xb1] sm:$0xff] %vm279_vm0, %v2301_v1  ;;  %v2278_v53 = vadd.f32 %v7084_v41, %v2242_v7  ;;  %2646 = vrot.lane.b32.xlu1 %v7294_v33, %s4509_s30  ;;  %v2306_v14 = vmax.f32 %v2274_v9, 0.0  ;;  %2644 = vrot.lane.b32.xlu0 %v7297_v15, %s4509_s30  ;;  %v2247_v16 = vmul.f32 %v7076_v42, %v7203_v2  ;;  %v2307_v8 = vmax.f32 %v2275_v19, 0.0  ;;  %v7363_v1 = vld [vmem:[#allocation3 + $0x68] sm:$0xff]  ;;  %v7367_v9 = vld [vmem:[#allocation3 + $0x60] sm:$0xff] }
 0x4a5   : > { %2334 = vst.msk [vmem:[#allocation3 + $0xc1] sm:$0xff] %vm279_vm0, %v2302_v24  ;;  %v2279_v23 = vadd.f32 %v7084_v41, %v2243_v51  ;;  %v7319_v56 = vsel %vm528_vm2, %v2470_v6, %v2472_v49  ;;  %v2248_v0 = vmul.f32 %v7076_v42, %v7209_v59  ;;  %v2249_v39 = vmul.f32 %v7076_v42, %v7221_v45 }
 0x4a6   : > { %2335 = vst.msk [vmem:[#allocation3 + $0xc9] sm:$0xff] %vm279_vm0, %v2303_v48  ;;  %v2280_v32 = vadd.f32 %v7084_v41, %v2244_v52  ;;  %v2308_v10 = vmax.f32 %v2276_v4, 0.0  ;;  %2654 = vrot.lane.b32.xlu2 %v7319_v56, %s4509_s30  ;;  %v7329_v2 = vld [vmem:[#allocation3 + $0x78] sm:$0xff]  ;;  %v2281_v46 = vadd.f32 %v7084_v41, %v2245_v21  ;;  %v2309_v36 = vmax.f32 %v2277_v22, 0.0  ;;  %v7365_v21 = vld [vmem:[#allocation3 + $0x70] sm:$0x3] }
 0x4a7   : > { %10245 = vst [vmem:[#allocation34_spill] sm:$0xff] %v7319_v56  ;;  %v7331_v3 = vld [vmem:[#allocation3 + $0x80] sm:$0xff]  ;;  %v2469_v59 = vrot.slane %v7310_v25, 1  ;;  %v2467_v45 = vrot.slane %v7312_v61, 1  ;;  %v2250_v57 = vmul.f32 %v7076_v42, %v7242_v44  ;;  %v2282_v43 = vadd.f32 %v7084_v41, %v2246_v50 }
 0x4a8   : > { %2336 = vst.msk [vmem:[#allocation3 + $0xd9] sm:$0xff] %vm279_vm0, %v2304_v20  ;;  %v2310_v26 = vmax.f32 %v2278_v53, 0.0  ;;  %v2283_v34 = vadd.f32 %v7084_v41, %v2247_v16  ;;  %v2311_v63 = vmax.f32 %v2279_v23, 0.0  ;;  %v2479_v28 = vrot.slane %v7329_v2, 1  ;;  %v7401_v50 = vld [vmem:[#allocation3 + $0x90] sm:$0xff] }
 0x4a9   : > { %2337 = vst.msk [vmem:[#allocation3 + $0xe1] sm:$0xff] %vm279_vm0, %v2305_v17  ;;  %v2480_v12 = vrot.slane %v7331_v3, 1  ;;  %v2284_v13 = vadd.f32 %v7084_v41, %v2248_v0  ;;  %v2312_v62 = vmax.f32 %v2280_v32, 0.0  ;;  %v2285_v42 = vadd.f32 %v7084_v41, %v2249_v39  ;;  %v7376_v18 = vld [vmem:[#allocation3 + $0x98] sm:$0xff]  ;;  %v7378_v19 = vld [vmem:[#allocation3 + $0xa0] sm:$0x3] }
 0x4aa   : > { %2338 = vst.msk [vmem:[#allocation3 + $0xf1] sm:$0xff] %vm279_vm0, %v2306_v14  ;;  %v2313_v44 = vmax.f32 %v2281_v46, 0.0  ;;  %v7350_v11 = vsel %vm528_vm2, %v2469_v59, %v2470_v6  ;;  %v7355_v7 = vsel %vm528_vm2, %v2465_v54, %v2467_v45  ;;  %v2286_v51 = vadd.f32 %v7084_v41, %v2250_v57  ;;  %v7403_v53 = vld [vmem:[#allocation3 + $0x88] sm:$0x3] }
 0x4ab   : > { %2339 = vst.msk [vmem:[#allocation3 + $0xf9] sm:$0xff] %vm279_vm0, %v2307_v8  ;;  %v2314_v52 = vmax.f32 %v2282_v43, 0.0  ;;  %v2315_v24 = vmax.f32 %v2283_v34, 0.0  ;;  %v7371_v41 = vsel %vm528_vm2, %v2479_v28, %v2480_v12  ;;  %v2316_v54 = vmax.f32 %v2284_v13, 0.0  ;;  %v7430_v59 = vld [vmem:[#allocation3 + $0xb8] sm:$0x3] }
 0x4ac   : > { %2340 = vst.msk [vmem:[#allocation3 + $0x109] sm:$0xff] %vm279_vm0, %v2308_v10  ;;  %2652 = vrot.lane.b32.xlu1 %v7350_v11, %s4509_s30  ;;  %2650 = vrot.lane.b32.xlu0 %v7355_v7, %s4509_s30  ;;  %v2317_v38 = vmax.f32 %v2285_v42, 0.0  ;;  %v2475_v47 = vrot.slane %v7363_v1, 1  ;;  %v2477_v48 = vrot.slane %v7365_v21, 1  ;;  %v2474_v4 = vrot.slane %v7367_v9, 1  ;;  %v7410_v16 = vld [vmem:[#allocation3 + $0xc0] sm:$0xff] }
 0x4ad   : > { %2341 = vst.msk [vmem:[#allocation3 + $0x111] sm:$0xff] %vm279_vm0, %v2309_v36  ;;  %v2318_v22 = vmax.f32 %v2286_v51, 0.0  ;;  %v2485_v20 = vrot.slane %v7376_v18, 1  ;;  %v2487_v17 = vrot.slane %v7378_v19, 1  ;;  %v7412_v23 = vld [vmem:[#allocation3 + $0xc8] sm:$0xff]  ;;  %v2484_v8 = vrot.slane %v7401_v50, 1 }
 0x4ae   : > { %2342 = vst.msk [vmem:[#allocation3 + $0x121] sm:$0xff] %vm279_vm0, %v2310_v26  ;;  %2660 = vrot.lane.b32.xlu2 %v7371_v41, %s4509_s30  ;;  %v7391_v6 = vsel %vm528_vm2, %v2475_v47, %v2477_v48  ;;  %v7394_v49 = vsel %vm528_vm2, %v2474_v4, %v2475_v47  ;;  %v2482_v0 = vrot.slane %v7403_v53, 1  ;;  %v2494_v39 = vrot.slane %v7410_v16, 1  ;;  %v7428_v36 = vld [vmem:[#allocation3 + $0xb0] sm:$0xff]  ;;  %v7432_v45 = vld [vmem:[#allocation3 + $0xa8] sm:$0xff] }
 0x4af   : > { %2343 = vst.msk [vmem:[#allocation3 + $0x129] sm:$0xff] %vm279_vm0, %v2311_v63  ;;  %v7406_v14 = vsel %vm528_vm2, %v2485_v20, %v2487_v17  ;;  %v2495_v32 = vrot.slane %v7412_v23, 1  ;;  %v7419_v10 = vsel %vm528_vm2, %v2484_v8, %v2485_v20  ;;  %v2490_v34 = vrot.slane %v7428_v36, 1  ;;  %v7460_v51 = vld [vmem:[#allocation3 + $0xd0] sm:$0x3] }
 0x4b0   : > { %10246 = vst [vmem:[#allocation168_spill] sm:$0xff] %v7371_v41  ;;  %v7422_v46 = vsel %vm528_vm2, %v2480_v12, %v2482_v0  ;;  %v7439_v43 = vld [vmem:[#allocation3 + $0xe0] sm:$0xff]  ;;  %v7441_v26 = vld [vmem:[#allocation3 + $0xe8] sm:$0x3]  ;;  %v2492_v63 = vrot.slane %v7430_v59, 1  ;;  %v2489_v28 = vrot.slane %v7432_v45, 1 }
 0x4b1   : > { %2344 = vst.msk [vmem:[#allocation3 + $0x139] sm:$0xff] %vm279_vm0, %v2312_v62  ;;  %v7435_v57 = vsel %vm528_vm2, %v2494_v39, %v2495_v32  ;;  %v2500_v12 = vrot.slane %v7439_v43, 1  ;;  %v2502_v13 = vrot.slane %v7441_v26, 1  ;;  %v2497_v47 = vrot.slane %v7460_v51, 1  ;;  %v7489_v0 = vld [vmem:[#allocation3 + $0xf0] sm:$0xff] }
 0x4b2   : > { %2345 = vst.msk [vmem:[#allocation3 + $0x141] sm:$0xff] %vm279_vm0, %v2313_v44  ;;  %v7449_v62 = vsel %vm528_vm2, %v2490_v34, %v2492_v63  ;;  %v7452_v42 = vsel %vm528_vm2, %v2489_v28, %v2490_v34  ;;  %v7458_v44 = vld [vmem:[#allocation3 + $0xd8] sm:$0xff]  ;;  %v7487_v8 = vld [vmem:[#allocation3 + $0x100] sm:$0x3]  ;;  %v2534_v40 = vrot.slane %v7056_v55, 2  ;;  %v2544_v55 = vrot.slane %v7228_v30, 2 }
 0x4b3   : > { %2346 = vst.msk [vmem:[#allocation3 + $0x151] sm:$0xff] %vm279_vm0, %v2314_v52  ;;  %v7463_v52 = vsel %vm528_vm2, %v2500_v12, %v2502_v13  ;;  %v7479_v20 = vsel %vm528_vm2, %v2495_v32, %v2497_v47  ;;  %v7485_v17 = vld [vmem:[#allocation3 + $0xf8] sm:$0xff]  ;;  %v2507_v28 = vrot.slane %v7487_v8, 1 }
 0x4b4   : > { %2347 = vst.msk [vmem:[#allocation3 + $0x159] sm:$0xff] %vm279_vm0, %v2315_v24  ;;  %2658 = vrot.lane.b32.xlu1 %v7391_v6, %s4509_s30  ;;  %2656 = vrot.lane.b32.xlu0 %v7394_v49, %s4509_s30  ;;  %v7467_v24 = vld [vmem:[#allocation3 + $0x108] sm:$0xff]  ;;  %v2505_v63 = vrot.slane %v7485_v17, 1 }
 0x4b5   : > { %2348 = vst.msk [vmem:[#allocation3 + $0x169] sm:$0xff] %vm279_vm0, %v2316_v54  ;;  %v7469_v54 = vld [vmem:[#allocation3 + $0x110] sm:$0xff]  ;;  %v2509_v48 = vrot.slane %v7467_v24, 1 }
 0x4b6   : > { %2349 = vst.msk [vmem:[#allocation3 + $0x171] sm:$0xff] %vm279_vm0, %v2317_v38  ;;  %2666 = vrot.lane.b32.xlu2 %v7406_v14, %s4509_s30  ;;  %v2499_v38 = vrot.slane %v7458_v44, 1  ;;  %v2510_v4 = vrot.slane %v7469_v54, 1  ;;  %v7496_v32 = vld [vmem:[#allocation3 + $0x128] sm:$0xff]  ;;  %v7498_v34 = vld [vmem:[#allocation3 + $0x130] sm:$0x3]  ;;  %v7506_v47 = vsel %vm528_vm2, %v2505_v63, %v2507_v28 }
 0x4b7   : > { %10247 = vst [vmem:[#allocation182_spill] sm:$0xff] %v7391_v6  ;;  %v2515_v13 = vrot.slane %v7496_v32, 1 }
 0x4b8   : > { %10248 = vst [vmem:[#allocation75_spill] sm:$0xff] %v7394_v49  ;;  %v7492_v39 = vsel %vm528_vm2, %v2509_v48, %v2510_v4 }
 0x4b9   : > { %2350 = vst.msk [vmem:[#allocation3 + $0x181] sm:$0xff] %vm279_vm0, %v2318_v22  ;;  %v7476_v22 = vsel %vm528_vm2, %v2499_v38, %v2500_v12  ;;  %v2504_v12 = vrot.slane %v7489_v0, 1  ;;  %v2517_v38 = vrot.slane %v7498_v34, 1 }
 0x4ba   : > { %10249 = vst [vmem:[#allocation116_spill] sm:$0xff] %v7406_v14  ;;  %v7524_v28 = vld [vmem:[#allocation3 + $0x150] sm:$0xff]  ;;  %v7544_v14 = vld [vmem:[#allocation3 + $0x148] sm:$0x3] }
 0x4bb   : > { %10250 = vst [vmem:[#allocation138_spill] sm:$0xff] %v7419_v10  ;;  %v7509_v48 = vsel %vm528_vm2, %v2504_v12, %v2505_v63  ;;  %v7526_v63 = vld [vmem:[#allocation3 + $0x158] sm:$0xff] }
 0x4bc   : > { %10251 = vst [vmem:[#allocation72_spill] sm:$0xff] %v7422_v46  ;;  %2664 = vrot.lane.b32.xlu1 %v7419_v10, %s4509_s30  ;;  %2662 = vrot.lane.b32.xlu0 %v7422_v46, %s4509_s30  ;;  %v7574_v10 = vld [vmem:[#allocation3 + $0x160] sm:$0x3] }
 0x4bd   : > { %10252 = vst [vmem:[#allocation73_spill] sm:$0xff] %v7435_v57 }
 0x4be   : > { %2672 = vrot.lane.b32.xlu2 %v7435_v57, %s4509_s30  ;;  %10253 = vst [vmem:[#allocation117_spill] sm:$0xff] %v7449_v62  ;;  %v7520_v57 = vsel %vm528_vm2, %v2515_v13, %v2517_v38 }
 0x4bf   : > { %10254 = vst [vmem:[#allocation145_spill] sm:$0xff] %v7452_v42 }
 0x4c0   : > { %10255 = vst [vmem:[#allocation161_spill] sm:$0xff] %v7463_v52 }
 0x4c1   : > { %10256 = vst [vmem:[#allocation78_spill] sm:$0xff] %v7476_v22 }
 0x4c2   : > { %10257 = vst [vmem:[#allocation106_spill] sm:$0xff] %v7479_v20 }
 0x4c3   : > { %10258 = vst [vmem:[#allocation39_spill] sm:$0xff] %v7492_v39 }
 0x4c4   : > { %2670 = vrot.lane.b32.xlu1 %v7449_v62, %s4509_s30  ;;  %2668 = vrot.lane.b32.xlu0 %v7452_v42, %s4509_s30  ;;  %10259 = vst [vmem:[#allocation169_spill] sm:$0xff] %v7506_v47  ;;  %v7546_v42 = vld [vmem:[#allocation3 + $0x138] sm:$0xff] }
 0x4c5   : > { %10260 = vst [vmem:[#allocation58_spill] sm:$0xff] %v7509_v48 }
 0x4c6   : > { %2678 = vrot.lane.b32.xlu2 %v7463_v52, %s4509_s30  ;;  %v7517_v52 = vld [vmem:[#allocation3 + $0x118] sm:$0x3]  ;;  %10261 = vst [vmem:[#allocation186_spill] sm:$0xff] %v7520_v57 }
 0x4cc   : > { %2676 = vrot.lane.b32.xlu1 %v7476_v22, %s4509_s30  ;;  %2674 = vrot.lane.b32.xlu0 %v7479_v20, %s4509_s30  ;;  %v2525_v20 = vrot.slane %v7526_v63, 1 }
 0x4ce   : > { %2684 = vrot.lane.b32.xlu2 %v7492_v39, %s4509_s30  ;;  %v7515_v39 = vld [vmem:[#allocation3 + $0x120] sm:$0xff] }
 0x4cf   : > { %v2514_v12 = vrot.slane %v7515_v39, 1 }
 0x4d1   : > { %v7533_v22 = vsel %vm528_vm2, %v2514_v12, %v2515_v13  ;;  %v7555_v13 = vld [vmem:[#allocation3 + $0x178] sm:$0x3]  ;;  %v2522_v12 = vrot.slane %v7544_v14, 1 }
 0x4d2   : > { %10262 = vst [vmem:[#allocation119_spill] sm:$0xff] %v7533_v22  ;;  %v2532_v41 = vrot.slane %v7555_v13, 1 }
 0x4d4   : > { %2682 = vrot.lane.b32.xlu1 %v7506_v47, %s4509_s30  ;;  %2680 = vrot.lane.b32.xlu0 %v7509_v48, %s4509_s30  ;;  %v2512_v47 = vrot.slane %v7517_v52, 1  ;;  %v2524_v48 = vrot.slane %v7524_v28, 1 }
 0x4d6   : > { %2690 = vrot.lane.b32.xlu2 %v7520_v57, %s4509_s30  ;;  %v7536_v38 = vsel %vm528_vm2, %v2510_v4, %v2512_v47  ;;  %v7542_v57 = vld [vmem:[#allocation3 + $0x140] sm:$0xff]  ;;  %v7549_v62 = vsel %vm528_vm2, %v2524_v48, %v2525_v20  ;;  %v7553_v4 = vld [vmem:[#allocation3 + $0x170] sm:$0xff] }
 0x4d7   : > { %10263 = vst [vmem:[#allocation141_spill] sm:$0xff] %v7536_v38  ;;  %v2520_v47 = vrot.slane %v7542_v57, 1 }
 0x4d8   : > { %10264 = vst [vmem:[#allocation170_spill] sm:$0xff] %v7549_v62 }
 0x4d9   : > { %v7563_v48 = vsel %vm528_vm2, %v2520_v47, %v2522_v12 }
 0x4da   : > { %10265 = vst [vmem:[#allocation61_spill] sm:$0xff] %v7563_v48 }
 0x4dc   : > { %2688 = vrot.lane.b32.xlu1 %v7533_v22, %s4509_s30  ;;  %2686 = vrot.lane.b32.xlu0 %v7536_v38, %s4509_s30  ;;  %v2519_v38 = vrot.slane %v7546_v42, 1  ;;  %v2530_v22 = vrot.slane %v7553_v4, 1 }
 0x4de   : > { %2696 = vrot.lane.b32.xlu2 %v7549_v62, %s4509_s30  ;;  %v7566_v46 = vsel %vm528_vm2, %v2519_v38, %v2520_v47  ;;  %v7572_v62 = vld [vmem:[#allocation3 + $0x168] sm:$0xff]  ;;  %v7577_v56 = vsel %vm528_vm2, %v2530_v22, %v2532_v41  ;;  %v2527_v38 = vrot.slane %v7574_v10, 1  ;;  %v2539_v47 = vrot.slane %v7271_v60, 2 }
 0x4df   : > { %10266 = vst [vmem:[#allocation183_spill] sm:$0xff] %v7566_v46  ;;  %v2529_v12 = vrot.slane %v7572_v62, 1  ;;  %v2535_v41 = vrot.slane %v7052_v29, 2  ;;  %v2547_v29 = vrot.slane %v7312_v61, 2  ;;  %v2555_v61 = vrot.slane %v7363_v1, 2 }
 0x4e0   : > { %10267 = vst [vmem:[#allocation122_spill] sm:$0xff] %v7577_v56  ;;  %v7589_v49 = vsel %vm528_vm2, %v2525_v20, %v2527_v38  ;;  %v2545_v38 = vrot.slane %v7233_v5, 2 }
 0x4e1   : > { %10269 = vst [vmem:[#allocation163_spill] sm:$0xff] %v7589_v49 }
 0x4e4   : > { %2694 = vrot.lane.b32.xlu1 %v7563_v48, %s4509_s30  ;;  %2692 = vrot.lane.b32.xlu0 %v7566_v46, %s4509_s30  ;;  %v2540_v48 = vrot.slane %v7276_v27, 2  ;;  %v7586_v46 = vsel %vm528_vm2, %v2529_v12, %v2530_v22  ;;  %v7603_v22 = vpop.permute.xlu2 %2642  ;;  %v2536_v12 = vsel %vm609_vm4, %v2534_v40, %v2535_v41  ;;  %v2554_v40 = vrot.slane %v7367_v9, 2 }
 0x4e5   : > { %10268 = vst [vmem:[#allocation147_spill] sm:$0xff] %v7586_v46 }
 0x4e6   : > { %2702 = vrot.lane.b32.xlu2 %v7577_v56, %s4509_s30  ;;  %v2537_v56 = vrot.slane %v7054_v37, 2  ;;  %v7598_v6 = vsel %vm609_vm4, %v2539_v47, %v2540_v48  ;;  %10270 = vst [vmem:[#allocation80_spill] sm:$0xff] %v7603_v22  ;;  %v7612_v37 = vsel %vm609_vm4, %v2545_v38, %v2547_v29  ;;  %v2549_v29 = vrot.slane %v7310_v25, 2 }
 0x4e8   : > { %v2538_v20 = vsel %vm609_vm4, %v2535_v41, %v2537_v56  ;;  %v2542_v56 = vrot.slane %v7278_v58, 2  ;;  %v7623_v41 = vsel %vm609_vm4, %v2544_v55, %v2545_v38  ;;  %v7633_v58 = vsel %vm609_vm4, %v2554_v40, %v2555_v61 }
 0x4e9   : > { %10272 = vst [vmem:[#allocation98_spill] sm:$0xff] %v7633_v58  ;;  %v2552_v38 = vrot.slane %v7291_v31, 2  ;;  %v2560_v55 = vrot.slane %v7331_v3, 2 }
 0x4ec   : > { %2700 = vrot.lane.b32.xlu1 %v7586_v46, %s4509_s30  ;;  %2698 = vrot.lane.b32.xlu0 %v7589_v49, %s4509_s30 }
 0x4ee   : > { %2740 = vrot.lane.b32.xlu2 %v7598_v6, %s4510_s8 }
 0x4f4   : > { %2738 = vrot.lane.b32.xlu1 %v2538_v20, %s4510_s8  ;;  %2736 = vrot.lane.b32.xlu0 %v2536_v12, %s4510_s8  ;;  %v7626_v20 = vsel %vm609_vm4, %v2540_v48, %v2542_v56  ;;  %v2550_v12 = vrot.slane %v7289_v35, 2  ;;  %v2562_v56 = vrot.slane %v7403_v53, 2  ;;  %v2559_v53 = vrot.slane %v7329_v2, 2 }
 0x4f6   : > { %2746 = vrot.lane.b32.xlu2 %v7612_v37, %s4510_s8  ;;  %v7648_v40 = vsel %vm609_vm4, %v2549_v29, %v2550_v12  ;;  %v7655_v31 = vsel %vm609_vm4, %v2560_v55, %v2562_v56  ;;  %v2570_v29 = vrot.slane %v7428_v36, 2  ;;  %v7666_v22 = vsel %vm609_vm4, %v2559_v53, %v2560_v55  ;;  %v7675_v56 = vpop.permute.xlu1 %2640 }
 0x4f7   : > { %10274 = vst [vmem:[#allocation133_spill] sm:$0xff] %v7655_v31  ;;  %v2565_v55 = vrot.slane %v7376_v18, 2  ;;  %v2567_v53 = vrot.slane %v7378_v19, 2 }
 0x4f8   : > { %v7618_v47 = vpop.permute.xlu2 %2648  ;;  %10276 = vst [vmem:[#allocation44_spill] sm:$0xff] %v7675_v56 }
 0x4f9   : > { %10271 = vst [vmem:[#allocation188_spill] sm:$0xff] %v7618_v47  ;;  %v7645_v47 = vsel %vm609_vm4, %v2550_v12, %v2552_v38  ;;  %v2557_v38 = vrot.slane %v7365_v21, 2  ;;  %v2569_v12 = vrot.slane %v7432_v45, 2  ;;  %v7690_v56 = vsel %vm609_vm4, %v2565_v55, %v2567_v53 }
 0x4fa   : > { %10279 = vst [vmem:[#allocation79_spill] sm:$0xff] %v7690_v56 }
 0x4fb   : > { %v7678_v21 = vsel %vm609_vm4, %v2569_v12, %v2570_v29 }
 0x4fc   : > { %2744 = vrot.lane.b32.xlu1 %v7623_v41, %s4510_s8  ;;  %2742 = vrot.lane.b32.xlu0 %v7626_v20, %s4510_s8  ;;  %10277 = vst [vmem:[#allocation172_spill] sm:$0xff] %v7678_v21 }
 0x4fe   : > { %2752 = vrot.lane.b32.xlu2 %v7633_v58, %s4510_s8  ;;  %v7669_v58 = vsel %vm609_vm4, %v2555_v61, %v2557_v38  ;;  %v2564_v61 = vrot.slane %v7401_v50, 2 }
 0x500   : > { %v7640_v48 = vpop.permute.xlu2 %2654  ;;  %v7693_v12 = vsel %vm609_vm4, %v2564_v61, %v2565_v55  ;;  %v2572_v55 = vrot.slane %v7430_v59, 2  ;;  %v2584_v61 = vrot.slane %v7489_v0, 2 }
 0x501   : > { %10273 = vst [vmem:[#allocation109_spill] sm:$0xff] %v7640_v48 }
 0x502   : > { %10280 = vst [vmem:[#allocation84_spill] sm:$0xff] %v7693_v12 }
 0x504   : > { %2750 = vrot.lane.b32.xlu1 %v7645_v47, %s4510_s8  ;;  %2748 = vrot.lane.b32.xlu0 %v7648_v40, %s4510_s8 }
 0x506   : > { %2758 = vrot.lane.b32.xlu2 %v7655_v31, %s4510_s8  ;;  %v2577_v31 = vrot.slane %v7460_v51, 2  ;;  %v2574_v51 = vrot.slane %v7410_v16, 2 }
 0x508   : > { %v7661_v48 = vpop.permute.xlu2 %2660 }
 0x509   : > { %10275 = vst [vmem:[#allocation146_spill] sm:$0xff] %v7661_v48  ;;  %v2575_v48 = vrot.slane %v7412_v23, 2 }
 0x50b   : > { %v7700_v19 = vsel %vm609_vm4, %v2575_v48, %v2577_v31  ;;  %v7715_v31 = vsel %vm609_vm4, %v2574_v51, %v2575_v48  ;;  %v2580_v48 = vrot.slane %v7439_v43, 2  ;;  %v2579_v51 = vrot.slane %v7458_v44, 2 }
 0x50c   : > { %2756 = vrot.lane.b32.xlu1 %v7666_v22, %s4510_s8  ;;  %2754 = vrot.lane.b32.xlu0 %v7669_v58, %s4510_s8  ;;  %10281 = vst [vmem:[#allocation124_spill] sm:$0xff] %v7700_v19 }
 0x50d   : > { %10285 = vst [vmem:[#allocation171_spill] sm:$0xff] %v7715_v31 }
 0x50e   : > { %2764 = vrot.lane.b32.xlu2 %v7678_v21, %s4510_s8 }
 0x510   : > { %v7685_v38 = vpop.permute.xlu2 %2666 }
 0x511   : > { %10278 = vst [vmem:[#allocation179_spill] sm:$0xff] %v7685_v38 }
 0x514   : > { %2762 = vrot.lane.b32.xlu1 %v7690_v56, %s4510_s8  ;;  %2760 = vrot.lane.b32.xlu0 %v7693_v12, %s4510_s8  ;;  %v2585_v56 = vrot.slane %v7485_v17, 2  ;;  %v7718_v12 = vsel %vm609_vm4, %v2570_v29, %v2572_v55  ;;  %v2582_v29 = vrot.slane %v7441_v26, 2 }
 0x515   : > { %10286 = vst [vmem:[#allocation83_spill] sm:$0xff] %v7718_v12 }
 0x516   : > { %v7702_v38 = vpop.permute.xlu0 %2644  ;;  %v7704_v21 = vpop.permute.xlu1 %2646  ;;  %2770 = vrot.lane.b32.xlu2 %v7700_v19, %s4510_s8  ;;  %v7725_v59 = vsel %vm609_vm4, %v2584_v61, %v2585_v56  ;;  %v2592_v61 = vrot.slane %v7517_v52, 2  ;;  %v2589_v52 = vrot.slane %v7467_v24, 2 }
 0x517   : > { %10282 = vst [vmem:[#allocation134_spill] sm:$0xff] %v7702_v38  ;;  %v2605_v38 = vrot.slane %v7526_v63, 2 }
 0x518   : > { %10283 = vst [vmem:[#allocation143_spill] sm:$0xff] %v7704_v21  ;;  %v7710_v53 = vpop.permute.xlu2 %2672  ;;  %v2600_v21 = vrot.slane %v7542_v57, 2 }
 0x519   : > { %10284 = vst [vmem:[#allocation157_spill] sm:$0xff] %v7710_v53 }
 0x51c   : > { %2768 = vrot.lane.b32.xlu1 %v7715_v31, %s4510_s8  ;;  %2766 = vrot.lane.b32.xlu0 %v7718_v12, %s4510_s8  ;;  %v2590_v31 = vrot.slane %v7469_v54, 2  ;;  %v7741_v12 = vsel %vm609_vm4, %v2580_v48, %v2582_v29 }
 0x51e   : > { %v7727_v19 = vpop.permute.xlu0 %2650  ;;  %v7729_v53 = vpop.permute.xlu1 %2652  ;;  %2776 = vrot.lane.b32.xlu2 %v7725_v59, %s4510_s8  ;;  %v7751_v26 = vsel %vm609_vm4, %v2590_v31, %v2592_v61  ;;  %v7766_v61 = vsel %vm609_vm4, %v2589_v52, %v2590_v31  ;;  %v2595_v31 = vrot.slane %v7496_v32, 2  ;;  %v2594_v52 = vrot.slane %v7515_v39, 2 }
 0x51f   : > { %10287 = vst [vmem:[#allocation64_spill] sm:$0xff] %v7727_v19 }
 0x520   : > { %10288 = vst [vmem:[#allocation187_spill] sm:$0xff] %v7729_v53  ;;  %v7736_v55 = vpop.permute.xlu2 %2678  ;;  %v7744_v53 = vsel %vm609_vm4, %v2579_v51, %v2580_v48  ;;  %v2587_v48 = vrot.slane %v7487_v8, 2  ;;  %v2599_v51 = vrot.slane %v7546_v42, 2 }
 0x521   : > { %10289 = vst [vmem:[#allocation100_spill] sm:$0xff] %v7736_v55 }
 0x522   : > { %10290 = vst [vmem:[#allocation123_spill] sm:$0xff] %v7751_v26  ;;  %v7776_v8 = vsel %vm609_vm4, %v2599_v51, %v2600_v21  ;;  %v2607_v51 = vrot.slane %v7574_v10, 2  ;;  %v2604_v10 = vrot.slane %v7524_v28, 2 }
 0x523   : > { %10294 = vst [vmem:[#allocation165_spill] sm:$0xff] %v7776_v8 }
 0x524   : > { %2774 = vrot.lane.b32.xlu1 %v7741_v12, %s4510_s8  ;;  %2772 = vrot.lane.b32.xlu0 %v7744_v53, %s4510_s8 }
 0x526   : > { %v7753_v55 = vpop.permute.xlu0 %2656  ;;  %v7755_v19 = vpop.permute.xlu1 %2658  ;;  %2782 = vrot.lane.b32.xlu2 %v7751_v26, %s4510_s8 }
 0x527   : > { %10291 = vst [vmem:[#allocation125_spill] sm:$0xff] %v7753_v55  ;;  %v7769_v55 = vsel %vm609_vm4, %v2585_v56, %v2587_v48  ;;  %v2597_v56 = vrot.slane %v7498_v34, 2  ;;  %v7802_v34 = vsel %vm609_vm4, %v2605_v38, %v2607_v51 }
 0x528   : > { %10292 = vst [vmem:[#allocation149_spill] sm:$0xff] %v7755_v19  ;;  %v7761_v29 = vpop.permute.xlu2 %2684 }
 0x529   : > { %10293 = vst [vmem:[#allocation59_spill] sm:$0xff] %v7761_v29  ;;  %v7792_v26 = vsel %vm609_vm4, %v2595_v31, %v2597_v56 }
 0x52a   : > { %10298 = vst [vmem:[#allocation102_spill] sm:$0xff] %v7802_v34 }
 0x52c   : > { %2780 = vrot.lane.b32.xlu1 %v7766_v61, %s4510_s8  ;;  %2778 = vrot.lane.b32.xlu0 %v7769_v55, %s4510_s8 }
 0x52e   : > { %v7778_v29 = vpop.permute.xlu0 %2662  ;;  %v7780_v19 = vpop.permute.xlu1 %2664  ;;  %2788 = vrot.lane.b32.xlu2 %v7776_v8, %s4510_s8 }
 0x52f   : > { %10295 = vst [vmem:[#allocation181_spill] sm:$0xff] %v7778_v29 }
 0x530   : > { %10296 = vst [vmem:[#allocation86_spill] sm:$0xff] %v7780_v19  ;;  %v7787_v48 = vpop.permute.xlu2 %2690  ;;  %v7795_v19 = vsel %vm609_vm4, %v2594_v52, %v2595_v31  ;;  %v2602_v31 = vrot.slane %v7544_v14, 2  ;;  %v7815_v52 = vsel %vm609_vm4, %v2604_v10, %v2605_v38  ;;  %v2610_v14 = vrot.slane %v7553_v4, 2 }
 0x531   : > { %10297 = vst [vmem:[#allocation191_spill] sm:$0xff] %v7787_v48  ;;  %v2612_v38 = vrot.slane %v7555_v13, 2 }
 0x532   : > { %10302 = vst [vmem:[#allocation150_spill] sm:$0xff] %v7815_v52  ;;  %v7818_v8 = vsel %vm609_vm4, %v2600_v21, %v2602_v31  ;;  %v2609_v21 = vrot.slane %v7572_v62, 2 }
 0x533   : > { %10303 = vst [vmem:[#allocation173_spill] sm:$0xff] %v7818_v8  ;;  %v7836_v31 = vsel %vm609_vm4, %v2610_v14, %v2612_v38 }
 0x534   : > { %2786 = vrot.lane.b32.xlu1 %v7792_v26, %s4510_s8  ;;  %2784 = vrot.lane.b32.xlu0 %v7795_v19, %s4510_s8  ;;  %10307 = vst [vmem:[#allocation127_spill] sm:$0xff] %v7836_v31 }
 0x536   : > { %v7804_v48 = vpop.permute.xlu0 %2668  ;;  %v7806_v29 = vpop.permute.xlu1 %2670  ;;  %2794 = vrot.lane.b32.xlu2 %v7802_v34, %s4510_s8 }
 0x537   : > { %10299 = vst [vmem:[#allocation112_spill] sm:$0xff] %v7804_v48 }
 0x538   : > { %10300 = vst [vmem:[#allocation136_spill] sm:$0xff] %v7806_v29  ;;  %v7812_v56 = vpop.permute.xlu2 %2696 }
 0x539   : > { %10301 = vst [vmem:[#allocation148_spill] sm:$0xff] %v7812_v56  ;;  %v7839_v56 = vsel %vm609_vm4, %v2609_v21, %v2610_v14 }
 0x53a   : > { %10308 = vst [vmem:[#allocation137_spill] sm:$0xff] %v7839_v56 }
 0x53c   : > { %2792 = vrot.lane.b32.xlu1 %v7815_v52, %s4510_s8  ;;  %2790 = vrot.lane.b32.xlu0 %v7818_v8, %s4510_s8  ;;  %v10364_v8 = vld [vmem:[#allocation169_spill] sm:$0xff] }
 0x53e   : > { %v7824_v51 = vpop.permute.xlu0 %2674  ;;  %v7826_v29 = vpop.permute.xlu1 %2676  ;;  %2832 = vrot.lane.b32.xlu2 %v7271_v60, %s4511_s9 }
 0x53f   : > { %10304 = vst [vmem:[#allocation184_spill] sm:$0xff] %v7824_v51 }
 0x540   : > { %10305 = vst [vmem:[#allocation85_spill] sm:$0xff] %v7826_v29  ;;  %v7833_v10 = vpop.permute.xlu2 %2702 }
 0x541   : > { %10306 = vst [vmem:[#allocation89_spill] sm:$0xff] %v7833_v10 }
 0x544   : > { %2798 = vrot.lane.b32.xlu1 %v7836_v31, %s4510_s8  ;;  %2796 = vrot.lane.b32.xlu0 %v7839_v56, %s4510_s8  ;;  %v10345_v56 = vld [vmem:[#allocation34_spill] sm:$0xff] }
 0x546   : > { %v7845_v60 = vpop.permute.xlu0 %2680  ;;  %v7847_v48 = vpop.permute.xlu1 %2682  ;;  %2838 = vrot.lane.b32.xlu2 %v7233_v5, %s4511_s9 }
 0x547   : > { %10309 = vst [vmem:[#allocation37_spill] sm:$0xff] %v7845_v60 }
 0x548   : > { %10310 = vst [vmem:[#allocation160_spill] sm:$0xff] %v7847_v48  ;;  %v7851_v13 = vpop.permute.xlu2 %2740 }
 0x54c   : > { %2836 = vrot.lane.b32.xlu1 %v7228_v30, %s4511_s9  ;;  %2834 = vrot.lane.b32.xlu0 %v7276_v27, %s4511_s9 }
 0x54e   : > { %v7857_v14 = vpop.permute.xlu0 %2686  ;;  %v7859_v38 = vpop.permute.xlu1 %2688  ;;  %2844 = vrot.lane.b32.xlu2 %v7367_v9, %s4511_s9 }
 0x54f   : > { %10311 = vst [vmem:[#allocation82_spill] sm:$0xff] %v7857_v14 }
 0x550   : > { %10312 = vst [vmem:[#allocation88_spill] sm:$0xff] %v7859_v38  ;;  %v7863_v21 = vpop.permute.xlu2 %2746 }
 0x551   : > { %10313 = vst [vmem:[#allocation69_spill] sm:$0xff] %v7863_v21  ;;  %v10366_v21 = vld [vmem:[#allocation58_spill] sm:$0xff] }
 0x554   : > { %2842 = vrot.lane.b32.xlu1 %v7289_v35, %s4511_s9  ;;  %2840 = vrot.lane.b32.xlu0 %v7310_v25, %s4511_s9 }
 0x556   : > { %v7869_v5 = vpop.permute.xlu0 %2692  ;;  %v7871_v30 = vpop.permute.xlu1 %2694  ;;  %2850 = vrot.lane.b32.xlu2 %v7331_v3, %s4511_s9 }
 0x557   : > { %10314 = vst [vmem:[#allocation104_spill] sm:$0xff] %v7869_v5 }
 0x558   : > { %10315 = vst [vmem:[#allocation126_spill] sm:$0xff] %v7871_v30  ;;  %v7875_v27 = vpop.permute.xlu2 %2752 }
 0x559   : > { %10316 = vst [vmem:[#allocation128_spill] sm:$0xff] %v7875_v27  ;;  %v10348_v27 = vld [vmem:[#allocation138_spill] sm:$0xff] }
 0x55c   : > { %2848 = vrot.lane.b32.xlu1 %v7329_v2, %s4511_s9  ;;  %2846 = vrot.lane.b32.xlu0 %v7363_v1, %s4511_s9 }
 0x55e   : > { %v7881_v10 = vpop.permute.xlu0 %2698  ;;  %v7883_v38 = vpop.permute.xlu1 %2700  ;;  %2856 = vrot.lane.b32.xlu2 %v7432_v45, %s4511_s9 }
 0x55f   : > { %10317 = vst [vmem:[#allocation152_spill] sm:$0xff] %v7881_v10 }
 0x560   : > { %10318 = vst [vmem:[#allocation57_spill] sm:$0xff] %v7883_v38  ;;  %v7887_v5 = vpop.permute.xlu2 %2758 }
 0x561   : > { %10319 = vst [vmem:[#allocation167_spill] sm:$0xff] %v7887_v5 }
 0x564   : > { %2854 = vrot.lane.b32.xlu1 %v7376_v18, %s4511_s9  ;;  %2852 = vrot.lane.b32.xlu0 %v7401_v50, %s4511_s9 }
 0x566   : > { %v7893_v3 = vpop.permute.xlu0 %2736  ;;  %v7895_v2 = vpop.permute.xlu1 %2738  ;;  %2862 = vrot.lane.b32.xlu2 %v7412_v23, %s4511_s9 }
 0x568   : > { %v7899_v10 = vpop.permute.xlu2 %2764 }
 0x569   : > { %10320 = vst [vmem:[#allocation185_spill] sm:$0xff] %v7899_v10 }
 0x56c   : > { %2860 = vrot.lane.b32.xlu1 %v7410_v16, %s4511_s9  ;;  %2858 = vrot.lane.b32.xlu0 %v7428_v36, %s4511_s9 }
 0x56e   : > { %v7905_v45 = vpop.permute.xlu0 %2742  ;;  %v7907_v18 = vpop.permute.xlu1 %2744  ;;  %2868 = vrot.lane.b32.xlu2 %v7489_v0, %s4511_s9 }
 0x570   : > { %v7911_v38 = vpop.permute.xlu2 %2770 }
 0x571   : > { %10321 = vst [vmem:[#allocation51_spill] sm:$0xff] %v7911_v38 }
 0x574   : > { %2866 = vrot.lane.b32.xlu1 %v7439_v43, %s4511_s9  ;;  %2864 = vrot.lane.b32.xlu0 %v7458_v44, %s4511_s9 }
 0x576   : > { %v7917_v23 = vpop.permute.xlu0 %2748  ;;  %v7919_v16 = vpop.permute.xlu1 %2750  ;;  %2874 = vrot.lane.b32.xlu2 %v7469_v54, %s4511_s9 }
 0x577   : > { %10322 = vst [vmem:[#allocation65_spill] sm:$0xff] %v7917_v23  ;;  %v10358_v23 = vld [vmem:[#allocation78_spill] sm:$0xff] }
 0x578   : > { %10323 = vst [vmem:[#allocation91_spill] sm:$0xff] %v7919_v16  ;;  %v7923_v36 = vpop.permute.xlu2 %2776  ;;  %v10354_v16 = vld [vmem:[#allocation117_spill] sm:$0xff] }
 0x579   : > { %10324 = vst [vmem:[#allocation105_spill] sm:$0xff] %v7923_v36  ;;  %v10351_v36 = vld [vmem:[#allocation168_spill] sm:$0xff] }
 0x57c   : > { %2872 = vrot.lane.b32.xlu1 %v7467_v24, %s4511_s9  ;;  %2870 = vrot.lane.b32.xlu0 %v7485_v17, %s4511_s9 }
 0x57e   : > { %v7929_v30 = vpop.permute.xlu0 %2754  ;;  %v7931_v43 = vpop.permute.xlu1 %2756  ;;  %2880 = vrot.lane.b32.xlu2 %v7546_v42, %s4511_s9 }
 0x57f   : > { %10325 = vst [vmem:[#allocation115_spill] sm:$0xff] %v7929_v30 }
 0x580   : > { %10326 = vst [vmem:[#allocation139_spill] sm:$0xff] %v7931_v43  ;;  %v7935_v44 = vpop.permute.xlu2 %2782 }
 0x581   : > { %10327 = vst [vmem:[#allocation151_spill] sm:$0xff] %v7935_v44  ;;  %v7953_v44 = vld [vmem:[#allocation3 + $0x180] sm:$0xff] }
 0x582   : > { %10331 = vst [vmem:[#allocation197_spill] sm:$0xff] %v7953_v44 }
 0x584   : > { %2878 = vrot.lane.b32.xlu1 %v7496_v32, %s4511_s9  ;;  %2876 = vrot.lane.b32.xlu0 %v7515_v39, %s4511_s9 }
 0x586   : > { %v7941_v10 = vpop.permute.xlu0 %2760  ;;  %v7943_v5 = vpop.permute.xlu1 %2762  ;;  %2886 = vrot.lane.b32.xlu2 %v7526_v63, %s4511_s9 }
 0x587   : > { %10328 = vst [vmem:[#allocation50_spill] sm:$0xff] %v7941_v10  ;;  %v10342_v10 = vld [vmem:[#allocation182_spill] sm:$0xff] }
 0x588   : > { %10329 = vst [vmem:[#allocation175_spill] sm:$0xff] %v7943_v5  ;;  %v7947_v14 = vpop.permute.xlu2 %2788 }
 0x589   : > { %10330 = vst [vmem:[#allocation189_spill] sm:$0xff] %v7947_v14 }
 0x58c   : > { %2884 = vrot.lane.b32.xlu1 %v7524_v28, %s4511_s9  ;;  %2882 = vrot.lane.b32.xlu0 %v7542_v57, %s4511_s9 }
 0x58e   : > { %v7955_v43 = vpop.permute.xlu0 %2766  ;;  %v7957_v30 = vpop.permute.xlu1 %2768  ;;  %2892 = vrot.lane.b32.xlu2 %v7953_v44, %s4511_s9 }
 0x58f   : > { %10332 = vst [vmem:[#allocation204_spill] sm:$0xff] %v7955_v43  ;;  %v7975_v43 = vld [vmem:[#allocation3 + $0x188] sm:$0xff] }
 0x590   : > { %v7961_v5 = vpop.permute.xlu2 %2794  ;;  %10336 = vst [vmem:[#allocation90_spill] sm:$0xff] %v7975_v43 }
 0x591   : > { %10333 = vst [vmem:[#allocation38_spill] sm:$0xff] %v7961_v5 }
 0x594   : > { %2890 = vrot.lane.b32.xlu1 %v7553_v4, %s4511_s9  ;;  %2888 = vrot.lane.b32.xlu0 %v7572_v62, %s4511_s9 }
 0x596   : > { %v7967_v28 = vpop.permute.xlu0 %2772  ;;  %v7969_v57 = vpop.permute.xlu1 %2774  ;;  %2930 = vrot.lane.b32.xlu2 %v7294_v33, %s4512_s10  ;;  %v10339_v33 = vld [vmem:[#allocation103_spill] sm:$0xff] }
 0x597   : > { %10334 = vst [vmem:[#allocation47_spill] sm:$0xff] %v7967_v28 }
 0x598   : > { %10335 = vst [vmem:[#allocation66_spill] sm:$0xff] %v7969_v57  ;;  %v7973_v63 = vpop.permute.xlu2 %2832 }
 0x59c   : > { %2928 = vrot.lane.b32.xlu1 %v7297_v15, %s4512_s10  ;;  %2894 = vrot.lane.b32.xlu0 %v7975_v43, %s4511_s9 }
 0x59e   : > { %v7981_v4 = vpop.permute.xlu0 %2778  ;;  %v7983_v62 = vpop.permute.xlu1 %2780  ;;  %2936 = vrot.lane.b32.xlu2 %v7350_v11, %s4512_s10 }
 0x59f   : > { %10337 = vst [vmem:[#allocation94_spill] sm:$0xff] %v7981_v4 }
 0x5a0   : > { %10338 = vst [vmem:[#allocation130_spill] sm:$0xff] %v7983_v62  ;;  %v7987_v5 = vpop.permute.xlu2 %2838  ;;  %v10344_v62 = vld [vmem:[#allocation75_spill] sm:$0xff] }
 0x5a4   : > { %2934 = vrot.lane.b32.xlu1 %v7355_v7, %s4512_s10  ;;  %2932 = vrot.lane.b32.xlu0 %v10339_v33, %s4512_s10 }
 0x5a6   : > { %v7993_v14 = vpop.permute.xlu0 %2784  ;;  %v7995_v15 = vpop.permute.xlu1 %2786  ;;  %2942 = vrot.lane.b32.xlu2 %v10342_v10, %s4512_s10 }
 0x5a7   : > { %10340 = vst [vmem:[#allocation140_spill] sm:$0xff] %v7993_v14 }
 0x5a8   : > { %10341 = vst [vmem:[#allocation33_spill] sm:$0xff] %v7995_v15  ;;  %v7999_v31 = vpop.permute.xlu2 %2844  ;;  %v10350_v15 = vld [vmem:[#allocation72_spill] sm:$0xff] }
 0x5a9   : > { %10343 = vst [vmem:[#allocation162_spill] sm:$0xff] %v7999_v31 }
 0x5ac   : > { %2940 = vrot.lane.b32.xlu1 %v10344_v62, %s4512_s10  ;;  %2938 = vrot.lane.b32.xlu0 %v10345_v56, %s4512_s10 }
 0x5ae   : > { %v8005_v4 = vpop.permute.xlu0 %2790  ;;  %v8007_v48 = vpop.permute.xlu1 %2792  ;;  %2948 = vrot.lane.b32.xlu2 %v10348_v27, %s4512_s10 }
 0x5af   : > { %10346 = vst [vmem:[#allocation174_spill] sm:$0xff] %v8005_v4 }
 0x5b0   : > { %10347 = vst [vmem:[#allocation176_spill] sm:$0xff] %v8007_v48  ;;  %v8011_v14 = vpop.permute.xlu2 %2850  ;;  %v10356_v48 = vld [vmem:[#allocation145_spill] sm:$0xff] }
 0x5b1   : > { %10349 = vst [vmem:[#allocation200_spill] sm:$0xff] %v8011_v14  ;;  %v10357_v14 = vld [vmem:[#allocation116_spill] sm:$0xff] }
 0x5b4   : > { %2946 = vrot.lane.b32.xlu1 %v10350_v15, %s4512_s10  ;;  %2944 = vrot.lane.b32.xlu0 %v10351_v36, %s4512_s10 }
 0x5b6   : > { %v8017_v60 = vpop.permute.xlu0 %2796  ;;  %v8019_v34 = vpop.permute.xlu1 %2798  ;;  %2954 = vrot.lane.b32.xlu2 %v10354_v16, %s4512_s10 }
 0x5b7   : > { %10352 = vst [vmem:[#allocation205_spill] sm:$0xff] %v8017_v60 }
 0x5b8   : > { %10353 = vst [vmem:[#allocation42_spill] sm:$0xff] %v8019_v34  ;;  %v8023_v4 = vpop.permute.xlu2 %2856  ;;  %v10360_v34 = vld [vmem:[#allocation106_spill] sm:$0xff] }
 0x5b9   : > { %10355 = vst [vmem:[#allocation49_spill] sm:$0xff] %v8023_v4  ;;  %v10361_v4 = vld [vmem:[#allocation73_spill] sm:$0xff] }
 0x5bc   : > { %2952 = vrot.lane.b32.xlu1 %v10356_v48, %s4512_s10  ;;  %2950 = vrot.lane.b32.xlu0 %v10357_v14, %s4512_s10 }
 0x5be   : > { %v8029_v57 = vpop.permute.xlu0 %2834  ;;  %v8031_v31 = vpop.permute.xlu1 %2836  ;;  %2960 = vrot.lane.b32.xlu2 %v10358_v23, %s4512_s10 }
 0x5c0   : > { %v8035_v60 = vpop.permute.xlu2 %2862 }
 0x5c1   : > { %10359 = vst [vmem:[#allocation70_spill] sm:$0xff] %v8035_v60  ;;  %v10367_v60 = vld [vmem:[#allocation161_spill] sm:$0xff] }
 0x5c4   : > { %2958 = vrot.lane.b32.xlu1 %v10360_v34, %s4512_s10  ;;  %2956 = vrot.lane.b32.xlu0 %v10361_v4, %s4512_s10  ;;  %v10370_v4 = vld [vmem:[#allocation119_spill] sm:$0xff] }
 0x5c6   : > { %v8041_v52 = vpop.permute.xlu0 %2840  ;;  %v8043_v16 = vpop.permute.xlu1 %2842  ;;  %2966 = vrot.lane.b32.xlu2 %v10364_v8, %s4512_s10 }
 0x5c7   : > { %10362 = vst [vmem:[#allocation76_spill] sm:$0xff] %v8041_v52 }
 0x5c8   : > { %10363 = vst [vmem:[#allocation74_spill] sm:$0xff] %v8043_v16  ;;  %v8047_v28 = vpop.permute.xlu2 %2868  ;;  %v10372_v16 = vld [vmem:[#allocation141_spill] sm:$0xff] }
 0x5c9   : > { %10365 = vst [vmem:[#allocation107_spill] sm:$0xff] %v8047_v28  ;;  %v10373_v28 = vld [vmem:[#allocation39_spill] sm:$0xff] }
 0x5cc   : > { %2964 = vrot.lane.b32.xlu1 %v10366_v21, %s4512_s10  ;;  %2962 = vrot.lane.b32.xlu0 %v10367_v60, %s4512_s10  ;;  %v10376_v60 = vld [vmem:[#allocation61_spill] sm:$0xff] }
 0x5ce   : > { %v8053_v23 = vpop.permute.xlu0 %2846  ;;  %v8055_v34 = vpop.permute.xlu1 %2848  ;;  %2972 = vrot.lane.b32.xlu2 %v10370_v4, %s4512_s10 }
 0x5cf   : > { %10368 = vst [vmem:[#allocation129_spill] sm:$0xff] %v8053_v23 }
 0x5d0   : > { %10369 = vst [vmem:[#allocation131_spill] sm:$0xff] %v8055_v34  ;;  %v8059_v29 = vpop.permute.xlu2 %2874  ;;  %v10378_v34 = vld [vmem:[#allocation183_spill] sm:$0xff] }
 0x5d1   : > { %10371 = vst [vmem:[#allocation154_spill] sm:$0xff] %v8059_v29  ;;  %v10379_v29 = vld [vmem:[#allocation186_spill] sm:$0xff] }
 0x5d4   : > { %2970 = vrot.lane.b32.xlu1 %v10372_v16, %s4512_s10  ;;  %2968 = vrot.lane.b32.xlu0 %v10373_v28, %s4512_s10 }
 0x5d6   : > { %v8065_v38 = vpop.permute.xlu0 %2852  ;;  %v8067_v48 = vpop.permute.xlu1 %2854  ;;  %2978 = vrot.lane.b32.xlu2 %v10376_v60, %s4512_s10  ;;  %v2618_v60 = vrot.slane %v7975_v43, 1 }
 0x5d7   : > { %10374 = vst [vmem:[#allocation60_spill] sm:$0xff] %v8065_v38  ;;  %v8083_v38 = vld [vmem:[#allocation3 + $0x190] sm:$0x3] }
 0x5d8   : > { %10375 = vst [vmem:[#allocation71_spill] sm:$0xff] %v8067_v48  ;;  %v8071_v23 = vpop.permute.xlu2 %2880 }
 0x5d9   : > { %10377 = vst [vmem:[#allocation190_spill] sm:$0xff] %v8071_v23  ;;  %v2620_v23 = vrot.slane %v8083_v38, 1 }
 0x5da   : > { %10382 = vst [vmem:[#allocation43_spill] sm:$0xff] %v8083_v38 }
 0x5dc   : > { %2976 = vrot.lane.b32.xlu1 %v10378_v34, %s4512_s10  ;;  %2974 = vrot.lane.b32.xlu0 %v10379_v29, %s4512_s10  ;;  %v10384_v34 = vld [vmem:[#allocation170_spill] sm:$0xff] }
 0x5de   : > { %v8077_v51 = vpop.permute.xlu0 %2858  ;;  %v8079_v52 = vpop.permute.xlu1 %2860  ;;  %2984 = vrot.lane.b32.xlu2 %v7586_v46, %s4512_s10 }
 0x5df   : > { %10380 = vst [vmem:[#allocation199_spill] sm:$0xff] %v8077_v51  ;;  %v8094_v51 = vsel %vm528_vm2, %v2618_v60, %v2620_v23  ;;  %v10388_v23 = vld [vmem:[#allocation122_spill] sm:$0xff] }
 0x5e0   : > { %10381 = vst [vmem:[#allocation201_spill] sm:$0xff] %v8079_v52  ;;  %v8085_v48 = vpop.permute.xlu2 %2886 }
 0x5e1   : > { %10383 = vst [vmem:[#allocation55_spill] sm:$0xff] %v8085_v48  ;;  %v2617_v48 = vrot.slane %v7953_v44, 1  ;;  %v8142_v44 = vld [vmem:[#allocation3 + $0x38] sm:$0xff] }
 0x5e2   : > { %10385 = vst [vmem:[#allocation62_spill] sm:$0xff] %v8094_v51 }
 0x5e3   : > { %v8106_v38 = vsel %vm528_vm2, %v2617_v48, %v2618_v60 }
 0x5e4   : > { %2982 = vrot.lane.b32.xlu1 %v7589_v49, %s4512_s10  ;;  %2980 = vrot.lane.b32.xlu0 %v10384_v34, %s4512_s10  ;;  %10387 = vst [vmem:[#allocation96_spill] sm:$0xff] %v8106_v38 }
 0x5e6   : > { %v8096_v52 = vpop.permute.xlu0 %2864  ;;  %v8098_v46 = vpop.permute.xlu1 %2866  ;;  %2990 = vrot.lane.b32.xlu2 %v8094_v51, %s4512_s10 }
 0x5e8   : > { %v8103_v43 = vpop.permute.xlu2 %2892 }
 0x5e9   : > { %10386 = vst [vmem:[#allocation92_spill] sm:$0xff] %v8103_v43  ;;  %v8128_v43 = vld [vmem:[#allocation3 + $0x30] sm:$0xff] }
 0x5ec   : > { %2988 = vrot.lane.b32.xlu1 %v8106_v38, %s4512_s10  ;;  %2986 = vrot.lane.b32.xlu0 %v10388_v23, %s4512_s10 }
 0x5ee   : > { %v8112_v49 = vpop.permute.xlu0 %2870  ;;  %v8114_v34 = vpop.permute.xlu1 %2872  ;;  %3028 = vrot.lane.b32.xlu2 %v7623_v41, %s4513_s11 }
 0x5f0   : > { %v8118_v51 = vpop.permute.xlu2 %2930 }
 0x5f4   : > { %3026 = vrot.lane.b32.xlu1 %v7626_v20, %s4513_s11  ;;  %3024 = vrot.lane.b32.xlu0 %v7598_v6, %s4513_s11 }
 0x5f6   : > { %v8124_v48 = vpop.permute.xlu0 %2876  ;;  %v8126_v60 = vpop.permute.xlu1 %2878  ;;  %3120 = vrot.lane.b32.xlu2 %v8128_v43, %s4514_s12 }
 0x5f7   : > { %10389 = vst [vmem:[#allocation108_spill] sm:$0xff] %v8124_v48 }
 0x5f8   : > { %10390 = vst [vmem:[#allocation118_spill] sm:$0xff] %v8126_v60  ;;  %v8132_v38 = vpop.permute.xlu2 %2936 }
 0x5fc   : > { %3032 = vrot.lane.b32.xlu1 %v7648_v40, %s4513_s11  ;;  %3030 = vrot.lane.b32.xlu0 %v7612_v37, %s4513_s11 }
 0x5fe   : > { %v8138_v20 = vpop.permute.xlu0 %2882  ;;  %v8140_v6 = vpop.permute.xlu1 %2884  ;;  %3122 = vrot.lane.b32.xlu2 %v8142_v44, %s4514_s12 }
 0x5ff   : > { %10391 = vst [vmem:[#allocation142_spill] sm:$0xff] %v8138_v20 }
 0x600   : > { %10392 = vst [vmem:[#allocation153_spill] sm:$0xff] %v8140_v6  ;;  %v8146_v60 = vpop.permute.xlu2 %2942 }
 0x604   : > { %3312 = vrot.lane.b32.xlu1 %v7623_v41, %s4516_s14  ;;  %3216 = vrot.lane.b32.xlu0 %v10339_v33, %s4515_s13 }
 0x606   : > { %v8152_v48 = vpop.permute.xlu0 %2888  ;;  %v8154_v23 = vpop.permute.xlu1 %2890  ;;  %3124 = vrot.lane.b32.xlu2 %v7310_v25, %s4514_s12 }
 0x607   : > { %10393 = vst [vmem:[#allocation155_spill] sm:$0xff] %v8152_v48 }
 0x608   : > { %10394 = vst [vmem:[#allocation178_spill] sm:$0xff] %v8154_v23  ;;  %v8158_v6 = vpop.permute.xlu2 %2948 }
 0x609   : > { %10395 = vst [vmem:[#allocation192_spill] sm:$0xff] %v8158_v6 }
 0x60c   : > { %3314 = vrot.lane.b32.xlu1 %v7612_v37, %s4516_s14  ;;  %3218 = vrot.lane.b32.xlu0 %v7355_v7, %s4515_s13 }
 0x60e   : > { %v8164_v20 = vpop.permute.xlu0 %2894  ;;  %v8166_v41 = vpop.permute.xlu1 %2928  ;;  %3126 = vrot.lane.b32.xlu2 %v7289_v35, %s4514_s12 }
 0x60f   : > { %10396 = vst [vmem:[#allocation198_spill] sm:$0xff] %v8164_v20 }
 0x610   : > { %v8170_v33 = vpop.permute.xlu2 %2954 }
 0x611   : > { %10397 = vst [vmem:[#allocation206_spill] sm:$0xff] %v8170_v33 }
 0x614   : > { %3316 = vrot.lane.b32.xlu1 %v7648_v40, %s4516_s14  ;;  %3220 = vrot.lane.b32.xlu0 %v7350_v11, %s4515_s13 }
 0x616   : > { %v8176_v25 = vpop.permute.xlu0 %2932  ;;  %v8178_v37 = vpop.permute.xlu1 %2934  ;;  %3152 = vrot.lane.b32.xlu2 %v7489_v0, %s4514_s12 }
 0x618   : > { %v8182_v7 = vpop.permute.xlu2 %2960 }
 0x61c   : > { %3222 = vrot.lane.b32.xlu1 %v10345_v56, %s4515_s13  ;;  %3056 = vrot.lane.b32.xlu0 %v7744_v53, %s4513_s11 }
 0x61e   : > { %v8188_v35 = vpop.permute.xlu0 %2938  ;;  %v8190_v40 = vpop.permute.xlu1 %2940  ;;  %3344 = vrot.lane.b32.xlu2 %v7725_v59, %s4516_s14 }
 0x620   : > { %v8194_v11 = vpop.permute.xlu2 %2966 }
 0x624   : > { %3318 = vrot.lane.b32.xlu0 %v7645_v47, %s4516_s14  ;;  %3248 = vrot.lane.b32.xlu1 %v10366_v21, %s4515_s13 }
 0x626   : > { %v8200_v0 = vpop.permute.xlu0 %2944  ;;  %v8202_v56 = vpop.permute.xlu1 %2946  ;;  %3224 = vrot.lane.b32.xlu2 %v10344_v62, %s4515_s13  ;;  %v10401_v62 = vld [vmem:[#allocation98_spill] sm:$0xff] }
 0x628   : > { %v8206_v20 = vpop.permute.xlu2 %2972 }
 0x62c   : > { %3128 = vrot.lane.b32.xlu0 %v7367_v9, %s4514_s12  ;;  %3058 = vrot.lane.b32.xlu1 %v7741_v12, %s4513_s11 }
 0x62e   : > { %v8212_v23 = vpop.permute.xlu0 %2950  ;;  %v8214_v48 = vpop.permute.xlu1 %2952  ;;  %3250 = vrot.lane.b32.xlu2 %v10364_v8, %s4515_s13 }
 0x62f   : > { %10398 = vst [vmem:[#allocation45_spill] sm:$0xff] %v8212_v23 }
 0x630   : > { %10399 = vst [vmem:[#allocation48_spill] sm:$0xff] %v8214_v48  ;;  %v8218_v21 = vpop.permute.xlu2 %2978 }
 0x631   : > { %10400 = vst [vmem:[#allocation77_spill] sm:$0xff] %v8218_v21  ;;  %v3665_v21 = vld [vmem:[%s9542_s4 + $0x8] sm:$0xff] }
 0x634   : > { %3154 = vrot.lane.b32.xlu0 %v7485_v17, %s4514_s12  ;;  %3320 = vrot.lane.b32.xlu1 %v10401_v62, %s4516_s14 }
 0x636   : > { %v8224_v33 = vpop.permute.xlu0 %2956  ;;  %v8226_v9 = vpop.permute.xlu1 %2958  ;;  %3130 = vrot.lane.b32.xlu2 %v7363_v1, %s4514_s12 }
 0x637   : > { %10402 = vst [vmem:[#allocation97_spill] sm:$0xff] %v8224_v33 }
 0x638   : > { %10403 = vst [vmem:[#allocation95_spill] sm:$0xff] %v8226_v9  ;;  %v8230_v23 = vpop.permute.xlu2 %2984 }
 0x639   : > { %10404 = vst [vmem:[#allocation24_spill] sm:$0xff] %v8230_v23 }
 0x63c   : > { %3346 = vrot.lane.b32.xlu0 %v7769_v55, %s4516_s14  ;;  %3034 = vrot.lane.b32.xlu1 %v7645_v47, %s4513_s11 }
 0x63e   : > { %v8236_v8 = vpop.permute.xlu0 %2962  ;;  %v8238_v17 = vpop.permute.xlu1 %2964  ;;  %3156 = vrot.lane.b32.xlu2 %v7467_v24, %s4514_s12 }
 0x640   : > { %v8242_v33 = vpop.permute.xlu2 %2990 }
 0x641   : > { %10405 = vst [vmem:[#allocation164_spill] sm:$0xff] %v8242_v33  ;;  %v3667_v33 = vld [vmem:[%s9542_s4 + $0x18] sm:$0xff] }
 0x644   : > { %3060 = vrot.lane.b32.xlu0 %v7725_v59, %s4513_s11  ;;  %3226 = vrot.lane.b32.xlu1 %v10342_v10, %s4515_s13  ;;  %v3668_v10 = vld [vmem:[%s9542_s4 + $0x20] sm:$0xf] }
 0x645   : > { %4364 = vmatpush.msk.msra.mxu1 %vm1849_vm5, %v3668_v10  ;;  %4406 = vmatpush.msk.msra.mxu3 %vm1849_vm5, %v3668_v10 }
 0x646   : > { %v8248_v1 = vpop.permute.xlu0 %2968  ;;  %v8250_v23 = vpop.permute.xlu1 %2970  ;;  %3348 = vrot.lane.b32.xlu2 %v7766_v61, %s4516_s14 }
 0x647   : > { %3780 = vmatpush.msra.mxu1 %v3667_v33  ;;  %4407 = vmatpush.msra.mxu3 %v3667_v33  ;;  %v3664_v33 = vld [vmem:[%s9542_s4] sm:$0xff] }
 0x648   : > { %v8254_v47 = vpop.permute.xlu2 %3028 }
 0x64c   : > { %3322 = vrot.lane.b32.xlu0 %v7669_v58, %s4516_s14  ;;  %3252 = vrot.lane.b32.xlu1 %v10373_v28, %s4515_s13  ;;  %v3666_v28 = vld [vmem:[%s9542_s4 + $0x10] sm:$0xff] }
 0x64d   : > { %3781 = vmatpush.msra.mxu1 %v3666_v28  ;;  %4408 = vmatpush.msra.mxu3 %v3666_v28 }
 0x64e   : > { %v8260_v24 = vpop.permute.xlu0 %2974  ;;  %v8262_v59 = vpop.permute.xlu1 %2976  ;;  %3062 = vrot.lane.b32.xlu2 %v7769_v55, %s4513_s11  ;;  %v8279_v55 = vld [vmem:[#allocation3 + $0x78] sm:$0xff] }
 0x64f   : > { %10406 = vst [vmem:[#allocation177_spill] sm:$0xff] %v8260_v24  ;;  %3782 = vmatpush.msra.mxu1 %v3665_v21  ;;  %4409 = vmatpush.msra.mxu3 %v3665_v21  ;;  %v10413_v21 = vld [vmem:[#allocation123_spill] sm:$0xff] }
 0x650   : > { %10407 = vst [vmem:[#allocation207_spill] sm:$0xff] %v8262_v59  ;;  %v3121_v9 = vpop.permute.xlu2 %3120 }
 0x651   : > { %10408 = vst [vmem:[#allocation54_spill] sm:$0xff] %v8279_v55  ;;  %3783 = vmatpush.msra.mxu1 %v3664_v33  ;;  %4410 = vmatpush.msra.mxu3 %v3664_v33 }
 0x654   : > { %3036 = vrot.lane.b32.xlu0 %v10401_v62, %s4513_s11  ;;  %3132 = vrot.lane.b32.xlu1 %v8279_v55, %s4514_s12 }
 0x656   : > { %v8286_v10 = vpop.permute.xlu0 %2980  ;;  %v8288_v48 = vpop.permute.xlu1 %2982  ;;  %3324 = vrot.lane.b32.xlu2 %v7666_v22, %s4516_s14 }
 0x657   : > { %10409 = vst [vmem:[#allocation81_spill] sm:$0xff] %v8286_v10 }
 0x658   : > { %10410 = vst [vmem:[#allocation110_spill] sm:$0xff] %v8288_v48  ;;  %v3123_v62 = vpop.permute.xlu2 %3122 }
 0x65c   : > { %3228 = vrot.lane.b32.xlu0 %v10351_v36, %s4515_s13  ;;  %3158 = vrot.lane.b32.xlu1 %v7469_v54, %s4514_s12  ;;  %v8313_v36 = vld [vmem:[#allocation3 + $0x80] sm:$0xff] }
 0x65d   : > { %10414 = vst [vmem:[#allocation193_spill] sm:$0xff] %v8313_v36 }
 0x65e   : > { %v8299_v28 = vpop.permute.xlu0 %2986  ;;  %v8301_v48 = vpop.permute.xlu1 %2988  ;;  %3038 = vrot.lane.b32.xlu2 %v7669_v58, %s4513_s11 }
 0x65f   : > { %10411 = vst [vmem:[#allocation132_spill] sm:$0xff] %v8299_v28  ;;  %v10415_v28 = vld [vmem:[#allocation44_spill] sm:$0xff] }
 0x660   : > { %10412 = vst [vmem:[#allocation63_spill] sm:$0xff] %v8301_v48  ;;  %v3125_v10 = vpop.permute.xlu2 %3124  ;;  %v4472_v48 = vld [vmem:[#allocation3] sm:$0xff] }
 0x664   : > { %3254 = vrot.lane.b32.xlu0 %v10372_v16, %s4515_s13  ;;  %3350 = vrot.lane.b32.xlu1 %v10413_v21, %s4516_s14 }
 0x666   : > { %v3025_v33 = vpop.permute.xlu0 %3024  ;;  %v3027_v59 = vpop.permute.xlu1 %3026  ;;  %3230 = vrot.lane.b32.xlu2 %v10350_v15, %s4515_s13  ;;  %v3408_v15 = vsel %vm279_vm0, %v4472_v48, %v10415_v28 }
 0x667   : > { %v3440_v24 = vsel %vm1516_vm6, %v3408_v15, %v7893_v3  ;;  %v4473_v15 = vld [vmem:[#allocation3 + $0x8] sm:$0xff] }
 0x668   : > { %v8311_v54 = vpop.permute.xlu2 %3126 }
 0x66c   : > { %3134 = vrot.lane.b32.xlu0 %v8313_v36, %s4514_s12  ;;  %3064 = vrot.lane.b32.xlu1 %v7766_v61, %s4513_s11  ;;  %v3472_v36 = vsel %vm1549_vm7, %v3440_v24, %v7973_v63  ;;  %v10417_v63 = vld [vmem:[#allocation80_spill] sm:$0xff] }
 0x66d   : > { %v3504_v61 = vsel %vm1582_vm9, %v3472_v36, %v8166_v41  ;;  %v3409_v24 = vsel %vm279_vm0, %v4473_v15, %v10417_v63 }
 0x66e   : > { %v8319_v58 = vpop.permute.xlu0 %3030  ;;  %v8321_v16 = vpop.permute.xlu1 %3032  ;;  %3256 = vrot.lane.b32.xlu2 %v10370_v4, %s4515_s13  ;;  %v3536_v55 = vsel %vm1615_vm8, %v3504_v61, %v3025_v33  ;;  %v10416_v4 = vld [vmem:[#allocation133_spill] sm:$0xff]  ;;  %v3441_v33 = vsel %vm1516_vm6, %v3409_v24, %v7895_v2 }
 0x66f   : > { %v3568_v28 = vsel %vm1648_vm10, %v3536_v55, %v3121_v9  ;;  %v3473_v61 = vsel %vm1549_vm7, %v3441_v33, %v8029_v57 }
 0x670   : > { %v8329_v6 = vpop.permute.xlu2 %3152 }
 0x674   : > { %3160 = vrot.lane.b32.xlu0 %v7515_v39, %s4514_s12  ;;  %3326 = vrot.lane.b32.xlu1 %v10416_v4, %s4516_s14 }
 0x676   : > { %v3217_v48 = vpop.permute.xlu0 %3216  ;;  %v3313_v3 = vpop.permute.xlu1 %3312  ;;  %3136 = vrot.lane.b32.xlu2 %v7401_v50, %s4514_s12  ;;  %v3505_v50 = vsel %vm1582_vm9, %v3473_v61, %v8118_v51 }
 0x677   : > { %v3600_v41 = vsel %vm1681_vm12, %v3568_v28, %v3217_v48  ;;  %v3537_v9 = vsel %vm1615_vm8, %v3505_v50, %v3027_v59  ;;  %v4474_v59 = vld [vmem:[#allocation3 + $0x18] sm:$0xff]  ;;  %v8397_v50 = vld [vmem:[#allocation3 + $0xc0] sm:$0xff] }
 0x678   : > { %v3632_v39 = vsel %vm1714_vm11, %v3600_v41, %v3313_v3  ;;  %v3345_v36 = vpop.permute.xlu2 %3344  ;;  %v3569_v55 = vsel %vm1648_vm10, %v3537_v9, %v3123_v62  ;;  %v10418_v3 = vld [vmem:[#allocation134_spill] sm:$0xff]  ;;  %v10421_v9 = vld [vmem:[#allocation157_spill] sm:$0xff] }
 0x679   : > { %4365 = vmatmul.msk.f32.vlgmr.msra.gmra.mxu1 %vm1752_vm13, %v3632_v39  ;;  %v3410_v15 = vsel %vm279_vm0, %v4474_v59, %v10418_v3 }
 0x67c   : > { %3352 = vrot.lane.b32.xlu0 %v7795_v19, %s4516_s14  ;;  %3040 = vrot.lane.b32.xlu1 %v7666_v22, %s4513_s11  ;;  %v3442_v22 = vsel %vm1516_vm6, %v3410_v15, %v7851_v13  ;;  %v10422_v15 = vld [vmem:[#allocation79_spill] sm:$0xff] }
 0x67d   : > { %v3474_v62 = vsel %vm1549_vm7, %v3442_v22, %v8031_v31 }
 0x67e   : > { %v3219_v2 = vpop.permute.xlu0 %3218  ;;  %v3315_v48 = vpop.permute.xlu1 %3314  ;;  %3162 = vrot.lane.b32.xlu2 %v7496_v32, %s4514_s12  ;;  %v3506_v32 = vsel %vm1582_vm9, %v3474_v62, %v8176_v25 }
 0x67f   : > { %v3601_v57 = vsel %vm1681_vm12, %v3569_v55, %v3219_v2  ;;  %v3538_v63 = vsel %vm1615_vm8, %v3506_v32, %v8254_v47  ;;  %v4475_v47 = vld [vmem:[#allocation3 + $0x20] sm:$0xff]  ;;  %v3424_v2 = vsel %vm279_vm0, %v8397_v50, %v10421_v9 }
 0x680   : > { %v3633_v28 = vsel %vm1714_vm11, %v3601_v57, %v3315_v48  ;;  %v8364_v51 = vpop.permute.xlu2 %3224  ;;  %v3570_v24 = vsel %vm1648_vm10, %v3538_v63, %v3125_v10  ;;  %v10420_v10 = vld [vmem:[#allocation143_spill] sm:$0xff] }
 0x681   : > { %4366 = vmatmul.msk.f32.gmra.mxu1 %vm1752_vm13, %v3633_v28 }
 0x684   : > { %3066 = vrot.lane.b32.xlu0 %v10413_v21, %s4513_s11  ;;  %3232 = vrot.lane.b32.xlu1 %v10348_v27, %s4515_s13  ;;  %v10419_v27 = vld [vmem:[#allocation84_spill] sm:$0xff]  ;;  %v3411_v21 = vsel %vm279_vm0, %v4475_v47, %v10420_v10  ;;  %v8461_v47 = vld [vmem:[#allocation3 + $0xc8] sm:$0xff] }
 0x685   : > { %v3443_v55 = vsel %vm1516_vm6, %v3411_v21, %v7905_v45 }
 0x686   : > { %v3221_v41 = vpop.permute.xlu0 %3220  ;;  %v3317_v33 = vpop.permute.xlu1 %3316  ;;  %3354 = vrot.lane.b32.xlu2 %v7792_v26, %s4516_s14  ;;  %v3475_v48 = vsel %vm1549_vm7, %v3443_v55, %v7987_v5  ;;  %v8421_v5 = vld [vmem:[#allocation3 + $0x98] sm:$0xff] }
 0x687   : > { %v3602_v31 = vsel %vm1681_vm12, %v3570_v24, %v3221_v41  ;;  %v3507_v28 = vsel %vm1582_vm9, %v3475_v48, %v8178_v37  ;;  %v10424_v41 = vld [vmem:[#allocation76_spill] sm:$0xff] }
 0x688   : > { %v3634_v13 = vsel %vm1714_vm11, %v3602_v31, %v3317_v33  ;;  %v8386_v25 = vpop.permute.xlu2 %3250  ;;  %v3539_v45 = vsel %vm1615_vm8, %v3507_v28, %v8319_v58  ;;  %v8482_v28 = vld [vmem:[#allocation3 + $0xa8] sm:$0xff] }
 0x689   : > { %4367 = vmatmul.msk.f32.gmra.mxu1 %vm1752_vm13, %v3634_v13  ;;  %v10425_v13 = vld [vmem:[#allocation183_spill] sm:$0xff] }
 0x68c   : > { %3328 = vrot.lane.b32.xlu0 %v10419_v27, %s4516_s14  ;;  %3258 = vrot.lane.b32.xlu1 %v10379_v29, %s4515_s13  ;;  %v3456_v29 = vsel %vm1516_vm6, %v3424_v2, %v7957_v30 }
 0x68e   : > { %v3057_v39 = vpop.permute.xlu0 %3056  ;;  %v3223_v61 = vpop.permute.xlu1 %3222  ;;  %3068 = vrot.lane.b32.xlu2 %v7795_v19, %s4513_s11  ;;  %v3488_v19 = vsel %vm1549_vm7, %v3456_v29, %v8096_v52  ;;  %v3571_v52 = vsel %vm1648_vm10, %v3539_v45, %v8311_v54 }
 0x68f   : > { %v3520_v59 = vsel %vm1582_vm9, %v3488_v19, %v8182_v7  ;;  %v3603_v30 = vsel %vm1681_vm12, %v3571_v52, %v3223_v61  ;;  %v10429_v61 = vld [vmem:[#allocation51_spill] sm:$0xff] }
 0x690   : > { %v8408_v57 = vpop.permute.xlu2 %3130  ;;  %v3552_v3 = vsel %vm1615_vm8, %v3520_v59, %v3057_v39 }
 0x691   : > { %v3584_v7 = vsel %vm1648_vm10, %v3552_v3, %v8329_v6  ;;  %v10423_v6 = vld [vmem:[#allocation188_spill] sm:$0xff]  ;;  %v10430_v3 = vld [vmem:[#allocation61_spill] sm:$0xff] }
 0x692   : > { %v3412_v54 = vsel %vm279_vm0, %v8128_v43, %v10423_v6 }
 0x694   : > { %3042 = vrot.lane.b32.xlu0 %v10416_v4, %s4513_s11  ;;  %3138 = vrot.lane.b32.xlu1 %v8421_v5, %s4514_s12 }
 0x696   : > { %v3319_v37 = vpop.permute.xlu0 %3318  ;;  %v3249_v58 = vpop.permute.xlu1 %3248  ;;  %3330 = vrot.lane.b32.xlu2 %v10422_v15, %s4516_s14 }
 0x697   : > { %v3616_v4 = vsel %vm1681_vm12, %v3584_v7, %v3249_v58  ;;  %v3635_v22 = vsel %vm1714_vm11, %v3603_v30, %v3319_v37  ;;  %v8494_v30 = vld [vmem:[#allocation3 + $0x140] sm:$0xff]  ;;  %v10432_v37 = vld [vmem:[#allocation64_spill] sm:$0xff] }
 0x698   : > { %4368 = vmatmul.msk.f32.gmra.mxu1 %vm1752_vm13, %v3635_v22  ;;  %v3648_v62 = vsel %vm1714_vm11, %v3616_v4, %v3345_v36  ;;  %v8436_v32 = vpop.permute.xlu2 %3156  ;;  %v3444_v36 = vsel %vm1516_vm6, %v3412_v54, %v7907_v18  ;;  %v10427_v18 = vld [vmem:[#allocation184_spill] sm:$0xff]  ;;  %v8507_v22 = vld [vmem:[#allocation3 + $0xd8] sm:$0xff] }
 0x699   : > { %4381 = vmatmul.msk.f32.vlgmr.msra.gmra.mxu3 %vm1752_vm13, %v3648_v62  ;;  %v3476_v33 = vsel %vm1549_vm7, %v3444_v36, %v10424_v41  ;;  %v3425_v10 = vsel %vm279_vm0, %v8461_v47, %v10427_v18  ;;  %v8503_v4 = vld [vmem:[#allocation3 + $0xb0] sm:$0xff]  ;;  %v10433_v62 = vld [vmem:[#allocation85_spill] sm:$0xff] }
 0x69a   : > { %v3457_v9 = vsel %vm1516_vm6, %v3425_v10, %v10429_v61  ;;  %v3426_v6 = vsel %vm279_vm0, %v8507_v22, %v10433_v62  ;;  %v10434_v54 = vld [vmem:[#allocation69_spill] sm:$0xff]  ;;  %v8537_v61 = vld [vmem:[#allocation3 + $0x150] sm:$0xff] }
 0x69b   : > { %v3489_v55 = vsel %vm1549_vm7, %v3457_v9, %v8098_v46 }
 0x69c   : > { %3234 = vrot.lane.b32.xlu0 %v10357_v14, %s4515_s13  ;;  %3164 = vrot.lane.b32.xlu1 %v7546_v42, %s4514_s12  ;;  %v3508_v14 = vsel %vm1582_vm9, %v3476_v33, %v8132_v38  ;;  %v3521_v48 = vsel %vm1582_vm9, %v3489_v55, %v8236_v8 }
 0x69d   : > { %v3540_v42 = vsel %vm1615_vm8, %v3508_v14, %v8321_v16  ;;  %v10428_v16 = vld [vmem:[#allocation145_spill] sm:$0xff]  ;;  %v10437_v14 = vld [vmem:[#allocation107_spill] sm:$0xff] }
 0x69e   : > { %v3129_v63 = vpop.permute.xlu0 %3128  ;;  %v3059_v24 = vpop.permute.xlu1 %3058  ;;  %3044 = vrot.lane.b32.xlu2 %v10419_v27, %s4513_s11  ;;  %v10426_v27 = vld [vmem:[#allocation165_spill] sm:$0xff] }
 0x69f   : > { %v3572_v43 = vsel %vm1648_vm10, %v3540_v42, %v3129_v63 }
 0x6a0   : > { %v3349_v31 = vpop.permute.xlu2 %3348  ;;  %v3604_v38 = vsel %vm1681_vm12, %v3572_v43, %v8364_v51  ;;  %v3553_v51 = vsel %vm1615_vm8, %v3521_v48, %v3059_v24  ;;  %v10435_v24 = vld [vmem:[#allocation47_spill] sm:$0xff] }
 0x6a1   : > { %v3458_v36 = vsel %vm1516_vm6, %v3426_v6, %v10435_v24 }
 0x6a2   : > { %v3490_v42 = vsel %vm1549_vm7, %v3458_v36, %v10437_v14  ;;  %v8574_v36 = vld [vmem:[#allocation3 + $0xe0] sm:$0xff] }
 0x6a3   : > { %v10447_v14 = vld [vmem:[#allocation66_spill] sm:$0xff] }
 0x6a4   : > { %3260 = vrot.lane.b32.xlu0 %v10425_v13, %s4515_s13  ;;  %3356 = vrot.lane.b32.xlu1 %v10426_v27, %s4516_s14  ;;  %v3522_v13 = vsel %vm1582_vm9, %v3490_v42, %v8238_v17 }
 0x6a6   : > { %v3155_v21 = vpop.permute.xlu0 %3154  ;;  %v3321_v39 = vpop.permute.xlu1 %3320  ;;  %3236 = vrot.lane.b32.xlu2 %v10428_v16, %s4515_s13 }
 0x6a7   : > { %v3636_v2 = vsel %vm1714_vm11, %v3604_v38, %v3321_v39  ;;  %v3585_v19 = vsel %vm1648_vm10, %v3553_v51, %v3155_v21  ;;  %v10438_v21 = vld [vmem:[#allocation173_spill] sm:$0xff]  ;;  %v10440_v51 = vld [vmem:[#allocation150_spill] sm:$0xff] }
 0x6a8   : > { %4369 = vmatmul.msk.f32.gmra.mxu1 %vm1752_vm13, %v3636_v2  ;;  %v8476_v29 = vpop.permute.xlu2 %3062  ;;  %v3617_v45 = vsel %vm1681_vm12, %v3585_v19, %v8386_v25  ;;  %v3413_v25 = vsel %vm279_vm0, %v8142_v44, %v10432_v37  ;;  %v10436_v44 = vld [vmem:[#allocation74_spill] sm:$0xff]  ;;  %v4484_v19 = vld [vmem:[#allocation3 + $0x48] sm:$0xff] }
 0x6a9   : > { %v3445_v63 = vsel %vm1516_vm6, %v3413_v25, %v10434_v54 }
 0x6aa   : > { %v3477_v41 = vsel %vm1549_vm7, %v3445_v63, %v10436_v44  ;;  %v10446_v44 = vld [vmem:[#allocation100_spill] sm:$0xff] }
 0x6ab   : > { %v3509_v43 = vsel %vm1582_vm9, %v3477_v41, %v8188_v35  ;;  %v3427_v41 = vsel %vm279_vm0, %v8574_v36, %v10446_v44 }
 0x6ac   : > { %3140 = vrot.lane.b32.xlu0 %v8482_v28, %s4514_s12  ;;  %3070 = vrot.lane.b32.xlu1 %v7792_v26, %s4513_s11  ;;  %v10431_v26 = vld [vmem:[#allocation172_spill] sm:$0xff]  ;;  %v3459_v42 = vsel %vm1516_vm6, %v3427_v41, %v10447_v14 }
 0x6ae   : > { %v3347_v46 = vpop.permute.xlu0 %3346  ;;  %v3035_v59 = vpop.permute.xlu1 %3034  ;;  %3262 = vrot.lane.b32.xlu2 %v10430_v3, %s4515_s13 }
 0x6af   : > { %v3649_v8 = vsel %vm1714_vm11, %v3617_v45, %v3347_v46  ;;  %v3541_v18 = vsel %vm1615_vm8, %v3509_v43, %v3035_v59  ;;  %v10441_v46 = vld [vmem:[#allocation187_spill] sm:$0xff]  ;;  %v10442_v45 = vld [vmem:[#allocation65_spill] sm:$0xff]  ;;  %v3491_v43 = vsel %vm1549_vm7, %v3459_v42, %v8112_v49 }
 0x6b0   : > { %4382 = vmatmul.msk.f32.gmra.mxu3 %vm1752_vm13, %v3649_v8  ;;  %v3325_v52 = vpop.permute.xlu2 %3324  ;;  %v3573_v39 = vsel %vm1648_vm10, %v3541_v18, %v8408_v57  ;;  %v3414_v59 = vsel %vm279_vm0, %v4484_v19, %v10441_v46  ;;  %v10443_v8 = vld [vmem:[#allocation162_spill] sm:$0xff]  ;;  %v10458_v42 = vld [vmem:[#allocation147_spill] sm:$0xff] }
 0x6b4   : > { %3166 = vrot.lane.b32.xlu0 %v8494_v30, %s4514_s12  ;;  %3332 = vrot.lane.b32.xlu1 %v10431_v26, %s4516_s14 }
 0x6b6   : > { %v3061_v7 = vpop.permute.xlu0 %3060  ;;  %v3227_v58 = vpop.permute.xlu1 %3226  ;;  %3142 = vrot.lane.b32.xlu2 %v8503_v4, %s4514_s12 }
 0x6b7   : > { %v3554_v10 = vsel %vm1615_vm8, %v3522_v13, %v3061_v7  ;;  %v3605_v38 = vsel %vm1681_vm12, %v3573_v39, %v3227_v58  ;;  %v10444_v7 = vld [vmem:[#allocation83_spill] sm:$0xff]  ;;  %v10445_v58 = vld [vmem:[#allocation170_spill] sm:$0xff]  ;;  %v3523_v13 = vsel %vm1582_vm9, %v3491_v43, %v8194_v11 }
 0x6b8   : > { %v8518_v33 = vpop.permute.xlu2 %3038  ;;  %v3586_v35 = vsel %vm1648_vm10, %v3554_v10, %v8436_v32  ;;  %v10439_v32 = vld [vmem:[#allocation117_spill] sm:$0xff]  ;;  %v10448_v39 = vld [vmem:[#allocation171_spill] sm:$0xff] }
 0x6bc   : > { %3358 = vrot.lane.b32.xlu0 %v10438_v21, %s4516_s14  ;;  %3046 = vrot.lane.b32.xlu1 %v10422_v15, %s4513_s11 }
 0x6be   : > { %v3323_v16 = vpop.permute.xlu0 %3322  ;;  %v3253_v17 = vpop.permute.xlu1 %3252  ;;  %3168 = vrot.lane.b32.xlu2 %v8537_v61, %s4514_s12 }
 0x6bf   : > { %v3618_v9 = vsel %vm1681_vm12, %v3586_v35, %v3253_v17  ;;  %v3637_v2 = vsel %vm1714_vm11, %v3605_v38, %v3323_v16  ;;  %v10450_v16 = vld [vmem:[#allocation109_spill] sm:$0xff] }
 0x6c0   : > { %4370 = vmatmul.msk.f32.gmra.mxu1 %vm1752_vm13, %v3637_v2  ;;  %v3650_v57 = vsel %vm1714_vm11, %v3618_v9, %v3349_v31  ;;  %v3231_v15 = vpop.permute.xlu2 %3230  ;;  %v3446_v31 = vsel %vm1516_vm6, %v3414_v59, %v10442_v45  ;;  %v10451_v2 = vld [vmem:[#allocation91_spill] sm:$0xff] }
 0x6c1   : > { %4383 = vmatmul.msk.f32.gmra.mxu3 %vm1752_vm13, %v3650_v57  ;;  %v10453_v45 = vld [vmem:[#allocation163_spill] sm:$0xff] }
 0x6c4   : > { %3072 = vrot.lane.b32.xlu0 %v10426_v27, %s4513_s11  ;;  %3238 = vrot.lane.b32.xlu1 %v10439_v32, %s4515_s13  ;;  %v3478_v27 = vsel %vm1549_vm7, %v3446_v31, %v10443_v8  ;;  %v10452_v32 = vld [vmem:[#allocation129_spill] sm:$0xff]  ;;  %v10454_v31 = vld [vmem:[#allocation102_spill] sm:$0xff]  ;;  %v4488_v8 = vld [vmem:[#allocation3 + $0xf0] sm:$0xff] }
 0x6c5   : > { %v3510_v37 = vsel %vm1582_vm9, %v3478_v27, %v8190_v40  ;;  %v10455_v27 = vld [vmem:[#allocation37_spill] sm:$0xff] }
 0x6c6   : > { %v3037_v55 = vpop.permute.xlu0 %3036  ;;  %v3133_v48 = vpop.permute.xlu1 %3132  ;;  %3360 = vrot.lane.b32.xlu2 %v10440_v51, %s4516_s14 }
 0x6c7   : > { %v3542_v25 = vsel %vm1615_vm8, %v3510_v37, %v3037_v55  ;;  %v3428_v37 = vsel %vm279_vm0, %v4488_v8, %v10455_v27  ;;  %v8685_v27 = vld [vmem:[#allocation3 + $0x170] sm:$0xff] }
 0x6c8   : > { %v8556_v3 = vpop.permute.xlu2 %3256  ;;  %v3574_v62 = vsel %vm1648_vm10, %v3542_v25, %v3133_v48 }
 0x6cc   : > { %3334 = vrot.lane.b32.xlu0 %v10444_v7, %s4516_s14  ;;  %3264 = vrot.lane.b32.xlu1 %v10445_v58, %s4515_s13 }
 0x6ce   : > { %v3229_v6 = vpop.permute.xlu0 %3228  ;;  %v3159_v54 = vpop.permute.xlu1 %3158  ;;  %3074 = vrot.lane.b32.xlu2 %v10438_v21, %s4513_s11 }
 0x6cf   : > { %v3606_v63 = vsel %vm1681_vm12, %v3574_v62, %v3229_v6 }
 0x6d0   : > { %v3638_v24 = vsel %vm1714_vm11, %v3606_v63, %v3325_v52  ;;  %v8572_v40 = vpop.permute.xlu2 %3136  ;;  %v3555_v52 = vsel %vm1615_vm8, %v3523_v13, %v8476_v29  ;;  %v4487_v29 = vld [vmem:[#allocation3 + $0x50] sm:$0xff]  ;;  %v8650_v13 = vld [vmem:[#allocation3 + $0x168] sm:$0xff] }
 0x6d1   : > { %4371 = vmatmul.msk.f32.gmra.mxu1 %vm1752_vm13, %v3638_v24  ;;  %v3587_v18 = vsel %vm1648_vm10, %v3555_v52, %v3159_v54  ;;  %v3415_v35 = vsel %vm279_vm0, %v4487_v29, %v10450_v16  ;;  %v10460_v52 = vld [vmem:[#allocation125_spill] sm:$0xff]  ;;  %v10463_v16 = vld [vmem:[#allocation131_spill] sm:$0xff] }
 0x6d2   : > { %v3447_v57 = vsel %vm1516_vm6, %v3415_v35, %v10451_v2 }
 0x6d3   : > { %v3479_v55 = vsel %vm1549_vm7, %v3447_v57, %v10452_v32 }
 0x6d4   : > { %3048 = vrot.lane.b32.xlu0 %v10431_v26, %s4513_s11  ;;  %3144 = vrot.lane.b32.xlu1 %v8397_v50, %s4514_s12  ;;  %v10449_v50 = vld [vmem:[#allocation73_spill] sm:$0xff]  ;;  %v3511_v19 = vsel %vm1582_vm9, %v3479_v55, %v8146_v60  ;;  %v10456_v60 = vld [vmem:[#allocation106_spill] sm:$0xff] }
 0x6d5   : > { %v8602_v26 = vld [vmem:[#allocation3 + $0x158] sm:$0xff]  ;;  %v3543_v46 = vsel %vm1615_vm8, %v3511_v19, %v8518_v33 }
 0x6d6   : > { %v3255_v10 = vpop.permute.xlu0 %3254  ;;  %v3351_v21 = vpop.permute.xlu1 %3350  ;;  %3336 = vrot.lane.b32.xlu2 %v10448_v39, %s4516_s14  ;;  %v10457_v33 = vld [vmem:[#allocation105_spill] sm:$0xff] }
 0x6d7   : > { %v3619_v49 = vsel %vm1681_vm12, %v3587_v18, %v3255_v10  ;;  %v3460_v62 = vsel %vm1516_vm6, %v3428_v37, %v10457_v33  ;;  %v10461_v10 = vld [vmem:[#allocation128_spill] sm:$0xff]  ;;  %v4493_v33 = vld [vmem:[#allocation3 + $0x68] sm:$0xff] }
 0x6d8   : > { %v3651_v11 = vsel %vm1714_vm11, %v3619_v49, %v3351_v21  ;;  %v8597_v38 = vpop.permute.xlu2 %3162  ;;  %v3492_v54 = vsel %vm1549_vm7, %v3460_v62, %v8114_v34  ;;  %v10469_v62 = vld [vmem:[#allocation149_spill] sm:$0xff] }
 0x6d9   : > { %4384 = vmatmul.msk.f32.gmra.mxu3 %vm1752_vm13, %v3651_v11  ;;  %v3524_v24 = vsel %vm1582_vm9, %v3492_v54, %v8248_v1  ;;  %v4491_v11 = vld [vmem:[#allocation3 + $0xf8] sm:$0xff] }
 0x6dc   : > { %3240 = vrot.lane.b32.xlu0 %v10449_v50, %s4515_s13  ;;  %3170 = vrot.lane.b32.xlu1 %v8602_v26, %s4514_s12  ;;  %v10462_v50 = vld [vmem:[#allocation160_spill] sm:$0xff] }
 0x6dd   : > { %v3429_v29 = vsel %vm279_vm0, %v4491_v11, %v10462_v50 }
 0x6de   : > { %v3135_v17 = vpop.permute.xlu0 %3134  ;;  %v3065_v9 = vpop.permute.xlu1 %3064  ;;  %3050 = vrot.lane.b32.xlu2 %v10444_v7, %s4513_s11 }
 0x6df   : > { %v3575_v59 = vsel %vm1648_vm10, %v3543_v46, %v3135_v17 }
 0x6e0   : > { %v3355_v48 = vpop.permute.xlu2 %3354  ;;  %v3607_v58 = vsel %vm1681_vm12, %v3575_v59, %v3231_v15  ;;  %v3556_v15 = vsel %vm1615_vm8, %v3524_v24, %v3065_v9  ;;  %v10464_v9 = vld [vmem:[#allocation94_spill] sm:$0xff]  ;;  %v10466_v59 = vld [vmem:[#allocation137_spill] sm:$0xff]  ;;  %v10470_v24 = vld [vmem:[#allocation115_spill] sm:$0xff] }
 0x6e1   : > { %v3461_v2 = vsel %vm1516_vm6, %v3429_v29, %v10464_v9 }
 0x6e4   : > { %3266 = vrot.lane.b32.xlu0 %v10453_v45, %s4515_s13  ;;  %3362 = vrot.lane.b32.xlu1 %v10454_v31, %s4516_s14 }
 0x6e6   : > { %v3161_v25 = vpop.permute.xlu0 %3160  ;;  %v3327_v7 = vpop.permute.xlu1 %3326  ;;  %3242 = vrot.lane.b32.xlu2 %v10456_v60, %s4515_s13  ;;  %v10468_v60 = vld [vmem:[#allocation127_spill] sm:$0xff] }
 0x6e7   : > { %v3639_v6 = vsel %vm1714_vm11, %v3607_v58, %v3327_v7  ;;  %v3588_v44 = vsel %vm1648_vm10, %v3556_v15, %v3161_v25  ;;  %v10467_v58 = vld [vmem:[#allocation78_spill] sm:$0xff]  ;;  %v10471_v15 = vld [vmem:[#allocation200_spill] sm:$0xff] }
 0x6e8   : > { %4372 = vmatmul.msk.f32.gmra.mxu1 %vm1752_vm13, %v3639_v6  ;;  %v8634_v63 = vpop.permute.xlu2 %3068  ;;  %v3620_v34 = vsel %vm1681_vm12, %v3588_v44, %v8556_v3  ;;  %v3417_v6 = vsel %vm279_vm0, %v4493_v33, %v10469_v62  ;;  %v10485_v33 = vld [vmem:[#allocation96_spill] sm:$0xff] }
 0x6ec   : > { %3146 = vrot.lane.b32.xlu0 %v8461_v47, %s4514_s12  ;;  %3076 = vrot.lane.b32.xlu1 %v10440_v51, %s4513_s11  ;;  %v10459_v47 = vld [vmem:[#allocation124_spill] sm:$0xff]  ;;  %v4490_v51 = vld [vmem:[#allocation3 + $0x60] sm:$0xff] }
 0x6ed   : > { %v3416_v3 = vsel %vm279_vm0, %v4490_v51, %v10460_v52 }
 0x6ee   : > { %v3353_v41 = vpop.permute.xlu0 %3352  ;;  %v3041_v14 = vpop.permute.xlu1 %3040  ;;  %3268 = vrot.lane.b32.xlu2 %v10458_v42, %s4515_s13  ;;  %v3448_v21 = vsel %vm1516_vm6, %v3416_v3, %v10461_v10  ;;  %v4494_v3 = vld [vmem:[#allocation3 + $0x108] sm:$0xff] }
 0x6ef   : > { %v3652_v1 = vsel %vm1714_vm11, %v3620_v34, %v3353_v41  ;;  %v3480_v35 = vsel %vm1549_vm7, %v3448_v21, %v10463_v16  ;;  %v10472_v34 = vld [vmem:[#allocation122_spill] sm:$0xff] }
 0x6f0   : > { %4385 = vmatmul.msk.f32.gmra.mxu3 %vm1752_vm13, %v3652_v1  ;;  %v3331_v43 = vpop.permute.xlu2 %3330  ;;  %v3512_v57 = vsel %vm1582_vm9, %v3480_v35, %v8200_v0 }
 0x6f1   : > { %v3544_v55 = vsel %vm1615_vm8, %v3512_v57, %v3041_v14 }
 0x6f2   : > { %v3576_v45 = vsel %vm1648_vm10, %v3544_v55, %v8572_v40 }
 0x6f4   : > { %3172 = vrot.lane.b32.xlu0 %v8650_v13, %s4514_s12  ;;  %3338 = vrot.lane.b32.xlu1 %v10459_v47, %s4516_s14 }
 0x6f6   : > { %v3067_v18 = vpop.permute.xlu0 %3066  ;;  %3148 = vrot.lane.b32.xlu2 %v8507_v22, %s4514_s12  ;;  %v3233_v49 = vpop.permute.xlu1 %3232  ;;  %v10465_v22 = vld [vmem:[#allocation154_spill] sm:$0xff] }
 0x6f7   : > { %v3493_v32 = vsel %vm1549_vm7, %v3461_v2, %v10465_v22  ;;  %v3608_v0 = vsel %vm1681_vm12, %v3576_v45, %v3233_v49  ;;  %v10475_v49 = vld [vmem:[#allocation108_spill] sm:$0xff]  ;;  %v10479_v22 = vld [vmem:[#allocation54_spill] sm:$0xff]  ;;  %v10481_v45 = vld [vmem:[#allocation139_spill] sm:$0xff] }
 0x6f8   : > { %v8666_v17 = vpop.permute.xlu2 %3044  ;;  %v3525_v19 = vsel %vm1582_vm9, %v3493_v32, %v8250_v23 }
 0x6f9   : > { %v3557_v46 = vsel %vm1615_vm8, %v3525_v19, %v3067_v18  ;;  %v10473_v18 = vld [vmem:[#allocation59_spill] sm:$0xff]  ;;  %v10480_v19 = vld [vmem:[#allocation90_spill] sm:$0xff] }
 0x6fa   : > { %v3589_v23 = vsel %vm1648_vm10, %v3557_v46, %v8597_v38  ;;  %v3430_v10 = vsel %vm279_vm0, %v4494_v3, %v10473_v18  ;;  %v2623_v46 = vrot.slane %v10480_v19, 2  ;;  %v10489_v3 = vld [vmem:[#allocation177_spill] sm:$0xff] }
 0x6fc   : > { %3364 = vrot.lane.b32.xlu0 %v10466_v59, %s4516_s14  ;;  %3052 = vrot.lane.b32.xlu1 %v10448_v39, %s4513_s11 }
 0x6fe   : > { %v3329_v8 = vpop.permute.xlu0 %3328  ;;  %3174 = vrot.lane.b32.xlu2 %v8685_v27, %s4514_s12  ;;  %v3259_v37 = vpop.permute.xlu1 %3258 }
 0x6ff   : > { %v3640_v25 = vsel %vm1714_vm11, %v3608_v0, %v3329_v8  ;;  %v3621_v7 = vsel %vm1681_vm12, %v3589_v23, %v3259_v37  ;;  %v10482_v8 = vld [vmem:[#allocation60_spill] sm:$0xff]  ;;  %v10483_v37 = vld [vmem:[#allocation43_spill] sm:$0xff] }
 0x700   : > { %4373 = vmatmul.msk.f32.gmra.mxu1 %vm1752_vm13, %v3640_v25  ;;  %v8694_v39 = vpop.permute.xlu2 %3236  ;;  %v3653_v40 = vsel %vm1714_vm11, %v3621_v7, %v3355_v48  ;;  %v3449_v48 = vsel %vm1516_vm6, %v3417_v6, %v10470_v24  ;;  %v2625_v25 = vrot.slane %v10483_v37, 2  ;;  %v10484_v7 = vld [vmem:[#allocation192_spill] sm:$0xff] }
 0x701   : > { %4386 = vmatmul.msk.f32.gmra.mxu3 %vm1752_vm13, %v3653_v40  ;;  %v3481_v44 = vsel %vm1549_vm7, %v3449_v48, %v10471_v15  ;;  %v4495_v6 = vld [vmem:[#allocation3 + $0x110] sm:$0xff]  ;;  %v2403_v15 = vld [vmem:[#allocation3 + $0x198] sm:$0xff] }
 0x702   : > { %v2626_v62 = vsel %vm609_vm4, %v2623_v46, %v2625_v25  ;;  %v10498_v25 = vld [vmem:[#allocation190_spill] sm:$0xff] }
 0x704   : > { %3078 = vrot.lane.b32.xlu0 %v10454_v31, %s4513_s11  ;;  %3244 = vrot.lane.b32.xlu1 %v10467_v58, %s4515_s13  ;;  %v3513_v31 = vsel %vm1582_vm9, %v3481_v44, %v8202_v56 }
 0x706   : > { %v3043_v38 = vpop.permute.xlu0 %3042  ;;  %3366 = vrot.lane.b32.xlu2 %v10468_v60, %s4516_s14  ;;  %v3139_v54 = vpop.permute.xlu1 %3138 }
 0x707   : > { %v3545_v14 = vsel %vm1615_vm8, %v3513_v31, %v3043_v38 }
 0x708   : > { %v8712_v41 = vpop.permute.xlu2 %3262  ;;  %v3577_v42 = vsel %vm1648_vm10, %v3545_v14, %v3139_v54  ;;  %v10486_v54 = vld [vmem:[#allocation82_spill] sm:$0xff] }
 0x709   : > { %v3431_v24 = vsel %vm279_vm0, %v4495_v6, %v10486_v54 }
 0x70c   : > { %3340 = vrot.lane.b32.xlu0 %v7744_v53, %s4516_s14  ;;  %3270 = vrot.lane.b32.xlu1 %v10472_v34, %s4515_s13  ;;  %v10474_v53 = vld [vmem:[#allocation130_spill] sm:$0xff]  ;;  %v2630_v34 = vrot.slane %v2403_v15, 1 }
 0x70d   : > { %v3462_v21 = vsel %vm1516_vm6, %v3430_v10, %v10474_v53 }
 0x70e   : > { %v3235_v1 = vpop.permute.xlu0 %3234  ;;  %3080 = vrot.lane.b32.xlu2 %v10466_v59, %s4513_s11  ;;  %v3165_v52 = vpop.permute.xlu1 %3164  ;;  %v3494_v11 = vsel %vm1549_vm7, %v3462_v21, %v10475_v49  ;;  %v10490_v49 = vld [vmem:[#allocation62_spill] sm:$0xff] }
 0x70f   : > { %v3609_v51 = vsel %vm1681_vm12, %v3577_v42, %v3235_v1  ;;  %v3526_v50 = vsel %vm1582_vm9, %v3494_v11, %v8206_v20  ;;  %v10488_v42 = vld [vmem:[#allocation118_spill] sm:$0xff] }
 0x710   : > { %v3641_v56 = vsel %vm1714_vm11, %v3609_v51, %v3331_v43  ;;  %v8737_v43 = vpop.permute.xlu2 %3142  ;;  %v3558_v29 = vsel %vm1615_vm8, %v3526_v50, %v8634_v63 }
 0x711   : > { %4374 = vmatmul.msk.f32.gmra.mxu1 %vm1752_vm13, %v3641_v56  ;;  %v3590_v16 = vsel %vm1648_vm10, %v3558_v29, %v3165_v52  ;;  %v2404_v56 = vld [vmem:[#allocation3 + $0x1a0] sm:$0xff] }
 0x712   : > { %v2631_v10 = vrot.slane %v2404_v56, 1 }
 0x714   : > { %3054 = vrot.lane.b32.xlu0 %v10459_v47, %s4513_s11  ;;  %3150 = vrot.lane.b32.xlu1 %v8574_v36, %s4514_s12  ;;  %v10476_v36 = vld [vmem:[#allocation161_spill] sm:$0xff] }
 0x715   : > { %v10477_v47 = vld [vmem:[#allocation197_spill] sm:$0xff] }
 0x716   : > { %v3261_v35 = vpop.permute.xlu0 %3260  ;;  %3342 = vrot.lane.b32.xlu2 %v7741_v12, %s4516_s14  ;;  %v3357_v20 = vpop.permute.xlu1 %3356  ;;  %v10478_v12 = vld [vmem:[#allocation146_spill] sm:$0xff]  ;;  %v2622_v55 = vrot.slane %v10477_v47, 2 }
 0x717   : > { %v3622_v9 = vsel %vm1681_vm12, %v3590_v16, %v3261_v35  ;;  %v3418_v32 = vsel %vm279_vm0, %v10479_v22, %v10478_v12 }
 0x718   : > { %v3654_v2 = vsel %vm1714_vm11, %v3622_v9, %v3357_v20  ;;  %v8751_v63 = vpop.permute.xlu2 %3168  ;;  %v3450_v0 = vsel %vm1516_vm6, %v3418_v32, %v10481_v45  ;;  %v2624_v38 = vsel %vm609_vm4, %v2622_v55, %v2623_v46  ;;  %v2635_v9 = vrot.slane %v2403_v15, 2  ;;  %v4496_v32 = vld [vmem:[#allocation3 + $0x120] sm:$0xff]  ;;  %v10494_v55 = vld [vmem:[#allocation88_spill] sm:$0xff]  ;;  %v10495_v46 = vld [vmem:[#allocation71_spill] sm:$0xff] }
 0x719   : > { %4387 = vmatmul.msk.f32.gmra.mxu3 %vm1752_vm13, %v3654_v2  ;;  %v3482_v23 = vsel %vm1549_vm7, %v3450_v0, %v10482_v8  ;;  %v2636_v20 = vrot.slane %v2404_v56, 2  ;;  %v10491_v2 = vld [vmem:[#allocation181_spill] sm:$0xff]  ;;  %v10496_v45 = vld [vmem:[#allocation140_spill] sm:$0xff] }
 0x71a   : > { %v3514_v40 = vsel %vm1582_vm9, %v3482_v23, %v10484_v7  ;;  %v10497_v8 = vld [vmem:[#allocation45_spill] sm:$0xff] }
 0x71b   : > { %v3546_v58 = vsel %vm1615_vm8, %v3514_v40, %v8666_v17  ;;  %v10487_v17 = vld [vmem:[#allocation151_spill] sm:$0xff]  ;;  %v2637_v37 = vsel %vm609_vm4, %v2635_v9, %v2636_v20 }
 0x71c   : > { %3246 = vrot.lane.b32.xlu0 %v10476_v36, %s4515_s13  ;;  %3176 = vrot.lane.b32.xlu1 %v10477_v47, %s4514_s12  ;;  %v3463_v44 = vsel %vm1516_vm6, %v3431_v24, %v10487_v17  ;;  %v10492_v36 = vld [vmem:[#allocation193_spill] sm:$0xff] }
 0x71d   : > { %v3495_v1 = vsel %vm1549_vm7, %v3463_v44, %v10488_v42  ;;  %v3419_v47 = vsel %vm279_vm0, %v10492_v36, %v10491_v2  ;;  %v4498_v36 = vld [vmem:[#allocation3 + $0x128] sm:$0xff] }
 0x71e   : > { %v3141_v57 = vpop.permute.xlu0 %3140  ;;  %3082 = vrot.lane.b32.xlu2 %v10468_v60, %s4513_s11  ;;  %v3071_v59 = vpop.permute.xlu1 %3070  ;;  %v3527_v18 = vsel %vm1582_vm9, %v3495_v1, %v10489_v3 }
 0x71f   : > { %v3578_v60 = vsel %vm1648_vm10, %v3546_v58, %v3141_v57  ;;  %v3559_v53 = vsel %vm1615_vm8, %v3527_v18, %v3071_v59  ;;  %v2405_v58 = vld [vmem:[#allocation3 + $0x1a8] sm:$0x3] }
 0x720   : > { %v3610_v14 = vsel %vm1681_vm12, %v3578_v60, %v8694_v39  ;;  %v3361_v51 = vpop.permute.xlu2 %3360  ;;  %v2632_v39 = vsel %vm528_vm2, %v2630_v34, %v2631_v10  ;;  %v2633_v24 = vrot.slane %v2405_v58, 1 }
 0x722   : > { %v2634_v42 = vsel %vm528_vm2, %v2631_v10, %v2633_v24 }
 0x724   : > { %3272 = vrot.lane.b32.xlu0 %v10485_v33, %s4515_s13  ;;  %3368 = vrot.lane.b32.xlu1 %v2624_v38, %s4516_s14 }
 0x726   : > { %v3167_v48 = vpop.permute.xlu0 %3166  ;;  %3370 = vrot.lane.b32.xlu2 %v2626_v62, %s4516_s14  ;;  %v3333_v31 = vpop.permute.xlu1 %3332 }
 0x727   : > { %v3642_v52 = vsel %vm1714_vm11, %v3610_v14, %v3333_v31  ;;  %v3591_v21 = vsel %vm1648_vm10, %v3559_v53, %v3167_v48  ;;  %v2638_v48 = vrot.slane %v2405_v58, 2  ;;  %v10501_v53 = vld [vmem:[#allocation50_spill] sm:$0xff] }
 0x728   : > { %4375 = vmatmul.msk.f32.gmra.mxu1 %vm1752_vm13, %v3642_v52  ;;  %v3623_v50 = vsel %vm1681_vm12, %v3591_v21, %v8712_v41  ;;  %v3075_v35 = vpop.permute.xlu2 %3074  ;;  %v10493_v41 = vld [vmem:[#allocation167_spill] sm:$0xff]  ;;  %v4497_v52 = vld [vmem:[#allocation3 + $0x90] sm:$0xff]  ;;  %v10502_v21 = vld [vmem:[#allocation49_spill] sm:$0xff] }
 0x729   : > { %v3451_v12 = vsel %vm1516_vm6, %v3419_v47, %v10493_v41  ;;  %v10504_v47 = vld [vmem:[#allocation191_spill] sm:$0xff]  ;;  %v10505_v41 = vld [vmem:[#allocation33_spill] sm:$0xff] }
 0x72a   : > { %v3483_v59 = vsel %vm1549_vm7, %v3451_v12, %v10495_v46 }
 0x72b   : > { %v3515_v23 = vsel %vm1582_vm9, %v3483_v59, %v10497_v8 }
 0x72c   : > { %3178 = vrot.lane.b32.xlu0 %v10480_v19, %s4514_s12  ;;  %3274 = vrot.lane.b32.xlu1 %v10490_v49, %s4515_s13  ;;  %v3432_v19 = vsel %vm279_vm0, %v4496_v32, %v10494_v55  ;;  %v10507_v55 = vld [vmem:[#allocation77_spill] sm:$0xff] }
 0x72d   : > { %v3464_v0 = vsel %vm1516_vm6, %v3432_v19, %v10496_v45 }
 0x72e   : > { %v3359_v11 = vpop.permute.xlu0 %3358  ;;  %3276 = vrot.lane.b32.xlu2 %v2632_v39, %s4515_s13  ;;  %v3047_v29 = vpop.permute.xlu1 %3046  ;;  %v3496_v7 = vsel %vm1549_vm7, %v3464_v0, %v10498_v25  ;;  %v10503_v39 = vld [vmem:[#allocation48_spill] sm:$0xff] }
 0x72f   : > { %v3655_v16 = vsel %vm1714_vm11, %v3623_v50, %v3359_v11  ;;  %v3547_v40 = vsel %vm1615_vm8, %v3515_v23, %v3047_v29 }
 0x730   : > { %4388 = vmatmul.msk.f32.gmra.mxu3 %vm1752_vm13, %v3655_v16  ;;  %v3337_v33 = vpop.permute.xlu2 %3336  ;;  %v3579_v54 = vsel %vm1648_vm10, %v3547_v40, %v8737_v43  ;;  %v2639_v43 = vsel %vm609_vm4, %v2636_v20, %v2638_v48 }
 0x734   : > { %3084 = vrot.lane.b32.xlu0 %v2624_v38, %s4513_s11  ;;  %3180 = vrot.lane.b32.xlu1 %v2403_v15, %s4514_s12  ;;  %v10499_v38 = vld [vmem:[#allocation207_spill] sm:$0xff] }
 0x735   : > { %v3528_v60 = vsel %vm1582_vm9, %v3496_v7, %v10499_v38  ;;  %v10508_v7 = vld [vmem:[#allocation179_spill] sm:$0xff] }
 0x736   : > { %v3073_v57 = vpop.permute.xlu0 %3072  ;;  %3182 = vrot.lane.b32.xlu2 %v2404_v56, %s4514_s12  ;;  %v3239_v22 = vpop.permute.xlu1 %3238  ;;  %v10500_v56 = vld [vmem:[#allocation86_spill] sm:$0xff]  ;;  %v3421_v40 = vsel %vm279_vm0, %v8421_v5, %v10508_v7  ;;  %v10509_v38 = vld [vmem:[#allocation175_spill] sm:$0xff] }
 0x737   : > { %v3560_v6 = vsel %vm1615_vm8, %v3528_v60, %v3073_v57  ;;  %v3611_v15 = vsel %vm1681_vm12, %v3579_v54, %v3239_v22  ;;  %v3420_v3 = vsel %vm279_vm0, %v4497_v52, %v10500_v56  ;;  %v3433_v57 = vsel %vm279_vm0, %v4498_v36, %v10504_v47  ;;  %v10506_v22 = vld [vmem:[#allocation142_spill] sm:$0xff]  ;;  %v10510_v60 = vld [vmem:[#allocation199_spill] sm:$0xff]  ;;  %v10519_v36 = vld [vmem:[#allocation201_spill] sm:$0xff] }
 0x738   : > { %v3592_v44 = vsel %vm1648_vm10, %v3560_v6, %v8751_v63  ;;  %v3051_v63 = vpop.permute.xlu2 %3050  ;;  %v3465_v12 = vsel %vm1516_vm6, %v3433_v57, %v10505_v41  ;;  %v10511_v6 = vld [vmem:[#allocation206_spill] sm:$0xff] }
 0x739   : > { %v3497_v32 = vsel %vm1549_vm7, %v3465_v12, %v10506_v22  ;;  %v10520_v41 = vld [vmem:[#allocation174_spill] sm:$0xff]  ;;  %v10521_v22 = vld [vmem:[#allocation97_spill] sm:$0xff] }
 0x73a   : > { %v3529_v19 = vsel %vm1582_vm9, %v3497_v32, %v10507_v55 }
 0x73b   : > { %v3561_v46 = vsel %vm1615_vm8, %v3529_v19, %v3075_v35  ;;  %v3453_v35 = vsel %vm1516_vm6, %v3421_v40, %v10509_v38 }
 0x73c   : > { %3372 = vrot.lane.b32.xlu0 %v2637_v37, %s4516_s14  ;;  %3086 = vrot.lane.b32.xlu1 %v2626_v62, %s4513_s11 }
 0x73e   : > { %v3335_v17 = vpop.permute.xlu0 %3334  ;;  %v3265_v31 = vpop.permute.xlu1 %3264 }
 0x73f   : > { %v3643_v14 = vsel %vm1714_vm11, %v3611_v15, %v3335_v17  ;;  %v3624_v34 = vsel %vm1681_vm12, %v3592_v44, %v3265_v31  ;;  %v4499_v17 = vld [vmem:[#allocation3 + $0x138] sm:$0xff]  ;;  %v10512_v44 = vld [vmem:[#allocation104_spill] sm:$0xff] }
 0x740   : > { %4376 = vmatmul.msk.f32.gmra.mxu1 %vm1752_vm13, %v3643_v14  ;;  %v3656_v62 = vsel %vm1714_vm11, %v3624_v34, %v3361_v51  ;;  %v3452_v51 = vsel %vm1516_vm6, %v3420_v3, %v10501_v53  ;;  %v3243_v20 = vpop.permute.xlu2 %3242  ;;  %v3434_v31 = vsel %vm279_vm0, %v4499_v17, %v10512_v44  ;;  %v10513_v14 = vld [vmem:[#allocation189_spill] sm:$0xff] }
 0x741   : > { %4389 = vmatmul.msk.f32.gmra.mxu3 %vm1752_vm13, %v3656_v62  ;;  %v3484_v10 = vsel %vm1549_vm7, %v3452_v51, %v10502_v21  ;;  %v3466_v34 = vsel %vm1516_vm6, %v3434_v31, %v10513_v14 }
 0x742   : > { %v3516_v49 = vsel %vm1582_vm9, %v3484_v10, %v10503_v39 }
 0x744   : > { %3278 = vrot.lane.b32.xlu0 %v2634_v42, %s4515_s13  ;;  %3374 = vrot.lane.b32.xlu1 %v2639_v43, %s4516_s14  ;;  %v10514_v43 = vld [vmem:[#allocation153_spill] sm:$0xff] }
 0x746   : > { %v3049_v1 = vpop.permute.xlu0 %3048  ;;  %v3145_v18 = vpop.permute.xlu1 %3144 }
 0x747   : > { %v3548_v11 = vsel %vm1615_vm8, %v3516_v49, %v3049_v1  ;;  %v3498_v1 = vsel %vm1549_vm7, %v3466_v34, %v10514_v43  ;;  %v10516_v49 = vld [vmem:[#allocation112_spill] sm:$0xff] }
 0x748   : > { %v3580_v50 = vsel %vm1648_vm10, %v3548_v11, %v3145_v18  ;;  %v3269_v37 = vpop.permute.xlu2 %3268  ;;  %v3422_v11 = vsel %vm279_vm0, %v8482_v28, %v10516_v49  ;;  %v10522_v28 = vld [vmem:[#allocation55_spill] sm:$0xff] }
 0x74e   : > { %v3241_v29 = vpop.permute.xlu0 %3240  ;;  %v3171_v9 = vpop.permute.xlu1 %3170 }
 0x74f   : > { %v3612_v16 = vsel %vm1681_vm12, %v3580_v50, %v3241_v29  ;;  %v3593_v59 = vsel %vm1648_vm10, %v3561_v46, %v3171_v9  ;;  %v10517_v29 = vld [vmem:[#allocation185_spill] sm:$0xff]  ;;  %v10523_v46 = vld [vmem:[#allocation110_spill] sm:$0xff] }
 0x750   : > { %v3644_v2 = vsel %vm1714_vm11, %v3612_v16, %v3337_v33  ;;  %v3485_v33 = vsel %vm1549_vm7, %v3453_v35, %v10510_v60  ;;  %v3149_v48 = vpop.permute.xlu2 %3148  ;;  %v3454_v16 = vsel %vm1516_vm6, %v3422_v11, %v10517_v29  ;;  %v10524_v35 = vld [vmem:[#allocation136_spill] sm:$0xff] }
 0x751   : > { %4377 = vmatmul.msk.f32.gmra.mxu1 %vm1752_vm13, %v3644_v2  ;;  %v3517_v54 = vsel %vm1582_vm9, %v3485_v33, %v10511_v6  ;;  %v3486_v47 = vsel %vm1549_vm7, %v3454_v16, %v10519_v36  ;;  %v3423_v60 = vsel %vm279_vm0, %v8503_v4, %v10524_v35  ;;  %v10525_v6 = vld [vmem:[#allocation204_spill] sm:$0xff]  ;;  %v10533_v16 = vld [vmem:[#allocation38_spill] sm:$0xff] }
 0x752   : > { %v3549_v24 = vsel %vm1615_vm8, %v3517_v54, %v3051_v63  ;;  %v10515_v63 = vld [vmem:[#allocation81_spill] sm:$0xff]  ;;  %v3518_v32 = vsel %vm1582_vm9, %v3486_v47, %v10521_v22  ;;  %v3455_v54 = vsel %vm1516_vm6, %v3423_v60, %v10525_v6  ;;  %v10535_v47 = vld [vmem:[#allocation132_spill] sm:$0xff] }
 0x753   : > { %v3530_v56 = vsel %vm1582_vm9, %v3498_v1, %v10515_v63  ;;  %v10529_v1 = vld [vmem:[#allocation176_spill] sm:$0xff]  ;;  %v8939_v63 = vpop.f32.mrf.mxu1 }
 0x756   : > { %v3267_v45 = vpop.permute.xlu0 %3266  ;;  %v3363_v8 = vpop.permute.xlu1 %3362 }
 0x757   : > { %v3625_v0 = vsel %vm1681_vm12, %v3593_v59, %v3267_v45 }
 0x758   : > { %v3657_v23 = vsel %vm1714_vm11, %v3625_v0, %v3363_v8  ;;  %v3175_v53 = vpop.permute.xlu2 %3174 }
 0x759   : > { %4390 = vmatmul.msk.f32.gmra.mxu3 %vm1752_vm13, %v3657_v23 }
 0x75b   : > { %v8957_v36 = vpop.f32.mrf.mxu1 }
 0x75e   : > { %v3147_v25 = vpop.permute.xlu0 %3146  ;;  %v3077_v58 = vpop.permute.xlu1 %3076 }
 0x75f   : > { %v3581_v15 = vsel %vm1648_vm10, %v3549_v24, %v3147_v25  ;;  %v3562_v3 = vsel %vm1615_vm8, %v3530_v56, %v3077_v58  ;;  %v10526_v24 = vld [vmem:[#allocation70_spill] sm:$0xff]  ;;  %v10530_v56 = vld [vmem:[#allocation155_spill] sm:$0xff] }
 0x760   : > { %v3613_v42 = vsel %vm1681_vm12, %v3581_v15, %v3243_v20  ;;  %v10518_v20 = vld [vmem:[#allocation126_spill] sm:$0xff]  ;;  %v3367_v57 = vpop.permute.xlu2 %3366  ;;  %v10527_v15 = vld [vmem:[#allocation95_spill] sm:$0xff] }
 0x761   : > { %v3435_v2 = vsel %vm279_vm0, %v8494_v30, %v10518_v20  ;;  %v10534_v20 = vld [vmem:[#allocation178_spill] sm:$0xff] }
 0x762   : > { %v3467_v12 = vsel %vm1516_vm6, %v3435_v2, %v10520_v41 }
 0x763   : > { %v3499_v55 = vsel %vm1549_vm7, %v3467_v12, %v10522_v28 }
 0x764   : > { %v3531_v59 = vsel %vm1582_vm9, %v3499_v55, %v10523_v46 }
 0x766   : > { %v3173_v5 = vpop.permute.xlu0 %3172  ;;  %v3339_v62 = vpop.permute.xlu1 %3338 }
 0x767   : > { %v3645_v52 = vsel %vm1714_vm11, %v3613_v42, %v3339_v62  ;;  %v3594_v18 = vsel %vm1648_vm10, %v3562_v3, %v3173_v5  ;;  %v10528_v42 = vld [vmem:[#allocation148_spill] sm:$0xff] }
 0x768   : > { %4378 = vmatmul.msk.f32.gmra.mxu1 %vm1752_vm13, %v3645_v52  ;;  %v3626_v21 = vsel %vm1681_vm12, %v3594_v18, %v3269_v37  ;;  %v3081_v58 = vpop.permute.xlu2 %3080  ;;  %v3436_v43 = vsel %vm279_vm0, %v8537_v61, %v10528_v42  ;;  %v10531_v18 = vld [vmem:[#allocation24_spill] sm:$0xff] }
 0x769   : > { %v3468_v52 = vsel %vm1516_vm6, %v3436_v43, %v10529_v1 }
 0x76a   : > { %v3500_v3 = vsel %vm1549_vm7, %v3468_v52, %v10530_v56  ;;  %v9002_v56 = vpop.f32.mrf.mxu3 }
 0x76e   : > { %v3365_v51 = vpop.permute.xlu0 %3364  ;;  %v3053_v10 = vpop.permute.xlu1 %3052 }
 0x76f   : > { %v3658_v39 = vsel %vm1714_vm11, %v3626_v21, %v3365_v51  ;;  %v3550_v19 = vsel %vm1615_vm8, %v3518_v32, %v3053_v10 }
 0x770   : > { %4391 = vmatmul.msk.f32.gmra.mxu3 %vm1752_vm13, %v3658_v39  ;;  %v3582_v45 = vsel %vm1648_vm10, %v3550_v19, %v3149_v48  ;;  %v3487_v48 = vsel %vm1549_vm7, %v3455_v54, %v10526_v24  ;;  %v3343_v31 = vpop.permute.xlu2 %3342  ;;  %v10536_v19 = vld [vmem:[#allocation57_spill] sm:$0xff] }
 0x771   : > { %v3519_v17 = vsel %vm1582_vm9, %v3487_v48, %v10527_v15  ;;  %v3438_v46 = vsel %vm279_vm0, %v8650_v13, %v10536_v19  ;;  %v10541_v48 = vld [vmem:[#allocation42_spill] sm:$0xff] }
 0x776   : > { %v3079_v50 = vpop.permute.xlu0 %3078  ;;  %v3245_v9 = vpop.permute.xlu1 %3244 }
 0x777   : > { %v3563_v30 = vsel %vm1615_vm8, %v3531_v59, %v3079_v50  ;;  %v3614_v0 = vsel %vm1681_vm12, %v3582_v45, %v3245_v9  ;;  %v10532_v50 = vld [vmem:[#allocation152_spill] sm:$0xff]  ;;  %v10537_v59 = vld [vmem:[#allocation205_spill] sm:$0xff] }
 0x778   : > { %v3595_v23 = vsel %vm1648_vm10, %v3563_v30, %v3175_v53  ;;  %v3532_v53 = vsel %vm1582_vm9, %v3500_v3, %v10531_v18  ;;  %v3083_v21 = vpop.permute.xlu2 %3082  ;;  %v3437_v29 = vsel %vm279_vm0, %v8602_v26, %v10532_v50  ;;  %v3470_v30 = vsel %vm1516_vm6, %v3438_v46, %v10537_v59  ;;  %v10538_v45 = vld [vmem:[#allocation92_spill] sm:$0xff]  ;;  %v9006_v18 = vpop.f32.mrf.mxu3 }
 0x779   : > { %v3564_v51 = vsel %vm1615_vm8, %v3532_v53, %v3081_v58  ;;  %v3469_v9 = vsel %vm1516_vm6, %v3437_v29, %v10533_v16  ;;  %v3952_v29 = vmul.f32 %v8957_v36, %v8957_v36  ;;  %v3951_v16 = vmul.f32 %v8939_v63, %v8939_v63 }
 0x77a   : > { %v3501_v2 = vsel %vm1549_vm7, %v3469_v9, %v10534_v20  ;;  %v3882_v9 = vsel %vm279_vm0, %v8957_v36, 0.0 }
 0x77e   : > { %v3341_v8 = vpop.permute.xlu0 %3340  ;;  %v3271_v37 = vpop.permute.xlu1 %3270 }
 0x77f   : > { %v3646_v25 = vsel %vm1714_vm11, %v3614_v0, %v3341_v8  ;;  %v3627_v7 = vsel %vm1681_vm12, %v3595_v23, %v3271_v37  ;;  %v3502_v0 = vsel %vm1549_vm7, %v3470_v30, %v10538_v45  ;;  %v8973_v8 = vpop.f32.mrf.mxu1  ;;  %v10539_v37 = vld [vmem:[#allocation63_spill] sm:$0xff] }
 0x780   : > { %4379 = vmatmul.msk.f32.gmra.mxu1 %vm1752_vm13, %v3646_v25  ;;  %v3659_v40 = vsel %vm1714_vm11, %v3627_v7, %v3367_v57  ;;  %v3533_v57 = vsel %vm1582_vm9, %v3501_v2, %v10535_v47  ;;  %v3371_v28 = vpop.permute.xlu2 %3370  ;;  %v3534_v25 = vsel %vm1582_vm9, %v3502_v0, %v10539_v37  ;;  %v3953_v20 = vmul.f32 %v8973_v8, %v8973_v8 }
 0x781   : > { %4392 = vmatmul.msk.f32.gmra.mxu3 %vm1752_vm13, %v3659_v40  ;;  %v3565_v41 = vsel %vm1615_vm8, %v3533_v57, %v3083_v21  ;;  %v3881_v47 = vsel %vm279_vm0, %v8939_v63, 0.0  ;;  %v3984_v57 = vsel %vm279_vm0, %v3952_v29, 0.0 }
 0x786   : > { %v3055_v38 = vpop.permute.xlu0 %3054  ;;  %v3151_v33 = vpop.permute.xlu1 %3150 }
 0x787   : > { %v3551_v44 = vsel %vm1615_vm8, %v3519_v17, %v3055_v38  ;;  %v8979_v35 = vpop.f32.mrf.mxu1  ;;  %v10542_v17 = vld [vmem:[#allocation198_spill] sm:$0xff] }
 0x788   : > { %v3583_v5 = vsel %vm1648_vm10, %v3551_v44, %v3151_v33  ;;  %v3277_v58 = vpop.permute.xlu2 %3276  ;;  %v10540_v33 = vld [vmem:[#allocation89_spill] sm:$0xff] }
 0x789   : > { %v3439_v6 = vsel %vm279_vm0, %v8685_v27, %v10540_v33 }
 0x78a   : > { %v3471_v15 = vsel %vm1516_vm6, %v3439_v6, %v10541_v48 }
 0x78b   : > { %v3503_v44 = vsel %vm1549_vm7, %v3471_v15, %v10542_v17 }
 0x78e   : > { %v3247_v14 = vpop.permute.xlu0 %3246  ;;  %v3177_v62 = vpop.permute.xlu1 %3176 }
 0x78f   : > { %v3615_v34 = vsel %vm1681_vm12, %v3583_v5, %v3247_v14  ;;  %v3596_v10 = vsel %vm1648_vm10, %v3564_v51, %v3177_v62  ;;  %v8994_v62 = vpop.f32.mrf.mxu1  ;;  %v9010_v51 = vpop.f32.mrf.mxu3 }
 0x790   : > { %v3647_v4 = vsel %vm1714_vm11, %v3615_v34, %v3343_v31  ;;  %v10543_v31 = vld [vmem:[#allocation164_spill] sm:$0xff]  ;;  %v3183_v34 = vpop.permute.xlu2 %3182  ;;  %v3888_v45 = vsel %vm279_vm0, %v8994_v62, 0.0 }
 0x791   : > { %4380 = vmatmul.msk.f32.gmra.mxu1 %vm1752_vm13, %v3647_v4  ;;  %v3535_v5 = vsel %vm1582_vm9, %v3503_v44, %v10543_v31 }
 0x796   : > { %v3273_v39 = vpop.permute.xlu0 %3272  ;;  %v3369_v49 = vpop.permute.xlu1 %3368 }
 0x797   : > { %v3628_v61 = vsel %vm1681_vm12, %v3596_v10, %v3273_v39  ;;  %v9000_v52 = vpop.f32.mrf.mxu1  ;;  %v9014_v10 = vpop.f32.mrf.mxu3 }
 0x798   : > { %v3660_v11 = vsel %vm1714_vm11, %v3628_v61, %v3369_v49  ;;  %v3956_v0 = vmul.f32 %v9000_v52, %v9000_v52 }
 0x799   : > { %4393 = vmatmul.msk.f32.gmra.mxu3 %vm1752_vm13, %v3660_v11 }
 0x79e   : > { %v3179_v12 = vpop.permute.xlu0 %3178  ;;  %v3275_v32 = vpop.permute.xlu1 %3274 }
 0x79f   : > { %v3597_v22 = vsel %vm1648_vm10, %v3565_v41, %v3179_v12  ;;  %v9004_v3 = vpop.f32.mrf.mxu1  ;;  %v9018_v61 = vpop.f32.mrf.mxu3  ;;  %v3884_v41 = vsel %vm279_vm0, %v8973_v8, 0.0  ;;  %v3954_v12 = vmul.f32 %v8979_v35, %v8979_v35 }
 0x7a0   : > { %v3629_v26 = vsel %vm1681_vm12, %v3597_v22, %v3275_v32  ;;  %v3883_v22 = vadd.f32 %v3882_v9, %v3881_v47  ;;  %v3983_v32 = vsel %vm279_vm0, %v3951_v16, 0.0  ;;  %v3892_v33 = vsel %vm279_vm0, %v9004_v3, 0.0 }
 0x7a1   : > { %v3661_v55 = vsel %vm1714_vm11, %v3629_v26, %v3371_v28  ;;  %v3986_v28 = vsel %vm279_vm0, %v3953_v20, 0.0  ;;  %v3886_v26 = vsel %vm279_vm0, %v8979_v35, 0.0  ;;  %v3985_v19 = vadd.f32 %v3984_v57, %v3983_v32 }
 0x7a2   : > { %4394 = vmatmul.msk.f32.gmra.mxu3 %vm1752_vm13, %v3661_v55  ;;  %v3955_v55 = vmul.f32 %v8994_v62, %v8994_v62  ;;  %v3885_v46 = vadd.f32 %v3884_v41, %v3883_v22  ;;  %v3988_v30 = vsel %vm279_vm0, %v3954_v12, 0.0 }
 0x7a4   : > { %v3887_v37 = vadd.f32 %v3886_v26, %v3885_v46 }
 0x7a6   : > { %v3085_v23 = vpop.permute.xlu0 %3084  ;;  %v3181_v7 = vpop.permute.xlu1 %3180 }
 0x7a7   : > { %v3566_v40 = vsel %vm1615_vm8, %v3534_v25, %v3085_v23  ;;  %v9008_v53 = vpop.f32.mrf.mxu1  ;;  %v9022_v11 = vpop.f32.mrf.mxu3  ;;  %v3987_v23 = vadd.f32 %v3986_v28, %v3985_v19  ;;  %v3990_v25 = vsel %vm279_vm0, %v3955_v55, 0.0 }
 0x7a8   : > { %v3598_v38 = vsel %vm1648_vm10, %v3566_v40, %v3181_v7  ;;  %v3890_v7 = vsel %vm279_vm0, %v9000_v52, 0.0  ;;  %v3957_v40 = vmul.f32 %v9004_v3, %v9004_v3  ;;  %v3958_v6 = vmul.f32 %v9008_v53, %v9008_v53 }
 0x7a9   : > { %v3630_v13 = vsel %vm1681_vm12, %v3598_v38, %v3277_v58  ;;  %v3989_v38 = vadd.f32 %v3988_v30, %v3987_v23  ;;  %v3894_v15 = vsel %vm279_vm0, %v9008_v53, 0.0 }
 0x7aa   : > { %v3994_v48 = vsel %vm279_vm0, %v3957_v40, 0.0 }
 0x7ae   : > { %v3373_v60 = vpop.permute.xlu0 %3372  ;;  %v3087_v54 = vpop.permute.xlu1 %3086 }
 0x7af   : > { %v3662_v24 = vsel %vm1714_vm11, %v3630_v13, %v3373_v60  ;;  %v3567_v14 = vsel %vm1615_vm8, %v3535_v5, %v3087_v54  ;;  %v9012_v21 = vpop.f32.mrf.mxu1  ;;  %v9034_v2 = vpop.f32.mrf.mxu3  ;;  %v3889_v13 = vadd.f32 %v3888_v45, %v3887_v37  ;;  %v3992_v60 = vsel %vm279_vm0, %v3956_v0, 0.0 }
 0x7b0   : > { %4395 = vmatmul.msk.f32.gmra.mxu3 %vm1752_vm13, %v3662_v24  ;;  %v3599_v27 = vsel %vm1648_vm10, %v3567_v14, %v3183_v34  ;;  %v3991_v54 = vadd.f32 %v3990_v25, %v3989_v38  ;;  %v3959_v17 = vmul.f32 %v9012_v21, %v9012_v21  ;;  %v3996_v14 = vsel %vm279_vm0, %v3958_v6, 0.0 }
 0x7b1   : > { %v3891_v24 = vadd.f32 %v3890_v7, %v3889_v13  ;;  %v3896_v34 = vsel %vm279_vm0, %v9012_v21, 0.0 }
 0x7b2   : > { %v3993_v44 = vadd.f32 %v3992_v60, %v3991_v54 }
 0x7b3   : > { %v3893_v31 = vadd.f32 %v3892_v33, %v3891_v24 }
 0x7b6   : > { %v3279_v4 = vpop.permute.xlu0 %3278  ;;  %v3375_v43 = vpop.permute.xlu1 %3374 }
 0x7b7   : > { %v3631_v42 = vsel %vm1681_vm12, %v3599_v27, %v3279_v4  ;;  %v9016_v39 = vpop.f32.mrf.mxu1  ;;  %v9061_v58 = vpop.f32.mrf.mxu3  ;;  %v3995_v4 = vadd.f32 %v3994_v48, %v3993_v44 }
 0x7b8   : > { %v3663_v1 = vsel %vm1714_vm11, %v3631_v42, %v3375_v43  ;;  %v3960_v27 = vmul.f32 %v9016_v39, %v9016_v39  ;;  %v3895_v42 = vadd.f32 %v3894_v15, %v3893_v31  ;;  %v3998_v43 = vsel %vm279_vm0, %v3959_v17, 0.0 }
 0x7b9   : > { %4396 = vmatmul.msk.f32.gmra.mxu3 %vm1752_vm13, %v3663_v1  ;;  %v3898_v1 = vsel %vm279_vm0, %v9016_v39, 0.0  ;;  %v3997_v9 = vadd.f32 %v3996_v14, %v3995_v4  ;;  %v3967_v31 = vmul.f32 %v9002_v56, %v9002_v56 }
 0x7ba   : > { %v3897_v20 = vadd.f32 %v3896_v34, %v3895_v42  ;;  %v4000_v47 = vsel %vm279_vm0, %v3960_v27, 0.0  ;;  %v3912_v42 = vsel %vm279_vm0, %v9002_v56, 0.0 }
 0x7bb   : > { %v3999_v12 = vadd.f32 %v3998_v43, %v3997_v9  ;;  %v3968_v43 = vmul.f32 %v9006_v18, %v9006_v18 }
 0x7bc   : > { %v3899_v22 = vadd.f32 %v3898_v1, %v3897_v20 }
 0x7bd   : > { %v4001_v55 = vadd.f32 %v4000_v47, %v3999_v12  ;;  %v4014_v47 = vsel %vm279_vm0, %v3967_v31, 0.0  ;;  %v3924_v31 = vsel %vm279_vm0, %v9034_v2, 0.0 }
 0x7bf   : > { %v9020_v49 = vpop.f32.mrf.mxu1 }
 0x7c0   : > { %v3961_v29 = vmul.f32 %v9020_v49, %v9020_v49  ;;  %v3900_v57 = vsel %vm279_vm0, %v9020_v49, 0.0 }
 0x7c1   : > { %v3901_v19 = vadd.f32 %v3900_v57, %v3899_v22  ;;  %v3914_v57 = vsel %vm279_vm0, %v9006_v18, 0.0 }
 0x7c2   : > { %v4002_v32 = vsel %vm279_vm0, %v3961_v29, 0.0 }
 0x7c3   : > { %v4003_v23 = vadd.f32 %v4002_v32, %v4001_v55  ;;  %v4016_v32 = vsel %vm279_vm0, %v3968_v43, 0.0  ;;  %v3926_v43 = vsel %vm279_vm0, %v9061_v58, 0.0 }
 0x7c4   : > { %v9085_v16 = vpop.f32.mrf.mxu3 }
 0x7c7   : > { %v9024_v50 = vpop.f32.mrf.mxu1 }
 0x7c8   : > { %v3962_v41 = vmul.f32 %v9024_v50, %v9024_v50  ;;  %v3902_v28 = vsel %vm279_vm0, %v9024_v50, 0.0 }
 0x7c9   : > { %v3903_v37 = vadd.f32 %v3902_v28, %v3901_v19  ;;  %v3916_v28 = vsel %vm279_vm0, %v9010_v51, 0.0 }
 0x7ca   : > { %v4004_v30 = vsel %vm279_vm0, %v3962_v41, 0.0  ;;  %v3969_v41 = vmul.f32 %v9010_v51, %v9010_v51 }
 0x7cb   : > { %v4005_v13 = vadd.f32 %v4004_v30, %v4003_v23 }
 0x7cc   : > { %v4018_v30 = vsel %vm279_vm0, %v3969_v41, 0.0  ;;  %v3928_v41 = vsel %vm279_vm0, %v9085_v16, 0.0 }
 0x7cf   : > { %v9049_v59 = vpop.f32.mrf.mxu1 }
 0x7d0   : > { %v3963_v26 = vmul.f32 %v9049_v59, %v9049_v59  ;;  %v3904_v45 = vsel %vm279_vm0, %v9049_v59, 0.0 }
 0x7d1   : > { %v3905_v60 = vadd.f32 %v3904_v45, %v3903_v37  ;;  %v3918_v45 = vsel %vm279_vm0, %v9014_v10, 0.0 }
 0x7d2   : > { %v4006_v25 = vsel %vm279_vm0, %v3963_v26, 0.0  ;;  %v3970_v26 = vmul.f32 %v9014_v10, %v9014_v10 }
 0x7d3   : > { %v4007_v54 = vadd.f32 %v4006_v25, %v4005_v13 }
 0x7d4   : > { %v4020_v25 = vsel %vm279_vm0, %v3970_v26, 0.0 }
 0x7dc   : > { %v9105_v7 = vpop.f32.mrf.mxu3 }
 0x7dd   : > { %v3930_v26 = vsel %vm279_vm0, %v9105_v7, 0.0 }
 0x7e5   : > { %v9073_v5 = vpop.f32.mrf.mxu1 }
 0x7e6   : > { %v3964_v0 = vmul.f32 %v9073_v5, %v9073_v5  ;;  %v3906_v40 = vsel %vm279_vm0, %v9073_v5, 0.0 }
 0x7e7   : > { %v3907_v24 = vadd.f32 %v3906_v40, %v3905_v60  ;;  %v3920_v40 = vsel %vm279_vm0, %v9018_v61, 0.0 }
 0x7e8   : > { %v4008_v33 = vsel %vm279_vm0, %v3964_v0, 0.0  ;;  %v3971_v0 = vmul.f32 %v9018_v61, %v9018_v61 }
 0x7e9   : > { %v4009_v15 = vadd.f32 %v4008_v33, %v4007_v54  ;;  %v3922_v54 = vsel %vm279_vm0, %v9022_v11, 0.0 }
 0x7f3   : > { %v9127_v1 = vpop.f32.mrf.mxu3 }
 0x7fd   : > { %v9097_v46 = vpop.f32.mrf.mxu1 }
 0x7fe   : > { %v3965_v38 = vmul.f32 %v9097_v46, %v9097_v46  ;;  %v3908_v6 = vsel %vm279_vm0, %v9097_v46, 0.0 }
 0x7ff   : > { %v3909_v17 = vadd.f32 %v3908_v6, %v3907_v24  ;;  %v4022_v6 = vsel %vm279_vm0, %v3971_v0, 0.0  ;;  %v3973_v24 = vmul.f32 %v9034_v2, %v9034_v2 }
 0x800   : > { %v4010_v48 = vsel %vm279_vm0, %v3965_v38, 0.0  ;;  %v3972_v38 = vmul.f32 %v9022_v11, %v9022_v11 }
 0x801   : > { %v4011_v27 = vadd.f32 %v4010_v48, %v4009_v15 }
 0x804   : > { %v9150_v13 = vpop.f32.mrf.mxu3 }
 0x80e   : > { %v9115_v44 = vpop.f32.mrf.mxu1 }
 0x80f   : > { %v3910_v14 = vsel %vm279_vm0, %v9115_v44, 0.0  ;;  %v3966_v34 = vmul.f32 %v9115_v44, %v9115_v44 }
 0x810   : > { %v3911_v4 = vadd.f32 %v3910_v14, %v3909_v17  ;;  %v4024_v17 = vsel %vm279_vm0, %v3972_v38, 0.0 }
 0x811   : > { %v4012_v29 = vsel %vm279_vm0, %v3966_v34, 0.0 }
 0x812   : > { %v3913_v9 = vadd.f32 %v3912_v42, %v3911_v4  ;;  %v4013_v20 = vadd.f32 %v4012_v29, %v4011_v27  ;;  %v4026_v27 = vsel %vm279_vm0, %v3973_v24, 0.0  ;;  %v3974_v4 = vmul.f32 %v9061_v58, %v9061_v58 }
 0x814   : > { %v3915_v12 = vadd.f32 %v3914_v57, %v3913_v9  ;;  %v4015_v22 = vadd.f32 %v4014_v47, %v4013_v20  ;;  %v4028_v20 = vsel %vm279_vm0, %v3974_v4, 0.0  ;;  %v3975_v47 = vmul.f32 %v9085_v16, %v9085_v16 }
 0x816   : > { %v3917_v55 = vadd.f32 %v3916_v28, %v3915_v12  ;;  %v4017_v19 = vadd.f32 %v4016_v32, %v4015_v22  ;;  %v4030_v22 = vsel %vm279_vm0, %v3975_v47, 0.0  ;;  %v3976_v32 = vmul.f32 %v9105_v7, %v9105_v7 }
 0x818   : > { %v3919_v23 = vadd.f32 %v3918_v45, %v3917_v55  ;;  %v4019_v37 = vadd.f32 %v4018_v30, %v4017_v19  ;;  %v4032_v19 = vsel %vm279_vm0, %v3976_v32, 0.0  ;;  %v3977_v30 = vmul.f32 %v9127_v1, %v9127_v1 }
 0x81a   : > { %v3921_v60 = vadd.f32 %v3920_v40, %v3919_v23  ;;  %v4021_v33 = vadd.f32 %v4020_v25, %v4019_v37  ;;  %v3932_v23 = vsel %vm279_vm0, %v9127_v1, 0.0  ;;  %v4034_v25 = vsel %vm279_vm0, %v3977_v30, 0.0 }
 0x81b   : > { %v3978_v40 = vmul.f32 %v9150_v13, %v9150_v13 }
 0x81c   : > { %v3923_v48 = vadd.f32 %v3922_v54, %v3921_v60  ;;  %v4023_v15 = vadd.f32 %v4022_v6, %v4021_v33  ;;  %v9165_v29 = vpop.f32.mrf.mxu3  ;;  %v3934_v60 = vsel %vm279_vm0, %v9150_v13, 0.0 }
 0x81d   : > { %v4036_v6 = vsel %vm279_vm0, %v3978_v40, 0.0  ;;  %v3979_v54 = vmul.f32 %v9165_v29, %v9165_v29 }
 0x81e   : > { %v4025_v14 = vadd.f32 %v4024_v17, %v4023_v15  ;;  %v3925_v34 = vadd.f32 %v3924_v31, %v3923_v48  ;;  %v3936_v15 = vsel %vm279_vm0, %v9165_v29, 0.0 }
 0x81f   : > { %v4038_v31 = vsel %vm279_vm0, %v3979_v54, 0.0 }
 0x820   : > { %v4027_v42 = vadd.f32 %v4026_v27, %v4025_v14  ;;  %v3927_v9 = vadd.f32 %v3926_v43, %v3925_v34 }
 0x822   : > { %v4029_v57 = vadd.f32 %v4028_v20, %v4027_v42  ;;  %v3929_v12 = vadd.f32 %v3928_v41, %v3927_v9 }
 0x824   : > { %v4031_v28 = vadd.f32 %v4030_v22, %v4029_v57  ;;  %v3931_v55 = vadd.f32 %v3930_v26, %v3929_v12 }
 0x825   : > { %v9180_v45 = vpop.f32.mrf.mxu3 }
 0x826   : > { %v4033_v0 = vadd.f32 %v4032_v19, %v4031_v28  ;;  %v3933_v37 = vadd.f32 %v3932_v23, %v3931_v55  ;;  %v3980_v14 = vmul.f32 %v9180_v45, %v9180_v45  ;;  %v3938_v4 = vsel %vm279_vm0, %v9180_v45, 0.0 }
 0x828   : > { %v4035_v38 = vadd.f32 %v4034_v25, %v4033_v0  ;;  %v3935_v33 = vadd.f32 %v3934_v60, %v3933_v37  ;;  %v4040_v9 = vsel %vm279_vm0, %v3980_v14, 0.0 }
 0x82a   : > { %v4037_v48 = vadd.f32 %v4036_v6, %v4035_v38  ;;  %v3937_v17 = vadd.f32 %v3936_v15, %v3935_v33 }
 0x82c   : > { %v4039_v27 = vadd.f32 %v4038_v31, %v4037_v48  ;;  %v3939_v43 = vadd.f32 %v3938_v4, %v3937_v17 }
 0x82e   : > { %v4041_v47 = vadd.f32 %v4040_v9, %v4039_v27 }
 0x833   : > { %v9192_v24 = vpop.f32.mrf.mxu3 }
 0x834   : > { %v3981_v34 = vmul.f32 %v9192_v24, %v9192_v24  ;;  %v3940_v42 = vsel %vm279_vm0, %v9192_v24, 0.0 }
 0x835   : > { %v3941_v57 = vadd.f32 %v3940_v42, %v3939_v43 }
 0x836   : > { %v4042_v20 = vsel %vm279_vm0, %v3981_v34, 0.0 }
 0x837   : > { %v4043_v32 = vadd.f32 %v4042_v20, %v4041_v47 }
 0x83c   : > { %v9207_v41 = vpop.f32.mrf.mxu3 }
 0x83d   : > { %v3942_v12 = vsel %vm279_vm0, %v9207_v41, 0.0  ;;  %v3982_v22 = vmul.f32 %v9207_v41, %v9207_v41 }
 0x83e   : > { %v3943_v28 = vadd.f32 %v3942_v12, %v3941_v57 }
 0x83f   : > { %v4044_v26 = vsel %vm279_vm0, %v3982_v22, 0.0 }
 0x840   : > { %v3944_v55 = vrot.slane %v3943_v28, 4  ;;  %v4045_v19 = vadd.f32 %v4044_v26, %v4043_v32 }
 0x842   : > { %v3945_v30 = vadd.f32 %v3944_v55, %v3943_v28  ;;  %v4046_v0 = vrot.slane %v4045_v19, 4 }
 0x844   : > { %v3946_v23 = vrot.slane %v3945_v30, 2  ;;  %v4047_v37 = vadd.f32 %v4046_v0, %v4045_v19 }
 0x846   : > { %v3947_v25 = vadd.f32 %v3946_v23, %v3945_v30  ;;  %v4048_v40 = vrot.slane %v4047_v37, 2 }
 0x848   : > { %v3948_v38 = vrot.slane %v3947_v25, 1  ;;  %v4049_v60 = vadd.f32 %v4048_v40, %v4047_v37 }
 0x84a   : > { %v3949_v33 = vadd.f32 %v3948_v38, %v3947_v25  ;;  %v4050_v6 = vrot.slane %v4049_v60, 1 }
 0x84c   : > { %v9214_v54 = vmul.f32 0.00390625, %v3949_v33  ;;  %v4051_v48 = vadd.f32 %v4050_v6, %v4049_v60 }
 0x84e   : > { %v4052_v15 = vmul.f32 0.00390625, %v4051_v48  ;;  %v4053_v17 = vmul.f32 %v9214_v54, %v9214_v54  ;;  %v4056_v47 = vsub.f32 %v8939_v63, %v9214_v54  ;;  %v4057_v57 = vsub.f32 %v8957_v36, %v9214_v54 }
 0x84f   : > { %v4058_v12 = vsub.f32 %v8973_v8, %v9214_v54  ;;  %v4059_v22 = vsub.f32 %v8979_v35, %v9214_v54  ;;  %v4060_v32 = vsub.f32 %v8994_v62, %v9214_v54  ;;  %v4061_v28 = vsub.f32 %v9000_v52, %v9214_v54 }
 0x850   : > { %v4054_v31 = vsub.f32 %v4052_v15, %v4053_v17  ;;  %v4062_v63 = vsub.f32 %v9004_v3, %v9214_v54  ;;  %v4063_v26 = vsub.f32 %v9008_v53, %v9214_v54  ;;  %v4064_v8 = vsub.f32 %v9012_v21, %v9214_v54  ;;  %v9290_v15 = vld [vmem:[%s9544_s6] ss:$0 sm:$0xff] }
 0x851   : > { %v4065_v35 = vsub.f32 %v9016_v39, %v9214_v54  ;;  %v4066_v62 = vsub.f32 %v9020_v49, %v9214_v54  ;;  %v4067_v52 = vsub.f32 %v9024_v50, %v9214_v54  ;;  %v4068_v3 = vsub.f32 %v9049_v59, %v9214_v54  ;;  %v9260_v59 = vld [vmem:[%s9543_s5] ss:$0 sm:$0xff] }
 0x852   : > { %v4055_v14 = vmax.f32 %v4054_v31, 0.0  ;;  %v4069_v53 = vsub.f32 %v9073_v5, %v9214_v54  ;;  %v4070_v55 = vsub.f32 %v9097_v46, %v9214_v54  ;;  %v4071_v21 = vsub.f32 %v9115_v44, %v9214_v54 }
 0x853   : > { %v4072_v39 = vsub.f32 %v9002_v56, %v9214_v54  ;;  %v4073_v5 = vsub.f32 %v9006_v18, %v9214_v54  ;;  %v4074_v46 = vsub.f32 %v9010_v51, %v9214_v54  ;;  %v4075_v56 = vsub.f32 %v9014_v10, %v9214_v54 }
 0x854   : > { %v4088_v34 = vadd.f32 1e-05, %v4055_v14  ;;  %v4076_v30 = vsub.f32 %v9018_v61, %v9214_v54  ;;  %v4077_v0 = vsub.f32 %v9022_v11, %v9214_v54  ;;  %v4078_v23 = vsub.f32 %v9034_v2, %v9214_v54 }
 0x855   : > { %v4079_v18 = vsub.f32 %v9061_v58, %v9214_v54  ;;  %v4080_v25 = vsub.f32 %v9085_v16, %v9214_v54  ;;  %v4081_v40 = vsub.f32 %v9105_v7, %v9214_v54  ;;  %v4082_v17 = vsub.f32 %v9127_v1, %v9214_v54 }
 0x856   : > { %4434 = vrsqrt.f32 %v4088_v34  ;;  %vm4095_vm3 = vweird.f32 %v4088_v34  ;;  %v4083_v31 = vsub.f32 %v9150_v13, %v9214_v54 }
 0x85c   : > { %v4435_v27 = vpop.eup %4434 }
 0x85d   : > { %v4090_v4 = vmul.f32 %v4435_v27, %v4088_v34  ;;  %vm4096_vm2 = vweird.f32 %v4435_v27 }
 0x85e   : > { %vm4097_vm4 = vmor %vm4095_vm3, %vm4096_vm2 }
 0x85f   : > { %v4091_v42 = vmul.f32 %v4435_v27, %v4090_v4  ;;  %v4085_v4 = vsub.f32 %v9180_v45, %v9214_v54 }
 0x861   : > { %v4092_v43 = vmul.f32 0.5, %v4091_v42 }
 0x863   : > { %v4093_v9 = vsub.f32 1.5, %v4092_v43 }
 0x865   : > { %v4094_v20 = vmul.f32 %v4435_v27, %v4093_v9  ;;  %v4086_v9 = vsub.f32 %v9192_v24, %v9214_v54 }
 0x867   : > { %v9234_v36 = vsel %vm4097_vm4, %v4435_v27, %v4094_v20  ;;  %v4084_v27 = vsub.f32 %v9165_v29, %v9214_v54 }
 0x868   : > { %v4099_v49 = vmul.f32 %v9234_v36, %v4056_v47  ;;  %v4100_v19 = vmul.f32 %v9234_v36, %v4057_v57  ;;  %v4101_v50 = vmul.f32 %v9234_v36, %v4058_v12  ;;  %v4102_v44 = vmul.f32 %v9234_v36, %v4059_v22 }
 0x869   : > { %v4103_v37 = vmul.f32 %v9234_v36, %v4060_v32  ;;  %v4104_v38 = vmul.f32 %v9234_v36, %v4061_v28  ;;  %v4105_v60 = vmul.f32 %v9234_v36, %v4062_v63  ;;  %v4106_v14 = vmul.f32 %v9234_v36, %v4063_v26 }
 0x86a   : > { %v4135_v33 = vmul.f32 %v9260_v59, %v4099_v49  ;;  %v4136_v6 = vmul.f32 %v9260_v59, %v4100_v19  ;;  %v4137_v48 = vmul.f32 %v9260_v59, %v4101_v50  ;;  %v4138_v34 = vmul.f32 %v9260_v59, %v4102_v44 }
 0x86b   : > { %v4107_v42 = vmul.f32 %v9234_v36, %v4064_v8  ;;  %v4139_v43 = vmul.f32 %v9260_v59, %v4103_v37  ;;  %v4108_v20 = vmul.f32 %v9234_v36, %v4065_v35  ;;  %v4109_v47 = vmul.f32 %v9234_v36, %v4066_v62 }
 0x86c   : > { %v4140_v57 = vmul.f32 %v9260_v59, %v4104_v38  ;;  %v4141_v12 = vmul.f32 %v9260_v59, %v4105_v60  ;;  %v4171_v22 = vadd.f32 %v9290_v15, %v4135_v33  ;;  %v4172_v32 = vadd.f32 %v9290_v15, %v4136_v6  ;;  %v10544_v38 = vld [vmem:[#allocation6_spill] sm:$0xff]  ;;  %v10545_v33 = vld [vmem:[#allocation7_spill] sm:$0xff] }
 0x86d   : > { %v4173_v28 = vadd.f32 %v9290_v15, %v4137_v48  ;;  %v4087_v63 = vsub.f32 %v9207_v41, %v9214_v54  ;;  %v4110_v26 = vmul.f32 %v9234_v36, %v4067_v52  ;;  %v4142_v8 = vmul.f32 %v9260_v59, %v4106_v14  ;;  %v10546_v48 = vld [vmem:[#allocation4_spill] sm:$0xff] }
 0x86e   : > { %v4174_v35 = vadd.f32 %v9290_v15, %v4138_v34  ;;  %v4111_v62 = vmul.f32 %v9234_v36, %v4068_v3  ;;  %v4112_v49 = vmul.f32 %v9234_v36, %v4069_v53  ;;  %v4143_v19 = vmul.f32 %v9260_v59, %v4107_v42 }
 0x86f   : > { %v4175_v50 = vadd.f32 %v9290_v15, %v4139_v43  ;;  %v4113_v52 = vmul.f32 %v9234_v36, %v4070_v55  ;;  %v4144_v44 = vmul.f32 %v9260_v59, %v4108_v20  ;;  %v4145_v37 = vmul.f32 %v9260_v59, %v4109_v47  ;;  %v10547_v43 = vld [vmem:[#allocation5_spill] sm:$0xff] }
 0x870   : > { %v4176_v3 = vadd.f32 %v9290_v15, %v4140_v57  ;;  %v4177_v53 = vadd.f32 %v9290_v15, %v4141_v12  ;;  %v4203_v60 = vadd.f32 %v4171_v22, %v10544_v38  ;;  %v4204_v6 = vadd.f32 %v4172_v32, %v10545_v33  ;;  %v10548_v22 = vld [vmem:[#allocation8_spill] sm:$0xff]  ;;  %v10553_v33 = vld [vmem:[#allocation13_spill] sm:$0xff] }
 0x871   : > { %v4205_v14 = vadd.f32 %v4173_v28, %v10546_v48  ;;  %v4114_v34 = vmul.f32 %v9234_v36, %v4071_v21  ;;  %v4146_v55 = vmul.f32 %v9260_v59, %v4110_v26  ;;  %v4178_v42 = vadd.f32 %v9290_v15, %v4142_v8  ;;  %v10549_v26 = vld [vmem:[#allocation9_spill] sm:$0xff] }
 0x872   : > { %v4206_v20 = vadd.f32 %v4174_v35, %v10547_v43  ;;  %v4115_v47 = vmul.f32 %v9234_v36, %v4072_v39  ;;  %v4147_v57 = vmul.f32 %v9260_v59, %v4111_v62  ;;  %v4179_v12 = vadd.f32 %v9290_v15, %v4143_v19  ;;  %4235 = vst.msk [vmem:[%s9327_s28] sm:$0xff] %vm279_vm0, %v4203_v60  ;;  %v10550_v19 = vld [vmem:[#allocation10_spill] sm:$0xff] }
 0x873   : > { %v4207_v38 = vadd.f32 %v4175_v50, %v10548_v22  ;;  %v4116_v21 = vmul.f32 %v9234_v36, %v4073_v5  ;;  %v4148_v32 = vmul.f32 %v9260_v59, %v4112_v49  ;;  %v4180_v28 = vadd.f32 %v9290_v15, %v4144_v44  ;;  %4236 = vst.msk [vmem:[%s9327_s28 + $0x8] sm:$0xff] %vm279_vm0, %v4204_v6  ;;  %v10551_v44 = vld [vmem:[#allocation11_spill] sm:$0xff]  ;;  %v10557_v22 = vld [vmem:[#allocation17_spill] sm:$0xff] }
 0x874   : > { %v4208_v8 = vadd.f32 %v4176_v3, %v10549_v26  ;;  %v4117_v39 = vmul.f32 %v9234_v36, %v4074_v46  ;;  %v4149_v35 = vmul.f32 %v9260_v59, %v4113_v52  ;;  %v4181_v62 = vadd.f32 %v9290_v15, %v4145_v37  ;;  %4237 = vst.msk [vmem:[%s9327_s28 + $0x10] sm:$0xff] %vm279_vm0, %v4205_v14  ;;  %v10552_v3 = vld [vmem:[#allocation12_spill] sm:$0xff]  ;;  %v10554_v14 = vld [vmem:[#allocation14_spill] sm:$0xff] }
 0x875   : > { %v4209_v5 = vadd.f32 %v4177_v53, %v10550_v19  ;;  %v4118_v49 = vmul.f32 %v9234_v36, %v4075_v56  ;;  %v4150_v50 = vmul.f32 %v9260_v59, %v4114_v34  ;;  %v4182_v51 = vadd.f32 %v9290_v15, %v4146_v55  ;;  %4238 = vst.msk [vmem:[%s9327_s28 + $0x18] sm:$0xff] %vm279_vm0, %v4206_v20 }
 0x876   : > { %v4210_v46 = vadd.f32 %v4178_v42, %v10551_v44  ;;  %v4119_v52 = vmul.f32 %v9234_v36, %v4076_v30  ;;  %v4151_v37 = vmul.f32 %v9260_v59, %v4115_v47  ;;  %v4183_v10 = vadd.f32 %v9290_v15, %v4147_v57  ;;  %4239 = vst.msk [vmem:[%s9327_s28 + $0x20] sm:$0xff] %vm279_vm0, %v4207_v38  ;;  %v10555_v42 = vld [vmem:[#allocation15_spill] sm:$0xff]  ;;  %v10556_v47 = vld [vmem:[#allocation16_spill] sm:$0xff] }
 0x877   : > { %v4211_v56 = vadd.f32 %v4179_v12, %v10552_v3  ;;  %v4120_v53 = vmul.f32 %v9234_v36, %v4077_v0  ;;  %v4152_v60 = vmul.f32 %v9260_v59, %v4116_v21  ;;  %v4184_v61 = vadd.f32 %v9290_v15, %v4148_v32  ;;  %4240 = vst.msk [vmem:[%s9327_s28 + $0x28] sm:$0xff] %vm279_vm0, %v4208_v8  ;;  %v10558_v32 = vld [vmem:[#allocation18_spill] sm:$0xff]  ;;  %v10559_v8 = vld [vmem:[#allocation19_spill] sm:$0xff] }
 0x878   : > { %v4212_v30 = vadd.f32 %v4180_v28, %v10553_v33  ;;  %v4121_v6 = vmul.f32 %v9234_v36, %v4078_v23  ;;  %v4153_v48 = vmul.f32 %v9260_v59, %v4117_v39  ;;  %v4185_v11 = vadd.f32 %v9290_v15, %v4149_v35  ;;  %4241 = vst.msk [vmem:[%s9327_s28 + $0x30] sm:$0xff] %vm279_vm0, %v4209_v5  ;;  %v10566_v33 = vld [vmem:[#allocation29_spill] sm:$0xff] }
 0x879   : > { %v4213_v0 = vadd.f32 %v4181_v62, %v10554_v14  ;;  %v4122_v34 = vmul.f32 %v9234_v36, %v4079_v18  ;;  %v4154_v55 = vmul.f32 %v9260_v59, %v4118_v49  ;;  %v4186_v2 = vadd.f32 %v9290_v15, %v4150_v50  ;;  %4242 = vst.msk [vmem:[%s9327_s28 + $0x38] sm:$0xff] %vm279_vm0, %v4210_v46  ;;  %v10560_v62 = vld [vmem:[#allocation20_spill] sm:$0xff]  ;;  %v10561_v49 = vld [vmem:[#allocation21_spill] sm:$0xff] }
 0x87a   : > { %v4214_v23 = vadd.f32 %v4182_v51, %v10555_v42  ;;  %v4123_v43 = vmul.f32 %v9234_v36, %v4080_v25  ;;  %v4155_v20 = vmul.f32 %v9260_v59, %v4119_v52  ;;  %v4187_v58 = vadd.f32 %v9290_v15, %v4151_v37  ;;  %4243 = vst.msk [vmem:[%s9327_s28 + $0x40] sm:$0xff] %vm279_vm0, %v4211_v56  ;;  %v10564_v56 = vld [vmem:[#allocation25_spill] sm:$0xff]  ;;  %v10569_v42 = vld [vmem:[#allocation32_spill] sm:$0xff] }
 0x87b   : > { %v4215_v18 = vadd.f32 %v4183_v10, %v10556_v47  ;;  %v4124_v57 = vmul.f32 %v9234_v36, %v4081_v40  ;;  %v4156_v12 = vmul.f32 %v9260_v59, %v4120_v53  ;;  %v4188_v16 = vadd.f32 %v9290_v15, %v4152_v60  ;;  %4244 = vst.msk [vmem:[%s9327_s28 + $0x48] sm:$0xff] %vm279_vm0, %v4212_v30  ;;  %v10571_v47 = vld [vmem:[#allocation36_spill] sm:$0xff] }
 0x87c   : > { %v4216_v25 = vadd.f32 %v4184_v61, %v10557_v22  ;;  %v4125_v38 = vmul.f32 %v9234_v36, %v4082_v17  ;;  %v4157_v21 = vmul.f32 %v9260_v59, %v4121_v6  ;;  %v4189_v7 = vadd.f32 %v9290_v15, %v4153_v48  ;;  %4245 = vst.msk [vmem:[%s9327_s28 + $0x50] sm:$0xff] %vm279_vm0, %v4213_v0 }
 0x87d   : > { %v4217_v40 = vadd.f32 %v4185_v11, %v10558_v32  ;;  %v4126_v28 = vmul.f32 %v9234_v36, %v4083_v31  ;;  %v4158_v26 = vmul.f32 %v9260_v59, %v4122_v34  ;;  %v4190_v1 = vadd.f32 %v9290_v15, %v4154_v55  ;;  %4246 = vst.msk [vmem:[%s9327_s28 + $0x58] sm:$0xff] %vm279_vm0, %v4214_v23  ;;  %v10567_v11 = vld [vmem:[#allocation30_spill] sm:$0xff]  ;;  %v10568_v34 = vld [vmem:[#allocation31_spill] sm:$0xff] }
 0x87e   : > { %v4218_v17 = vadd.f32 %v4186_v2, %v10559_v8  ;;  %v4127_v39 = vmul.f32 %v9234_v36, %v4084_v27  ;;  %v4159_v35 = vmul.f32 %v9260_v59, %v4123_v43  ;;  %v4191_v13 = vadd.f32 %v9290_v15, %v4155_v20  ;;  %4247 = vst.msk [vmem:[%s9327_s28 + $0x60] sm:$0xff] %vm279_vm0, %v4215_v18  ;;  %v10570_v43 = vld [vmem:[#allocation35_spill] sm:$0xff] }
 0x87f   : > { %v4219_v31 = vadd.f32 %v4187_v58, %v10560_v62  ;;  %v4128_v19 = vmul.f32 %v9234_v36, %v4085_v4  ;;  %v4160_v5 = vmul.f32 %v9260_v59, %v4124_v57  ;;  %v4192_v29 = vadd.f32 %v9290_v15, %v4156_v12  ;;  %4248 = vst.msk [vmem:[%s9327_s28 + $0x68] sm:$0xff] %vm279_vm0, %v4216_v25  ;;  %v10562_v4 = vld [vmem:[#allocation22_spill] sm:$0xff]  ;;  %v10572_v57 = vld [vmem:[#allocation40_spill] sm:$0xff] }
 0x880   : > { %v4220_v27 = vadd.f32 %v4188_v16, %v10561_v49  ;;  %v4129_v50 = vmul.f32 %v9234_v36, %v4086_v9  ;;  %v4161_v51 = vmul.f32 %v9260_v59, %v4125_v38  ;;  %v4193_v45 = vadd.f32 %v9290_v15, %v4157_v21  ;;  %4249 = vst.msk [vmem:[%s9327_s28 + $0x70] sm:$0xff] %vm279_vm0, %v4217_v40  ;;  %v10563_v9 = vld [vmem:[#allocation23_spill] sm:$0xff]  ;;  %v10573_v16 = vld [vmem:[#allocation41_spill] sm:$0xff]  ;;  %v10574_v25 = vld [vmem:[#allocation120_spill] sm:$0xff] }
 0x881   : > { %v4221_v44 = vadd.f32 %v4189_v7, %v10562_v4  ;;  %v4130_v46 = vmul.f32 %v9234_v36, %v4087_v63  ;;  %v4162_v52 = vmul.f32 %v9260_v59, %v4126_v28  ;;  %v4194_v24 = vadd.f32 %v9290_v15, %v4158_v26  ;;  %4250 = vst.msk [vmem:[%s9327_s28 + $0x78] sm:$0xff] %vm279_vm0, %v4218_v17  ;;  %v10565_v36 = vld [vmem:[#allocation27_spill] sm:$0xff]  ;;  %v10575_v21 = vld [vmem:[#allocation121_spill] sm:$0xff] }
 0x882   : > { %v4222_v37 = vadd.f32 %v4190_v1, %v10563_v9  ;;  %v4163_v10 = vmul.f32 %v9260_v59, %v4127_v39  ;;  %v4195_v3 = vadd.f32 %v9290_v15, %v4159_v35  ;;  %v4223_v53 = vadd.f32 %v4191_v13, %v10564_v56  ;;  %4251 = vst.msk [vmem:[%s9327_s28 + $0x80] sm:$0xff] %vm279_vm0, %v4219_v31 }
 0x883   : > { %v4164_v41 = vmul.f32 %v9260_v59, %v4128_v19  ;;  %v4196_v54 = vadd.f32 %v9290_v15, %v4160_v5  ;;  %v4224_v63 = vadd.f32 %v4192_v29, %v10565_v36  ;;  %4252 = vst.msk [vmem:[%s9327_s28 + $0x88] sm:$0xff] %vm279_vm0, %v4220_v27  ;;  %v4165_v60 = vmul.f32 %v9260_v59, %v4129_v50 }
 0x884   : > { %v4197_v61 = vadd.f32 %v9290_v15, %v4161_v51  ;;  %v4225_v30 = vadd.f32 %v4193_v45, %v10566_v33  ;;  %4253 = vst.msk [vmem:[%s9327_s28 + $0x90] sm:$0xff] %vm279_vm0, %v4221_v44  ;;  %v4166_v6 = vmul.f32 %v9260_v59, %v4130_v46  ;;  %v4198_v48 = vadd.f32 %v9290_v15, %v4162_v52 }
 0x885   : > { %v4226_v14 = vadd.f32 %v4194_v24, %v10567_v11  ;;  %4254 = vst.msk [vmem:[%s9327_s28 + $0x98] sm:$0xff] %vm279_vm0, %v4222_v37  ;;  %v4199_v0 = vadd.f32 %v9290_v15, %v4163_v10  ;;  %v4227_v55 = vadd.f32 %v4195_v3, %v10568_v34  ;;  %v4200_v2 = vadd.f32 %v9290_v15, %v4164_v41 }
 0x886   : > { %4255 = vst.msk [vmem:[%s9327_s28 + $0xa0] sm:$0xff] %vm279_vm0, %v4223_v53  ;;  %v4228_v59 = vadd.f32 %v4196_v54, %v10569_v42  ;;  %v4201_v23 = vadd.f32 %v9290_v15, %v4165_v60  ;;  %v4229_v20 = vadd.f32 %v4197_v61, %v10570_v43  ;;  %v4202_v58 = vadd.f32 %v9290_v15, %v4166_v6 }
 0x887   : > { %4256 = vst.msk [vmem:[%s9327_s28 + $0xa8] sm:$0xff] %vm279_vm0, %v4224_v63  ;;  %v4230_v18 = vadd.f32 %v4198_v48, %v10571_v47  ;;  %v4231_v12 = vadd.f32 %v4199_v0, %v10572_v57  ;;  %v4232_v22 = vadd.f32 %v4200_v2, %v10573_v16 }
 0x888   : > { %4257 = vst.msk [vmem:[%s9327_s28 + $0xb0] sm:$0xff] %vm279_vm0, %v4225_v30  ;;  %v4233_v38 = vadd.f32 %v4201_v23, %v10574_v25  ;;  %v4234_v7 = vadd.f32 %v4202_v58, %v10575_v21 }
 0x889   : > { %4258 = vst.msk [vmem:[%s9327_s28 + $0xb8] sm:$0xff] %vm279_vm0, %v4226_v14 }
 0x88a   : > { %4259 = vst.msk [vmem:[%s9327_s28 + $0xc0] sm:$0xff] %vm279_vm0, %v4227_v55 }
 0x88b   : > { %4260 = vst.msk [vmem:[%s9327_s28 + $0xc8] sm:$0xff] %vm279_vm0, %v4228_v59 }
 0x88c   : > { %4261 = vst.msk [vmem:[%s9327_s28 + $0xd0] sm:$0xff] %vm279_vm0, %v4229_v20 }
 0x88d   : > { %4262 = vst.msk [vmem:[%s9327_s28 + $0xd8] sm:$0xff] %vm279_vm0, %v4230_v18 }
 0x88e   : > { %4263 = vst.msk [vmem:[%s9327_s28 + $0xe0] sm:$0xff] %vm279_vm0, %v4231_v12 }
 0x88f   : > { %4264 = vst.msk [vmem:[%s9327_s28 + $0xe8] sm:$0xff] %vm279_vm0, %v4232_v22 }
 0x890   : > { %4265 = vst.msk [vmem:[%s9327_s28 + $0xf0] sm:$0xff] %vm279_vm0, %v4233_v38 }
 0x891   : > { %4266 = vst.msk [vmem:[%s9327_s28 + $0xf8] sm:$0xff] %vm279_vm0, %v4234_v7 }
 0x892 PF: > { %s17_s24 = sadd.s32 1, %s4506_s24  }
 0x893   : > { %p14_p4 = scmp.ge.s32.totalorder %s17_s24, 4  }
 0x895   :  { %16 = sbr.rel (!%p14_p4) target bundleno = 1 (0x1), region = 82 }

</bundles_post_ra>
